<compile_context>
chip_gen: v7x
topology: tpu7x:2x2x1
jax: 0.10.0
libtpu: 0.0.40
codegen_flags: <defaults>
</compile_context>

<pallas_src>
import functools

import jax
import jax.numpy as jnp
from jax import lax
from jax.experimental import pallas as pl
from jax.experimental.pallas import tpu as pltpu


# ----------------------------------------------------------------------------
# Pallas kernel: one bidirectional LSTM layer (output = fwd_h + bwd_h).
# ----------------------------------------------------------------------------
def _bilstm_layer_kernel(x_ref, w_ih_ref, w_hh_f_ref, w_hh_b_ref, b_ref,
                         out_ref, xp_ref, *,
                         seq_len, b_tile, hidden, final_leaky_relu):
    """x_ref   : (T*B, D)  rows ordered t*B + b (time-major within the tile)
       w_ih_ref: (D, 8H)   [W_ih_fwd | W_ih_bwd], pre-transposed
       w_hh_*  : (H, 4H)   recurrent weights, pre-transposed
       b_ref   : (1, 8H)   b_ih + b_hh for both directions
       out_ref : (T*B, H)  fwd_h[t] + bwd_h[t]   (the split+sum of the module)
       xp_ref  : VMEM scratch (T*B, 8H) — fused input projections
    """
    T, B, H = seq_len, b_tile, hidden

    # Fused input projection: every timestep, both directions, one MXU matmul.
    xp_ref[...] = (
        jnp.dot(x_ref[...], w_ih_ref[...], preferred_element_type=jnp.float32)
        + b_ref[...])

    # Output accumulates: fwd writes rows of time t, bwd rows of time T-1-t.
    out_ref[...] = jnp.zeros_like(out_ref)

    # Hoist recurrent weights out of the sequential loop.
    w_hh_f = w_hh_f_ref[...]
    w_hh_b = w_hh_b_ref[...]

    def cell(gates, c_prev):
        i = jax.nn.sigmoid(gates[:, 0 * H:1 * H])
        f = jax.nn.sigmoid(gates[:, 1 * H:2 * H])
        g = jnp.tanh(gates[:, 2 * H:3 * H])
        o = jax.nn.sigmoid(gates[:, 3 * H:4 * H])
        c = f * c_prev + i * g
        h = o * jnp.tanh(c)
        return h, c

    def step(t, carry):
        h_f, c_f, h_b, c_b = carry
        rf = pl.multiple_of(t * B, B)              # rows of fwd timestep t
        rb = pl.multiple_of((T - 1 - t) * B, B)    # rows of bwd timestep T-1-t

        xp_f = xp_ref[pl.ds(rf, B), :]             # (B, 8H)
        xp_b = xp_ref[pl.ds(rb, B), :]

        gates_f = xp_f[:, :4 * H] + jnp.dot(
            h_f, w_hh_f, preferred_element_type=jnp.float32)
        gates_b = xp_b[:, 4 * H:] + jnp.dot(
            h_b, w_hh_b, preferred_element_type=jnp.float32)

        h_f, c_f = cell(gates_f, c_f)
        h_b, c_b = cell(gates_b, c_b)

        out_ref[pl.ds(rf, B), :] = out_ref[pl.ds(rf, B), :] + h_f
        out_ref[pl.ds(rb, B), :] = out_ref[pl.ds(rb, B), :] + h_b
        return h_f, c_f, h_b, c_b

    zeros = jnp.zeros((B, H), jnp.float32)
    lax.fori_loop(0, T, step, (zeros, zeros, zeros, zeros),
                  unroll=(T <= 16))

    if final_leaky_relu:
        y = out_ref[...]
        out_ref[...] = jnp.where(y > 0, y, 0.01 * y)


# ----------------------------------------------------------------------------
# Wrappers
# ----------------------------------------------------------------------------
def _round_up(x, m):
    return (x + m - 1) // m * m


def _pack_layer(p):
    """PyTorch-layout params -> kernel layout (pre-transposed, fused, pre-summed)."""
    w_ih = jnp.concatenate([p["w_ih_f"].T, p["w_ih_b"].T], axis=1)      # (D, 8H)
    w_hh_f = p["w_hh_f"].T                                              # (H, 4H)
    w_hh_b = p["w_hh_b"].T                                              # (H, 4H)
    b = jnp.concatenate([p["b_ih_f"] + p["b_hh_f"],
                         p["b_ih_b"] + p["b_hh_b"]])[None, :]           # (1, 8H)
    return w_ih, w_hh_f, w_hh_b, b


def _bilstm_layer(x, layer_params, *, final_leaky_relu):
    """x: (B, T, D) float32 -> (B, T, H) = fwd + bwd hidden states."""
    B, T, D = x.shape
    H = layer_params["w_hh_f"].shape[1]
    w_ih, w_hh_f, w_hh_b, b = _pack_layer(layer_params)

    b_tile = min(128, _round_up(B, 8))     # full sublanes, aligned pl.ds starts
    B_pad = _round_up(B, b_tile)
    n_tiles = B_pad // b_tile
    TB = T * b_tile

    # (B, T, D) -> (n_tiles, T*b_tile, D), rows within a tile = t*b_tile + b.
    xt = jnp.pad(x, ((0, B_pad - B), (0, 0), (0, 0)))
    xt = xt.reshape(n_tiles, b_tile, T, D).transpose(0, 2, 1, 3)
    xt = xt.reshape(n_tiles, TB, D)

    kernel = functools.partial(
        _bilstm_layer_kernel, seq_len=T, b_tile=b_tile, hidden=H,
        final_leaky_relu=final_leaky_relu)

    out = pl.pallas_call(
        kernel,
        out_shape=jax.ShapeDtypeStruct((n_tiles, TB, H), jnp.float32),
        grid_spec=pltpu.PrefetchScalarGridSpec(
            num_scalar_prefetch=0,
            grid=(n_tiles,),
            in_specs=[
                pl.BlockSpec((None, TB, D), lambda i: (i, 0, 0)),
                pl.BlockSpec((D, 8 * H), lambda i: (0, 0)),
                pl.BlockSpec((H, 4 * H), lambda i: (0, 0)),
                pl.BlockSpec((H, 4 * H), lambda i: (0, 0)),
                pl.BlockSpec((1, 8 * H), lambda i: (0, 0)),
            ],
            out_specs=pl.BlockSpec((None, TB, H), lambda i: (i, 0, 0)),
            scratch_shapes=[pltpu.VMEM((TB, 8 * H), jnp.float32)],
        ),
        compiler_params=pltpu.CompilerParams(
            dimension_semantics=("parallel",)),
    )(xt, w_ih, w_hh_f, w_hh_b, b)

    # (n_tiles, T*b_tile, H) -> (B, T, H)
    out = out.reshape(n_tiles, T, b_tile, H).transpose(0, 2, 1, 3)
    out = out.reshape(B_pad, T, H)
    return out[:B]


def bi_lstm_standard(x, params):
    """Forward pass of Bi_LSTM_Standard (inference: dropout = identity)."""
    h = x
    n_layers = len(params)
    for li in range(n_layers):
        h = _bilstm_layer(h, params[f"layer{li}"],
                          final_leaky_relu=(li == n_layers - 1))
    return h


# ----------------------------------------------------------------------------
# Parameter init (PyTorch LSTM layout: w_ih (4H, D), w_hh (4H, H), gate order
# i, f, g, o; uniform(-1/sqrt(H), 1/sqrt(H))).
# ----------------------------------------------------------------------------
def init_params(key, input_dim, num_hidden):
    layer_dims = [(input_dim, num_hidden),
                  (num_hidden, 2 * num_hidden),
                  (2 * num_hidden, num_hidden)]
    params = {}
    for li, (d_in, hid) in enumerate(layer_dims):
        bound = 1.0 / (hid ** 0.5)
        shapes = {
            "w_ih_f": (4 * hid, d_in), "w_hh_f": (4 * hid, hid),
            "b_ih_f": (4 * hid,), "b_hh_f": (4 * hid,),
            "w_ih_b": (4 * hid, d_in), "w_hh_b": (4 * hid, hid),
            "b_ih_b": (4 * hid,), "b_hh_b": (4 * hid,),
        }
        key, *ks = jax.random.split(key, len(shapes) + 1)
        params[f"layer{li}"] = {
            name: jax.random.uniform(k, shape, minval=-bound, maxval=bound,
                                     dtype=jnp.float32)
            for (name, shape), k in zip(shapes.items(), ks)}
    return params


# ----------------------------------------------------------------------------
# Pure-JAX reference mirroring the PyTorch forward (eval mode).
# ----------------------------------------------------------------------------
def _lstm_direction_ref(x, w_ih, w_hh, b_ih, b_hh, reverse):
    Bn, _, _ = x.shape
    H = w_hh.shape[1]
    xs = jnp.swapaxes(x, 0, 1)                       # (T, B, D)
    if reverse:
        xs = xs[::-1]

    def step(carry, xt):
        h, c = carry
        gates = xt @ w_ih.T + b_ih + h @ w_hh.T + b_hh
        i, f, g, o = jnp.split(gates, 4, axis=-1)
        c = jax.nn.sigmoid(f) * c + jax.nn.sigmoid(i) * jnp.tanh(g)
        h = jax.nn.sigmoid(o) * jnp.tanh(c)
        return (h, c), h

    init = (jnp.zeros((Bn, H), jnp.float32), jnp.zeros((Bn, H), jnp.float32))
    _, hs = lax.scan(step, init, xs)
    if reverse:
        hs = hs[::-1]
    return jnp.swapaxes(hs, 0, 1)                    # (B, T, H)


def bi_lstm_standard_ref(x, params):
    h = x
    for li in range(len(params)):
        p = params[f"layer{li}"]
        fwd = _lstm_direction_ref(h, p["w_ih_f"], p["w_hh_f"],
                                  p["b_ih_f"], p["b_hh_f"], reverse=False)
        bwd = _lstm_direction_ref(h, p["w_ih_b"], p["w_hh_b"],
                                  p["b_ih_b"], p["b_hh_b"], reverse=True)
        h = fwd + bwd        # torch.split(out, out.shape[2]//2, 2)[0] + [1]
    return jnp.where(h > 0, h, 0.01 * h)             # F.leaky_relu, slope 0.01


# ----------------------------------------------------------------------------
if __name__ == "__main__":
    batch, time_length, input_dim, num_hidden = 2, 8, 4, 32

    key = jax.random.PRNGKey(0)
    kx, kp = jax.random.split(key)
    x = jax.random.normal(kx, (batch, time_length, input_dim),
                          dtype=jnp.float32)
    params = init_params(kp, input_dim, num_hidden)

    fwd = jax.jit(bi_lstm_standard)
    out = jax.block_until_ready(fwd(x, params))

    ref = bi_lstm_standard_ref(x, params)
    assert out.shape == (batch, time_length, num_hidden), out.shape
    # Slightly relaxed tolerance: sigmoid/tanh lowering differs marginally
    # between Pallas (EUP) and XLA:TPU, compounded over 3 recurrent layers.
    assert jnp.allclose(out, ref, atol=1e-4, rtol=1e-4), \
        f"max abs err {jnp.max(jnp.abs(out - ref))}"

    print("KERNEL_OK")
</pallas_src>

<mosaic_0001>
module attributes {stable_mosaic.version = 11 : i64} {
  func.func @_bilstm_layer_kernel(%arg0: i32, %arg1: memref<1x64x4xf32, #tpu.memory_space<vmem>>, %arg2: memref<4x256xf32, #tpu.memory_space<vmem>>, %arg3: memref<32x128xf32, #tpu.memory_space<vmem>>, %arg4: memref<32x128xf32, #tpu.memory_space<vmem>>, %arg5: memref<1x256xf32, #tpu.memory_space<vmem>>, %arg6: memref<1x64x32xf32, #tpu.memory_space<vmem>>, %arg7: memref<64x256xf32, #tpu.memory_space<vmem>>) attributes {dimension_semantics = [#tpu.dimension_semantics<parallel>], iteration_bounds = array<i64: 1>, scalar_prefetch = 0 : i64, scratch_operands = 1 : i64, tpu.core_type = #tpu.core_type<tc>, window_params = [{transform_indices = @transform_0, window_bounds = array<i64: 1, 64, 4>}, {pipeline_mode = #tpu.pipeline_mode<synchronous>, transform_indices = @transform_1, window_bounds = array<i64: 4, 256>}, {pipeline_mode = #tpu.pipeline_mode<synchronous>, transform_indices = @transform_2, window_bounds = array<i64: 32, 128>}, {pipeline_mode = #tpu.pipeline_mode<synchronous>, transform_indices = @transform_3, window_bounds = array<i64: 32, 128>}, {pipeline_mode = #tpu.pipeline_mode<synchronous>, transform_indices = @transform_4, window_bounds = array<i64: 1, 256>}, {transform_indices = @transform_5, window_bounds = array<i64: 1, 64, 32>}]} {
    %c0 = arith.constant 0 : index
    %c0_0 = arith.constant 0 : index
    %c0_1 = arith.constant 0 : index
    %0 = vector.load %arg1[%c0, %c0_0, %c0_1] : memref<1x64x4xf32, #tpu.memory_space<vmem>>, vector<1x64x4xf32>
    %1 = vector.shape_cast %0 : vector<1x64x4xf32> to vector<64x4xf32>
    %c0_2 = arith.constant 0 : index
    %c0_3 = arith.constant 0 : index
    %2 = vector.load %arg2[%c0_2, %c0_3] : memref<4x256xf32, #tpu.memory_space<vmem>>, vector<4x256xf32>
    %cst = arith.constant dense<0.000000e+00> : vector<64x256xf32>
    %3 = tpu.matmul %1, %2, %cst {dimension_numbers = #tpu.dot_dimension_numbers<[1], [0], [0], [1], [0, 0, 1, 1], [], []>} : vector<64x4xf32>, vector<4x256xf32>, vector<64x256xf32> -> vector<64x256xf32>
    %c0_4 = arith.constant 0 : index
    %c0_5 = arith.constant 0 : index
    %4 = vector.load %arg5[%c0_4, %c0_5] : memref<1x256xf32, #tpu.memory_space<vmem>>, vector<1x256xf32>
    %5 = vector.broadcast %4 : vector<1x256xf32> to vector<64x256xf32>
    %6 = arith.addf %3, %5 : vector<64x256xf32>
    %c0_6 = arith.constant 0 : index
    %c0_7 = arith.constant 0 : index
    %7 = vector.load %arg7[%c0_6, %c0_7] : memref<64x256xf32, #tpu.memory_space<vmem>>, vector<64x256xf32>
    tpu.vector_store %arg7[%c0_6, %c0_7], %6 {strides = array<i32>} : memref<64x256xf32, #tpu.memory_space<vmem>>, vector<64x256xf32>,
    %cst_8 = arith.constant 0.000000e+00 : f32
    %8 = vector.broadcast %cst_8 : f32 to vector<64x32xf32>
    %c0_9 = arith.constant 0 : index
    %c0_10 = arith.constant 0 : index
    %c0_11 = arith.constant 0 : index
    %9 = vector.load %arg6[%c0_9, %c0_10, %c0_11] : memref<1x64x32xf32, #tpu.memory_space<vmem>>, vector<1x64x32xf32>
    %10 = vector.shape_cast %9 : vector<1x64x32xf32> to vector<64x32xf32>
    %11 = vector.shape_cast %8 : vector<64x32xf32> to vector<1x64x32xf32>
    tpu.vector_store %arg6[%c0_9, %c0_10, %c0_11], %11 {strides = array<i32>} : memref<1x64x32xf32, #tpu.memory_space<vmem>>, vector<1x64x32xf32>,
    %c0_12 = arith.constant 0 : index
    %c0_13 = arith.constant 0 : index
    %12 = vector.load %arg3[%c0_12, %c0_13] : memref<32x128xf32, #tpu.memory_space<vmem>>, vector<32x128xf32>
    %c0_14 = arith.constant 0 : index
    %c0_15 = arith.constant 0 : index
    %13 = vector.load %arg4[%c0_14, %c0_15] : memref<32x128xf32, #tpu.memory_space<vmem>>, vector<32x128xf32>
    %cst_16 = arith.constant 0.000000e+00 : f32
    %14 = vector.broadcast %cst_16 : f32 to vector<8x32xf32>
    %c0_i32 = arith.constant 0 : i32
    %c8_i32 = arith.constant 8 : i32
    %15 = arith.muli %c0_i32, %c8_i32 : i32
    %16 = tpu.assume_multiple %15, 8 : i32
    %c7_i32 = arith.constant 7 : i32
    %17 = arith.subi %c7_i32, %c0_i32 : i32
    %c8_i32_17 = arith.constant 8 : i32
    %18 = arith.muli %17, %c8_i32_17 : i32
    %19 = tpu.assume_multiple %18, 8 : i32
    %20 = arith.index_cast %16 : i32 to index
    %c0_18 = arith.constant 0 : index
    %21 = vector.load %arg7[%20, %c0_18] : memref<64x256xf32, #tpu.memory_space<vmem>>, vector<8x256xf32>
    %22 = arith.index_cast %19 : i32 to index
    %c0_19 = arith.constant 0 : index
    %23 = vector.load %arg7[%22, %c0_19] : memref<64x256xf32, #tpu.memory_space<vmem>>, vector<8x256xf32>
    %24 = vector.extract_strided_slice %21 {offsets = [0, 0], sizes = [8, 128], strides = [1, 1]} : vector<8x256xf32> to vector<8x128xf32>
    %cst_20 = arith.constant dense<0.000000e+00> : vector<8x128xf32>
    %25 = tpu.matmul %14, %12, %cst_20 {dimension_numbers = #tpu.dot_dimension_numbers<[1], [0], [0], [1], [0, 0, 1, 1], [], []>} : vector<8x32xf32>, vector<32x128xf32>, vector<8x128xf32> -> vector<8x128xf32>
    %26 = arith.addf %24, %25 : vector<8x128xf32>
    %27 = vector.extract_strided_slice %23 {offsets = [0, 128], sizes = [8, 128], strides = [1, 1]} : vector<8x256xf32> to vector<8x128xf32>
    %cst_21 = arith.constant dense<0.000000e+00> : vector<8x128xf32>
    %28 = tpu.matmul %14, %13, %cst_21 {dimension_numbers = #tpu.dot_dimension_numbers<[1], [0], [0], [1], [0, 0, 1, 1], [], []>} : vector<8x32xf32>, vector<32x128xf32>, vector<8x128xf32> -> vector<8x128xf32>
    %29 = arith.addf %27, %28 : vector<8x128xf32>
    %30 = vector.extract_strided_slice %26 {offsets = [0, 0], sizes = [8, 32], strides = [1, 1]} : vector<8x128xf32> to vector<8x32xf32>
    %31 = arith.negf %30 : vector<8x32xf32>
    %32 = math.exp %31 : vector<8x32xf32>
    %cst_22 = arith.constant 1.000000e+00 : f32
    %33 = vector.broadcast %cst_22 : f32 to vector<8x32xf32>
    %34 = arith.addf %33, %32 : vector<8x32xf32>
    %35 = arith.divf %33, %34 : vector<8x32xf32>
    %36 = vector.extract_strided_slice %26 {offsets = [0, 32], sizes = [8, 32], strides = [1, 1]} : vector<8x128xf32> to vector<8x32xf32>
    %37 = arith.negf %36 : vector<8x32xf32>
    %38 = math.exp %37 : vector<8x32xf32>
    %cst_23 = arith.constant 1.000000e+00 : f32
    %39 = vector.broadcast %cst_23 : f32 to vector<8x32xf32>
    %40 = arith.addf %39, %38 : vector<8x32xf32>
    %41 = arith.divf %39, %40 : vector<8x32xf32>
    %42 = vector.extract_strided_slice %26 {offsets = [0, 64], sizes = [8, 32], strides = [1, 1]} : vector<8x128xf32> to vector<8x32xf32>
    %43 = math.tanh %42 : vector<8x32xf32>
    %44 = vector.extract_strided_slice %26 {offsets = [0, 96], sizes = [8, 32], strides = [1, 1]} : vector<8x128xf32> to vector<8x32xf32>
    %45 = arith.negf %44 : vector<8x32xf32>
    %46 = math.exp %45 : vector<8x32xf32>
    %cst_24 = arith.constant 1.000000e+00 : f32
    %47 = vector.broadcast %cst_24 : f32 to vector<8x32xf32>
    %48 = arith.addf %47, %46 : vector<8x32xf32>
    %49 = arith.divf %47, %48 : vector<8x32xf32>
    %50 = arith.mulf %41, %14 : vector<8x32xf32>
    %51 = arith.mulf %35, %43 : vector<8x32xf32>
    %52 = arith.addf %50, %51 : vector<8x32xf32>
    %53 = math.tanh %52 : vector<8x32xf32>
    %54 = arith.mulf %49, %53 : vector<8x32xf32>
    %55 = vector.extract_strided_slice %29 {offsets = [0, 0], sizes = [8, 32], strides = [1, 1]} : vector<8x128xf32> to vector<8x32xf32>
    %56 = arith.negf %55 : vector<8x32xf32>
    %57 = math.exp %56 : vector<8x32xf32>
    %cst_25 = arith.constant 1.000000e+00 : f32
    %58 = vector.broadcast %cst_25 : f32 to vector<8x32xf32>
    %59 = arith.addf %58, %57 : vector<8x32xf32>
    %60 = arith.divf %58, %59 : vector<8x32xf32>
    %61 = vector.extract_strided_slice %29 {offsets = [0, 32], sizes = [8, 32], strides = [1, 1]} : vector<8x128xf32> to vector<8x32xf32>
    %62 = arith.negf %61 : vector<8x32xf32>
    %63 = math.exp %62 : vector<8x32xf32>
    %cst_26 = arith.constant 1.000000e+00 : f32
    %64 = vector.broadcast %cst_26 : f32 to vector<8x32xf32>
    %65 = arith.addf %64, %63 : vector<8x32xf32>
    %66 = arith.divf %64, %65 : vector<8x32xf32>
    %67 = vector.extract_strided_slice %29 {offsets = [0, 64], sizes = [8, 32], strides = [1, 1]} : vector<8x128xf32> to vector<8x32xf32>
    %68 = math.tanh %67 : vector<8x32xf32>
    %69 = vector.extract_strided_slice %29 {offsets = [0, 96], sizes = [8, 32], strides = [1, 1]} : vector<8x128xf32> to vector<8x32xf32>
    %70 = arith.negf %69 : vector<8x32xf32>
    %71 = math.exp %70 : vector<8x32xf32>
    %cst_27 = arith.constant 1.000000e+00 : f32
    %72 = vector.broadcast %cst_27 : f32 to vector<8x32xf32>
    %73 = arith.addf %72, %71 : vector<8x32xf32>
    %74 = arith.divf %72, %73 : vector<8x32xf32>
    %75 = arith.mulf %66, %14 : vector<8x32xf32>
    %76 = arith.mulf %60, %68 : vector<8x32xf32>
    %77 = arith.addf %75, %76 : vector<8x32xf32>
    %78 = math.tanh %77 : vector<8x32xf32>
    %79 = arith.mulf %74, %78 : vector<8x32xf32>
    %c0_28 = arith.constant 0 : index
    %80 = arith.index_cast %16 : i32 to index
    %c0_29 = arith.constant 0 : index
    %81 = vector.load %arg6[%c0_28, %80, %c0_29] : memref<1x64x32xf32, #tpu.memory_space<vmem>>, vector<1x8x32xf32>
    %82 = vector.shape_cast %81 : vector<1x8x32xf32> to vector<8x32xf32>
    %83 = arith.addf %82, %54 : vector<8x32xf32>
    %c0_30 = arith.constant 0 : index
    %84 = arith.index_cast %16 : i32 to index
    %c0_31 = arith.constant 0 : index
    %85 = vector.load %arg6[%c0_30, %84, %c0_31] : memref<1x64x32xf32, #tpu.memory_space<vmem>>, vector<1x8x32xf32>
    %86 = vector.shape_cast %85 : vector<1x8x32xf32> to vector<8x32xf32>
    %87 = vector.shape_cast %83 : vector<8x32xf32> to vector<1x8x32xf32>
    tpu.vector_store %arg6[%c0_30, %84, %c0_31], %87 {strides = array<i32>} : memref<1x64x32xf32, #tpu.memory_space<vmem>>, vector<1x8x32xf32>,
    %c0_32 = arith.constant 0 : index
    %88 = arith.index_cast %19 : i32 to index
    %c0_33 = arith.constant 0 : index
    %89 = vector.load %arg6[%c0_32, %88, %c0_33] : memref<1x64x32xf32, #tpu.memory_space<vmem>>, vector<1x8x32xf32>
    %90 = vector.shape_cast %89 : vector<1x8x32xf32> to vector<8x32xf32>
    %91 = arith.addf %90, %79 : vector<8x32xf32>
    %c0_34 = arith.constant 0 : index
    %92 = arith.index_cast %19 : i32 to index
    %c0_35 = arith.constant 0 : index
    %93 = vector.load %arg6[%c0_34, %92, %c0_35] : memref<1x64x32xf32, #tpu.memory_space<vmem>>, vector<1x8x32xf32>
    %94 = vector.shape_cast %93 : vector<1x8x32xf32> to vector<8x32xf32>
    %95 = vector.shape_cast %91 : vector<8x32xf32> to vector<1x8x32xf32>
    tpu.vector_store %arg6[%c0_34, %92, %c0_35], %95 {strides = array<i32>} : memref<1x64x32xf32, #tpu.memory_space<vmem>>, vector<1x8x32xf32>,
    %c1_i32 = arith.constant 1 : i32
    %c8_i32_36 = arith.constant 8 : i32
    %96 = arith.muli %c1_i32, %c8_i32_36 : i32
    %97 = tpu.assume_multiple %96, 8 : i32
    %c7_i32_37 = arith.constant 7 : i32
    %98 = arith.subi %c7_i32_37, %c1_i32 : i32
    %c8_i32_38 = arith.constant 8 : i32
    %99 = arith.muli %98, %c8_i32_38 : i32
    %100 = tpu.assume_multiple %99, 8 : i32
    %101 = arith.index_cast %97 : i32 to index
    %c0_39 = arith.constant 0 : index
    %102 = vector.load %arg7[%101, %c0_39] : memref<64x256xf32, #tpu.memory_space<vmem>>, vector<8x256xf32>
    %103 = arith.index_cast %100 : i32 to index
    %c0_40 = arith.constant 0 : index
    %104 = vector.load %arg7[%103, %c0_40] : memref<64x256xf32, #tpu.memory_space<vmem>>, vector<8x256xf32>
    %105 = vector.extract_strided_slice %102 {offsets = [0, 0], sizes = [8, 128], strides = [1, 1]} : vector<8x256xf32> to vector<8x128xf32>
    %cst_41 = arith.constant dense<0.000000e+00> : vector<8x128xf32>
    %106 = tpu.matmul %54, %12, %cst_41 {dimension_numbers = #tpu.dot_dimension_numbers<[1], [0], [0], [1], [0, 0, 1, 1], [], []>} : vector<8x32xf32>, vector<32x128xf32>, vector<8x128xf32> -> vector<8x128xf32>
    %107 = arith.addf %105, %106 : vector<8x128xf32>
    %108 = vector.extract_strided_slice %104 {offsets = [0, 128], sizes = [8, 128], strides = [1, 1]} : vector<8x256xf32> to vector<8x128xf32>
    %cst_42 = arith.constant dense<0.000000e+00> : vector<8x128xf32>
    %109 = tpu.matmul %79, %13, %cst_42 {dimension_numbers = #tpu.dot_dimension_numbers<[1], [0], [0], [1], [0, 0, 1, 1], [], []>} : vector<8x32xf32>, vector<32x128xf32>, vector<8x128xf32> -> vector<8x128xf32>
    %110 = arith.addf %108, %109 : vector<8x128xf32>
    %111 = vector.extract_strided_slice %107 {offsets = [0, 0], sizes = [8, 32], strides = [1, 1]} : vector<8x128xf32> to vector<8x32xf32>
    %112 = arith.negf %111 : vector<8x32xf32>
    %113 = math.exp %112 : vector<8x32xf32>
    %cst_43 = arith.constant 1.000000e+00 : f32
    %114 = vector.broadcast %cst_43 : f32 to vector<8x32xf32>
    %115 = arith.addf %114, %113 : vector<8x32xf32>
    %116 = arith.divf %114, %115 : vector<8x32xf32>
    %117 = vector.extract_strided_slice %107 {offsets = [0, 32], sizes = [8, 32], strides = [1, 1]} : vector<8x128xf32> to vector<8x32xf32>
    %118 = arith.negf %117 : vector<8x32xf32>
    %119 = math.exp %118 : vector<8x32xf32>
    %cst_44 = arith.constant 1.000000e+00 : f32
    %120 = vector.broadcast %cst_44 : f32 to vector<8x32xf32>
    %121 = arith.addf %120, %119 : vector<8x32xf32>
    %122 = arith.divf %120, %121 : vector<8x32xf32>
    %123 = vector.extract_strided_slice %107 {offsets = [0, 64], sizes = [8, 32], strides = [1, 1]} : vector<8x128xf32> to vector<8x32xf32>
    %124 = math.tanh %123 : vector<8x32xf32>
    %125 = vector.extract_strided_slice %107 {offsets = [0, 96], sizes = [8, 32], strides = [1, 1]} : vector<8x128xf32> to vector<8x32xf32>
    %126 = arith.negf %125 : vector<8x32xf32>
    %127 = math.exp %126 : vector<8x32xf32>
    %cst_45 = arith.constant 1.000000e+00 : f32
    %128 = vector.broadcast %cst_45 : f32 to vector<8x32xf32>
    %129 = arith.addf %128, %127 : vector<8x32xf32>
    %130 = arith.divf %128, %129 : vector<8x32xf32>
    %131 = arith.mulf %122, %52 : vector<8x32xf32>
    %132 = arith.mulf %116, %124 : vector<8x32xf32>
    %133 = arith.addf %131, %132 : vector<8x32xf32>
    %134 = math.tanh %133 : vector<8x32xf32>
    %135 = arith.mulf %130, %134 : vector<8x32xf32>
    %136 = vector.extract_strided_slice %110 {offsets = [0, 0], sizes = [8, 32], strides = [1, 1]} : vector<8x128xf32> to vector<8x32xf32>
    %137 = arith.negf %136 : vector<8x32xf32>
    %138 = math.exp %137 : vector<8x32xf32>
    %cst_46 = arith.constant 1.000000e+00 : f32
    %139 = vector.broadcast %cst_46 : f32 to vector<8x32xf32>
    %140 = arith.addf %139, %138 : vector<8x32xf32>
    %141 = arith.divf %139, %140 : vector<8x32xf32>
    %142 = vector.extract_strided_slice %110 {offsets = [0, 32], sizes = [8, 32], strides = [1, 1]} : vector<8x128xf32> to vector<8x32xf32>
    %143 = arith.negf %142 : vector<8x32xf32>
    %144 = math.exp %143 : vector<8x32xf32>
    %cst_47 = arith.constant 1.000000e+00 : f32
    %145 = vector.broadcast %cst_47 : f32 to vector<8x32xf32>
    %146 = arith.addf %145, %144 : vector<8x32xf32>
    %147 = arith.divf %145, %146 : vector<8x32xf32>
    %148 = vector.extract_strided_slice %110 {offsets = [0, 64], sizes = [8, 32], strides = [1, 1]} : vector<8x128xf32> to vector<8x32xf32>
    %149 = math.tanh %148 : vector<8x32xf32>
    %150 = vector.extract_strided_slice %110 {offsets = [0, 96], sizes = [8, 32], strides = [1, 1]} : vector<8x128xf32> to vector<8x32xf32>
    %151 = arith.negf %150 : vector<8x32xf32>
    %152 = math.exp %151 : vector<8x32xf32>
    %cst_48 = arith.constant 1.000000e+00 : f32
    %153 = vector.broadcast %cst_48 : f32 to vector<8x32xf32>
    %154 = arith.addf %153, %152 : vector<8x32xf32>
    %155 = arith.divf %153, %154 : vector<8x32xf32>
    %156 = arith.mulf %147, %77 : vector<8x32xf32>
    %157 = arith.mulf %141, %149 : vector<8x32xf32>
    %158 = arith.addf %156, %157 : vector<8x32xf32>
    %159 = math.tanh %158 : vector<8x32xf32>
    %160 = arith.mulf %155, %159 : vector<8x32xf32>
    %c0_49 = arith.constant 0 : index
    %161 = arith.index_cast %97 : i32 to index
    %c0_50 = arith.constant 0 : index
    %162 = vector.load %arg6[%c0_49, %161, %c0_50] : memref<1x64x32xf32, #tpu.memory_space<vmem>>, vector<1x8x32xf32>
    %163 = vector.shape_cast %162 : vector<1x8x32xf32> to vector<8x32xf32>
    %164 = arith.addf %163, %135 : vector<8x32xf32>
    %c0_51 = arith.constant 0 : index
    %165 = arith.index_cast %97 : i32 to index
    %c0_52 = arith.constant 0 : index
    %166 = vector.load %arg6[%c0_51, %165, %c0_52] : memref<1x64x32xf32, #tpu.memory_space<vmem>>, vector<1x8x32xf32>
    %167 = vector.shape_cast %166 : vector<1x8x32xf32> to vector<8x32xf32>
    %168 = vector.shape_cast %164 : vector<8x32xf32> to vector<1x8x32xf32>
    tpu.vector_store %arg6[%c0_51, %165, %c0_52], %168 {strides = array<i32>} : memref<1x64x32xf32, #tpu.memory_space<vmem>>, vector<1x8x32xf32>,
    %c0_53 = arith.constant 0 : index
    %169 = arith.index_cast %100 : i32 to index
    %c0_54 = arith.constant 0 : index
    %170 = vector.load %arg6[%c0_53, %169, %c0_54] : memref<1x64x32xf32, #tpu.memory_space<vmem>>, vector<1x8x32xf32>
    %171 = vector.shape_cast %170 : vector<1x8x32xf32> to vector<8x32xf32>
    %172 = arith.addf %171, %160 : vector<8x32xf32>
    %c0_55 = arith.constant 0 : index
    %173 = arith.index_cast %100 : i32 to index
    %c0_56 = arith.constant 0 : index
    %174 = vector.load %arg6[%c0_55, %173, %c0_56] : memref<1x64x32xf32, #tpu.memory_space<vmem>>, vector<1x8x32xf32>
    %175 = vector.shape_cast %174 : vector<1x8x32xf32> to vector<8x32xf32>
    %176 = vector.shape_cast %172 : vector<8x32xf32> to vector<1x8x32xf32>
    tpu.vector_store %arg6[%c0_55, %173, %c0_56], %176 {strides = array<i32>} : memref<1x64x32xf32, #tpu.memory_space<vmem>>, vector<1x8x32xf32>,
    %c2_i32 = arith.constant 2 : i32
    %c8_i32_57 = arith.constant 8 : i32
    %177 = arith.muli %c2_i32, %c8_i32_57 : i32
    %178 = tpu.assume_multiple %177, 8 : i32
    %c7_i32_58 = arith.constant 7 : i32
    %179 = arith.subi %c7_i32_58, %c2_i32 : i32
    %c8_i32_59 = arith.constant 8 : i32
    %180 = arith.muli %179, %c8_i32_59 : i32
    %181 = tpu.assume_multiple %180, 8 : i32
    %182 = arith.index_cast %178 : i32 to index
    %c0_60 = arith.constant 0 : index
    %183 = vector.load %arg7[%182, %c0_60] : memref<64x256xf32, #tpu.memory_space<vmem>>, vector<8x256xf32>
    %184 = arith.index_cast %181 : i32 to index
    %c0_61 = arith.constant 0 : index
    %185 = vector.load %arg7[%184, %c0_61] : memref<64x256xf32, #tpu.memory_space<vmem>>, vector<8x256xf32>
    %186 = vector.extract_strided_slice %183 {offsets = [0, 0], sizes = [8, 128], strides = [1, 1]} : vector<8x256xf32> to vector<8x128xf32>
    %cst_62 = arith.constant dense<0.000000e+00> : vector<8x128xf32>
    %187 = tpu.matmul %135, %12, %cst_62 {dimension_numbers = #tpu.dot_dimension_numbers<[1], [0], [0], [1], [0, 0, 1, 1], [], []>} : vector<8x32xf32>, vector<32x128xf32>, vector<8x128xf32> -> vector<8x128xf32>
    %188 = arith.addf %186, %187 : vector<8x128xf32>
    %189 = vector.extract_strided_slice %185 {offsets = [0, 128], sizes = [8, 128], strides = [1, 1]} : vector<8x256xf32> to vector<8x128xf32>
    %cst_63 = arith.constant dense<0.000000e+00> : vector<8x128xf32>
    %190 = tpu.matmul %160, %13, %cst_63 {dimension_numbers = #tpu.dot_dimension_numbers<[1], [0], [0], [1], [0, 0, 1, 1], [], []>} : vector<8x32xf32>, vector<32x128xf32>, vector<8x128xf32> -> vector<8x128xf32>
    %191 = arith.addf %189, %190 : vector<8x128xf32>
    %192 = vector.extract_strided_slice %188 {offsets = [0, 0], sizes = [8, 32], strides = [1, 1]} : vector<8x128xf32> to vector<8x32xf32>
    %193 = arith.negf %192 : vector<8x32xf32>
    %194 = math.exp %193 : vector<8x32xf32>
    %cst_64 = arith.constant 1.000000e+00 : f32
    %195 = vector.broadcast %cst_64 : f32 to vector<8x32xf32>
    %196 = arith.addf %195, %194 : vector<8x32xf32>
    %197 = arith.divf %195, %196 : vector<8x32xf32>
    %198 = vector.extract_strided_slice %188 {offsets = [0, 32], sizes = [8, 32], strides = [1, 1]} : vector<8x128xf32> to vector<8x32xf32>
    %199 = arith.negf %198 : vector<8x32xf32>
    %200 = math.exp %199 : vector<8x32xf32>
    %cst_65 = arith.constant 1.000000e+00 : f32
    %201 = vector.broadcast %cst_65 : f32 to vector<8x32xf32>
    %202 = arith.addf %201, %200 : vector<8x32xf32>
    %203 = arith.divf %201, %202 : vector<8x32xf32>
    %204 = vector.extract_strided_slice %188 {offsets = [0, 64], sizes = [8, 32], strides = [1, 1]} : vector<8x128xf32> to vector<8x32xf32>
    %205 = math.tanh %204 : vector<8x32xf32>
    %206 = vector.extract_strided_slice %188 {offsets = [0, 96], sizes = [8, 32], strides = [1, 1]} : vector<8x128xf32> to vector<8x32xf32>
    %207 = arith.negf %206 : vector<8x32xf32>
    %208 = math.exp %207 : vector<8x32xf32>
    %cst_66 = arith.constant 1.000000e+00 : f32
    %209 = vector.broadcast %cst_66 : f32 to vector<8x32xf32>
    %210 = arith.addf %209, %208 : vector<8x32xf32>
    %211 = arith.divf %209, %210 : vector<8x32xf32>
    %212 = arith.mulf %203, %133 : vector<8x32xf32>
    %213 = arith.mulf %197, %205 : vector<8x32xf32>
    %214 = arith.addf %212, %213 : vector<8x32xf32>
    %215 = math.tanh %214 : vector<8x32xf32>
    %216 = arith.mulf %211, %215 : vector<8x32xf32>
    %217 = vector.extract_strided_slice %191 {offsets = [0, 0], sizes = [8, 32], strides = [1, 1]} : vector<8x128xf32> to vector<8x32xf32>
    %218 = arith.negf %217 : vector<8x32xf32>
    %219 = math.exp %218 : vector<8x32xf32>
    %cst_67 = arith.constant 1.000000e+00 : f32
    %220 = vector.broadcast %cst_67 : f32 to vector<8x32xf32>
    %221 = arith.addf %220, %219 : vector<8x32xf32>
    %222 = arith.divf %220, %221 : vector<8x32xf32>
    %223 = vector.extract_strided_slice %191 {offsets = [0, 32], sizes = [8, 32], strides = [1, 1]} : vector<8x128xf32> to vector<8x32xf32>
    %224 = arith.negf %223 : vector<8x32xf32>
    %225 = math.exp %224 : vector<8x32xf32>
    %cst_68 = arith.constant 1.000000e+00 : f32
    %226 = vector.broadcast %cst_68 : f32 to vector<8x32xf32>
    %227 = arith.addf %226, %225 : vector<8x32xf32>
    %228 = arith.divf %226, %227 : vector<8x32xf32>
    %229 = vector.extract_strided_slice %191 {offsets = [0, 64], sizes = [8, 32], strides = [1, 1]} : vector<8x128xf32> to vector<8x32xf32>
    %230 = math.tanh %229 : vector<8x32xf32>
    %231 = vector.extract_strided_slice %191 {offsets = [0, 96], sizes = [8, 32], strides = [1, 1]} : vector<8x128xf32> to vector<8x32xf32>
    %232 = arith.negf %231 : vector<8x32xf32>
    %233 = math.exp %232 : vector<8x32xf32>
    %cst_69 = arith.constant 1.000000e+00 : f32
    %234 = vector.broadcast %cst_69 : f32 to vector<8x32xf32>
    %235 = arith.addf %234, %233 : vector<8x32xf32>
    %236 = arith.divf %234, %235 : vector<8x32xf32>
    %237 = arith.mulf %228, %158 : vector<8x32xf32>
    %238 = arith.mulf %222, %230 : vector<8x32xf32>
    %239 = arith.addf %237, %238 : vector<8x32xf32>
    %240 = math.tanh %239 : vector<8x32xf32>
    %241 = arith.mulf %236, %240 : vector<8x32xf32>
    %c0_70 = arith.constant 0 : index
    %242 = arith.index_cast %178 : i32 to index
    %c0_71 = arith.constant 0 : index
    %243 = vector.load %arg6[%c0_70, %242, %c0_71] : memref<1x64x32xf32, #tpu.memory_space<vmem>>, vector<1x8x32xf32>
    %244 = vector.shape_cast %243 : vector<1x8x32xf32> to vector<8x32xf32>
    %245 = arith.addf %244, %216 : vector<8x32xf32>
    %c0_72 = arith.constant 0 : index
    %246 = arith.index_cast %178 : i32 to index
    %c0_73 = arith.constant 0 : index
    %247 = vector.load %arg6[%c0_72, %246, %c0_73] : memref<1x64x32xf32, #tpu.memory_space<vmem>>, vector<1x8x32xf32>
    %248 = vector.shape_cast %247 : vector<1x8x32xf32> to vector<8x32xf32>
    %249 = vector.shape_cast %245 : vector<8x32xf32> to vector<1x8x32xf32>
    tpu.vector_store %arg6[%c0_72, %246, %c0_73], %249 {strides = array<i32>} : memref<1x64x32xf32, #tpu.memory_space<vmem>>, vector<1x8x32xf32>,
    %c0_74 = arith.constant 0 : index
    %250 = arith.index_cast %181 : i32 to index
    %c0_75 = arith.constant 0 : index
    %251 = vector.load %arg6[%c0_74, %250, %c0_75] : memref<1x64x32xf32, #tpu.memory_space<vmem>>, vector<1x8x32xf32>
    %252 = vector.shape_cast %251 : vector<1x8x32xf32> to vector<8x32xf32>
    %253 = arith.addf %252, %241 : vector<8x32xf32>
    %c0_76 = arith.constant 0 : index
    %254 = arith.index_cast %181 : i32 to index
    %c0_77 = arith.constant 0 : index
    %255 = vector.load %arg6[%c0_76, %254, %c0_77] : memref<1x64x32xf32, #tpu.memory_space<vmem>>, vector<1x8x32xf32>
    %256 = vector.shape_cast %255 : vector<1x8x32xf32> to vector<8x32xf32>
    %257 = vector.shape_cast %253 : vector<8x32xf32> to vector<1x8x32xf32>
    tpu.vector_store %arg6[%c0_76, %254, %c0_77], %257 {strides = array<i32>} : memref<1x64x32xf32, #tpu.memory_space<vmem>>, vector<1x8x32xf32>,
    %c3_i32 = arith.constant 3 : i32
    %c8_i32_78 = arith.constant 8 : i32
    %258 = arith.muli %c3_i32, %c8_i32_78 : i32
    %259 = tpu.assume_multiple %258, 8 : i32
    %c7_i32_79 = arith.constant 7 : i32
    %260 = arith.subi %c7_i32_79, %c3_i32 : i32
    %c8_i32_80 = arith.constant 8 : i32
    %261 = arith.muli %260, %c8_i32_80 : i32
    %262 = tpu.assume_multiple %261, 8 : i32
    %263 = arith.index_cast %259 : i32 to index
    %c0_81 = arith.constant 0 : index
    %264 = vector.load %arg7[%263, %c0_81] : memref<64x256xf32, #tpu.memory_space<vmem>>, vector<8x256xf32>
    %265 = arith.index_cast %262 : i32 to index
    %c0_82 = arith.constant 0 : index
    %266 = vector.load %arg7[%265, %c0_82] : memref<64x256xf32, #tpu.memory_space<vmem>>, vector<8x256xf32>
    %267 = vector.extract_strided_slice %264 {offsets = [0, 0], sizes = [8, 128], strides = [1, 1]} : vector<8x256xf32> to vector<8x128xf32>
    %cst_83 = arith.constant dense<0.000000e+00> : vector<8x128xf32>
    %268 = tpu.matmul %216, %12, %cst_83 {dimension_numbers = #tpu.dot_dimension_numbers<[1], [0], [0], [1], [0, 0, 1, 1], [], []>} : vector<8x32xf32>, vector<32x128xf32>, vector<8x128xf32> -> vector<8x128xf32>
    %269 = arith.addf %267, %268 : vector<8x128xf32>
    %270 = vector.extract_strided_slice %266 {offsets = [0, 128], sizes = [8, 128], strides = [1, 1]} : vector<8x256xf32> to vector<8x128xf32>
    %cst_84 = arith.constant dense<0.000000e+00> : vector<8x128xf32>
    %271 = tpu.matmul %241, %13, %cst_84 {dimension_numbers = #tpu.dot_dimension_numbers<[1], [0], [0], [1], [0, 0, 1, 1], [], []>} : vector<8x32xf32>, vector<32x128xf32>, vector<8x128xf32> -> vector<8x128xf32>
    %272 = arith.addf %270, %271 : vector<8x128xf32>
    %273 = vector.extract_strided_slice %269 {offsets = [0, 0], sizes = [8, 32], strides = [1, 1]} : vector<8x128xf32> to vector<8x32xf32>
    %274 = arith.negf %273 : vector<8x32xf32>
    %275 = math.exp %274 : vector<8x32xf32>
    %cst_85 = arith.constant 1.000000e+00 : f32
    %276 = vector.broadcast %cst_85 : f32 to vector<8x32xf32>
    %277 = arith.addf %276, %275 : vector<8x32xf32>
    %278 = arith.divf %276, %277 : vector<8x32xf32>
    %279 = vector.extract_strided_slice %269 {offsets = [0, 32], sizes = [8, 32], strides = [1, 1]} : vector<8x128xf32> to vector<8x32xf32>
    %280 = arith.negf %279 : vector<8x32xf32>
    %281 = math.exp %280 : vector<8x32xf32>
    %cst_86 = arith.constant 1.000000e+00 : f32
    %282 = vector.broadcast %cst_86 : f32 to vector<8x32xf32>
    %283 = arith.addf %282, %281 : vector<8x32xf32>
    %284 = arith.divf %282, %283 : vector<8x32xf32>
    %285 = vector.extract_strided_slice %269 {offsets = [0, 64], sizes = [8, 32], strides = [1, 1]} : vector<8x128xf32> to vector<8x32xf32>
    %286 = math.tanh %285 : vector<8x32xf32>
    %287 = vector.extract_strided_slice %269 {offsets = [0, 96], sizes = [8, 32], strides = [1, 1]} : vector<8x128xf32> to vector<8x32xf32>
    %288 = arith.negf %287 : vector<8x32xf32>
    %289 = math.exp %288 : vector<8x32xf32>
    %cst_87 = arith.constant 1.000000e+00 : f32
    %290 = vector.broadcast %cst_87 : f32 to vector<8x32xf32>
    %291 = arith.addf %290, %289 : vector<8x32xf32>
    %292 = arith.divf %290, %291 : vector<8x32xf32>
    %293 = arith.mulf %284, %214 : vector<8x32xf32>
    %294 = arith.mulf %278, %286 : vector<8x32xf32>
    %295 = arith.addf %293, %294 : vector<8x32xf32>
    %296 = math.tanh %295 : vector<8x32xf32>
    %297 = arith.mulf %292, %296 : vector<8x32xf32>
    %298 = vector.extract_strided_slice %272 {offsets = [0, 0], sizes = [8, 32], strides = [1, 1]} : vector<8x128xf32> to vector<8x32xf32>
    %299 = arith.negf %298 : vector<8x32xf32>
    %300 = math.exp %299 : vector<8x32xf32>
    %cst_88 = arith.constant 1.000000e+00 : f32
    %301 = vector.broadcast %cst_88 : f32 to vector<8x32xf32>
    %302 = arith.addf %301, %300 : vector<8x32xf32>
    %303 = arith.divf %301, %302 : vector<8x32xf32>
    %304 = vector.extract_strided_slice %272 {offsets = [0, 32], sizes = [8, 32], strides = [1, 1]} : vector<8x128xf32> to vector<8x32xf32>
    %305 = arith.negf %304 : vector<8x32xf32>
    %306 = math.exp %305 : vector<8x32xf32>
    %cst_89 = arith.constant 1.000000e+00 : f32
    %307 = vector.broadcast %cst_89 : f32 to vector<8x32xf32>
    %308 = arith.addf %307, %306 : vector<8x32xf32>
    %309 = arith.divf %307, %308 : vector<8x32xf32>
    %310 = vector.extract_strided_slice %272 {offsets = [0, 64], sizes = [8, 32], strides = [1, 1]} : vector<8x128xf32> to vector<8x32xf32>
    %311 = math.tanh %310 : vector<8x32xf32>
    %312 = vector.extract_strided_slice %272 {offsets = [0, 96], sizes = [8, 32], strides = [1, 1]} : vector<8x128xf32> to vector<8x32xf32>
    %313 = arith.negf %312 : vector<8x32xf32>
    %314 = math.exp %313 : vector<8x32xf32>
    %cst_90 = arith.constant 1.000000e+00 : f32
    %315 = vector.broadcast %cst_90 : f32 to vector<8x32xf32>
    %316 = arith.addf %315, %314 : vector<8x32xf32>
    %317 = arith.divf %315, %316 : vector<8x32xf32>
    %318 = arith.mulf %309, %239 : vector<8x32xf32>
    %319 = arith.mulf %303, %311 : vector<8x32xf32>
    %320 = arith.addf %318, %319 : vector<8x32xf32>
    %321 = math.tanh %320 : vector<8x32xf32>
    %322 = arith.mulf %317, %321 : vector<8x32xf32>
    %c0_91 = arith.constant 0 : index
    %323 = arith.index_cast %259 : i32 to index
    %c0_92 = arith.constant 0 : index
    %324 = vector.load %arg6[%c0_91, %323, %c0_92] : memref<1x64x32xf32, #tpu.memory_space<vmem>>, vector<1x8x32xf32>
    %325 = vector.shape_cast %324 : vector<1x8x32xf32> to vector<8x32xf32>
    %326 = arith.addf %325, %297 : vector<8x32xf32>
    %c0_93 = arith.constant 0 : index
    %327 = arith.index_cast %259 : i32 to index
    %c0_94 = arith.constant 0 : index
    %328 = vector.load %arg6[%c0_93, %327, %c0_94] : memref<1x64x32xf32, #tpu.memory_space<vmem>>, vector<1x8x32xf32>
    %329 = vector.shape_cast %328 : vector<1x8x32xf32> to vector<8x32xf32>
    %330 = vector.shape_cast %326 : vector<8x32xf32> to vector<1x8x32xf32>
    tpu.vector_store %arg6[%c0_93, %327, %c0_94], %330 {strides = array<i32>} : memref<1x64x32xf32, #tpu.memory_space<vmem>>, vector<1x8x32xf32>,
    %c0_95 = arith.constant 0 : index
    %331 = arith.index_cast %262 : i32 to index
    %c0_96 = arith.constant 0 : index
    %332 = vector.load %arg6[%c0_95, %331, %c0_96] : memref<1x64x32xf32, #tpu.memory_space<vmem>>, vector<1x8x32xf32>
    %333 = vector.shape_cast %332 : vector<1x8x32xf32> to vector<8x32xf32>
    %334 = arith.addf %333, %322 : vector<8x32xf32>
    %c0_97 = arith.constant 0 : index
    %335 = arith.index_cast %262 : i32 to index
    %c0_98 = arith.constant 0 : index
    %336 = vector.load %arg6[%c0_97, %335, %c0_98] : memref<1x64x32xf32, #tpu.memory_space<vmem>>, vector<1x8x32xf32>
    %337 = vector.shape_cast %336 : vector<1x8x32xf32> to vector<8x32xf32>
    %338 = vector.shape_cast %334 : vector<8x32xf32> to vector<1x8x32xf32>
    tpu.vector_store %arg6[%c0_97, %335, %c0_98], %338 {strides = array<i32>} : memref<1x64x32xf32, #tpu.memory_space<vmem>>, vector<1x8x32xf32>,
    %c4_i32 = arith.constant 4 : i32
    %c8_i32_99 = arith.constant 8 : i32
    %339 = arith.muli %c4_i32, %c8_i32_99 : i32
    %340 = tpu.assume_multiple %339, 8 : i32
    %c7_i32_100 = arith.constant 7 : i32
    %341 = arith.subi %c7_i32_100, %c4_i32 : i32
    %c8_i32_101 = arith.constant 8 : i32
    %342 = arith.muli %341, %c8_i32_101 : i32
    %343 = tpu.assume_multiple %342, 8 : i32
    %344 = arith.index_cast %340 : i32 to index
    %c0_102 = arith.constant 0 : index
    %345 = vector.load %arg7[%344, %c0_102] : memref<64x256xf32, #tpu.memory_space<vmem>>, vector<8x256xf32>
    %346 = arith.index_cast %343 : i32 to index
    %c0_103 = arith.constant 0 : index
    %347 = vector.load %arg7[%346, %c0_103] : memref<64x256xf32, #tpu.memory_space<vmem>>, vector<8x256xf32>
    %348 = vector.extract_strided_slice %345 {offsets = [0, 0], sizes = [8, 128], strides = [1, 1]} : vector<8x256xf32> to vector<8x128xf32>
    %cst_104 = arith.constant dense<0.000000e+00> : vector<8x128xf32>
    %349 = tpu.matmul %297, %12, %cst_104 {dimension_numbers = #tpu.dot_dimension_numbers<[1], [0], [0], [1], [0, 0, 1, 1], [], []>} : vector<8x32xf32>, vector<32x128xf32>, vector<8x128xf32> -> vector<8x128xf32>
    %350 = arith.addf %348, %349 : vector<8x128xf32>
    %351 = vector.extract_strided_slice %347 {offsets = [0, 128], sizes = [8, 128], strides = [1, 1]} : vector<8x256xf32> to vector<8x128xf32>
    %cst_105 = arith.constant dense<0.000000e+00> : vector<8x128xf32>
    %352 = tpu.matmul %322, %13, %cst_105 {dimension_numbers = #tpu.dot_dimension_numbers<[1], [0], [0], [1], [0, 0, 1, 1], [], []>} : vector<8x32xf32>, vector<32x128xf32>, vector<8x128xf32> -> vector<8x128xf32>
    %353 = arith.addf %351, %352 : vector<8x128xf32>
    %354 = vector.extract_strided_slice %350 {offsets = [0, 0], sizes = [8, 32], strides = [1, 1]} : vector<8x128xf32> to vector<8x32xf32>
    %355 = arith.negf %354 : vector<8x32xf32>
    %356 = math.exp %355 : vector<8x32xf32>
    %cst_106 = arith.constant 1.000000e+00 : f32
    %357 = vector.broadcast %cst_106 : f32 to vector<8x32xf32>
    %358 = arith.addf %357, %356 : vector<8x32xf32>
    %359 = arith.divf %357, %358 : vector<8x32xf32>
    %360 = vector.extract_strided_slice %350 {offsets = [0, 32], sizes = [8, 32], strides = [1, 1]} : vector<8x128xf32> to vector<8x32xf32>
    %361 = arith.negf %360 : vector<8x32xf32>
    %362 = math.exp %361 : vector<8x32xf32>
    %cst_107 = arith.constant 1.000000e+00 : f32
    %363 = vector.broadcast %cst_107 : f32 to vector<8x32xf32>
    %364 = arith.addf %363, %362 : vector<8x32xf32>
    %365 = arith.divf %363, %364 : vector<8x32xf32>
    %366 = vector.extract_strided_slice %350 {offsets = [0, 64], sizes = [8, 32], strides = [1, 1]} : vector<8x128xf32> to vector<8x32xf32>
    %367 = math.tanh %366 : vector<8x32xf32>
    %368 = vector.extract_strided_slice %350 {offsets = [0, 96], sizes = [8, 32], strides = [1, 1]} : vector<8x128xf32> to vector<8x32xf32>
    %369 = arith.negf %368 : vector<8x32xf32>
    %370 = math.exp %369 : vector<8x32xf32>
    %cst_108 = arith.constant 1.000000e+00 : f32
    %371 = vector.broadcast %cst_108 : f32 to vector<8x32xf32>
    %372 = arith.addf %371, %370 : vector<8x32xf32>
    %373 = arith.divf %371, %372 : vector<8x32xf32>
    %374 = arith.mulf %365, %295 : vector<8x32xf32>
    %375 = arith.mulf %359, %367 : vector<8x32xf32>
    %376 = arith.addf %374, %375 : vector<8x32xf32>
    %377 = math.tanh %376 : vector<8x32xf32>
    %378 = arith.mulf %373, %377 : vector<8x32xf32>
    %379 = vector.extract_strided_slice %353 {offsets = [0, 0], sizes = [8, 32], strides = [1, 1]} : vector<8x128xf32> to vector<8x32xf32>
    %380 = arith.negf %379 : vector<8x32xf32>
    %381 = math.exp %380 : vector<8x32xf32>
    %cst_109 = arith.constant 1.000000e+00 : f32
    %382 = vector.broadcast %cst_109 : f32 to vector<8x32xf32>
    %383 = arith.addf %382, %381 : vector<8x32xf32>
    %384 = arith.divf %382, %383 : vector<8x32xf32>
    %385 = vector.extract_strided_slice %353 {offsets = [0, 32], sizes = [8, 32], strides = [1, 1]} : vector<8x128xf32> to vector<8x32xf32>
    %386 = arith.negf %385 : vector<8x32xf32>
    %387 = math.exp %386 : vector<8x32xf32>
    %cst_110 = arith.constant 1.000000e+00 : f32
    %388 = vector.broadcast %cst_110 : f32 to vector<8x32xf32>
    %389 = arith.addf %388, %387 : vector<8x32xf32>
    %390 = arith.divf %388, %389 : vector<8x32xf32>
    %391 = vector.extract_strided_slice %353 {offsets = [0, 64], sizes = [8, 32], strides = [1, 1]} : vector<8x128xf32> to vector<8x32xf32>
    %392 = math.tanh %391 : vector<8x32xf32>
    %393 = vector.extract_strided_slice %353 {offsets = [0, 96], sizes = [8, 32], strides = [1, 1]} : vector<8x128xf32> to vector<8x32xf32>
    %394 = arith.negf %393 : vector<8x32xf32>
    %395 = math.exp %394 : vector<8x32xf32>
    %cst_111 = arith.constant 1.000000e+00 : f32
    %396 = vector.broadcast %cst_111 : f32 to vector<8x32xf32>
    %397 = arith.addf %396, %395 : vector<8x32xf32>
    %398 = arith.divf %396, %397 : vector<8x32xf32>
    %399 = arith.mulf %390, %320 : vector<8x32xf32>
    %400 = arith.mulf %384, %392 : vector<8x32xf32>
    %401 = arith.addf %399, %400 : vector<8x32xf32>
    %402 = math.tanh %401 : vector<8x32xf32>
    %403 = arith.mulf %398, %402 : vector<8x32xf32>
    %c0_112 = arith.constant 0 : index
    %404 = arith.index_cast %340 : i32 to index
    %c0_113 = arith.constant 0 : index
    %405 = vector.load %arg6[%c0_112, %404, %c0_113] : memref<1x64x32xf32, #tpu.memory_space<vmem>>, vector<1x8x32xf32>
    %406 = vector.shape_cast %405 : vector<1x8x32xf32> to vector<8x32xf32>
    %407 = arith.addf %406, %378 : vector<8x32xf32>
    %c0_114 = arith.constant 0 : index
    %408 = arith.index_cast %340 : i32 to index
    %c0_115 = arith.constant 0 : index
    %409 = vector.load %arg6[%c0_114, %408, %c0_115] : memref<1x64x32xf32, #tpu.memory_space<vmem>>, vector<1x8x32xf32>
    %410 = vector.shape_cast %409 : vector<1x8x32xf32> to vector<8x32xf32>
    %411 = vector.shape_cast %407 : vector<8x32xf32> to vector<1x8x32xf32>
    tpu.vector_store %arg6[%c0_114, %408, %c0_115], %411 {strides = array<i32>} : memref<1x64x32xf32, #tpu.memory_space<vmem>>, vector<1x8x32xf32>,
    %c0_116 = arith.constant 0 : index
    %412 = arith.index_cast %343 : i32 to index
    %c0_117 = arith.constant 0 : index
    %413 = vector.load %arg6[%c0_116, %412, %c0_117] : memref<1x64x32xf32, #tpu.memory_space<vmem>>, vector<1x8x32xf32>
    %414 = vector.shape_cast %413 : vector<1x8x32xf32> to vector<8x32xf32>
    %415 = arith.addf %414, %403 : vector<8x32xf32>
    %c0_118 = arith.constant 0 : index
    %416 = arith.index_cast %343 : i32 to index
    %c0_119 = arith.constant 0 : index
    %417 = vector.load %arg6[%c0_118, %416, %c0_119] : memref<1x64x32xf32, #tpu.memory_space<vmem>>, vector<1x8x32xf32>
    %418 = vector.shape_cast %417 : vector<1x8x32xf32> to vector<8x32xf32>
    %419 = vector.shape_cast %415 : vector<8x32xf32> to vector<1x8x32xf32>
    tpu.vector_store %arg6[%c0_118, %416, %c0_119], %419 {strides = array<i32>} : memref<1x64x32xf32, #tpu.memory_space<vmem>>, vector<1x8x32xf32>,
    %c5_i32 = arith.constant 5 : i32
    %c8_i32_120 = arith.constant 8 : i32
    %420 = arith.muli %c5_i32, %c8_i32_120 : i32
    %421 = tpu.assume_multiple %420, 8 : i32
    %c7_i32_121 = arith.constant 7 : i32
    %422 = arith.subi %c7_i32_121, %c5_i32 : i32
    %c8_i32_122 = arith.constant 8 : i32
    %423 = arith.muli %422, %c8_i32_122 : i32
    %424 = tpu.assume_multiple %423, 8 : i32
    %425 = arith.index_cast %421 : i32 to index
    %c0_123 = arith.constant 0 : index
    %426 = vector.load %arg7[%425, %c0_123] : memref<64x256xf32, #tpu.memory_space<vmem>>, vector<8x256xf32>
    %427 = arith.index_cast %424 : i32 to index
    %c0_124 = arith.constant 0 : index
    %428 = vector.load %arg7[%427, %c0_124] : memref<64x256xf32, #tpu.memory_space<vmem>>, vector<8x256xf32>
    %429 = vector.extract_strided_slice %426 {offsets = [0, 0], sizes = [8, 128], strides = [1, 1]} : vector<8x256xf32> to vector<8x128xf32>
    %cst_125 = arith.constant dense<0.000000e+00> : vector<8x128xf32>
    %430 = tpu.matmul %378, %12, %cst_125 {dimension_numbers = #tpu.dot_dimension_numbers<[1], [0], [0], [1], [0, 0, 1, 1], [], []>} : vector<8x32xf32>, vector<32x128xf32>, vector<8x128xf32> -> vector<8x128xf32>
    %431 = arith.addf %429, %430 : vector<8x128xf32>
    %432 = vector.extract_strided_slice %428 {offsets = [0, 128], sizes = [8, 128], strides = [1, 1]} : vector<8x256xf32> to vector<8x128xf32>
    %cst_126 = arith.constant dense<0.000000e+00> : vector<8x128xf32>
    %433 = tpu.matmul %403, %13, %cst_126 {dimension_numbers = #tpu.dot_dimension_numbers<[1], [0], [0], [1], [0, 0, 1, 1], [], []>} : vector<8x32xf32>, vector<32x128xf32>, vector<8x128xf32> -> vector<8x128xf32>
    %434 = arith.addf %432, %433 : vector<8x128xf32>
    %435 = vector.extract_strided_slice %431 {offsets = [0, 0], sizes = [8, 32], strides = [1, 1]} : vector<8x128xf32> to vector<8x32xf32>
    %436 = arith.negf %435 : vector<8x32xf32>
    %437 = math.exp %436 : vector<8x32xf32>
    %cst_127 = arith.constant 1.000000e+00 : f32
    %438 = vector.broadcast %cst_127 : f32 to vector<8x32xf32>
    %439 = arith.addf %438, %437 : vector<8x32xf32>
    %440 = arith.divf %438, %439 : vector<8x32xf32>
    %441 = vector.extract_strided_slice %431 {offsets = [0, 32], sizes = [8, 32], strides = [1, 1]} : vector<8x128xf32> to vector<8x32xf32>
    %442 = arith.negf %441 : vector<8x32xf32>
    %443 = math.exp %442 : vector<8x32xf32>
    %cst_128 = arith.constant 1.000000e+00 : f32
    %444 = vector.broadcast %cst_128 : f32 to vector<8x32xf32>
    %445 = arith.addf %444, %443 : vector<8x32xf32>
    %446 = arith.divf %444, %445 : vector<8x32xf32>
    %447 = vector.extract_strided_slice %431 {offsets = [0, 64], sizes = [8, 32], strides = [1, 1]} : vector<8x128xf32> to vector<8x32xf32>
    %448 = math.tanh %447 : vector<8x32xf32>
    %449 = vector.extract_strided_slice %431 {offsets = [0, 96], sizes = [8, 32], strides = [1, 1]} : vector<8x128xf32> to vector<8x32xf32>
    %450 = arith.negf %449 : vector<8x32xf32>
    %451 = math.exp %450 : vector<8x32xf32>
    %cst_129 = arith.constant 1.000000e+00 : f32
    %452 = vector.broadcast %cst_129 : f32 to vector<8x32xf32>
    %453 = arith.addf %452, %451 : vector<8x32xf32>
    %454 = arith.divf %452, %453 : vector<8x32xf32>
    %455 = arith.mulf %446, %376 : vector<8x32xf32>
    %456 = arith.mulf %440, %448 : vector<8x32xf32>
    %457 = arith.addf %455, %456 : vector<8x32xf32>
    %458 = math.tanh %457 : vector<8x32xf32>
    %459 = arith.mulf %454, %458 : vector<8x32xf32>
    %460 = vector.extract_strided_slice %434 {offsets = [0, 0], sizes = [8, 32], strides = [1, 1]} : vector<8x128xf32> to vector<8x32xf32>
    %461 = arith.negf %460 : vector<8x32xf32>
    %462 = math.exp %461 : vector<8x32xf32>
    %cst_130 = arith.constant 1.000000e+00 : f32
    %463 = vector.broadcast %cst_130 : f32 to vector<8x32xf32>
    %464 = arith.addf %463, %462 : vector<8x32xf32>
    %465 = arith.divf %463, %464 : vector<8x32xf32>
    %466 = vector.extract_strided_slice %434 {offsets = [0, 32], sizes = [8, 32], strides = [1, 1]} : vector<8x128xf32> to vector<8x32xf32>
    %467 = arith.negf %466 : vector<8x32xf32>
    %468 = math.exp %467 : vector<8x32xf32>
    %cst_131 = arith.constant 1.000000e+00 : f32
    %469 = vector.broadcast %cst_131 : f32 to vector<8x32xf32>
    %470 = arith.addf %469, %468 : vector<8x32xf32>
    %471 = arith.divf %469, %470 : vector<8x32xf32>
    %472 = vector.extract_strided_slice %434 {offsets = [0, 64], sizes = [8, 32], strides = [1, 1]} : vector<8x128xf32> to vector<8x32xf32>
    %473 = math.tanh %472 : vector<8x32xf32>
    %474 = vector.extract_strided_slice %434 {offsets = [0, 96], sizes = [8, 32], strides = [1, 1]} : vector<8x128xf32> to vector<8x32xf32>
    %475 = arith.negf %474 : vector<8x32xf32>
    %476 = math.exp %475 : vector<8x32xf32>
    %cst_132 = arith.constant 1.000000e+00 : f32
    %477 = vector.broadcast %cst_132 : f32 to vector<8x32xf32>
    %478 = arith.addf %477, %476 : vector<8x32xf32>
    %479 = arith.divf %477, %478 : vector<8x32xf32>
    %480 = arith.mulf %471, %401 : vector<8x32xf32>
    %481 = arith.mulf %465, %473 : vector<8x32xf32>
    %482 = arith.addf %480, %481 : vector<8x32xf32>
    %483 = math.tanh %482 : vector<8x32xf32>
    %484 = arith.mulf %479, %483 : vector<8x32xf32>
    %c0_133 = arith.constant 0 : index
    %485 = arith.index_cast %421 : i32 to index
    %c0_134 = arith.constant 0 : index
    %486 = vector.load %arg6[%c0_133, %485, %c0_134] : memref<1x64x32xf32, #tpu.memory_space<vmem>>, vector<1x8x32xf32>
    %487 = vector.shape_cast %486 : vector<1x8x32xf32> to vector<8x32xf32>
    %488 = arith.addf %487, %459 : vector<8x32xf32>
    %c0_135 = arith.constant 0 : index
    %489 = arith.index_cast %421 : i32 to index
    %c0_136 = arith.constant 0 : index
    %490 = vector.load %arg6[%c0_135, %489, %c0_136] : memref<1x64x32xf32, #tpu.memory_space<vmem>>, vector<1x8x32xf32>
    %491 = vector.shape_cast %490 : vector<1x8x32xf32> to vector<8x32xf32>
    %492 = vector.shape_cast %488 : vector<8x32xf32> to vector<1x8x32xf32>
    tpu.vector_store %arg6[%c0_135, %489, %c0_136], %492 {strides = array<i32>} : memref<1x64x32xf32, #tpu.memory_space<vmem>>, vector<1x8x32xf32>,
    %c0_137 = arith.constant 0 : index
    %493 = arith.index_cast %424 : i32 to index
    %c0_138 = arith.constant 0 : index
    %494 = vector.load %arg6[%c0_137, %493, %c0_138] : memref<1x64x32xf32, #tpu.memory_space<vmem>>, vector<1x8x32xf32>
    %495 = vector.shape_cast %494 : vector<1x8x32xf32> to vector<8x32xf32>
    %496 = arith.addf %495, %484 : vector<8x32xf32>
    %c0_139 = arith.constant 0 : index
    %497 = arith.index_cast %424 : i32 to index
    %c0_140 = arith.constant 0 : index
    %498 = vector.load %arg6[%c0_139, %497, %c0_140] : memref<1x64x32xf32, #tpu.memory_space<vmem>>, vector<1x8x32xf32>
    %499 = vector.shape_cast %498 : vector<1x8x32xf32> to vector<8x32xf32>
    %500 = vector.shape_cast %496 : vector<8x32xf32> to vector<1x8x32xf32>
    tpu.vector_store %arg6[%c0_139, %497, %c0_140], %500 {strides = array<i32>} : memref<1x64x32xf32, #tpu.memory_space<vmem>>, vector<1x8x32xf32>,
    %c6_i32 = arith.constant 6 : i32
    %c8_i32_141 = arith.constant 8 : i32
    %501 = arith.muli %c6_i32, %c8_i32_141 : i32
    %502 = tpu.assume_multiple %501, 8 : i32
    %c7_i32_142 = arith.constant 7 : i32
    %503 = arith.subi %c7_i32_142, %c6_i32 : i32
    %c8_i32_143 = arith.constant 8 : i32
    %504 = arith.muli %503, %c8_i32_143 : i32
    %505 = tpu.assume_multiple %504, 8 : i32
    %506 = arith.index_cast %502 : i32 to index
    %c0_144 = arith.constant 0 : index
    %507 = vector.load %arg7[%506, %c0_144] : memref<64x256xf32, #tpu.memory_space<vmem>>, vector<8x256xf32>
    %508 = arith.index_cast %505 : i32 to index
    %c0_145 = arith.constant 0 : index
    %509 = vector.load %arg7[%508, %c0_145] : memref<64x256xf32, #tpu.memory_space<vmem>>, vector<8x256xf32>
    %510 = vector.extract_strided_slice %507 {offsets = [0, 0], sizes = [8, 128], strides = [1, 1]} : vector<8x256xf32> to vector<8x128xf32>
    %cst_146 = arith.constant dense<0.000000e+00> : vector<8x128xf32>
    %511 = tpu.matmul %459, %12, %cst_146 {dimension_numbers = #tpu.dot_dimension_numbers<[1], [0], [0], [1], [0, 0, 1, 1], [], []>} : vector<8x32xf32>, vector<32x128xf32>, vector<8x128xf32> -> vector<8x128xf32>
    %512 = arith.addf %510, %511 : vector<8x128xf32>
    %513 = vector.extract_strided_slice %509 {offsets = [0, 128], sizes = [8, 128], strides = [1, 1]} : vector<8x256xf32> to vector<8x128xf32>
    %cst_147 = arith.constant dense<0.000000e+00> : vector<8x128xf32>
    %514 = tpu.matmul %484, %13, %cst_147 {dimension_numbers = #tpu.dot_dimension_numbers<[1], [0], [0], [1], [0, 0, 1, 1], [], []>} : vector<8x32xf32>, vector<32x128xf32>, vector<8x128xf32> -> vector<8x128xf32>
    %515 = arith.addf %513, %514 : vector<8x128xf32>
    %516 = vector.extract_strided_slice %512 {offsets = [0, 0], sizes = [8, 32], strides = [1, 1]} : vector<8x128xf32> to vector<8x32xf32>
    %517 = arith.negf %516 : vector<8x32xf32>
    %518 = math.exp %517 : vector<8x32xf32>
    %cst_148 = arith.constant 1.000000e+00 : f32
    %519 = vector.broadcast %cst_148 : f32 to vector<8x32xf32>
    %520 = arith.addf %519, %518 : vector<8x32xf32>
    %521 = arith.divf %519, %520 : vector<8x32xf32>
    %522 = vector.extract_strided_slice %512 {offsets = [0, 32], sizes = [8, 32], strides = [1, 1]} : vector<8x128xf32> to vector<8x32xf32>
    %523 = arith.negf %522 : vector<8x32xf32>
    %524 = math.exp %523 : vector<8x32xf32>
    %cst_149 = arith.constant 1.000000e+00 : f32
    %525 = vector.broadcast %cst_149 : f32 to vector<8x32xf32>
    %526 = arith.addf %525, %524 : vector<8x32xf32>
    %527 = arith.divf %525, %526 : vector<8x32xf32>
    %528 = vector.extract_strided_slice %512 {offsets = [0, 64], sizes = [8, 32], strides = [1, 1]} : vector<8x128xf32> to vector<8x32xf32>
    %529 = math.tanh %528 : vector<8x32xf32>
    %530 = vector.extract_strided_slice %512 {offsets = [0, 96], sizes = [8, 32], strides = [1, 1]} : vector<8x128xf32> to vector<8x32xf32>
    %531 = arith.negf %530 : vector<8x32xf32>
    %532 = math.exp %531 : vector<8x32xf32>
    %cst_150 = arith.constant 1.000000e+00 : f32
    %533 = vector.broadcast %cst_150 : f32 to vector<8x32xf32>
    %534 = arith.addf %533, %532 : vector<8x32xf32>
    %535 = arith.divf %533, %534 : vector<8x32xf32>
    %536 = arith.mulf %527, %457 : vector<8x32xf32>
    %537 = arith.mulf %521, %529 : vector<8x32xf32>
    %538 = arith.addf %536, %537 : vector<8x32xf32>
    %539 = math.tanh %538 : vector<8x32xf32>
    %540 = arith.mulf %535, %539 : vector<8x32xf32>
    %541 = vector.extract_strided_slice %515 {offsets = [0, 0], sizes = [8, 32], strides = [1, 1]} : vector<8x128xf32> to vector<8x32xf32>
    %542 = arith.negf %541 : vector<8x32xf32>
    %543 = math.exp %542 : vector<8x32xf32>
    %cst_151 = arith.constant 1.000000e+00 : f32
    %544 = vector.broadcast %cst_151 : f32 to vector<8x32xf32>
    %545 = arith.addf %544, %543 : vector<8x32xf32>
    %546 = arith.divf %544, %545 : vector<8x32xf32>
    %547 = vector.extract_strided_slice %515 {offsets = [0, 32], sizes = [8, 32], strides = [1, 1]} : vector<8x128xf32> to vector<8x32xf32>
    %548 = arith.negf %547 : vector<8x32xf32>
    %549 = math.exp %548 : vector<8x32xf32>
    %cst_152 = arith.constant 1.000000e+00 : f32
    %550 = vector.broadcast %cst_152 : f32 to vector<8x32xf32>
    %551 = arith.addf %550, %549 : vector<8x32xf32>
    %552 = arith.divf %550, %551 : vector<8x32xf32>
    %553 = vector.extract_strided_slice %515 {offsets = [0, 64], sizes = [8, 32], strides = [1, 1]} : vector<8x128xf32> to vector<8x32xf32>
    %554 = math.tanh %553 : vector<8x32xf32>
    %555 = vector.extract_strided_slice %515 {offsets = [0, 96], sizes = [8, 32], strides = [1, 1]} : vector<8x128xf32> to vector<8x32xf32>
    %556 = arith.negf %555 : vector<8x32xf32>
    %557 = math.exp %556 : vector<8x32xf32>
    %cst_153 = arith.constant 1.000000e+00 : f32
    %558 = vector.broadcast %cst_153 : f32 to vector<8x32xf32>
    %559 = arith.addf %558, %557 : vector<8x32xf32>
    %560 = arith.divf %558, %559 : vector<8x32xf32>
    %561 = arith.mulf %552, %482 : vector<8x32xf32>
    %562 = arith.mulf %546, %554 : vector<8x32xf32>
    %563 = arith.addf %561, %562 : vector<8x32xf32>
    %564 = math.tanh %563 : vector<8x32xf32>
    %565 = arith.mulf %560, %564 : vector<8x32xf32>
    %c0_154 = arith.constant 0 : index
    %566 = arith.index_cast %502 : i32 to index
    %c0_155 = arith.constant 0 : index
    %567 = vector.load %arg6[%c0_154, %566, %c0_155] : memref<1x64x32xf32, #tpu.memory_space<vmem>>, vector<1x8x32xf32>
    %568 = vector.shape_cast %567 : vector<1x8x32xf32> to vector<8x32xf32>
    %569 = arith.addf %568, %540 : vector<8x32xf32>
    %c0_156 = arith.constant 0 : index
    %570 = arith.index_cast %502 : i32 to index
    %c0_157 = arith.constant 0 : index
    %571 = vector.load %arg6[%c0_156, %570, %c0_157] : memref<1x64x32xf32, #tpu.memory_space<vmem>>, vector<1x8x32xf32>
    %572 = vector.shape_cast %571 : vector<1x8x32xf32> to vector<8x32xf32>
    %573 = vector.shape_cast %569 : vector<8x32xf32> to vector<1x8x32xf32>
    tpu.vector_store %arg6[%c0_156, %570, %c0_157], %573 {strides = array<i32>} : memref<1x64x32xf32, #tpu.memory_space<vmem>>, vector<1x8x32xf32>,
    %c0_158 = arith.constant 0 : index
    %574 = arith.index_cast %505 : i32 to index
    %c0_159 = arith.constant 0 : index
    %575 = vector.load %arg6[%c0_158, %574, %c0_159] : memref<1x64x32xf32, #tpu.memory_space<vmem>>, vector<1x8x32xf32>
    %576 = vector.shape_cast %575 : vector<1x8x32xf32> to vector<8x32xf32>
    %577 = arith.addf %576, %565 : vector<8x32xf32>
    %c0_160 = arith.constant 0 : index
    %578 = arith.index_cast %505 : i32 to index
    %c0_161 = arith.constant 0 : index
    %579 = vector.load %arg6[%c0_160, %578, %c0_161] : memref<1x64x32xf32, #tpu.memory_space<vmem>>, vector<1x8x32xf32>
    %580 = vector.shape_cast %579 : vector<1x8x32xf32> to vector<8x32xf32>
    %581 = vector.shape_cast %577 : vector<8x32xf32> to vector<1x8x32xf32>
    tpu.vector_store %arg6[%c0_160, %578, %c0_161], %581 {strides = array<i32>} : memref<1x64x32xf32, #tpu.memory_space<vmem>>, vector<1x8x32xf32>,
    %c7_i32_162 = arith.constant 7 : i32
    %c8_i32_163 = arith.constant 8 : i32
    %582 = arith.muli %c7_i32_162, %c8_i32_163 : i32
    %583 = tpu.assume_multiple %582, 8 : i32
    %c7_i32_164 = arith.constant 7 : i32
    %584 = arith.subi %c7_i32_164, %c7_i32_162 : i32
    %c8_i32_165 = arith.constant 8 : i32
    %585 = arith.muli %584, %c8_i32_165 : i32
    %586 = tpu.assume_multiple %585, 8 : i32
    %587 = arith.index_cast %583 : i32 to index
    %c0_166 = arith.constant 0 : index
    %588 = vector.load %arg7[%587, %c0_166] : memref<64x256xf32, #tpu.memory_space<vmem>>, vector<8x256xf32>
    %589 = arith.index_cast %586 : i32 to index
    %c0_167 = arith.constant 0 : index
    %590 = vector.load %arg7[%589, %c0_167] : memref<64x256xf32, #tpu.memory_space<vmem>>, vector<8x256xf32>
    %591 = vector.extract_strided_slice %588 {offsets = [0, 0], sizes = [8, 128], strides = [1, 1]} : vector<8x256xf32> to vector<8x128xf32>
    %cst_168 = arith.constant dense<0.000000e+00> : vector<8x128xf32>
    %592 = tpu.matmul %540, %12, %cst_168 {dimension_numbers = #tpu.dot_dimension_numbers<[1], [0], [0], [1], [0, 0, 1, 1], [], []>} : vector<8x32xf32>, vector<32x128xf32>, vector<8x128xf32> -> vector<8x128xf32>
    %593 = arith.addf %591, %592 : vector<8x128xf32>
    %594 = vector.extract_strided_slice %590 {offsets = [0, 128], sizes = [8, 128], strides = [1, 1]} : vector<8x256xf32> to vector<8x128xf32>
    %cst_169 = arith.constant dense<0.000000e+00> : vector<8x128xf32>
    %595 = tpu.matmul %565, %13, %cst_169 {dimension_numbers = #tpu.dot_dimension_numbers<[1], [0], [0], [1], [0, 0, 1, 1], [], []>} : vector<8x32xf32>, vector<32x128xf32>, vector<8x128xf32> -> vector<8x128xf32>
    %596 = arith.addf %594, %595 : vector<8x128xf32>
    %597 = vector.extract_strided_slice %593 {offsets = [0, 0], sizes = [8, 32], strides = [1, 1]} : vector<8x128xf32> to vector<8x32xf32>
    %598 = arith.negf %597 : vector<8x32xf32>
    %599 = math.exp %598 : vector<8x32xf32>
    %cst_170 = arith.constant 1.000000e+00 : f32
    %600 = vector.broadcast %cst_170 : f32 to vector<8x32xf32>
    %601 = arith.addf %600, %599 : vector<8x32xf32>
    %602 = arith.divf %600, %601 : vector<8x32xf32>
    %603 = vector.extract_strided_slice %593 {offsets = [0, 32], sizes = [8, 32], strides = [1, 1]} : vector<8x128xf32> to vector<8x32xf32>
    %604 = arith.negf %603 : vector<8x32xf32>
    %605 = math.exp %604 : vector<8x32xf32>
    %cst_171 = arith.constant 1.000000e+00 : f32
    %606 = vector.broadcast %cst_171 : f32 to vector<8x32xf32>
    %607 = arith.addf %606, %605 : vector<8x32xf32>
    %608 = arith.divf %606, %607 : vector<8x32xf32>
    %609 = vector.extract_strided_slice %593 {offsets = [0, 64], sizes = [8, 32], strides = [1, 1]} : vector<8x128xf32> to vector<8x32xf32>
    %610 = math.tanh %609 : vector<8x32xf32>
    %611 = vector.extract_strided_slice %593 {offsets = [0, 96], sizes = [8, 32], strides = [1, 1]} : vector<8x128xf32> to vector<8x32xf32>
    %612 = arith.negf %611 : vector<8x32xf32>
    %613 = math.exp %612 : vector<8x32xf32>
    %cst_172 = arith.constant 1.000000e+00 : f32
    %614 = vector.broadcast %cst_172 : f32 to vector<8x32xf32>
    %615 = arith.addf %614, %613 : vector<8x32xf32>
    %616 = arith.divf %614, %615 : vector<8x32xf32>
    %617 = arith.mulf %608, %538 : vector<8x32xf32>
    %618 = arith.mulf %602, %610 : vector<8x32xf32>
    %619 = arith.addf %617, %618 : vector<8x32xf32>
    %620 = math.tanh %619 : vector<8x32xf32>
    %621 = arith.mulf %616, %620 : vector<8x32xf32>
    %622 = vector.extract_strided_slice %596 {offsets = [0, 0], sizes = [8, 32], strides = [1, 1]} : vector<8x128xf32> to vector<8x32xf32>
    %623 = arith.negf %622 : vector<8x32xf32>
    %624 = math.exp %623 : vector<8x32xf32>
    %cst_173 = arith.constant 1.000000e+00 : f32
    %625 = vector.broadcast %cst_173 : f32 to vector<8x32xf32>
    %626 = arith.addf %625, %624 : vector<8x32xf32>
    %627 = arith.divf %625, %626 : vector<8x32xf32>
    %628 = vector.extract_strided_slice %596 {offsets = [0, 32], sizes = [8, 32], strides = [1, 1]} : vector<8x128xf32> to vector<8x32xf32>
    %629 = arith.negf %628 : vector<8x32xf32>
    %630 = math.exp %629 : vector<8x32xf32>
    %cst_174 = arith.constant 1.000000e+00 : f32
    %631 = vector.broadcast %cst_174 : f32 to vector<8x32xf32>
    %632 = arith.addf %631, %630 : vector<8x32xf32>
    %633 = arith.divf %631, %632 : vector<8x32xf32>
    %634 = vector.extract_strided_slice %596 {offsets = [0, 64], sizes = [8, 32], strides = [1, 1]} : vector<8x128xf32> to vector<8x32xf32>
    %635 = math.tanh %634 : vector<8x32xf32>
    %636 = vector.extract_strided_slice %596 {offsets = [0, 96], sizes = [8, 32], strides = [1, 1]} : vector<8x128xf32> to vector<8x32xf32>
    %637 = arith.negf %636 : vector<8x32xf32>
    %638 = math.exp %637 : vector<8x32xf32>
    %cst_175 = arith.constant 1.000000e+00 : f32
    %639 = vector.broadcast %cst_175 : f32 to vector<8x32xf32>
    %640 = arith.addf %639, %638 : vector<8x32xf32>
    %641 = arith.divf %639, %640 : vector<8x32xf32>
    %642 = arith.mulf %633, %563 : vector<8x32xf32>
    %643 = arith.mulf %627, %635 : vector<8x32xf32>
    %644 = arith.addf %642, %643 : vector<8x32xf32>
    %645 = math.tanh %644 : vector<8x32xf32>
    %646 = arith.mulf %641, %645 : vector<8x32xf32>
    %c0_176 = arith.constant 0 : index
    %647 = arith.index_cast %583 : i32 to index
    %c0_177 = arith.constant 0 : index
    %648 = vector.load %arg6[%c0_176, %647, %c0_177] : memref<1x64x32xf32, #tpu.memory_space<vmem>>, vector<1x8x32xf32>
    %649 = vector.shape_cast %648 : vector<1x8x32xf32> to vector<8x32xf32>
    %650 = arith.addf %649, %621 : vector<8x32xf32>
    %c0_178 = arith.constant 0 : index
    %651 = arith.index_cast %583 : i32 to index
    %c0_179 = arith.constant 0 : index
    %652 = vector.load %arg6[%c0_178, %651, %c0_179] : memref<1x64x32xf32, #tpu.memory_space<vmem>>, vector<1x8x32xf32>
    %653 = vector.shape_cast %652 : vector<1x8x32xf32> to vector<8x32xf32>
    %654 = vector.shape_cast %650 : vector<8x32xf32> to vector<1x8x32xf32>
    tpu.vector_store %arg6[%c0_178, %651, %c0_179], %654 {strides = array<i32>} : memref<1x64x32xf32, #tpu.memory_space<vmem>>, vector<1x8x32xf32>,
    %c0_180 = arith.constant 0 : index
    %655 = arith.index_cast %586 : i32 to index
    %c0_181 = arith.constant 0 : index
    %656 = vector.load %arg6[%c0_180, %655, %c0_181] : memref<1x64x32xf32, #tpu.memory_space<vmem>>, vector<1x8x32xf32>
    %657 = vector.shape_cast %656 : vector<1x8x32xf32> to vector<8x32xf32>
    %658 = arith.addf %657, %646 : vector<8x32xf32>
    %c0_182 = arith.constant 0 : index
    %659 = arith.index_cast %586 : i32 to index
    %c0_183 = arith.constant 0 : index
    %660 = vector.load %arg6[%c0_182, %659, %c0_183] : memref<1x64x32xf32, #tpu.memory_space<vmem>>, vector<1x8x32xf32>
    %661 = vector.shape_cast %660 : vector<1x8x32xf32> to vector<8x32xf32>
    %662 = vector.shape_cast %658 : vector<8x32xf32> to vector<1x8x32xf32>
    tpu.vector_store %arg6[%c0_182, %659, %c0_183], %662 {strides = array<i32>} : memref<1x64x32xf32, #tpu.memory_space<vmem>>, vector<1x8x32xf32>,
    %c8_i32_184 = arith.constant 8 : i32
    return
  }
  func.func @transform_0(%arg0: i32) -> (i32, i32, i32) {
    %c0_i32 = arith.constant 0 : i32
    %c0_i32_0 = arith.constant 0 : i32
    %c0_i32_1 = arith.constant 0 : i32
    return %arg0, %c0_i32, %c0_i32_0 : i32, i32, i32
  }
  func.func @transform_1(%arg0: i32) -> (i32, i32) {
    %c0_i32 = arith.constant 0 : i32
    %c0_i32_0 = arith.constant 0 : i32
    %c0_i32_1 = arith.constant 0 : i32
    return %c0_i32, %c0_i32_0 : i32, i32
  }
  func.func @transform_2(%arg0: i32) -> (i32, i32) {
    %c0_i32 = arith.constant 0 : i32
    %c0_i32_0 = arith.constant 0 : i32
    %c0_i32_1 = arith.constant 0 : i32
    return %c0_i32, %c0_i32_0 : i32, i32
  }
  func.func @transform_3(%arg0: i32) -> (i32, i32) {
    %c0_i32 = arith.constant 0 : i32
    %c0_i32_0 = arith.constant 0 : i32
    %c0_i32_1 = arith.constant 0 : i32
    return %c0_i32, %c0_i32_0 : i32, i32
  }
  func.func @transform_4(%arg0: i32) -> (i32, i32) {
    %c0_i32 = arith.constant 0 : i32
    %c0_i32_0 = arith.constant 0 : i32
    %c0_i32_1 = arith.constant 0 : i32
    return %c0_i32, %c0_i32_0 : i32, i32
  }
  func.func @transform_5(%arg0: i32) -> (i32, i32, i32) {
    %c0_i32 = arith.constant 0 : i32
    %c0_i32_0 = arith.constant 0 : i32
    %c0_i32_1 = arith.constant 0 : i32
    return %arg0, %c0_i32, %c0_i32_0 : i32, i32, i32
  }
}

module attributes {stable_mosaic.version = 11 : i64} {
  func.func @_bilstm_layer_kernel(%arg0: i32, %arg1: memref<1x64x32xf32, #tpu.memory_space<vmem>>, %arg2: memref<32x512xf32, #tpu.memory_space<vmem>>, %arg3: memref<64x256xf32, #tpu.memory_space<vmem>>, %arg4: memref<64x256xf32, #tpu.memory_space<vmem>>, %arg5: memref<1x512xf32, #tpu.memory_space<vmem>>, %arg6: memref<1x64x64xf32, #tpu.memory_space<vmem>>, %arg7: memref<64x512xf32, #tpu.memory_space<vmem>>) attributes {dimension_semantics = [#tpu.dimension_semantics<parallel>], iteration_bounds = array<i64: 1>, scalar_prefetch = 0 : i64, scratch_operands = 1 : i64, tpu.core_type = #tpu.core_type<tc>, window_params = [{transform_indices = @transform_0, window_bounds = array<i64: 1, 64, 32>}, {pipeline_mode = #tpu.pipeline_mode<synchronous>, transform_indices = @transform_1, window_bounds = array<i64: 32, 512>}, {pipeline_mode = #tpu.pipeline_mode<synchronous>, transform_indices = @transform_2, window_bounds = array<i64: 64, 256>}, {pipeline_mode = #tpu.pipeline_mode<synchronous>, transform_indices = @transform_3, window_bounds = array<i64: 64, 256>}, {pipeline_mode = #tpu.pipeline_mode<synchronous>, transform_indices = @transform_4, window_bounds = array<i64: 1, 512>}, {transform_indices = @transform_5, window_bounds = array<i64: 1, 64, 64>}]} {
    %c0 = arith.constant 0 : index
    %c0_0 = arith.constant 0 : index
    %c0_1 = arith.constant 0 : index
    %0 = vector.load %arg1[%c0, %c0_0, %c0_1] : memref<1x64x32xf32, #tpu.memory_space<vmem>>, vector<1x64x32xf32>
    %1 = vector.shape_cast %0 : vector<1x64x32xf32> to vector<64x32xf32>
    %c0_2 = arith.constant 0 : index
    %c0_3 = arith.constant 0 : index
    %2 = vector.load %arg2[%c0_2, %c0_3] : memref<32x512xf32, #tpu.memory_space<vmem>>, vector<32x512xf32>
    %cst = arith.constant dense<0.000000e+00> : vector<64x512xf32>
    %3 = tpu.matmul %1, %2, %cst {dimension_numbers = #tpu.dot_dimension_numbers<[1], [0], [0], [1], [0, 0, 1, 1], [], []>} : vector<64x32xf32>, vector<32x512xf32>, vector<64x512xf32> -> vector<64x512xf32>
    %c0_4 = arith.constant 0 : index
    %c0_5 = arith.constant 0 : index
    %4 = vector.load %arg5[%c0_4, %c0_5] : memref<1x512xf32, #tpu.memory_space<vmem>>, vector<1x512xf32>
    %5 = vector.broadcast %4 : vector<1x512xf32> to vector<64x512xf32>
    %6 = arith.addf %3, %5 : vector<64x512xf32>
    %c0_6 = arith.constant 0 : index
    %c0_7 = arith.constant 0 : index
    %7 = vector.load %arg7[%c0_6, %c0_7] : memref<64x512xf32, #tpu.memory_space<vmem>>, vector<64x512xf32>
    tpu.vector_store %arg7[%c0_6, %c0_7], %6 {strides = array<i32>} : memref<64x512xf32, #tpu.memory_space<vmem>>, vector<64x512xf32>,
    %cst_8 = arith.constant 0.000000e+00 : f32
    %8 = vector.broadcast %cst_8 : f32 to vector<64x64xf32>
    %c0_9 = arith.constant 0 : index
    %c0_10 = arith.constant 0 : index
    %c0_11 = arith.constant 0 : index
    %9 = vector.load %arg6[%c0_9, %c0_10, %c0_11] : memref<1x64x64xf32, #tpu.memory_space<vmem>>, vector<1x64x64xf32>
    %10 = vector.shape_cast %9 : vector<1x64x64xf32> to vector<64x64xf32>
    %11 = vector.shape_cast %8 : vector<64x64xf32> to vector<1x64x64xf32>
    tpu.vector_store %arg6[%c0_9, %c0_10, %c0_11], %11 {strides = array<i32>} : memref<1x64x64xf32, #tpu.memory_space<vmem>>, vector<1x64x64xf32>,
    %c0_12 = arith.constant 0 : index
    %c0_13 = arith.constant 0 : index
    %12 = vector.load %arg3[%c0_12, %c0_13] : memref<64x256xf32, #tpu.memory_space<vmem>>, vector<64x256xf32>
    %c0_14 = arith.constant 0 : index
    %c0_15 = arith.constant 0 : index
    %13 = vector.load %arg4[%c0_14, %c0_15] : memref<64x256xf32, #tpu.memory_space<vmem>>, vector<64x256xf32>
    %cst_16 = arith.constant 0.000000e+00 : f32
    %14 = vector.broadcast %cst_16 : f32 to vector<8x64xf32>
    %c0_i32 = arith.constant 0 : i32
    %c8_i32 = arith.constant 8 : i32
    %15 = arith.muli %c0_i32, %c8_i32 : i32
    %16 = tpu.assume_multiple %15, 8 : i32
    %c7_i32 = arith.constant 7 : i32
    %17 = arith.subi %c7_i32, %c0_i32 : i32
    %c8_i32_17 = arith.constant 8 : i32
    %18 = arith.muli %17, %c8_i32_17 : i32
    %19 = tpu.assume_multiple %18, 8 : i32
    %20 = arith.index_cast %16 : i32 to index
    %c0_18 = arith.constant 0 : index
    %21 = vector.load %arg7[%20, %c0_18] : memref<64x512xf32, #tpu.memory_space<vmem>>, vector<8x512xf32>
    %22 = arith.index_cast %19 : i32 to index
    %c0_19 = arith.constant 0 : index
    %23 = vector.load %arg7[%22, %c0_19] : memref<64x512xf32, #tpu.memory_space<vmem>>, vector<8x512xf32>
    %24 = vector.extract_strided_slice %21 {offsets = [0, 0], sizes = [8, 256], strides = [1, 1]} : vector<8x512xf32> to vector<8x256xf32>
    %cst_20 = arith.constant dense<0.000000e+00> : vector<8x256xf32>
    %25 = tpu.matmul %14, %12, %cst_20 {dimension_numbers = #tpu.dot_dimension_numbers<[1], [0], [0], [1], [0, 0, 1, 1], [], []>} : vector<8x64xf32>, vector<64x256xf32>, vector<8x256xf32> -> vector<8x256xf32>
    %26 = arith.addf %24, %25 : vector<8x256xf32>
    %27 = vector.extract_strided_slice %23 {offsets = [0, 256], sizes = [8, 256], strides = [1, 1]} : vector<8x512xf32> to vector<8x256xf32>
    %cst_21 = arith.constant dense<0.000000e+00> : vector<8x256xf32>
    %28 = tpu.matmul %14, %13, %cst_21 {dimension_numbers = #tpu.dot_dimension_numbers<[1], [0], [0], [1], [0, 0, 1, 1], [], []>} : vector<8x64xf32>, vector<64x256xf32>, vector<8x256xf32> -> vector<8x256xf32>
    %29 = arith.addf %27, %28 : vector<8x256xf32>
    %30 = vector.extract_strided_slice %26 {offsets = [0, 0], sizes = [8, 64], strides = [1, 1]} : vector<8x256xf32> to vector<8x64xf32>
    %31 = arith.negf %30 : vector<8x64xf32>
    %32 = math.exp %31 : vector<8x64xf32>
    %cst_22 = arith.constant 1.000000e+00 : f32
    %33 = vector.broadcast %cst_22 : f32 to vector<8x64xf32>
    %34 = arith.addf %33, %32 : vector<8x64xf32>
    %35 = arith.divf %33, %34 : vector<8x64xf32>
    %36 = vector.extract_strided_slice %26 {offsets = [0, 64], sizes = [8, 64], strides = [1, 1]} : vector<8x256xf32> to vector<8x64xf32>
    %37 = arith.negf %36 : vector<8x64xf32>
    %38 = math.exp %37 : vector<8x64xf32>
    %cst_23 = arith.constant 1.000000e+00 : f32
    %39 = vector.broadcast %cst_23 : f32 to vector<8x64xf32>
    %40 = arith.addf %39, %38 : vector<8x64xf32>
    %41 = arith.divf %39, %40 : vector<8x64xf32>
    %42 = vector.extract_strided_slice %26 {offsets = [0, 128], sizes = [8, 64], strides = [1, 1]} : vector<8x256xf32> to vector<8x64xf32>
    %43 = math.tanh %42 : vector<8x64xf32>
    %44 = vector.extract_strided_slice %26 {offsets = [0, 192], sizes = [8, 64], strides = [1, 1]} : vector<8x256xf32> to vector<8x64xf32>
    %45 = arith.negf %44 : vector<8x64xf32>
    %46 = math.exp %45 : vector<8x64xf32>
    %cst_24 = arith.constant 1.000000e+00 : f32
    %47 = vector.broadcast %cst_24 : f32 to vector<8x64xf32>
    %48 = arith.addf %47, %46 : vector<8x64xf32>
    %49 = arith.divf %47, %48 : vector<8x64xf32>
    %50 = arith.mulf %41, %14 : vector<8x64xf32>
    %51 = arith.mulf %35, %43 : vector<8x64xf32>
    %52 = arith.addf %50, %51 : vector<8x64xf32>
    %53 = math.tanh %52 : vector<8x64xf32>
    %54 = arith.mulf %49, %53 : vector<8x64xf32>
    %55 = vector.extract_strided_slice %29 {offsets = [0, 0], sizes = [8, 64], strides = [1, 1]} : vector<8x256xf32> to vector<8x64xf32>
    %56 = arith.negf %55 : vector<8x64xf32>
    %57 = math.exp %56 : vector<8x64xf32>
    %cst_25 = arith.constant 1.000000e+00 : f32
    %58 = vector.broadcast %cst_25 : f32 to vector<8x64xf32>
    %59 = arith.addf %58, %57 : vector<8x64xf32>
    %60 = arith.divf %58, %59 : vector<8x64xf32>
    %61 = vector.extract_strided_slice %29 {offsets = [0, 64], sizes = [8, 64], strides = [1, 1]} : vector<8x256xf32> to vector<8x64xf32>
    %62 = arith.negf %61 : vector<8x64xf32>
    %63 = math.exp %62 : vector<8x64xf32>
    %cst_26 = arith.constant 1.000000e+00 : f32
    %64 = vector.broadcast %cst_26 : f32 to vector<8x64xf32>
    %65 = arith.addf %64, %63 : vector<8x64xf32>
    %66 = arith.divf %64, %65 : vector<8x64xf32>
    %67 = vector.extract_strided_slice %29 {offsets = [0, 128], sizes = [8, 64], strides = [1, 1]} : vector<8x256xf32> to vector<8x64xf32>
    %68 = math.tanh %67 : vector<8x64xf32>
    %69 = vector.extract_strided_slice %29 {offsets = [0, 192], sizes = [8, 64], strides = [1, 1]} : vector<8x256xf32> to vector<8x64xf32>
    %70 = arith.negf %69 : vector<8x64xf32>
    %71 = math.exp %70 : vector<8x64xf32>
    %cst_27 = arith.constant 1.000000e+00 : f32
    %72 = vector.broadcast %cst_27 : f32 to vector<8x64xf32>
    %73 = arith.addf %72, %71 : vector<8x64xf32>
    %74 = arith.divf %72, %73 : vector<8x64xf32>
    %75 = arith.mulf %66, %14 : vector<8x64xf32>
    %76 = arith.mulf %60, %68 : vector<8x64xf32>
    %77 = arith.addf %75, %76 : vector<8x64xf32>
    %78 = math.tanh %77 : vector<8x64xf32>
    %79 = arith.mulf %74, %78 : vector<8x64xf32>
    %c0_28 = arith.constant 0 : index
    %80 = arith.index_cast %16 : i32 to index
    %c0_29 = arith.constant 0 : index
    %81 = vector.load %arg6[%c0_28, %80, %c0_29] : memref<1x64x64xf32, #tpu.memory_space<vmem>>, vector<1x8x64xf32>
    %82 = vector.shape_cast %81 : vector<1x8x64xf32> to vector<8x64xf32>
    %83 = arith.addf %82, %54 : vector<8x64xf32>
    %c0_30 = arith.constant 0 : index
    %84 = arith.index_cast %16 : i32 to index
    %c0_31 = arith.constant 0 : index
    %85 = vector.load %arg6[%c0_30, %84, %c0_31] : memref<1x64x64xf32, #tpu.memory_space<vmem>>, vector<1x8x64xf32>
    %86 = vector.shape_cast %85 : vector<1x8x64xf32> to vector<8x64xf32>
    %87 = vector.shape_cast %83 : vector<8x64xf32> to vector<1x8x64xf32>
    tpu.vector_store %arg6[%c0_30, %84, %c0_31], %87 {strides = array<i32>} : memref<1x64x64xf32, #tpu.memory_space<vmem>>, vector<1x8x64xf32>,
    %c0_32 = arith.constant 0 : index
    %88 = arith.index_cast %19 : i32 to index
    %c0_33 = arith.constant 0 : index
    %89 = vector.load %arg6[%c0_32, %88, %c0_33] : memref<1x64x64xf32, #tpu.memory_space<vmem>>, vector<1x8x64xf32>
    %90 = vector.shape_cast %89 : vector<1x8x64xf32> to vector<8x64xf32>
    %91 = arith.addf %90, %79 : vector<8x64xf32>
    %c0_34 = arith.constant 0 : index
    %92 = arith.index_cast %19 : i32 to index
    %c0_35 = arith.constant 0 : index
    %93 = vector.load %arg6[%c0_34, %92, %c0_35] : memref<1x64x64xf32, #tpu.memory_space<vmem>>, vector<1x8x64xf32>
    %94 = vector.shape_cast %93 : vector<1x8x64xf32> to vector<8x64xf32>
    %95 = vector.shape_cast %91 : vector<8x64xf32> to vector<1x8x64xf32>
    tpu.vector_store %arg6[%c0_34, %92, %c0_35], %95 {strides = array<i32>} : memref<1x64x64xf32, #tpu.memory_space<vmem>>, vector<1x8x64xf32>,
    %c1_i32 = arith.constant 1 : i32
    %c8_i32_36 = arith.constant 8 : i32
    %96 = arith.muli %c1_i32, %c8_i32_36 : i32
    %97 = tpu.assume_multiple %96, 8 : i32
    %c7_i32_37 = arith.constant 7 : i32
    %98 = arith.subi %c7_i32_37, %c1_i32 : i32
    %c8_i32_38 = arith.constant 8 : i32
    %99 = arith.muli %98, %c8_i32_38 : i32
    %100 = tpu.assume_multiple %99, 8 : i32
    %101 = arith.index_cast %97 : i32 to index
    %c0_39 = arith.constant 0 : index
    %102 = vector.load %arg7[%101, %c0_39] : memref<64x512xf32, #tpu.memory_space<vmem>>, vector<8x512xf32>
    %103 = arith.index_cast %100 : i32 to index
    %c0_40 = arith.constant 0 : index
    %104 = vector.load %arg7[%103, %c0_40] : memref<64x512xf32, #tpu.memory_space<vmem>>, vector<8x512xf32>
    %105 = vector.extract_strided_slice %102 {offsets = [0, 0], sizes = [8, 256], strides = [1, 1]} : vector<8x512xf32> to vector<8x256xf32>
    %cst_41 = arith.constant dense<0.000000e+00> : vector<8x256xf32>
    %106 = tpu.matmul %54, %12, %cst_41 {dimension_numbers = #tpu.dot_dimension_numbers<[1], [0], [0], [1], [0, 0, 1, 1], [], []>} : vector<8x64xf32>, vector<64x256xf32>, vector<8x256xf32> -> vector<8x256xf32>
    %107 = arith.addf %105, %106 : vector<8x256xf32>
    %108 = vector.extract_strided_slice %104 {offsets = [0, 256], sizes = [8, 256], strides = [1, 1]} : vector<8x512xf32> to vector<8x256xf32>
    %cst_42 = arith.constant dense<0.000000e+00> : vector<8x256xf32>
    %109 = tpu.matmul %79, %13, %cst_42 {dimension_numbers = #tpu.dot_dimension_numbers<[1], [0], [0], [1], [0, 0, 1, 1], [], []>} : vector<8x64xf32>, vector<64x256xf32>, vector<8x256xf32> -> vector<8x256xf32>
    %110 = arith.addf %108, %109 : vector<8x256xf32>
    %111 = vector.extract_strided_slice %107 {offsets = [0, 0], sizes = [8, 64], strides = [1, 1]} : vector<8x256xf32> to vector<8x64xf32>
    %112 = arith.negf %111 : vector<8x64xf32>
    %113 = math.exp %112 : vector<8x64xf32>
    %cst_43 = arith.constant 1.000000e+00 : f32
    %114 = vector.broadcast %cst_43 : f32 to vector<8x64xf32>
    %115 = arith.addf %114, %113 : vector<8x64xf32>
    %116 = arith.divf %114, %115 : vector<8x64xf32>
    %117 = vector.extract_strided_slice %107 {offsets = [0, 64], sizes = [8, 64], strides = [1, 1]} : vector<8x256xf32> to vector<8x64xf32>
    %118 = arith.negf %117 : vector<8x64xf32>
    %119 = math.exp %118 : vector<8x64xf32>
    %cst_44 = arith.constant 1.000000e+00 : f32
    %120 = vector.broadcast %cst_44 : f32 to vector<8x64xf32>
    %121 = arith.addf %120, %119 : vector<8x64xf32>
    %122 = arith.divf %120, %121 : vector<8x64xf32>
    %123 = vector.extract_strided_slice %107 {offsets = [0, 128], sizes = [8, 64], strides = [1, 1]} : vector<8x256xf32> to vector<8x64xf32>
    %124 = math.tanh %123 : vector<8x64xf32>
    %125 = vector.extract_strided_slice %107 {offsets = [0, 192], sizes = [8, 64], strides = [1, 1]} : vector<8x256xf32> to vector<8x64xf32>
    %126 = arith.negf %125 : vector<8x64xf32>
    %127 = math.exp %126 : vector<8x64xf32>
    %cst_45 = arith.constant 1.000000e+00 : f32
    %128 = vector.broadcast %cst_45 : f32 to vector<8x64xf32>
    %129 = arith.addf %128, %127 : vector<8x64xf32>
    %130 = arith.divf %128, %129 : vector<8x64xf32>
    %131 = arith.mulf %122, %52 : vector<8x64xf32>
    %132 = arith.mulf %116, %124 : vector<8x64xf32>
    %133 = arith.addf %131, %132 : vector<8x64xf32>
    %134 = math.tanh %133 : vector<8x64xf32>
    %135 = arith.mulf %130, %134 : vector<8x64xf32>
    %136 = vector.extract_strided_slice %110 {offsets = [0, 0], sizes = [8, 64], strides = [1, 1]} : vector<8x256xf32> to vector<8x64xf32>
    %137 = arith.negf %136 : vector<8x64xf32>
    %138 = math.exp %137 : vector<8x64xf32>
    %cst_46 = arith.constant 1.000000e+00 : f32
    %139 = vector.broadcast %cst_46 : f32 to vector<8x64xf32>
    %140 = arith.addf %139, %138 : vector<8x64xf32>
    %141 = arith.divf %139, %140 : vector<8x64xf32>
    %142 = vector.extract_strided_slice %110 {offsets = [0, 64], sizes = [8, 64], strides = [1, 1]} : vector<8x256xf32> to vector<8x64xf32>
    %143 = arith.negf %142 : vector<8x64xf32>
    %144 = math.exp %143 : vector<8x64xf32>
    %cst_47 = arith.constant 1.000000e+00 : f32
    %145 = vector.broadcast %cst_47 : f32 to vector<8x64xf32>
    %146 = arith.addf %145, %144 : vector<8x64xf32>
    %147 = arith.divf %145, %146 : vector<8x64xf32>
    %148 = vector.extract_strided_slice %110 {offsets = [0, 128], sizes = [8, 64], strides = [1, 1]} : vector<8x256xf32> to vector<8x64xf32>
    %149 = math.tanh %148 : vector<8x64xf32>
    %150 = vector.extract_strided_slice %110 {offsets = [0, 192], sizes = [8, 64], strides = [1, 1]} : vector<8x256xf32> to vector<8x64xf32>
    %151 = arith.negf %150 : vector<8x64xf32>
    %152 = math.exp %151 : vector<8x64xf32>
    %cst_48 = arith.constant 1.000000e+00 : f32
    %153 = vector.broadcast %cst_48 : f32 to vector<8x64xf32>
    %154 = arith.addf %153, %152 : vector<8x64xf32>
    %155 = arith.divf %153, %154 : vector<8x64xf32>
    %156 = arith.mulf %147, %77 : vector<8x64xf32>
    %157 = arith.mulf %141, %149 : vector<8x64xf32>
    %158 = arith.addf %156, %157 : vector<8x64xf32>
    %159 = math.tanh %158 : vector<8x64xf32>
    %160 = arith.mulf %155, %159 : vector<8x64xf32>
    %c0_49 = arith.constant 0 : index
    %161 = arith.index_cast %97 : i32 to index
    %c0_50 = arith.constant 0 : index
    %162 = vector.load %arg6[%c0_49, %161, %c0_50] : memref<1x64x64xf32, #tpu.memory_space<vmem>>, vector<1x8x64xf32>
    %163 = vector.shape_cast %162 : vector<1x8x64xf32> to vector<8x64xf32>
    %164 = arith.addf %163, %135 : vector<8x64xf32>
    %c0_51 = arith.constant 0 : index
    %165 = arith.index_cast %97 : i32 to index
    %c0_52 = arith.constant 0 : index
    %166 = vector.load %arg6[%c0_51, %165, %c0_52] : memref<1x64x64xf32, #tpu.memory_space<vmem>>, vector<1x8x64xf32>
    %167 = vector.shape_cast %166 : vector<1x8x64xf32> to vector<8x64xf32>
    %168 = vector.shape_cast %164 : vector<8x64xf32> to vector<1x8x64xf32>
    tpu.vector_store %arg6[%c0_51, %165, %c0_52], %168 {strides = array<i32>} : memref<1x64x64xf32, #tpu.memory_space<vmem>>, vector<1x8x64xf32>,
    %c0_53 = arith.constant 0 : index
    %169 = arith.index_cast %100 : i32 to index
    %c0_54 = arith.constant 0 : index
    %170 = vector.load %arg6[%c0_53, %169, %c0_54] : memref<1x64x64xf32, #tpu.memory_space<vmem>>, vector<1x8x64xf32>
    %171 = vector.shape_cast %170 : vector<1x8x64xf32> to vector<8x64xf32>
    %172 = arith.addf %171, %160 : vector<8x64xf32>
    %c0_55 = arith.constant 0 : index
    %173 = arith.index_cast %100 : i32 to index
    %c0_56 = arith.constant 0 : index
    %174 = vector.load %arg6[%c0_55, %173, %c0_56] : memref<1x64x64xf32, #tpu.memory_space<vmem>>, vector<1x8x64xf32>
    %175 = vector.shape_cast %174 : vector<1x8x64xf32> to vector<8x64xf32>
    %176 = vector.shape_cast %172 : vector<8x64xf32> to vector<1x8x64xf32>
    tpu.vector_store %arg6[%c0_55, %173, %c0_56], %176 {strides = array<i32>} : memref<1x64x64xf32, #tpu.memory_space<vmem>>, vector<1x8x64xf32>,
    %c2_i32 = arith.constant 2 : i32
    %c8_i32_57 = arith.constant 8 : i32
    %177 = arith.muli %c2_i32, %c8_i32_57 : i32
    %178 = tpu.assume_multiple %177, 8 : i32
    %c7_i32_58 = arith.constant 7 : i32
    %179 = arith.subi %c7_i32_58, %c2_i32 : i32
    %c8_i32_59 = arith.constant 8 : i32
    %180 = arith.muli %179, %c8_i32_59 : i32
    %181 = tpu.assume_multiple %180, 8 : i32
    %182 = arith.index_cast %178 : i32 to index
    %c0_60 = arith.constant 0 : index
    %183 = vector.load %arg7[%182, %c0_60] : memref<64x512xf32, #tpu.memory_space<vmem>>, vector<8x512xf32>
    %184 = arith.index_cast %181 : i32 to index
    %c0_61 = arith.constant 0 : index
    %185 = vector.load %arg7[%184, %c0_61] : memref<64x512xf32, #tpu.memory_space<vmem>>, vector<8x512xf32>
    %186 = vector.extract_strided_slice %183 {offsets = [0, 0], sizes = [8, 256], strides = [1, 1]} : vector<8x512xf32> to vector<8x256xf32>
    %cst_62 = arith.constant dense<0.000000e+00> : vector<8x256xf32>
    %187 = tpu.matmul %135, %12, %cst_62 {dimension_numbers = #tpu.dot_dimension_numbers<[1], [0], [0], [1], [0, 0, 1, 1], [], []>} : vector<8x64xf32>, vector<64x256xf32>, vector<8x256xf32> -> vector<8x256xf32>
    %188 = arith.addf %186, %187 : vector<8x256xf32>
    %189 = vector.extract_strided_slice %185 {offsets = [0, 256], sizes = [8, 256], strides = [1, 1]} : vector<8x512xf32> to vector<8x256xf32>
    %cst_63 = arith.constant dense<0.000000e+00> : vector<8x256xf32>
    %190 = tpu.matmul %160, %13, %cst_63 {dimension_numbers = #tpu.dot_dimension_numbers<[1], [0], [0], [1], [0, 0, 1, 1], [], []>} : vector<8x64xf32>, vector<64x256xf32>, vector<8x256xf32> -> vector<8x256xf32>
    %191 = arith.addf %189, %190 : vector<8x256xf32>
    %192 = vector.extract_strided_slice %188 {offsets = [0, 0], sizes = [8, 64], strides = [1, 1]} : vector<8x256xf32> to vector<8x64xf32>
    %193 = arith.negf %192 : vector<8x64xf32>
    %194 = math.exp %193 : vector<8x64xf32>
    %cst_64 = arith.constant 1.000000e+00 : f32
    %195 = vector.broadcast %cst_64 : f32 to vector<8x64xf32>
    %196 = arith.addf %195, %194 : vector<8x64xf32>
    %197 = arith.divf %195, %196 : vector<8x64xf32>
    %198 = vector.extract_strided_slice %188 {offsets = [0, 64], sizes = [8, 64], strides = [1, 1]} : vector<8x256xf32> to vector<8x64xf32>
    %199 = arith.negf %198 : vector<8x64xf32>
    %200 = math.exp %199 : vector<8x64xf32>
    %cst_65 = arith.constant 1.000000e+00 : f32
    %201 = vector.broadcast %cst_65 : f32 to vector<8x64xf32>
    %202 = arith.addf %201, %200 : vector<8x64xf32>
    %203 = arith.divf %201, %202 : vector<8x64xf32>
    %204 = vector.extract_strided_slice %188 {offsets = [0, 128], sizes = [8, 64], strides = [1, 1]} : vector<8x256xf32> to vector<8x64xf32>
    %205 = math.tanh %204 : vector<8x64xf32>
    %206 = vector.extract_strided_slice %188 {offsets = [0, 192], sizes = [8, 64], strides = [1, 1]} : vector<8x256xf32> to vector<8x64xf32>
    %207 = arith.negf %206 : vector<8x64xf32>
    %208 = math.exp %207 : vector<8x64xf32>
    %cst_66 = arith.constant 1.000000e+00 : f32
    %209 = vector.broadcast %cst_66 : f32 to vector<8x64xf32>
    %210 = arith.addf %209, %208 : vector<8x64xf32>
    %211 = arith.divf %209, %210 : vector<8x64xf32>
    %212 = arith.mulf %203, %133 : vector<8x64xf32>
    %213 = arith.mulf %197, %205 : vector<8x64xf32>
    %214 = arith.addf %212, %213 : vector<8x64xf32>
    %215 = math.tanh %214 : vector<8x64xf32>
    %216 = arith.mulf %211, %215 : vector<8x64xf32>
    %217 = vector.extract_strided_slice %191 {offsets = [0, 0], sizes = [8, 64], strides = [1, 1]} : vector<8x256xf32> to vector<8x64xf32>
    %218 = arith.negf %217 : vector<8x64xf32>
    %219 = math.exp %218 : vector<8x64xf32>
    %cst_67 = arith.constant 1.000000e+00 : f32
    %220 = vector.broadcast %cst_67 : f32 to vector<8x64xf32>
    %221 = arith.addf %220, %219 : vector<8x64xf32>
    %222 = arith.divf %220, %221 : vector<8x64xf32>
    %223 = vector.extract_strided_slice %191 {offsets = [0, 64], sizes = [8, 64], strides = [1, 1]} : vector<8x256xf32> to vector<8x64xf32>
    %224 = arith.negf %223 : vector<8x64xf32>
    %225 = math.exp %224 : vector<8x64xf32>
    %cst_68 = arith.constant 1.000000e+00 : f32
    %226 = vector.broadcast %cst_68 : f32 to vector<8x64xf32>
    %227 = arith.addf %226, %225 : vector<8x64xf32>
    %228 = arith.divf %226, %227 : vector<8x64xf32>
    %229 = vector.extract_strided_slice %191 {offsets = [0, 128], sizes = [8, 64], strides = [1, 1]} : vector<8x256xf32> to vector<8x64xf32>
    %230 = math.tanh %229 : vector<8x64xf32>
    %231 = vector.extract_strided_slice %191 {offsets = [0, 192], sizes = [8, 64], strides = [1, 1]} : vector<8x256xf32> to vector<8x64xf32>
    %232 = arith.negf %231 : vector<8x64xf32>
    %233 = math.exp %232 : vector<8x64xf32>
    %cst_69 = arith.constant 1.000000e+00 : f32
    %234 = vector.broadcast %cst_69 : f32 to vector<8x64xf32>
    %235 = arith.addf %234, %233 : vector<8x64xf32>
    %236 = arith.divf %234, %235 : vector<8x64xf32>
    %237 = arith.mulf %228, %158 : vector<8x64xf32>
    %238 = arith.mulf %222, %230 : vector<8x64xf32>
    %239 = arith.addf %237, %238 : vector<8x64xf32>
    %240 = math.tanh %239 : vector<8x64xf32>
    %241 = arith.mulf %236, %240 : vector<8x64xf32>
    %c0_70 = arith.constant 0 : index
    %242 = arith.index_cast %178 : i32 to index
    %c0_71 = arith.constant 0 : index
    %243 = vector.load %arg6[%c0_70, %242, %c0_71] : memref<1x64x64xf32, #tpu.memory_space<vmem>>, vector<1x8x64xf32>
    %244 = vector.shape_cast %243 : vector<1x8x64xf32> to vector<8x64xf32>
    %245 = arith.addf %244, %216 : vector<8x64xf32>
    %c0_72 = arith.constant 0 : index
    %246 = arith.index_cast %178 : i32 to index
    %c0_73 = arith.constant 0 : index
    %247 = vector.load %arg6[%c0_72, %246, %c0_73] : memref<1x64x64xf32, #tpu.memory_space<vmem>>, vector<1x8x64xf32>
    %248 = vector.shape_cast %247 : vector<1x8x64xf32> to vector<8x64xf32>
    %249 = vector.shape_cast %245 : vector<8x64xf32> to vector<1x8x64xf32>
    tpu.vector_store %arg6[%c0_72, %246, %c0_73], %249 {strides = array<i32>} : memref<1x64x64xf32, #tpu.memory_space<vmem>>, vector<1x8x64xf32>,
    %c0_74 = arith.constant 0 : index
    %250 = arith.index_cast %181 : i32 to index
    %c0_75 = arith.constant 0 : index
    %251 = vector.load %arg6[%c0_74, %250, %c0_75] : memref<1x64x64xf32, #tpu.memory_space<vmem>>, vector<1x8x64xf32>
    %252 = vector.shape_cast %251 : vector<1x8x64xf32> to vector<8x64xf32>
    %253 = arith.addf %252, %241 : vector<8x64xf32>
    %c0_76 = arith.constant 0 : index
    %254 = arith.index_cast %181 : i32 to index
    %c0_77 = arith.constant 0 : index
    %255 = vector.load %arg6[%c0_76, %254, %c0_77] : memref<1x64x64xf32, #tpu.memory_space<vmem>>, vector<1x8x64xf32>
    %256 = vector.shape_cast %255 : vector<1x8x64xf32> to vector<8x64xf32>
    %257 = vector.shape_cast %253 : vector<8x64xf32> to vector<1x8x64xf32>
    tpu.vector_store %arg6[%c0_76, %254, %c0_77], %257 {strides = array<i32>} : memref<1x64x64xf32, #tpu.memory_space<vmem>>, vector<1x8x64xf32>,
    %c3_i32 = arith.constant 3 : i32
    %c8_i32_78 = arith.constant 8 : i32
    %258 = arith.muli %c3_i32, %c8_i32_78 : i32
    %259 = tpu.assume_multiple %258, 8 : i32
    %c7_i32_79 = arith.constant 7 : i32
    %260 = arith.subi %c7_i32_79, %c3_i32 : i32
    %c8_i32_80 = arith.constant 8 : i32
    %261 = arith.muli %260, %c8_i32_80 : i32
    %262 = tpu.assume_multiple %261, 8 : i32
    %263 = arith.index_cast %259 : i32 to index
    %c0_81 = arith.constant 0 : index
    %264 = vector.load %arg7[%263, %c0_81] : memref<64x512xf32, #tpu.memory_space<vmem>>, vector<8x512xf32>
    %265 = arith.index_cast %262 : i32 to index
    %c0_82 = arith.constant 0 : index
    %266 = vector.load %arg7[%265, %c0_82] : memref<64x512xf32, #tpu.memory_space<vmem>>, vector<8x512xf32>
    %267 = vector.extract_strided_slice %264 {offsets = [0, 0], sizes = [8, 256], strides = [1, 1]} : vector<8x512xf32> to vector<8x256xf32>
    %cst_83 = arith.constant dense<0.000000e+00> : vector<8x256xf32>
    %268 = tpu.matmul %216, %12, %cst_83 {dimension_numbers = #tpu.dot_dimension_numbers<[1], [0], [0], [1], [0, 0, 1, 1], [], []>} : vector<8x64xf32>, vector<64x256xf32>, vector<8x256xf32> -> vector<8x256xf32>
    %269 = arith.addf %267, %268 : vector<8x256xf32>
    %270 = vector.extract_strided_slice %266 {offsets = [0, 256], sizes = [8, 256], strides = [1, 1]} : vector<8x512xf32> to vector<8x256xf32>
    %cst_84 = arith.constant dense<0.000000e+00> : vector<8x256xf32>
    %271 = tpu.matmul %241, %13, %cst_84 {dimension_numbers = #tpu.dot_dimension_numbers<[1], [0], [0], [1], [0, 0, 1, 1], [], []>} : vector<8x64xf32>, vector<64x256xf32>, vector<8x256xf32> -> vector<8x256xf32>
    %272 = arith.addf %270, %271 : vector<8x256xf32>
    %273 = vector.extract_strided_slice %269 {offsets = [0, 0], sizes = [8, 64], strides = [1, 1]} : vector<8x256xf32> to vector<8x64xf32>
    %274 = arith.negf %273 : vector<8x64xf32>
    %275 = math.exp %274 : vector<8x64xf32>
    %cst_85 = arith.constant 1.000000e+00 : f32
    %276 = vector.broadcast %cst_85 : f32 to vector<8x64xf32>
    %277 = arith.addf %276, %275 : vector<8x64xf32>
    %278 = arith.divf %276, %277 : vector<8x64xf32>
    %279 = vector.extract_strided_slice %269 {offsets = [0, 64], sizes = [8, 64], strides = [1, 1]} : vector<8x256xf32> to vector<8x64xf32>
    %280 = arith.negf %279 : vector<8x64xf32>
    %281 = math.exp %280 : vector<8x64xf32>
    %cst_86 = arith.constant 1.000000e+00 : f32
    %282 = vector.broadcast %cst_86 : f32 to vector<8x64xf32>
    %283 = arith.addf %282, %281 : vector<8x64xf32>
    %284 = arith.divf %282, %283 : vector<8x64xf32>
    %285 = vector.extract_strided_slice %269 {offsets = [0, 128], sizes = [8, 64], strides = [1, 1]} : vector<8x256xf32> to vector<8x64xf32>
    %286 = math.tanh %285 : vector<8x64xf32>
    %287 = vector.extract_strided_slice %269 {offsets = [0, 192], sizes = [8, 64], strides = [1, 1]} : vector<8x256xf32> to vector<8x64xf32>
    %288 = arith.negf %287 : vector<8x64xf32>
    %289 = math.exp %288 : vector<8x64xf32>
    %cst_87 = arith.constant 1.000000e+00 : f32
    %290 = vector.broadcast %cst_87 : f32 to vector<8x64xf32>
    %291 = arith.addf %290, %289 : vector<8x64xf32>
    %292 = arith.divf %290, %291 : vector<8x64xf32>
    %293 = arith.mulf %284, %214 : vector<8x64xf32>
    %294 = arith.mulf %278, %286 : vector<8x64xf32>
    %295 = arith.addf %293, %294 : vector<8x64xf32>
    %296 = math.tanh %295 : vector<8x64xf32>
    %297 = arith.mulf %292, %296 : vector<8x64xf32>
    %298 = vector.extract_strided_slice %272 {offsets = [0, 0], sizes = [8, 64], strides = [1, 1]} : vector<8x256xf32> to vector<8x64xf32>
    %299 = arith.negf %298 : vector<8x64xf32>
    %300 = math.exp %299 : vector<8x64xf32>
    %cst_88 = arith.constant 1.000000e+00 : f32
    %301 = vector.broadcast %cst_88 : f32 to vector<8x64xf32>
    %302 = arith.addf %301, %300 : vector<8x64xf32>
    %303 = arith.divf %301, %302 : vector<8x64xf32>
    %304 = vector.extract_strided_slice %272 {offsets = [0, 64], sizes = [8, 64], strides = [1, 1]} : vector<8x256xf32> to vector<8x64xf32>
    %305 = arith.negf %304 : vector<8x64xf32>
    %306 = math.exp %305 : vector<8x64xf32>
    %cst_89 = arith.constant 1.000000e+00 : f32
    %307 = vector.broadcast %cst_89 : f32 to vector<8x64xf32>
    %308 = arith.addf %307, %306 : vector<8x64xf32>
    %309 = arith.divf %307, %308 : vector<8x64xf32>
    %310 = vector.extract_strided_slice %272 {offsets = [0, 128], sizes = [8, 64], strides = [1, 1]} : vector<8x256xf32> to vector<8x64xf32>
    %311 = math.tanh %310 : vector<8x64xf32>
    %312 = vector.extract_strided_slice %272 {offsets = [0, 192], sizes = [8, 64], strides = [1, 1]} : vector<8x256xf32> to vector<8x64xf32>
    %313 = arith.negf %312 : vector<8x64xf32>
    %314 = math.exp %313 : vector<8x64xf32>
    %cst_90 = arith.constant 1.000000e+00 : f32
    %315 = vector.broadcast %cst_90 : f32 to vector<8x64xf32>
    %316 = arith.addf %315, %314 : vector<8x64xf32>
    %317 = arith.divf %315, %316 : vector<8x64xf32>
    %318 = arith.mulf %309, %239 : vector<8x64xf32>
    %319 = arith.mulf %303, %311 : vector<8x64xf32>
    %320 = arith.addf %318, %319 : vector<8x64xf32>
    %321 = math.tanh %320 : vector<8x64xf32>
    %322 = arith.mulf %317, %321 : vector<8x64xf32>
    %c0_91 = arith.constant 0 : index
    %323 = arith.index_cast %259 : i32 to index
    %c0_92 = arith.constant 0 : index
    %324 = vector.load %arg6[%c0_91, %323, %c0_92] : memref<1x64x64xf32, #tpu.memory_space<vmem>>, vector<1x8x64xf32>
    %325 = vector.shape_cast %324 : vector<1x8x64xf32> to vector<8x64xf32>
    %326 = arith.addf %325, %297 : vector<8x64xf32>
    %c0_93 = arith.constant 0 : index
    %327 = arith.index_cast %259 : i32 to index
    %c0_94 = arith.constant 0 : index
    %328 = vector.load %arg6[%c0_93, %327, %c0_94] : memref<1x64x64xf32, #tpu.memory_space<vmem>>, vector<1x8x64xf32>
    %329 = vector.shape_cast %328 : vector<1x8x64xf32> to vector<8x64xf32>
    %330 = vector.shape_cast %326 : vector<8x64xf32> to vector<1x8x64xf32>
    tpu.vector_store %arg6[%c0_93, %327, %c0_94], %330 {strides = array<i32>} : memref<1x64x64xf32, #tpu.memory_space<vmem>>, vector<1x8x64xf32>,
    %c0_95 = arith.constant 0 : index
    %331 = arith.index_cast %262 : i32 to index
    %c0_96 = arith.constant 0 : index
    %332 = vector.load %arg6[%c0_95, %331, %c0_96] : memref<1x64x64xf32, #tpu.memory_space<vmem>>, vector<1x8x64xf32>
    %333 = vector.shape_cast %332 : vector<1x8x64xf32> to vector<8x64xf32>
    %334 = arith.addf %333, %322 : vector<8x64xf32>
    %c0_97 = arith.constant 0 : index
    %335 = arith.index_cast %262 : i32 to index
    %c0_98 = arith.constant 0 : index
    %336 = vector.load %arg6[%c0_97, %335, %c0_98] : memref<1x64x64xf32, #tpu.memory_space<vmem>>, vector<1x8x64xf32>
    %337 = vector.shape_cast %336 : vector<1x8x64xf32> to vector<8x64xf32>
    %338 = vector.shape_cast %334 : vector<8x64xf32> to vector<1x8x64xf32>
    tpu.vector_store %arg6[%c0_97, %335, %c0_98], %338 {strides = array<i32>} : memref<1x64x64xf32, #tpu.memory_space<vmem>>, vector<1x8x64xf32>,
    %c4_i32 = arith.constant 4 : i32
    %c8_i32_99 = arith.constant 8 : i32
    %339 = arith.muli %c4_i32, %c8_i32_99 : i32
    %340 = tpu.assume_multiple %339, 8 : i32
    %c7_i32_100 = arith.constant 7 : i32
    %341 = arith.subi %c7_i32_100, %c4_i32 : i32
    %c8_i32_101 = arith.constant 8 : i32
    %342 = arith.muli %341, %c8_i32_101 : i32
    %343 = tpu.assume_multiple %342, 8 : i32
    %344 = arith.index_cast %340 : i32 to index
    %c0_102 = arith.constant 0 : index
    %345 = vector.load %arg7[%344, %c0_102] : memref<64x512xf32, #tpu.memory_space<vmem>>, vector<8x512xf32>
    %346 = arith.index_cast %343 : i32 to index
    %c0_103 = arith.constant 0 : index
    %347 = vector.load %arg7[%346, %c0_103] : memref<64x512xf32, #tpu.memory_space<vmem>>, vector<8x512xf32>
    %348 = vector.extract_strided_slice %345 {offsets = [0, 0], sizes = [8, 256], strides = [1, 1]} : vector<8x512xf32> to vector<8x256xf32>
    %cst_104 = arith.constant dense<0.000000e+00> : vector<8x256xf32>
    %349 = tpu.matmul %297, %12, %cst_104 {dimension_numbers = #tpu.dot_dimension_numbers<[1], [0], [0], [1], [0, 0, 1, 1], [], []>} : vector<8x64xf32>, vector<64x256xf32>, vector<8x256xf32> -> vector<8x256xf32>
    %350 = arith.addf %348, %349 : vector<8x256xf32>
    %351 = vector.extract_strided_slice %347 {offsets = [0, 256], sizes = [8, 256], strides = [1, 1]} : vector<8x512xf32> to vector<8x256xf32>
    %cst_105 = arith.constant dense<0.000000e+00> : vector<8x256xf32>
    %352 = tpu.matmul %322, %13, %cst_105 {dimension_numbers = #tpu.dot_dimension_numbers<[1], [0], [0], [1], [0, 0, 1, 1], [], []>} : vector<8x64xf32>, vector<64x256xf32>, vector<8x256xf32> -> vector<8x256xf32>
    %353 = arith.addf %351, %352 : vector<8x256xf32>
    %354 = vector.extract_strided_slice %350 {offsets = [0, 0], sizes = [8, 64], strides = [1, 1]} : vector<8x256xf32> to vector<8x64xf32>
    %355 = arith.negf %354 : vector<8x64xf32>
    %356 = math.exp %355 : vector<8x64xf32>
    %cst_106 = arith.constant 1.000000e+00 : f32
    %357 = vector.broadcast %cst_106 : f32 to vector<8x64xf32>
    %358 = arith.addf %357, %356 : vector<8x64xf32>
    %359 = arith.divf %357, %358 : vector<8x64xf32>
    %360 = vector.extract_strided_slice %350 {offsets = [0, 64], sizes = [8, 64], strides = [1, 1]} : vector<8x256xf32> to vector<8x64xf32>
    %361 = arith.negf %360 : vector<8x64xf32>
    %362 = math.exp %361 : vector<8x64xf32>
    %cst_107 = arith.constant 1.000000e+00 : f32
    %363 = vector.broadcast %cst_107 : f32 to vector<8x64xf32>
    %364 = arith.addf %363, %362 : vector<8x64xf32>
    %365 = arith.divf %363, %364 : vector<8x64xf32>
    %366 = vector.extract_strided_slice %350 {offsets = [0, 128], sizes = [8, 64], strides = [1, 1]} : vector<8x256xf32> to vector<8x64xf32>
    %367 = math.tanh %366 : vector<8x64xf32>
    %368 = vector.extract_strided_slice %350 {offsets = [0, 192], sizes = [8, 64], strides = [1, 1]} : vector<8x256xf32> to vector<8x64xf32>
    %369 = arith.negf %368 : vector<8x64xf32>
    %370 = math.exp %369 : vector<8x64xf32>
    %cst_108 = arith.constant 1.000000e+00 : f32
    %371 = vector.broadcast %cst_108 : f32 to vector<8x64xf32>
    %372 = arith.addf %371, %370 : vector<8x64xf32>
    %373 = arith.divf %371, %372 : vector<8x64xf32>
    %374 = arith.mulf %365, %295 : vector<8x64xf32>
    %375 = arith.mulf %359, %367 : vector<8x64xf32>
    %376 = arith.addf %374, %375 : vector<8x64xf32>
    %377 = math.tanh %376 : vector<8x64xf32>
    %378 = arith.mulf %373, %377 : vector<8x64xf32>
    %379 = vector.extract_strided_slice %353 {offsets = [0, 0], sizes = [8, 64], strides = [1, 1]} : vector<8x256xf32> to vector<8x64xf32>
    %380 = arith.negf %379 : vector<8x64xf32>
    %381 = math.exp %380 : vector<8x64xf32>
    %cst_109 = arith.constant 1.000000e+00 : f32
    %382 = vector.broadcast %cst_109 : f32 to vector<8x64xf32>
    %383 = arith.addf %382, %381 : vector<8x64xf32>
    %384 = arith.divf %382, %383 : vector<8x64xf32>
    %385 = vector.extract_strided_slice %353 {offsets = [0, 64], sizes = [8, 64], strides = [1, 1]} : vector<8x256xf32> to vector<8x64xf32>
    %386 = arith.negf %385 : vector<8x64xf32>
    %387 = math.exp %386 : vector<8x64xf32>
    %cst_110 = arith.constant 1.000000e+00 : f32
    %388 = vector.broadcast %cst_110 : f32 to vector<8x64xf32>
    %389 = arith.addf %388, %387 : vector<8x64xf32>
    %390 = arith.divf %388, %389 : vector<8x64xf32>
    %391 = vector.extract_strided_slice %353 {offsets = [0, 128], sizes = [8, 64], strides = [1, 1]} : vector<8x256xf32> to vector<8x64xf32>
    %392 = math.tanh %391 : vector<8x64xf32>
    %393 = vector.extract_strided_slice %353 {offsets = [0, 192], sizes = [8, 64], strides = [1, 1]} : vector<8x256xf32> to vector<8x64xf32>
    %394 = arith.negf %393 : vector<8x64xf32>
    %395 = math.exp %394 : vector<8x64xf32>
    %cst_111 = arith.constant 1.000000e+00 : f32
    %396 = vector.broadcast %cst_111 : f32 to vector<8x64xf32>
    %397 = arith.addf %396, %395 : vector<8x64xf32>
    %398 = arith.divf %396, %397 : vector<8x64xf32>
    %399 = arith.mulf %390, %320 : vector<8x64xf32>
    %400 = arith.mulf %384, %392 : vector<8x64xf32>
    %401 = arith.addf %399, %400 : vector<8x64xf32>
    %402 = math.tanh %401 : vector<8x64xf32>
    %403 = arith.mulf %398, %402 : vector<8x64xf32>
    %c0_112 = arith.constant 0 : index
    %404 = arith.index_cast %340 : i32 to index
    %c0_113 = arith.constant 0 : index
    %405 = vector.load %arg6[%c0_112, %404, %c0_113] : memref<1x64x64xf32, #tpu.memory_space<vmem>>, vector<1x8x64xf32>
    %406 = vector.shape_cast %405 : vector<1x8x64xf32> to vector<8x64xf32>
    %407 = arith.addf %406, %378 : vector<8x64xf32>
    %c0_114 = arith.constant 0 : index
    %408 = arith.index_cast %340 : i32 to index
    %c0_115 = arith.constant 0 : index
    %409 = vector.load %arg6[%c0_114, %408, %c0_115] : memref<1x64x64xf32, #tpu.memory_space<vmem>>, vector<1x8x64xf32>
    %410 = vector.shape_cast %409 : vector<1x8x64xf32> to vector<8x64xf32>
    %411 = vector.shape_cast %407 : vector<8x64xf32> to vector<1x8x64xf32>
    tpu.vector_store %arg6[%c0_114, %408, %c0_115], %411 {strides = array<i32>} : memref<1x64x64xf32, #tpu.memory_space<vmem>>, vector<1x8x64xf32>,
    %c0_116 = arith.constant 0 : index
    %412 = arith.index_cast %343 : i32 to index
    %c0_117 = arith.constant 0 : index
    %413 = vector.load %arg6[%c0_116, %412, %c0_117] : memref<1x64x64xf32, #tpu.memory_space<vmem>>, vector<1x8x64xf32>
    %414 = vector.shape_cast %413 : vector<1x8x64xf32> to vector<8x64xf32>
    %415 = arith.addf %414, %403 : vector<8x64xf32>
    %c0_118 = arith.constant 0 : index
    %416 = arith.index_cast %343 : i32 to index
    %c0_119 = arith.constant 0 : index
    %417 = vector.load %arg6[%c0_118, %416, %c0_119] : memref<1x64x64xf32, #tpu.memory_space<vmem>>, vector<1x8x64xf32>
    %418 = vector.shape_cast %417 : vector<1x8x64xf32> to vector<8x64xf32>
    %419 = vector.shape_cast %415 : vector<8x64xf32> to vector<1x8x64xf32>
    tpu.vector_store %arg6[%c0_118, %416, %c0_119], %419 {strides = array<i32>} : memref<1x64x64xf32, #tpu.memory_space<vmem>>, vector<1x8x64xf32>,
    %c5_i32 = arith.constant 5 : i32
    %c8_i32_120 = arith.constant 8 : i32
    %420 = arith.muli %c5_i32, %c8_i32_120 : i32
    %421 = tpu.assume_multiple %420, 8 : i32
    %c7_i32_121 = arith.constant 7 : i32
    %422 = arith.subi %c7_i32_121, %c5_i32 : i32
    %c8_i32_122 = arith.constant 8 : i32
    %423 = arith.muli %422, %c8_i32_122 : i32
    %424 = tpu.assume_multiple %423, 8 : i32
    %425 = arith.index_cast %421 : i32 to index
    %c0_123 = arith.constant 0 : index
    %426 = vector.load %arg7[%425, %c0_123] : memref<64x512xf32, #tpu.memory_space<vmem>>, vector<8x512xf32>
    %427 = arith.index_cast %424 : i32 to index
    %c0_124 = arith.constant 0 : index
    %428 = vector.load %arg7[%427, %c0_124] : memref<64x512xf32, #tpu.memory_space<vmem>>, vector<8x512xf32>
    %429 = vector.extract_strided_slice %426 {offsets = [0, 0], sizes = [8, 256], strides = [1, 1]} : vector<8x512xf32> to vector<8x256xf32>
    %cst_125 = arith.constant dense<0.000000e+00> : vector<8x256xf32>
    %430 = tpu.matmul %378, %12, %cst_125 {dimension_numbers = #tpu.dot_dimension_numbers<[1], [0], [0], [1], [0, 0, 1, 1], [], []>} : vector<8x64xf32>, vector<64x256xf32>, vector<8x256xf32> -> vector<8x256xf32>
    %431 = arith.addf %429, %430 : vector<8x256xf32>
    %432 = vector.extract_strided_slice %428 {offsets = [0, 256], sizes = [8, 256], strides = [1, 1]} : vector<8x512xf32> to vector<8x256xf32>
    %cst_126 = arith.constant dense<0.000000e+00> : vector<8x256xf32>
    %433 = tpu.matmul %403, %13, %cst_126 {dimension_numbers = #tpu.dot_dimension_numbers<[1], [0], [0], [1], [0, 0, 1, 1], [], []>} : vector<8x64xf32>, vector<64x256xf32>, vector<8x256xf32> -> vector<8x256xf32>
    %434 = arith.addf %432, %433 : vector<8x256xf32>
    %435 = vector.extract_strided_slice %431 {offsets = [0, 0], sizes = [8, 64], strides = [1, 1]} : vector<8x256xf32> to vector<8x64xf32>
    %436 = arith.negf %435 : vector<8x64xf32>
    %437 = math.exp %436 : vector<8x64xf32>
    %cst_127 = arith.constant 1.000000e+00 : f32
    %438 = vector.broadcast %cst_127 : f32 to vector<8x64xf32>
    %439 = arith.addf %438, %437 : vector<8x64xf32>
    %440 = arith.divf %438, %439 : vector<8x64xf32>
    %441 = vector.extract_strided_slice %431 {offsets = [0, 64], sizes = [8, 64], strides = [1, 1]} : vector<8x256xf32> to vector<8x64xf32>
    %442 = arith.negf %441 : vector<8x64xf32>
    %443 = math.exp %442 : vector<8x64xf32>
    %cst_128 = arith.constant 1.000000e+00 : f32
    %444 = vector.broadcast %cst_128 : f32 to vector<8x64xf32>
    %445 = arith.addf %444, %443 : vector<8x64xf32>
    %446 = arith.divf %444, %445 : vector<8x64xf32>
    %447 = vector.extract_strided_slice %431 {offsets = [0, 128], sizes = [8, 64], strides = [1, 1]} : vector<8x256xf32> to vector<8x64xf32>
    %448 = math.tanh %447 : vector<8x64xf32>
    %449 = vector.extract_strided_slice %431 {offsets = [0, 192], sizes = [8, 64], strides = [1, 1]} : vector<8x256xf32> to vector<8x64xf32>
    %450 = arith.negf %449 : vector<8x64xf32>
    %451 = math.exp %450 : vector<8x64xf32>
    %cst_129 = arith.constant 1.000000e+00 : f32
    %452 = vector.broadcast %cst_129 : f32 to vector<8x64xf32>
    %453 = arith.addf %452, %451 : vector<8x64xf32>
    %454 = arith.divf %452, %453 : vector<8x64xf32>
    %455 = arith.mulf %446, %376 : vector<8x64xf32>
    %456 = arith.mulf %440, %448 : vector<8x64xf32>
    %457 = arith.addf %455, %456 : vector<8x64xf32>
    %458 = math.tanh %457 : vector<8x64xf32>
    %459 = arith.mulf %454, %458 : vector<8x64xf32>
    %460 = vector.extract_strided_slice %434 {offsets = [0, 0], sizes = [8, 64], strides = [1, 1]} : vector<8x256xf32> to vector<8x64xf32>
    %461 = arith.negf %460 : vector<8x64xf32>
    %462 = math.exp %461 : vector<8x64xf32>
    %cst_130 = arith.constant 1.000000e+00 : f32
    %463 = vector.broadcast %cst_130 : f32 to vector<8x64xf32>
    %464 = arith.addf %463, %462 : vector<8x64xf32>
    %465 = arith.divf %463, %464 : vector<8x64xf32>
    %466 = vector.extract_strided_slice %434 {offsets = [0, 64], sizes = [8, 64], strides = [1, 1]} : vector<8x256xf32> to vector<8x64xf32>
    %467 = arith.negf %466 : vector<8x64xf32>
    %468 = math.exp %467 : vector<8x64xf32>
    %cst_131 = arith.constant 1.000000e+00 : f32
    %469 = vector.broadcast %cst_131 : f32 to vector<8x64xf32>
    %470 = arith.addf %469, %468 : vector<8x64xf32>
    %471 = arith.divf %469, %470 : vector<8x64xf32>
    %472 = vector.extract_strided_slice %434 {offsets = [0, 128], sizes = [8, 64], strides = [1, 1]} : vector<8x256xf32> to vector<8x64xf32>
    %473 = math.tanh %472 : vector<8x64xf32>
    %474 = vector.extract_strided_slice %434 {offsets = [0, 192], sizes = [8, 64], strides = [1, 1]} : vector<8x256xf32> to vector<8x64xf32>
    %475 = arith.negf %474 : vector<8x64xf32>
    %476 = math.exp %475 : vector<8x64xf32>
    %cst_132 = arith.constant 1.000000e+00 : f32
    %477 = vector.broadcast %cst_132 : f32 to vector<8x64xf32>
    %478 = arith.addf %477, %476 : vector<8x64xf32>
    %479 = arith.divf %477, %478 : vector<8x64xf32>
    %480 = arith.mulf %471, %401 : vector<8x64xf32>
    %481 = arith.mulf %465, %473 : vector<8x64xf32>
    %482 = arith.addf %480, %481 : vector<8x64xf32>
    %483 = math.tanh %482 : vector<8x64xf32>
    %484 = arith.mulf %479, %483 : vector<8x64xf32>
    %c0_133 = arith.constant 0 : index
    %485 = arith.index_cast %421 : i32 to index
    %c0_134 = arith.constant 0 : index
    %486 = vector.load %arg6[%c0_133, %485, %c0_134] : memref<1x64x64xf32, #tpu.memory_space<vmem>>, vector<1x8x64xf32>
    %487 = vector.shape_cast %486 : vector<1x8x64xf32> to vector<8x64xf32>
    %488 = arith.addf %487, %459 : vector<8x64xf32>
    %c0_135 = arith.constant 0 : index
    %489 = arith.index_cast %421 : i32 to index
    %c0_136 = arith.constant 0 : index
    %490 = vector.load %arg6[%c0_135, %489, %c0_136] : memref<1x64x64xf32, #tpu.memory_space<vmem>>, vector<1x8x64xf32>
    %491 = vector.shape_cast %490 : vector<1x8x64xf32> to vector<8x64xf32>
    %492 = vector.shape_cast %488 : vector<8x64xf32> to vector<1x8x64xf32>
    tpu.vector_store %arg6[%c0_135, %489, %c0_136], %492 {strides = array<i32>} : memref<1x64x64xf32, #tpu.memory_space<vmem>>, vector<1x8x64xf32>,
    %c0_137 = arith.constant 0 : index
    %493 = arith.index_cast %424 : i32 to index
    %c0_138 = arith.constant 0 : index
    %494 = vector.load %arg6[%c0_137, %493, %c0_138] : memref<1x64x64xf32, #tpu.memory_space<vmem>>, vector<1x8x64xf32>
    %495 = vector.shape_cast %494 : vector<1x8x64xf32> to vector<8x64xf32>
    %496 = arith.addf %495, %484 : vector<8x64xf32>
    %c0_139 = arith.constant 0 : index
    %497 = arith.index_cast %424 : i32 to index
    %c0_140 = arith.constant 0 : index
    %498 = vector.load %arg6[%c0_139, %497, %c0_140] : memref<1x64x64xf32, #tpu.memory_space<vmem>>, vector<1x8x64xf32>
    %499 = vector.shape_cast %498 : vector<1x8x64xf32> to vector<8x64xf32>
    %500 = vector.shape_cast %496 : vector<8x64xf32> to vector<1x8x64xf32>
    tpu.vector_store %arg6[%c0_139, %497, %c0_140], %500 {strides = array<i32>} : memref<1x64x64xf32, #tpu.memory_space<vmem>>, vector<1x8x64xf32>,
    %c6_i32 = arith.constant 6 : i32
    %c8_i32_141 = arith.constant 8 : i32
    %501 = arith.muli %c6_i32, %c8_i32_141 : i32
    %502 = tpu.assume_multiple %501, 8 : i32
    %c7_i32_142 = arith.constant 7 : i32
    %503 = arith.subi %c7_i32_142, %c6_i32 : i32
    %c8_i32_143 = arith.constant 8 : i32
    %504 = arith.muli %503, %c8_i32_143 : i32
    %505 = tpu.assume_multiple %504, 8 : i32
    %506 = arith.index_cast %502 : i32 to index
    %c0_144 = arith.constant 0 : index
    %507 = vector.load %arg7[%506, %c0_144] : memref<64x512xf32, #tpu.memory_space<vmem>>, vector<8x512xf32>
    %508 = arith.index_cast %505 : i32 to index
    %c0_145 = arith.constant 0 : index
    %509 = vector.load %arg7[%508, %c0_145] : memref<64x512xf32, #tpu.memory_space<vmem>>, vector<8x512xf32>
    %510 = vector.extract_strided_slice %507 {offsets = [0, 0], sizes = [8, 256], strides = [1, 1]} : vector<8x512xf32> to vector<8x256xf32>
    %cst_146 = arith.constant dense<0.000000e+00> : vector<8x256xf32>
    %511 = tpu.matmul %459, %12, %cst_146 {dimension_numbers = #tpu.dot_dimension_numbers<[1], [0], [0], [1], [0, 0, 1, 1], [], []>} : vector<8x64xf32>, vector<64x256xf32>, vector<8x256xf32> -> vector<8x256xf32>
    %512 = arith.addf %510, %511 : vector<8x256xf32>
    %513 = vector.extract_strided_slice %509 {offsets = [0, 256], sizes = [8, 256], strides = [1, 1]} : vector<8x512xf32> to vector<8x256xf32>
    %cst_147 = arith.constant dense<0.000000e+00> : vector<8x256xf32>
    %514 = tpu.matmul %484, %13, %cst_147 {dimension_numbers = #tpu.dot_dimension_numbers<[1], [0], [0], [1], [0, 0, 1, 1], [], []>} : vector<8x64xf32>, vector<64x256xf32>, vector<8x256xf32> -> vector<8x256xf32>
    %515 = arith.addf %513, %514 : vector<8x256xf32>
    %516 = vector.extract_strided_slice %512 {offsets = [0, 0], sizes = [8, 64], strides = [1, 1]} : vector<8x256xf32> to vector<8x64xf32>
    %517 = arith.negf %516 : vector<8x64xf32>
    %518 = math.exp %517 : vector<8x64xf32>
    %cst_148 = arith.constant 1.000000e+00 : f32
    %519 = vector.broadcast %cst_148 : f32 to vector<8x64xf32>
    %520 = arith.addf %519, %518 : vector<8x64xf32>
    %521 = arith.divf %519, %520 : vector<8x64xf32>
    %522 = vector.extract_strided_slice %512 {offsets = [0, 64], sizes = [8, 64], strides = [1, 1]} : vector<8x256xf32> to vector<8x64xf32>
    %523 = arith.negf %522 : vector<8x64xf32>
    %524 = math.exp %523 : vector<8x64xf32>
    %cst_149 = arith.constant 1.000000e+00 : f32
    %525 = vector.broadcast %cst_149 : f32 to vector<8x64xf32>
    %526 = arith.addf %525, %524 : vector<8x64xf32>
    %527 = arith.divf %525, %526 : vector<8x64xf32>
    %528 = vector.extract_strided_slice %512 {offsets = [0, 128], sizes = [8, 64], strides = [1, 1]} : vector<8x256xf32> to vector<8x64xf32>
    %529 = math.tanh %528 : vector<8x64xf32>
    %530 = vector.extract_strided_slice %512 {offsets = [0, 192], sizes = [8, 64], strides = [1, 1]} : vector<8x256xf32> to vector<8x64xf32>
    %531 = arith.negf %530 : vector<8x64xf32>
    %532 = math.exp %531 : vector<8x64xf32>
    %cst_150 = arith.constant 1.000000e+00 : f32
    %533 = vector.broadcast %cst_150 : f32 to vector<8x64xf32>
    %534 = arith.addf %533, %532 : vector<8x64xf32>
    %535 = arith.divf %533, %534 : vector<8x64xf32>
    %536 = arith.mulf %527, %457 : vector<8x64xf32>
    %537 = arith.mulf %521, %529 : vector<8x64xf32>
    %538 = arith.addf %536, %537 : vector<8x64xf32>
    %539 = math.tanh %538 : vector<8x64xf32>
    %540 = arith.mulf %535, %539 : vector<8x64xf32>
    %541 = vector.extract_strided_slice %515 {offsets = [0, 0], sizes = [8, 64], strides = [1, 1]} : vector<8x256xf32> to vector<8x64xf32>
    %542 = arith.negf %541 : vector<8x64xf32>
    %543 = math.exp %542 : vector<8x64xf32>
    %cst_151 = arith.constant 1.000000e+00 : f32
    %544 = vector.broadcast %cst_151 : f32 to vector<8x64xf32>
    %545 = arith.addf %544, %543 : vector<8x64xf32>
    %546 = arith.divf %544, %545 : vector<8x64xf32>
    %547 = vector.extract_strided_slice %515 {offsets = [0, 64], sizes = [8, 64], strides = [1, 1]} : vector<8x256xf32> to vector<8x64xf32>
    %548 = arith.negf %547 : vector<8x64xf32>
    %549 = math.exp %548 : vector<8x64xf32>
    %cst_152 = arith.constant 1.000000e+00 : f32
    %550 = vector.broadcast %cst_152 : f32 to vector<8x64xf32>
    %551 = arith.addf %550, %549 : vector<8x64xf32>
    %552 = arith.divf %550, %551 : vector<8x64xf32>
    %553 = vector.extract_strided_slice %515 {offsets = [0, 128], sizes = [8, 64], strides = [1, 1]} : vector<8x256xf32> to vector<8x64xf32>
    %554 = math.tanh %553 : vector<8x64xf32>
    %555 = vector.extract_strided_slice %515 {offsets = [0, 192], sizes = [8, 64], strides = [1, 1]} : vector<8x256xf32> to vector<8x64xf32>
    %556 = arith.negf %555 : vector<8x64xf32>
    %557 = math.exp %556 : vector<8x64xf32>
    %cst_153 = arith.constant 1.000000e+00 : f32
    %558 = vector.broadcast %cst_153 : f32 to vector<8x64xf32>
    %559 = arith.addf %558, %557 : vector<8x64xf32>
    %560 = arith.divf %558, %559 : vector<8x64xf32>
    %561 = arith.mulf %552, %482 : vector<8x64xf32>
    %562 = arith.mulf %546, %554 : vector<8x64xf32>
    %563 = arith.addf %561, %562 : vector<8x64xf32>
    %564 = math.tanh %563 : vector<8x64xf32>
    %565 = arith.mulf %560, %564 : vector<8x64xf32>
    %c0_154 = arith.constant 0 : index
    %566 = arith.index_cast %502 : i32 to index
    %c0_155 = arith.constant 0 : index
    %567 = vector.load %arg6[%c0_154, %566, %c0_155] : memref<1x64x64xf32, #tpu.memory_space<vmem>>, vector<1x8x64xf32>
    %568 = vector.shape_cast %567 : vector<1x8x64xf32> to vector<8x64xf32>
    %569 = arith.addf %568, %540 : vector<8x64xf32>
    %c0_156 = arith.constant 0 : index
    %570 = arith.index_cast %502 : i32 to index
    %c0_157 = arith.constant 0 : index
    %571 = vector.load %arg6[%c0_156, %570, %c0_157] : memref<1x64x64xf32, #tpu.memory_space<vmem>>, vector<1x8x64xf32>
    %572 = vector.shape_cast %571 : vector<1x8x64xf32> to vector<8x64xf32>
    %573 = vector.shape_cast %569 : vector<8x64xf32> to vector<1x8x64xf32>
    tpu.vector_store %arg6[%c0_156, %570, %c0_157], %573 {strides = array<i32>} : memref<1x64x64xf32, #tpu.memory_space<vmem>>, vector<1x8x64xf32>,
    %c0_158 = arith.constant 0 : index
    %574 = arith.index_cast %505 : i32 to index
    %c0_159 = arith.constant 0 : index
    %575 = vector.load %arg6[%c0_158, %574, %c0_159] : memref<1x64x64xf32, #tpu.memory_space<vmem>>, vector<1x8x64xf32>
    %576 = vector.shape_cast %575 : vector<1x8x64xf32> to vector<8x64xf32>
    %577 = arith.addf %576, %565 : vector<8x64xf32>
    %c0_160 = arith.constant 0 : index
    %578 = arith.index_cast %505 : i32 to index
    %c0_161 = arith.constant 0 : index
    %579 = vector.load %arg6[%c0_160, %578, %c0_161] : memref<1x64x64xf32, #tpu.memory_space<vmem>>, vector<1x8x64xf32>
    %580 = vector.shape_cast %579 : vector<1x8x64xf32> to vector<8x64xf32>
    %581 = vector.shape_cast %577 : vector<8x64xf32> to vector<1x8x64xf32>
    tpu.vector_store %arg6[%c0_160, %578, %c0_161], %581 {strides = array<i32>} : memref<1x64x64xf32, #tpu.memory_space<vmem>>, vector<1x8x64xf32>,
    %c7_i32_162 = arith.constant 7 : i32
    %c8_i32_163 = arith.constant 8 : i32
    %582 = arith.muli %c7_i32_162, %c8_i32_163 : i32
    %583 = tpu.assume_multiple %582, 8 : i32
    %c7_i32_164 = arith.constant 7 : i32
    %584 = arith.subi %c7_i32_164, %c7_i32_162 : i32
    %c8_i32_165 = arith.constant 8 : i32
    %585 = arith.muli %584, %c8_i32_165 : i32
    %586 = tpu.assume_multiple %585, 8 : i32
    %587 = arith.index_cast %583 : i32 to index
    %c0_166 = arith.constant 0 : index
    %588 = vector.load %arg7[%587, %c0_166] : memref<64x512xf32, #tpu.memory_space<vmem>>, vector<8x512xf32>
    %589 = arith.index_cast %586 : i32 to index
    %c0_167 = arith.constant 0 : index
    %590 = vector.load %arg7[%589, %c0_167] : memref<64x512xf32, #tpu.memory_space<vmem>>, vector<8x512xf32>
    %591 = vector.extract_strided_slice %588 {offsets = [0, 0], sizes = [8, 256], strides = [1, 1]} : vector<8x512xf32> to vector<8x256xf32>
    %cst_168 = arith.constant dense<0.000000e+00> : vector<8x256xf32>
    %592 = tpu.matmul %540, %12, %cst_168 {dimension_numbers = #tpu.dot_dimension_numbers<[1], [0], [0], [1], [0, 0, 1, 1], [], []>} : vector<8x64xf32>, vector<64x256xf32>, vector<8x256xf32> -> vector<8x256xf32>
    %593 = arith.addf %591, %592 : vector<8x256xf32>
    %594 = vector.extract_strided_slice %590 {offsets = [0, 256], sizes = [8, 256], strides = [1, 1]} : vector<8x512xf32> to vector<8x256xf32>
    %cst_169 = arith.constant dense<0.000000e+00> : vector<8x256xf32>
    %595 = tpu.matmul %565, %13, %cst_169 {dimension_numbers = #tpu.dot_dimension_numbers<[1], [0], [0], [1], [0, 0, 1, 1], [], []>} : vector<8x64xf32>, vector<64x256xf32>, vector<8x256xf32> -> vector<8x256xf32>
    %596 = arith.addf %594, %595 : vector<8x256xf32>
    %597 = vector.extract_strided_slice %593 {offsets = [0, 0], sizes = [8, 64], strides = [1, 1]} : vector<8x256xf32> to vector<8x64xf32>
    %598 = arith.negf %597 : vector<8x64xf32>
    %599 = math.exp %598 : vector<8x64xf32>
    %cst_170 = arith.constant 1.000000e+00 : f32
    %600 = vector.broadcast %cst_170 : f32 to vector<8x64xf32>
    %601 = arith.addf %600, %599 : vector<8x64xf32>
    %602 = arith.divf %600, %601 : vector<8x64xf32>
    %603 = vector.extract_strided_slice %593 {offsets = [0, 64], sizes = [8, 64], strides = [1, 1]} : vector<8x256xf32> to vector<8x64xf32>
    %604 = arith.negf %603 : vector<8x64xf32>
    %605 = math.exp %604 : vector<8x64xf32>
    %cst_171 = arith.constant 1.000000e+00 : f32
    %606 = vector.broadcast %cst_171 : f32 to vector<8x64xf32>
    %607 = arith.addf %606, %605 : vector<8x64xf32>
    %608 = arith.divf %606, %607 : vector<8x64xf32>
    %609 = vector.extract_strided_slice %593 {offsets = [0, 128], sizes = [8, 64], strides = [1, 1]} : vector<8x256xf32> to vector<8x64xf32>
    %610 = math.tanh %609 : vector<8x64xf32>
    %611 = vector.extract_strided_slice %593 {offsets = [0, 192], sizes = [8, 64], strides = [1, 1]} : vector<8x256xf32> to vector<8x64xf32>
    %612 = arith.negf %611 : vector<8x64xf32>
    %613 = math.exp %612 : vector<8x64xf32>
    %cst_172 = arith.constant 1.000000e+00 : f32
    %614 = vector.broadcast %cst_172 : f32 to vector<8x64xf32>
    %615 = arith.addf %614, %613 : vector<8x64xf32>
    %616 = arith.divf %614, %615 : vector<8x64xf32>
    %617 = arith.mulf %608, %538 : vector<8x64xf32>
    %618 = arith.mulf %602, %610 : vector<8x64xf32>
    %619 = arith.addf %617, %618 : vector<8x64xf32>
    %620 = math.tanh %619 : vector<8x64xf32>
    %621 = arith.mulf %616, %620 : vector<8x64xf32>
    %622 = vector.extract_strided_slice %596 {offsets = [0, 0], sizes = [8, 64], strides = [1, 1]} : vector<8x256xf32> to vector<8x64xf32>
    %623 = arith.negf %622 : vector<8x64xf32>
    %624 = math.exp %623 : vector<8x64xf32>
    %cst_173 = arith.constant 1.000000e+00 : f32
    %625 = vector.broadcast %cst_173 : f32 to vector<8x64xf32>
    %626 = arith.addf %625, %624 : vector<8x64xf32>
    %627 = arith.divf %625, %626 : vector<8x64xf32>
    %628 = vector.extract_strided_slice %596 {offsets = [0, 64], sizes = [8, 64], strides = [1, 1]} : vector<8x256xf32> to vector<8x64xf32>
    %629 = arith.negf %628 : vector<8x64xf32>
    %630 = math.exp %629 : vector<8x64xf32>
    %cst_174 = arith.constant 1.000000e+00 : f32
    %631 = vector.broadcast %cst_174 : f32 to vector<8x64xf32>
    %632 = arith.addf %631, %630 : vector<8x64xf32>
    %633 = arith.divf %631, %632 : vector<8x64xf32>
    %634 = vector.extract_strided_slice %596 {offsets = [0, 128], sizes = [8, 64], strides = [1, 1]} : vector<8x256xf32> to vector<8x64xf32>
    %635 = math.tanh %634 : vector<8x64xf32>
    %636 = vector.extract_strided_slice %596 {offsets = [0, 192], sizes = [8, 64], strides = [1, 1]} : vector<8x256xf32> to vector<8x64xf32>
    %637 = arith.negf %636 : vector<8x64xf32>
    %638 = math.exp %637 : vector<8x64xf32>
    %cst_175 = arith.constant 1.000000e+00 : f32
    %639 = vector.broadcast %cst_175 : f32 to vector<8x64xf32>
    %640 = arith.addf %639, %638 : vector<8x64xf32>
    %641 = arith.divf %639, %640 : vector<8x64xf32>
    %642 = arith.mulf %633, %563 : vector<8x64xf32>
    %643 = arith.mulf %627, %635 : vector<8x64xf32>
    %644 = arith.addf %642, %643 : vector<8x64xf32>
    %645 = math.tanh %644 : vector<8x64xf32>
    %646 = arith.mulf %641, %645 : vector<8x64xf32>
    %c0_176 = arith.constant 0 : index
    %647 = arith.index_cast %583 : i32 to index
    %c0_177 = arith.constant 0 : index
    %648 = vector.load %arg6[%c0_176, %647, %c0_177] : memref<1x64x64xf32, #tpu.memory_space<vmem>>, vector<1x8x64xf32>
    %649 = vector.shape_cast %648 : vector<1x8x64xf32> to vector<8x64xf32>
    %650 = arith.addf %649, %621 : vector<8x64xf32>
    %c0_178 = arith.constant 0 : index
    %651 = arith.index_cast %583 : i32 to index
    %c0_179 = arith.constant 0 : index
    %652 = vector.load %arg6[%c0_178, %651, %c0_179] : memref<1x64x64xf32, #tpu.memory_space<vmem>>, vector<1x8x64xf32>
    %653 = vector.shape_cast %652 : vector<1x8x64xf32> to vector<8x64xf32>
    %654 = vector.shape_cast %650 : vector<8x64xf32> to vector<1x8x64xf32>
    tpu.vector_store %arg6[%c0_178, %651, %c0_179], %654 {strides = array<i32>} : memref<1x64x64xf32, #tpu.memory_space<vmem>>, vector<1x8x64xf32>,
    %c0_180 = arith.constant 0 : index
    %655 = arith.index_cast %586 : i32 to index
    %c0_181 = arith.constant 0 : index
    %656 = vector.load %arg6[%c0_180, %655, %c0_181] : memref<1x64x64xf32, #tpu.memory_space<vmem>>, vector<1x8x64xf32>
    %657 = vector.shape_cast %656 : vector<1x8x64xf32> to vector<8x64xf32>
    %658 = arith.addf %657, %646 : vector<8x64xf32>
    %c0_182 = arith.constant 0 : index
    %659 = arith.index_cast %586 : i32 to index
    %c0_183 = arith.constant 0 : index
    %660 = vector.load %arg6[%c0_182, %659, %c0_183] : memref<1x64x64xf32, #tpu.memory_space<vmem>>, vector<1x8x64xf32>
    %661 = vector.shape_cast %660 : vector<1x8x64xf32> to vector<8x64xf32>
    %662 = vector.shape_cast %658 : vector<8x64xf32> to vector<1x8x64xf32>
    tpu.vector_store %arg6[%c0_182, %659, %c0_183], %662 {strides = array<i32>} : memref<1x64x64xf32, #tpu.memory_space<vmem>>, vector<1x8x64xf32>,
    %c8_i32_184 = arith.constant 8 : i32
    return
  }
  func.func @transform_0(%arg0: i32) -> (i32, i32, i32) {
    %c0_i32 = arith.constant 0 : i32
    %c0_i32_0 = arith.constant 0 : i32
    %c0_i32_1 = arith.constant 0 : i32
    return %arg0, %c0_i32, %c0_i32_0 : i32, i32, i32
  }
  func.func @transform_1(%arg0: i32) -> (i32, i32) {
    %c0_i32 = arith.constant 0 : i32
    %c0_i32_0 = arith.constant 0 : i32
    %c0_i32_1 = arith.constant 0 : i32
    return %c0_i32, %c0_i32_0 : i32, i32
  }
  func.func @transform_2(%arg0: i32) -> (i32, i32) {
    %c0_i32 = arith.constant 0 : i32
    %c0_i32_0 = arith.constant 0 : i32
    %c0_i32_1 = arith.constant 0 : i32
    return %c0_i32, %c0_i32_0 : i32, i32
  }
  func.func @transform_3(%arg0: i32) -> (i32, i32) {
    %c0_i32 = arith.constant 0 : i32
    %c0_i32_0 = arith.constant 0 : i32
    %c0_i32_1 = arith.constant 0 : i32
    return %c0_i32, %c0_i32_0 : i32, i32
  }
  func.func @transform_4(%arg0: i32) -> (i32, i32) {
    %c0_i32 = arith.constant 0 : i32
    %c0_i32_0 = arith.constant 0 : i32
    %c0_i32_1 = arith.constant 0 : i32
    return %c0_i32, %c0_i32_0 : i32, i32
  }
  func.func @transform_5(%arg0: i32) -> (i32, i32, i32) {
    %c0_i32 = arith.constant 0 : i32
    %c0_i32_0 = arith.constant 0 : i32
    %c0_i32_1 = arith.constant 0 : i32
    return %arg0, %c0_i32, %c0_i32_0 : i32, i32, i32
  }
}

module attributes {stable_mosaic.version = 11 : i64} {
  func.func @_bilstm_layer_kernel(%arg0: i32, %arg1: memref<1x64x64xf32, #tpu.memory_space<vmem>>, %arg2: memref<64x256xf32, #tpu.memory_space<vmem>>, %arg3: memref<32x128xf32, #tpu.memory_space<vmem>>, %arg4: memref<32x128xf32, #tpu.memory_space<vmem>>, %arg5: memref<1x256xf32, #tpu.memory_space<vmem>>, %arg6: memref<1x64x32xf32, #tpu.memory_space<vmem>>, %arg7: memref<64x256xf32, #tpu.memory_space<vmem>>) attributes {dimension_semantics = [#tpu.dimension_semantics<parallel>], iteration_bounds = array<i64: 1>, scalar_prefetch = 0 : i64, scratch_operands = 1 : i64, tpu.core_type = #tpu.core_type<tc>, window_params = [{transform_indices = @transform_0, window_bounds = array<i64: 1, 64, 64>}, {pipeline_mode = #tpu.pipeline_mode<synchronous>, transform_indices = @transform_1, window_bounds = array<i64: 64, 256>}, {pipeline_mode = #tpu.pipeline_mode<synchronous>, transform_indices = @transform_2, window_bounds = array<i64: 32, 128>}, {pipeline_mode = #tpu.pipeline_mode<synchronous>, transform_indices = @transform_3, window_bounds = array<i64: 32, 128>}, {pipeline_mode = #tpu.pipeline_mode<synchronous>, transform_indices = @transform_4, window_bounds = array<i64: 1, 256>}, {transform_indices = @transform_5, window_bounds = array<i64: 1, 64, 32>}]} {
    %c0 = arith.constant 0 : index
    %c0_0 = arith.constant 0 : index
    %c0_1 = arith.constant 0 : index
    %0 = vector.load %arg1[%c0, %c0_0, %c0_1] : memref<1x64x64xf32, #tpu.memory_space<vmem>>, vector<1x64x64xf32>
    %1 = vector.shape_cast %0 : vector<1x64x64xf32> to vector<64x64xf32>
    %c0_2 = arith.constant 0 : index
    %c0_3 = arith.constant 0 : index
    %2 = vector.load %arg2[%c0_2, %c0_3] : memref<64x256xf32, #tpu.memory_space<vmem>>, vector<64x256xf32>
    %cst = arith.constant dense<0.000000e+00> : vector<64x256xf32>
    %3 = tpu.matmul %1, %2, %cst {dimension_numbers = #tpu.dot_dimension_numbers<[1], [0], [0], [1], [0, 0, 1, 1], [], []>} : vector<64x64xf32>, vector<64x256xf32>, vector<64x256xf32> -> vector<64x256xf32>
    %c0_4 = arith.constant 0 : index
    %c0_5 = arith.constant 0 : index
    %4 = vector.load %arg5[%c0_4, %c0_5] : memref<1x256xf32, #tpu.memory_space<vmem>>, vector<1x256xf32>
    %5 = vector.broadcast %4 : vector<1x256xf32> to vector<64x256xf32>
    %6 = arith.addf %3, %5 : vector<64x256xf32>
    %c0_6 = arith.constant 0 : index
    %c0_7 = arith.constant 0 : index
    %7 = vector.load %arg7[%c0_6, %c0_7] : memref<64x256xf32, #tpu.memory_space<vmem>>, vector<64x256xf32>
    tpu.vector_store %arg7[%c0_6, %c0_7], %6 {strides = array<i32>} : memref<64x256xf32, #tpu.memory_space<vmem>>, vector<64x256xf32>,
    %cst_8 = arith.constant 0.000000e+00 : f32
    %8 = vector.broadcast %cst_8 : f32 to vector<64x32xf32>
    %c0_9 = arith.constant 0 : index
    %c0_10 = arith.constant 0 : index
    %c0_11 = arith.constant 0 : index
    %9 = vector.load %arg6[%c0_9, %c0_10, %c0_11] : memref<1x64x32xf32, #tpu.memory_space<vmem>>, vector<1x64x32xf32>
    %10 = vector.shape_cast %9 : vector<1x64x32xf32> to vector<64x32xf32>
    %11 = vector.shape_cast %8 : vector<64x32xf32> to vector<1x64x32xf32>
    tpu.vector_store %arg6[%c0_9, %c0_10, %c0_11], %11 {strides = array<i32>} : memref<1x64x32xf32, #tpu.memory_space<vmem>>, vector<1x64x32xf32>,
    %c0_12 = arith.constant 0 : index
    %c0_13 = arith.constant 0 : index
    %12 = vector.load %arg3[%c0_12, %c0_13] : memref<32x128xf32, #tpu.memory_space<vmem>>, vector<32x128xf32>
    %c0_14 = arith.constant 0 : index
    %c0_15 = arith.constant 0 : index
    %13 = vector.load %arg4[%c0_14, %c0_15] : memref<32x128xf32, #tpu.memory_space<vmem>>, vector<32x128xf32>
    %cst_16 = arith.constant 0.000000e+00 : f32
    %14 = vector.broadcast %cst_16 : f32 to vector<8x32xf32>
    %c0_i32 = arith.constant 0 : i32
    %c8_i32 = arith.constant 8 : i32
    %15 = arith.muli %c0_i32, %c8_i32 : i32
    %16 = tpu.assume_multiple %15, 8 : i32
    %c7_i32 = arith.constant 7 : i32
    %17 = arith.subi %c7_i32, %c0_i32 : i32
    %c8_i32_17 = arith.constant 8 : i32
    %18 = arith.muli %17, %c8_i32_17 : i32
    %19 = tpu.assume_multiple %18, 8 : i32
    %20 = arith.index_cast %16 : i32 to index
    %c0_18 = arith.constant 0 : index
    %21 = vector.load %arg7[%20, %c0_18] : memref<64x256xf32, #tpu.memory_space<vmem>>, vector<8x256xf32>
    %22 = arith.index_cast %19 : i32 to index
    %c0_19 = arith.constant 0 : index
    %23 = vector.load %arg7[%22, %c0_19] : memref<64x256xf32, #tpu.memory_space<vmem>>, vector<8x256xf32>
    %24 = vector.extract_strided_slice %21 {offsets = [0, 0], sizes = [8, 128], strides = [1, 1]} : vector<8x256xf32> to vector<8x128xf32>
    %cst_20 = arith.constant dense<0.000000e+00> : vector<8x128xf32>
    %25 = tpu.matmul %14, %12, %cst_20 {dimension_numbers = #tpu.dot_dimension_numbers<[1], [0], [0], [1], [0, 0, 1, 1], [], []>} : vector<8x32xf32>, vector<32x128xf32>, vector<8x128xf32> -> vector<8x128xf32>
    %26 = arith.addf %24, %25 : vector<8x128xf32>
    %27 = vector.extract_strided_slice %23 {offsets = [0, 128], sizes = [8, 128], strides = [1, 1]} : vector<8x256xf32> to vector<8x128xf32>
    %cst_21 = arith.constant dense<0.000000e+00> : vector<8x128xf32>
    %28 = tpu.matmul %14, %13, %cst_21 {dimension_numbers = #tpu.dot_dimension_numbers<[1], [0], [0], [1], [0, 0, 1, 1], [], []>} : vector<8x32xf32>, vector<32x128xf32>, vector<8x128xf32> -> vector<8x128xf32>
    %29 = arith.addf %27, %28 : vector<8x128xf32>
    %30 = vector.extract_strided_slice %26 {offsets = [0, 0], sizes = [8, 32], strides = [1, 1]} : vector<8x128xf32> to vector<8x32xf32>
    %31 = arith.negf %30 : vector<8x32xf32>
    %32 = math.exp %31 : vector<8x32xf32>
    %cst_22 = arith.constant 1.000000e+00 : f32
    %33 = vector.broadcast %cst_22 : f32 to vector<8x32xf32>
    %34 = arith.addf %33, %32 : vector<8x32xf32>
    %35 = arith.divf %33, %34 : vector<8x32xf32>
    %36 = vector.extract_strided_slice %26 {offsets = [0, 32], sizes = [8, 32], strides = [1, 1]} : vector<8x128xf32> to vector<8x32xf32>
    %37 = arith.negf %36 : vector<8x32xf32>
    %38 = math.exp %37 : vector<8x32xf32>
    %cst_23 = arith.constant 1.000000e+00 : f32
    %39 = vector.broadcast %cst_23 : f32 to vector<8x32xf32>
    %40 = arith.addf %39, %38 : vector<8x32xf32>
    %41 = arith.divf %39, %40 : vector<8x32xf32>
    %42 = vector.extract_strided_slice %26 {offsets = [0, 64], sizes = [8, 32], strides = [1, 1]} : vector<8x128xf32> to vector<8x32xf32>
    %43 = math.tanh %42 : vector<8x32xf32>
    %44 = vector.extract_strided_slice %26 {offsets = [0, 96], sizes = [8, 32], strides = [1, 1]} : vector<8x128xf32> to vector<8x32xf32>
    %45 = arith.negf %44 : vector<8x32xf32>
    %46 = math.exp %45 : vector<8x32xf32>
    %cst_24 = arith.constant 1.000000e+00 : f32
    %47 = vector.broadcast %cst_24 : f32 to vector<8x32xf32>
    %48 = arith.addf %47, %46 : vector<8x32xf32>
    %49 = arith.divf %47, %48 : vector<8x32xf32>
    %50 = arith.mulf %41, %14 : vector<8x32xf32>
    %51 = arith.mulf %35, %43 : vector<8x32xf32>
    %52 = arith.addf %50, %51 : vector<8x32xf32>
    %53 = math.tanh %52 : vector<8x32xf32>
    %54 = arith.mulf %49, %53 : vector<8x32xf32>
    %55 = vector.extract_strided_slice %29 {offsets = [0, 0], sizes = [8, 32], strides = [1, 1]} : vector<8x128xf32> to vector<8x32xf32>
    %56 = arith.negf %55 : vector<8x32xf32>
    %57 = math.exp %56 : vector<8x32xf32>
    %cst_25 = arith.constant 1.000000e+00 : f32
    %58 = vector.broadcast %cst_25 : f32 to vector<8x32xf32>
    %59 = arith.addf %58, %57 : vector<8x32xf32>
    %60 = arith.divf %58, %59 : vector<8x32xf32>
    %61 = vector.extract_strided_slice %29 {offsets = [0, 32], sizes = [8, 32], strides = [1, 1]} : vector<8x128xf32> to vector<8x32xf32>
    %62 = arith.negf %61 : vector<8x32xf32>
    %63 = math.exp %62 : vector<8x32xf32>
    %cst_26 = arith.constant 1.000000e+00 : f32
    %64 = vector.broadcast %cst_26 : f32 to vector<8x32xf32>
    %65 = arith.addf %64, %63 : vector<8x32xf32>
    %66 = arith.divf %64, %65 : vector<8x32xf32>
    %67 = vector.extract_strided_slice %29 {offsets = [0, 64], sizes = [8, 32], strides = [1, 1]} : vector<8x128xf32> to vector<8x32xf32>
    %68 = math.tanh %67 : vector<8x32xf32>
    %69 = vector.extract_strided_slice %29 {offsets = [0, 96], sizes = [8, 32], strides = [1, 1]} : vector<8x128xf32> to vector<8x32xf32>
    %70 = arith.negf %69 : vector<8x32xf32>
    %71 = math.exp %70 : vector<8x32xf32>
    %cst_27 = arith.constant 1.000000e+00 : f32
    %72 = vector.broadcast %cst_27 : f32 to vector<8x32xf32>
    %73 = arith.addf %72, %71 : vector<8x32xf32>
    %74 = arith.divf %72, %73 : vector<8x32xf32>
    %75 = arith.mulf %66, %14 : vector<8x32xf32>
    %76 = arith.mulf %60, %68 : vector<8x32xf32>
    %77 = arith.addf %75, %76 : vector<8x32xf32>
    %78 = math.tanh %77 : vector<8x32xf32>
    %79 = arith.mulf %74, %78 : vector<8x32xf32>
    %c0_28 = arith.constant 0 : index
    %80 = arith.index_cast %16 : i32 to index
    %c0_29 = arith.constant 0 : index
    %81 = vector.load %arg6[%c0_28, %80, %c0_29] : memref<1x64x32xf32, #tpu.memory_space<vmem>>, vector<1x8x32xf32>
    %82 = vector.shape_cast %81 : vector<1x8x32xf32> to vector<8x32xf32>
    %83 = arith.addf %82, %54 : vector<8x32xf32>
    %c0_30 = arith.constant 0 : index
    %84 = arith.index_cast %16 : i32 to index
    %c0_31 = arith.constant 0 : index
    %85 = vector.load %arg6[%c0_30, %84, %c0_31] : memref<1x64x32xf32, #tpu.memory_space<vmem>>, vector<1x8x32xf32>
    %86 = vector.shape_cast %85 : vector<1x8x32xf32> to vector<8x32xf32>
    %87 = vector.shape_cast %83 : vector<8x32xf32> to vector<1x8x32xf32>
    tpu.vector_store %arg6[%c0_30, %84, %c0_31], %87 {strides = array<i32>} : memref<1x64x32xf32, #tpu.memory_space<vmem>>, vector<1x8x32xf32>,
    %c0_32 = arith.constant 0 : index
    %88 = arith.index_cast %19 : i32 to index
    %c0_33 = arith.constant 0 : index
    %89 = vector.load %arg6[%c0_32, %88, %c0_33] : memref<1x64x32xf32, #tpu.memory_space<vmem>>, vector<1x8x32xf32>
    %90 = vector.shape_cast %89 : vector<1x8x32xf32> to vector<8x32xf32>
    %91 = arith.addf %90, %79 : vector<8x32xf32>
    %c0_34 = arith.constant 0 : index
    %92 = arith.index_cast %19 : i32 to index
    %c0_35 = arith.constant 0 : index
    %93 = vector.load %arg6[%c0_34, %92, %c0_35] : memref<1x64x32xf32, #tpu.memory_space<vmem>>, vector<1x8x32xf32>
    %94 = vector.shape_cast %93 : vector<1x8x32xf32> to vector<8x32xf32>
    %95 = vector.shape_cast %91 : vector<8x32xf32> to vector<1x8x32xf32>
    tpu.vector_store %arg6[%c0_34, %92, %c0_35], %95 {strides = array<i32>} : memref<1x64x32xf32, #tpu.memory_space<vmem>>, vector<1x8x32xf32>,
    %c1_i32 = arith.constant 1 : i32
    %c8_i32_36 = arith.constant 8 : i32
    %96 = arith.muli %c1_i32, %c8_i32_36 : i32
    %97 = tpu.assume_multiple %96, 8 : i32
    %c7_i32_37 = arith.constant 7 : i32
    %98 = arith.subi %c7_i32_37, %c1_i32 : i32
    %c8_i32_38 = arith.constant 8 : i32
    %99 = arith.muli %98, %c8_i32_38 : i32
    %100 = tpu.assume_multiple %99, 8 : i32
    %101 = arith.index_cast %97 : i32 to index
    %c0_39 = arith.constant 0 : index
    %102 = vector.load %arg7[%101, %c0_39] : memref<64x256xf32, #tpu.memory_space<vmem>>, vector<8x256xf32>
    %103 = arith.index_cast %100 : i32 to index
    %c0_40 = arith.constant 0 : index
    %104 = vector.load %arg7[%103, %c0_40] : memref<64x256xf32, #tpu.memory_space<vmem>>, vector<8x256xf32>
    %105 = vector.extract_strided_slice %102 {offsets = [0, 0], sizes = [8, 128], strides = [1, 1]} : vector<8x256xf32> to vector<8x128xf32>
    %cst_41 = arith.constant dense<0.000000e+00> : vector<8x128xf32>
    %106 = tpu.matmul %54, %12, %cst_41 {dimension_numbers = #tpu.dot_dimension_numbers<[1], [0], [0], [1], [0, 0, 1, 1], [], []>} : vector<8x32xf32>, vector<32x128xf32>, vector<8x128xf32> -> vector<8x128xf32>
    %107 = arith.addf %105, %106 : vector<8x128xf32>
    %108 = vector.extract_strided_slice %104 {offsets = [0, 128], sizes = [8, 128], strides = [1, 1]} : vector<8x256xf32> to vector<8x128xf32>
    %cst_42 = arith.constant dense<0.000000e+00> : vector<8x128xf32>
    %109 = tpu.matmul %79, %13, %cst_42 {dimension_numbers = #tpu.dot_dimension_numbers<[1], [0], [0], [1], [0, 0, 1, 1], [], []>} : vector<8x32xf32>, vector<32x128xf32>, vector<8x128xf32> -> vector<8x128xf32>
    %110 = arith.addf %108, %109 : vector<8x128xf32>
    %111 = vector.extract_strided_slice %107 {offsets = [0, 0], sizes = [8, 32], strides = [1, 1]} : vector<8x128xf32> to vector<8x32xf32>
    %112 = arith.negf %111 : vector<8x32xf32>
    %113 = math.exp %112 : vector<8x32xf32>
    %cst_43 = arith.constant 1.000000e+00 : f32
    %114 = vector.broadcast %cst_43 : f32 to vector<8x32xf32>
    %115 = arith.addf %114, %113 : vector<8x32xf32>
    %116 = arith.divf %114, %115 : vector<8x32xf32>
    %117 = vector.extract_strided_slice %107 {offsets = [0, 32], sizes = [8, 32], strides = [1, 1]} : vector<8x128xf32> to vector<8x32xf32>
    %118 = arith.negf %117 : vector<8x32xf32>
    %119 = math.exp %118 : vector<8x32xf32>
    %cst_44 = arith.constant 1.000000e+00 : f32
    %120 = vector.broadcast %cst_44 : f32 to vector<8x32xf32>
    %121 = arith.addf %120, %119 : vector<8x32xf32>
    %122 = arith.divf %120, %121 : vector<8x32xf32>
    %123 = vector.extract_strided_slice %107 {offsets = [0, 64], sizes = [8, 32], strides = [1, 1]} : vector<8x128xf32> to vector<8x32xf32>
    %124 = math.tanh %123 : vector<8x32xf32>
    %125 = vector.extract_strided_slice %107 {offsets = [0, 96], sizes = [8, 32], strides = [1, 1]} : vector<8x128xf32> to vector<8x32xf32>
    %126 = arith.negf %125 : vector<8x32xf32>
    %127 = math.exp %126 : vector<8x32xf32>
    %cst_45 = arith.constant 1.000000e+00 : f32
    %128 = vector.broadcast %cst_45 : f32 to vector<8x32xf32>
    %129 = arith.addf %128, %127 : vector<8x32xf32>
    %130 = arith.divf %128, %129 : vector<8x32xf32>
    %131 = arith.mulf %122, %52 : vector<8x32xf32>
    %132 = arith.mulf %116, %124 : vector<8x32xf32>
    %133 = arith.addf %131, %132 : vector<8x32xf32>
    %134 = math.tanh %133 : vector<8x32xf32>
    %135 = arith.mulf %130, %134 : vector<8x32xf32>
    %136 = vector.extract_strided_slice %110 {offsets = [0, 0], sizes = [8, 32], strides = [1, 1]} : vector<8x128xf32> to vector<8x32xf32>
    %137 = arith.negf %136 : vector<8x32xf32>
    %138 = math.exp %137 : vector<8x32xf32>
    %cst_46 = arith.constant 1.000000e+00 : f32
    %139 = vector.broadcast %cst_46 : f32 to vector<8x32xf32>
    %140 = arith.addf %139, %138 : vector<8x32xf32>
    %141 = arith.divf %139, %140 : vector<8x32xf32>
    %142 = vector.extract_strided_slice %110 {offsets = [0, 32], sizes = [8, 32], strides = [1, 1]} : vector<8x128xf32> to vector<8x32xf32>
    %143 = arith.negf %142 : vector<8x32xf32>
    %144 = math.exp %143 : vector<8x32xf32>
    %cst_47 = arith.constant 1.000000e+00 : f32
    %145 = vector.broadcast %cst_47 : f32 to vector<8x32xf32>
    %146 = arith.addf %145, %144 : vector<8x32xf32>
    %147 = arith.divf %145, %146 : vector<8x32xf32>
    %148 = vector.extract_strided_slice %110 {offsets = [0, 64], sizes = [8, 32], strides = [1, 1]} : vector<8x128xf32> to vector<8x32xf32>
    %149 = math.tanh %148 : vector<8x32xf32>
    %150 = vector.extract_strided_slice %110 {offsets = [0, 96], sizes = [8, 32], strides = [1, 1]} : vector<8x128xf32> to vector<8x32xf32>
    %151 = arith.negf %150 : vector<8x32xf32>
    %152 = math.exp %151 : vector<8x32xf32>
    %cst_48 = arith.constant 1.000000e+00 : f32
    %153 = vector.broadcast %cst_48 : f32 to vector<8x32xf32>
    %154 = arith.addf %153, %152 : vector<8x32xf32>
    %155 = arith.divf %153, %154 : vector<8x32xf32>
    %156 = arith.mulf %147, %77 : vector<8x32xf32>
    %157 = arith.mulf %141, %149 : vector<8x32xf32>
    %158 = arith.addf %156, %157 : vector<8x32xf32>
    %159 = math.tanh %158 : vector<8x32xf32>
    %160 = arith.mulf %155, %159 : vector<8x32xf32>
    %c0_49 = arith.constant 0 : index
    %161 = arith.index_cast %97 : i32 to index
    %c0_50 = arith.constant 0 : index
    %162 = vector.load %arg6[%c0_49, %161, %c0_50] : memref<1x64x32xf32, #tpu.memory_space<vmem>>, vector<1x8x32xf32>
    %163 = vector.shape_cast %162 : vector<1x8x32xf32> to vector<8x32xf32>
    %164 = arith.addf %163, %135 : vector<8x32xf32>
    %c0_51 = arith.constant 0 : index
    %165 = arith.index_cast %97 : i32 to index
    %c0_52 = arith.constant 0 : index
    %166 = vector.load %arg6[%c0_51, %165, %c0_52] : memref<1x64x32xf32, #tpu.memory_space<vmem>>, vector<1x8x32xf32>
    %167 = vector.shape_cast %166 : vector<1x8x32xf32> to vector<8x32xf32>
    %168 = vector.shape_cast %164 : vector<8x32xf32> to vector<1x8x32xf32>
    tpu.vector_store %arg6[%c0_51, %165, %c0_52], %168 {strides = array<i32>} : memref<1x64x32xf32, #tpu.memory_space<vmem>>, vector<1x8x32xf32>,
    %c0_53 = arith.constant 0 : index
    %169 = arith.index_cast %100 : i32 to index
    %c0_54 = arith.constant 0 : index
    %170 = vector.load %arg6[%c0_53, %169, %c0_54] : memref<1x64x32xf32, #tpu.memory_space<vmem>>, vector<1x8x32xf32>
    %171 = vector.shape_cast %170 : vector<1x8x32xf32> to vector<8x32xf32>
    %172 = arith.addf %171, %160 : vector<8x32xf32>
    %c0_55 = arith.constant 0 : index
    %173 = arith.index_cast %100 : i32 to index
    %c0_56 = arith.constant 0 : index
    %174 = vector.load %arg6[%c0_55, %173, %c0_56] : memref<1x64x32xf32, #tpu.memory_space<vmem>>, vector<1x8x32xf32>
    %175 = vector.shape_cast %174 : vector<1x8x32xf32> to vector<8x32xf32>
    %176 = vector.shape_cast %172 : vector<8x32xf32> to vector<1x8x32xf32>
    tpu.vector_store %arg6[%c0_55, %173, %c0_56], %176 {strides = array<i32>} : memref<1x64x32xf32, #tpu.memory_space<vmem>>, vector<1x8x32xf32>,
    %c2_i32 = arith.constant 2 : i32
    %c8_i32_57 = arith.constant 8 : i32
    %177 = arith.muli %c2_i32, %c8_i32_57 : i32
    %178 = tpu.assume_multiple %177, 8 : i32
    %c7_i32_58 = arith.constant 7 : i32
    %179 = arith.subi %c7_i32_58, %c2_i32 : i32
    %c8_i32_59 = arith.constant 8 : i32
    %180 = arith.muli %179, %c8_i32_59 : i32
    %181 = tpu.assume_multiple %180, 8 : i32
    %182 = arith.index_cast %178 : i32 to index
    %c0_60 = arith.constant 0 : index
    %183 = vector.load %arg7[%182, %c0_60] : memref<64x256xf32, #tpu.memory_space<vmem>>, vector<8x256xf32>
    %184 = arith.index_cast %181 : i32 to index
    %c0_61 = arith.constant 0 : index
    %185 = vector.load %arg7[%184, %c0_61] : memref<64x256xf32, #tpu.memory_space<vmem>>, vector<8x256xf32>
    %186 = vector.extract_strided_slice %183 {offsets = [0, 0], sizes = [8, 128], strides = [1, 1]} : vector<8x256xf32> to vector<8x128xf32>
    %cst_62 = arith.constant dense<0.000000e+00> : vector<8x128xf32>
    %187 = tpu.matmul %135, %12, %cst_62 {dimension_numbers = #tpu.dot_dimension_numbers<[1], [0], [0], [1], [0, 0, 1, 1], [], []>} : vector<8x32xf32>, vector<32x128xf32>, vector<8x128xf32> -> vector<8x128xf32>
    %188 = arith.addf %186, %187 : vector<8x128xf32>
    %189 = vector.extract_strided_slice %185 {offsets = [0, 128], sizes = [8, 128], strides = [1, 1]} : vector<8x256xf32> to vector<8x128xf32>
    %cst_63 = arith.constant dense<0.000000e+00> : vector<8x128xf32>
    %190 = tpu.matmul %160, %13, %cst_63 {dimension_numbers = #tpu.dot_dimension_numbers<[1], [0], [0], [1], [0, 0, 1, 1], [], []>} : vector<8x32xf32>, vector<32x128xf32>, vector<8x128xf32> -> vector<8x128xf32>
    %191 = arith.addf %189, %190 : vector<8x128xf32>
    %192 = vector.extract_strided_slice %188 {offsets = [0, 0], sizes = [8, 32], strides = [1, 1]} : vector<8x128xf32> to vector<8x32xf32>
    %193 = arith.negf %192 : vector<8x32xf32>
    %194 = math.exp %193 : vector<8x32xf32>
    %cst_64 = arith.constant 1.000000e+00 : f32
    %195 = vector.broadcast %cst_64 : f32 to vector<8x32xf32>
    %196 = arith.addf %195, %194 : vector<8x32xf32>
    %197 = arith.divf %195, %196 : vector<8x32xf32>
    %198 = vector.extract_strided_slice %188 {offsets = [0, 32], sizes = [8, 32], strides = [1, 1]} : vector<8x128xf32> to vector<8x32xf32>
    %199 = arith.negf %198 : vector<8x32xf32>
    %200 = math.exp %199 : vector<8x32xf32>
    %cst_65 = arith.constant 1.000000e+00 : f32
    %201 = vector.broadcast %cst_65 : f32 to vector<8x32xf32>
    %202 = arith.addf %201, %200 : vector<8x32xf32>
    %203 = arith.divf %201, %202 : vector<8x32xf32>
    %204 = vector.extract_strided_slice %188 {offsets = [0, 64], sizes = [8, 32], strides = [1, 1]} : vector<8x128xf32> to vector<8x32xf32>
    %205 = math.tanh %204 : vector<8x32xf32>
    %206 = vector.extract_strided_slice %188 {offsets = [0, 96], sizes = [8, 32], strides = [1, 1]} : vector<8x128xf32> to vector<8x32xf32>
    %207 = arith.negf %206 : vector<8x32xf32>
    %208 = math.exp %207 : vector<8x32xf32>
    %cst_66 = arith.constant 1.000000e+00 : f32
    %209 = vector.broadcast %cst_66 : f32 to vector<8x32xf32>
    %210 = arith.addf %209, %208 : vector<8x32xf32>
    %211 = arith.divf %209, %210 : vector<8x32xf32>
    %212 = arith.mulf %203, %133 : vector<8x32xf32>
    %213 = arith.mulf %197, %205 : vector<8x32xf32>
    %214 = arith.addf %212, %213 : vector<8x32xf32>
    %215 = math.tanh %214 : vector<8x32xf32>
    %216 = arith.mulf %211, %215 : vector<8x32xf32>
    %217 = vector.extract_strided_slice %191 {offsets = [0, 0], sizes = [8, 32], strides = [1, 1]} : vector<8x128xf32> to vector<8x32xf32>
    %218 = arith.negf %217 : vector<8x32xf32>
    %219 = math.exp %218 : vector<8x32xf32>
    %cst_67 = arith.constant 1.000000e+00 : f32
    %220 = vector.broadcast %cst_67 : f32 to vector<8x32xf32>
    %221 = arith.addf %220, %219 : vector<8x32xf32>
    %222 = arith.divf %220, %221 : vector<8x32xf32>
    %223 = vector.extract_strided_slice %191 {offsets = [0, 32], sizes = [8, 32], strides = [1, 1]} : vector<8x128xf32> to vector<8x32xf32>
    %224 = arith.negf %223 : vector<8x32xf32>
    %225 = math.exp %224 : vector<8x32xf32>
    %cst_68 = arith.constant 1.000000e+00 : f32
    %226 = vector.broadcast %cst_68 : f32 to vector<8x32xf32>
    %227 = arith.addf %226, %225 : vector<8x32xf32>
    %228 = arith.divf %226, %227 : vector<8x32xf32>
    %229 = vector.extract_strided_slice %191 {offsets = [0, 64], sizes = [8, 32], strides = [1, 1]} : vector<8x128xf32> to vector<8x32xf32>
    %230 = math.tanh %229 : vector<8x32xf32>
    %231 = vector.extract_strided_slice %191 {offsets = [0, 96], sizes = [8, 32], strides = [1, 1]} : vector<8x128xf32> to vector<8x32xf32>
    %232 = arith.negf %231 : vector<8x32xf32>
    %233 = math.exp %232 : vector<8x32xf32>
    %cst_69 = arith.constant 1.000000e+00 : f32
    %234 = vector.broadcast %cst_69 : f32 to vector<8x32xf32>
    %235 = arith.addf %234, %233 : vector<8x32xf32>
    %236 = arith.divf %234, %235 : vector<8x32xf32>
    %237 = arith.mulf %228, %158 : vector<8x32xf32>
    %238 = arith.mulf %222, %230 : vector<8x32xf32>
    %239 = arith.addf %237, %238 : vector<8x32xf32>
    %240 = math.tanh %239 : vector<8x32xf32>
    %241 = arith.mulf %236, %240 : vector<8x32xf32>
    %c0_70 = arith.constant 0 : index
    %242 = arith.index_cast %178 : i32 to index
    %c0_71 = arith.constant 0 : index
    %243 = vector.load %arg6[%c0_70, %242, %c0_71] : memref<1x64x32xf32, #tpu.memory_space<vmem>>, vector<1x8x32xf32>
    %244 = vector.shape_cast %243 : vector<1x8x32xf32> to vector<8x32xf32>
    %245 = arith.addf %244, %216 : vector<8x32xf32>
    %c0_72 = arith.constant 0 : index
    %246 = arith.index_cast %178 : i32 to index
    %c0_73 = arith.constant 0 : index
    %247 = vector.load %arg6[%c0_72, %246, %c0_73] : memref<1x64x32xf32, #tpu.memory_space<vmem>>, vector<1x8x32xf32>
    %248 = vector.shape_cast %247 : vector<1x8x32xf32> to vector<8x32xf32>
    %249 = vector.shape_cast %245 : vector<8x32xf32> to vector<1x8x32xf32>
    tpu.vector_store %arg6[%c0_72, %246, %c0_73], %249 {strides = array<i32>} : memref<1x64x32xf32, #tpu.memory_space<vmem>>, vector<1x8x32xf32>,
    %c0_74 = arith.constant 0 : index
    %250 = arith.index_cast %181 : i32 to index
    %c0_75 = arith.constant 0 : index
    %251 = vector.load %arg6[%c0_74, %250, %c0_75] : memref<1x64x32xf32, #tpu.memory_space<vmem>>, vector<1x8x32xf32>
    %252 = vector.shape_cast %251 : vector<1x8x32xf32> to vector<8x32xf32>
    %253 = arith.addf %252, %241 : vector<8x32xf32>
    %c0_76 = arith.constant 0 : index
    %254 = arith.index_cast %181 : i32 to index
    %c0_77 = arith.constant 0 : index
    %255 = vector.load %arg6[%c0_76, %254, %c0_77] : memref<1x64x32xf32, #tpu.memory_space<vmem>>, vector<1x8x32xf32>
    %256 = vector.shape_cast %255 : vector<1x8x32xf32> to vector<8x32xf32>
    %257 = vector.shape_cast %253 : vector<8x32xf32> to vector<1x8x32xf32>
    tpu.vector_store %arg6[%c0_76, %254, %c0_77], %257 {strides = array<i32>} : memref<1x64x32xf32, #tpu.memory_space<vmem>>, vector<1x8x32xf32>,
    %c3_i32 = arith.constant 3 : i32
    %c8_i32_78 = arith.constant 8 : i32
    %258 = arith.muli %c3_i32, %c8_i32_78 : i32
    %259 = tpu.assume_multiple %258, 8 : i32
    %c7_i32_79 = arith.constant 7 : i32
    %260 = arith.subi %c7_i32_79, %c3_i32 : i32
    %c8_i32_80 = arith.constant 8 : i32
    %261 = arith.muli %260, %c8_i32_80 : i32
    %262 = tpu.assume_multiple %261, 8 : i32
    %263 = arith.index_cast %259 : i32 to index
    %c0_81 = arith.constant 0 : index
    %264 = vector.load %arg7[%263, %c0_81] : memref<64x256xf32, #tpu.memory_space<vmem>>, vector<8x256xf32>
    %265 = arith.index_cast %262 : i32 to index
    %c0_82 = arith.constant 0 : index
    %266 = vector.load %arg7[%265, %c0_82] : memref<64x256xf32, #tpu.memory_space<vmem>>, vector<8x256xf32>
    %267 = vector.extract_strided_slice %264 {offsets = [0, 0], sizes = [8, 128], strides = [1, 1]} : vector<8x256xf32> to vector<8x128xf32>
    %cst_83 = arith.constant dense<0.000000e+00> : vector<8x128xf32>
    %268 = tpu.matmul %216, %12, %cst_83 {dimension_numbers = #tpu.dot_dimension_numbers<[1], [0], [0], [1], [0, 0, 1, 1], [], []>} : vector<8x32xf32>, vector<32x128xf32>, vector<8x128xf32> -> vector<8x128xf32>
    %269 = arith.addf %267, %268 : vector<8x128xf32>
    %270 = vector.extract_strided_slice %266 {offsets = [0, 128], sizes = [8, 128], strides = [1, 1]} : vector<8x256xf32> to vector<8x128xf32>
    %cst_84 = arith.constant dense<0.000000e+00> : vector<8x128xf32>
    %271 = tpu.matmul %241, %13, %cst_84 {dimension_numbers = #tpu.dot_dimension_numbers<[1], [0], [0], [1], [0, 0, 1, 1], [], []>} : vector<8x32xf32>, vector<32x128xf32>, vector<8x128xf32> -> vector<8x128xf32>
    %272 = arith.addf %270, %271 : vector<8x128xf32>
    %273 = vector.extract_strided_slice %269 {offsets = [0, 0], sizes = [8, 32], strides = [1, 1]} : vector<8x128xf32> to vector<8x32xf32>
    %274 = arith.negf %273 : vector<8x32xf32>
    %275 = math.exp %274 : vector<8x32xf32>
    %cst_85 = arith.constant 1.000000e+00 : f32
    %276 = vector.broadcast %cst_85 : f32 to vector<8x32xf32>
    %277 = arith.addf %276, %275 : vector<8x32xf32>
    %278 = arith.divf %276, %277 : vector<8x32xf32>
    %279 = vector.extract_strided_slice %269 {offsets = [0, 32], sizes = [8, 32], strides = [1, 1]} : vector<8x128xf32> to vector<8x32xf32>
    %280 = arith.negf %279 : vector<8x32xf32>
    %281 = math.exp %280 : vector<8x32xf32>
    %cst_86 = arith.constant 1.000000e+00 : f32
    %282 = vector.broadcast %cst_86 : f32 to vector<8x32xf32>
    %283 = arith.addf %282, %281 : vector<8x32xf32>
    %284 = arith.divf %282, %283 : vector<8x32xf32>
    %285 = vector.extract_strided_slice %269 {offsets = [0, 64], sizes = [8, 32], strides = [1, 1]} : vector<8x128xf32> to vector<8x32xf32>
    %286 = math.tanh %285 : vector<8x32xf32>
    %287 = vector.extract_strided_slice %269 {offsets = [0, 96], sizes = [8, 32], strides = [1, 1]} : vector<8x128xf32> to vector<8x32xf32>
    %288 = arith.negf %287 : vector<8x32xf32>
    %289 = math.exp %288 : vector<8x32xf32>
    %cst_87 = arith.constant 1.000000e+00 : f32
    %290 = vector.broadcast %cst_87 : f32 to vector<8x32xf32>
    %291 = arith.addf %290, %289 : vector<8x32xf32>
    %292 = arith.divf %290, %291 : vector<8x32xf32>
    %293 = arith.mulf %284, %214 : vector<8x32xf32>
    %294 = arith.mulf %278, %286 : vector<8x32xf32>
    %295 = arith.addf %293, %294 : vector<8x32xf32>
    %296 = math.tanh %295 : vector<8x32xf32>
    %297 = arith.mulf %292, %296 : vector<8x32xf32>
    %298 = vector.extract_strided_slice %272 {offsets = [0, 0], sizes = [8, 32], strides = [1, 1]} : vector<8x128xf32> to vector<8x32xf32>
    %299 = arith.negf %298 : vector<8x32xf32>
    %300 = math.exp %299 : vector<8x32xf32>
    %cst_88 = arith.constant 1.000000e+00 : f32
    %301 = vector.broadcast %cst_88 : f32 to vector<8x32xf32>
    %302 = arith.addf %301, %300 : vector<8x32xf32>
    %303 = arith.divf %301, %302 : vector<8x32xf32>
    %304 = vector.extract_strided_slice %272 {offsets = [0, 32], sizes = [8, 32], strides = [1, 1]} : vector<8x128xf32> to vector<8x32xf32>
    %305 = arith.negf %304 : vector<8x32xf32>
    %306 = math.exp %305 : vector<8x32xf32>
    %cst_89 = arith.constant 1.000000e+00 : f32
    %307 = vector.broadcast %cst_89 : f32 to vector<8x32xf32>
    %308 = arith.addf %307, %306 : vector<8x32xf32>
    %309 = arith.divf %307, %308 : vector<8x32xf32>
    %310 = vector.extract_strided_slice %272 {offsets = [0, 64], sizes = [8, 32], strides = [1, 1]} : vector<8x128xf32> to vector<8x32xf32>
    %311 = math.tanh %310 : vector<8x32xf32>
    %312 = vector.extract_strided_slice %272 {offsets = [0, 96], sizes = [8, 32], strides = [1, 1]} : vector<8x128xf32> to vector<8x32xf32>
    %313 = arith.negf %312 : vector<8x32xf32>
    %314 = math.exp %313 : vector<8x32xf32>
    %cst_90 = arith.constant 1.000000e+00 : f32
    %315 = vector.broadcast %cst_90 : f32 to vector<8x32xf32>
    %316 = arith.addf %315, %314 : vector<8x32xf32>
    %317 = arith.divf %315, %316 : vector<8x32xf32>
    %318 = arith.mulf %309, %239 : vector<8x32xf32>
    %319 = arith.mulf %303, %311 : vector<8x32xf32>
    %320 = arith.addf %318, %319 : vector<8x32xf32>
    %321 = math.tanh %320 : vector<8x32xf32>
    %322 = arith.mulf %317, %321 : vector<8x32xf32>
    %c0_91 = arith.constant 0 : index
    %323 = arith.index_cast %259 : i32 to index
    %c0_92 = arith.constant 0 : index
    %324 = vector.load %arg6[%c0_91, %323, %c0_92] : memref<1x64x32xf32, #tpu.memory_space<vmem>>, vector<1x8x32xf32>
    %325 = vector.shape_cast %324 : vector<1x8x32xf32> to vector<8x32xf32>
    %326 = arith.addf %325, %297 : vector<8x32xf32>
    %c0_93 = arith.constant 0 : index
    %327 = arith.index_cast %259 : i32 to index
    %c0_94 = arith.constant 0 : index
    %328 = vector.load %arg6[%c0_93, %327, %c0_94] : memref<1x64x32xf32, #tpu.memory_space<vmem>>, vector<1x8x32xf32>
    %329 = vector.shape_cast %328 : vector<1x8x32xf32> to vector<8x32xf32>
    %330 = vector.shape_cast %326 : vector<8x32xf32> to vector<1x8x32xf32>
    tpu.vector_store %arg6[%c0_93, %327, %c0_94], %330 {strides = array<i32>} : memref<1x64x32xf32, #tpu.memory_space<vmem>>, vector<1x8x32xf32>,
    %c0_95 = arith.constant 0 : index
    %331 = arith.index_cast %262 : i32 to index
    %c0_96 = arith.constant 0 : index
    %332 = vector.load %arg6[%c0_95, %331, %c0_96] : memref<1x64x32xf32, #tpu.memory_space<vmem>>, vector<1x8x32xf32>
    %333 = vector.shape_cast %332 : vector<1x8x32xf32> to vector<8x32xf32>
    %334 = arith.addf %333, %322 : vector<8x32xf32>
    %c0_97 = arith.constant 0 : index
    %335 = arith.index_cast %262 : i32 to index
    %c0_98 = arith.constant 0 : index
    %336 = vector.load %arg6[%c0_97, %335, %c0_98] : memref<1x64x32xf32, #tpu.memory_space<vmem>>, vector<1x8x32xf32>
    %337 = vector.shape_cast %336 : vector<1x8x32xf32> to vector<8x32xf32>
    %338 = vector.shape_cast %334 : vector<8x32xf32> to vector<1x8x32xf32>
    tpu.vector_store %arg6[%c0_97, %335, %c0_98], %338 {strides = array<i32>} : memref<1x64x32xf32, #tpu.memory_space<vmem>>, vector<1x8x32xf32>,
    %c4_i32 = arith.constant 4 : i32
    %c8_i32_99 = arith.constant 8 : i32
    %339 = arith.muli %c4_i32, %c8_i32_99 : i32
    %340 = tpu.assume_multiple %339, 8 : i32
    %c7_i32_100 = arith.constant 7 : i32
    %341 = arith.subi %c7_i32_100, %c4_i32 : i32
    %c8_i32_101 = arith.constant 8 : i32
    %342 = arith.muli %341, %c8_i32_101 : i32
    %343 = tpu.assume_multiple %342, 8 : i32
    %344 = arith.index_cast %340 : i32 to index
    %c0_102 = arith.constant 0 : index
    %345 = vector.load %arg7[%344, %c0_102] : memref<64x256xf32, #tpu.memory_space<vmem>>, vector<8x256xf32>
    %346 = arith.index_cast %343 : i32 to index
    %c0_103 = arith.constant 0 : index
    %347 = vector.load %arg7[%346, %c0_103] : memref<64x256xf32, #tpu.memory_space<vmem>>, vector<8x256xf32>
    %348 = vector.extract_strided_slice %345 {offsets = [0, 0], sizes = [8, 128], strides = [1, 1]} : vector<8x256xf32> to vector<8x128xf32>
    %cst_104 = arith.constant dense<0.000000e+00> : vector<8x128xf32>
    %349 = tpu.matmul %297, %12, %cst_104 {dimension_numbers = #tpu.dot_dimension_numbers<[1], [0], [0], [1], [0, 0, 1, 1], [], []>} : vector<8x32xf32>, vector<32x128xf32>, vector<8x128xf32> -> vector<8x128xf32>
    %350 = arith.addf %348, %349 : vector<8x128xf32>
    %351 = vector.extract_strided_slice %347 {offsets = [0, 128], sizes = [8, 128], strides = [1, 1]} : vector<8x256xf32> to vector<8x128xf32>
    %cst_105 = arith.constant dense<0.000000e+00> : vector<8x128xf32>
    %352 = tpu.matmul %322, %13, %cst_105 {dimension_numbers = #tpu.dot_dimension_numbers<[1], [0], [0], [1], [0, 0, 1, 1], [], []>} : vector<8x32xf32>, vector<32x128xf32>, vector<8x128xf32> -> vector<8x128xf32>
    %353 = arith.addf %351, %352 : vector<8x128xf32>
    %354 = vector.extract_strided_slice %350 {offsets = [0, 0], sizes = [8, 32], strides = [1, 1]} : vector<8x128xf32> to vector<8x32xf32>
    %355 = arith.negf %354 : vector<8x32xf32>
    %356 = math.exp %355 : vector<8x32xf32>
    %cst_106 = arith.constant 1.000000e+00 : f32
    %357 = vector.broadcast %cst_106 : f32 to vector<8x32xf32>
    %358 = arith.addf %357, %356 : vector<8x32xf32>
    %359 = arith.divf %357, %358 : vector<8x32xf32>
    %360 = vector.extract_strided_slice %350 {offsets = [0, 32], sizes = [8, 32], strides = [1, 1]} : vector<8x128xf32> to vector<8x32xf32>
    %361 = arith.negf %360 : vector<8x32xf32>
    %362 = math.exp %361 : vector<8x32xf32>
    %cst_107 = arith.constant 1.000000e+00 : f32
    %363 = vector.broadcast %cst_107 : f32 to vector<8x32xf32>
    %364 = arith.addf %363, %362 : vector<8x32xf32>
    %365 = arith.divf %363, %364 : vector<8x32xf32>
    %366 = vector.extract_strided_slice %350 {offsets = [0, 64], sizes = [8, 32], strides = [1, 1]} : vector<8x128xf32> to vector<8x32xf32>
    %367 = math.tanh %366 : vector<8x32xf32>
    %368 = vector.extract_strided_slice %350 {offsets = [0, 96], sizes = [8, 32], strides = [1, 1]} : vector<8x128xf32> to vector<8x32xf32>
    %369 = arith.negf %368 : vector<8x32xf32>
    %370 = math.exp %369 : vector<8x32xf32>
    %cst_108 = arith.constant 1.000000e+00 : f32
    %371 = vector.broadcast %cst_108 : f32 to vector<8x32xf32>
    %372 = arith.addf %371, %370 : vector<8x32xf32>
    %373 = arith.divf %371, %372 : vector<8x32xf32>
    %374 = arith.mulf %365, %295 : vector<8x32xf32>
    %375 = arith.mulf %359, %367 : vector<8x32xf32>
    %376 = arith.addf %374, %375 : vector<8x32xf32>
    %377 = math.tanh %376 : vector<8x32xf32>
    %378 = arith.mulf %373, %377 : vector<8x32xf32>
    %379 = vector.extract_strided_slice %353 {offsets = [0, 0], sizes = [8, 32], strides = [1, 1]} : vector<8x128xf32> to vector<8x32xf32>
    %380 = arith.negf %379 : vector<8x32xf32>
    %381 = math.exp %380 : vector<8x32xf32>
    %cst_109 = arith.constant 1.000000e+00 : f32
    %382 = vector.broadcast %cst_109 : f32 to vector<8x32xf32>
    %383 = arith.addf %382, %381 : vector<8x32xf32>
    %384 = arith.divf %382, %383 : vector<8x32xf32>
    %385 = vector.extract_strided_slice %353 {offsets = [0, 32], sizes = [8, 32], strides = [1, 1]} : vector<8x128xf32> to vector<8x32xf32>
    %386 = arith.negf %385 : vector<8x32xf32>
    %387 = math.exp %386 : vector<8x32xf32>
    %cst_110 = arith.constant 1.000000e+00 : f32
    %388 = vector.broadcast %cst_110 : f32 to vector<8x32xf32>
    %389 = arith.addf %388, %387 : vector<8x32xf32>
    %390 = arith.divf %388, %389 : vector<8x32xf32>
    %391 = vector.extract_strided_slice %353 {offsets = [0, 64], sizes = [8, 32], strides = [1, 1]} : vector<8x128xf32> to vector<8x32xf32>
    %392 = math.tanh %391 : vector<8x32xf32>
    %393 = vector.extract_strided_slice %353 {offsets = [0, 96], sizes = [8, 32], strides = [1, 1]} : vector<8x128xf32> to vector<8x32xf32>
    %394 = arith.negf %393 : vector<8x32xf32>
    %395 = math.exp %394 : vector<8x32xf32>
    %cst_111 = arith.constant 1.000000e+00 : f32
    %396 = vector.broadcast %cst_111 : f32 to vector<8x32xf32>
    %397 = arith.addf %396, %395 : vector<8x32xf32>
    %398 = arith.divf %396, %397 : vector<8x32xf32>
    %399 = arith.mulf %390, %320 : vector<8x32xf32>
    %400 = arith.mulf %384, %392 : vector<8x32xf32>
    %401 = arith.addf %399, %400 : vector<8x32xf32>
    %402 = math.tanh %401 : vector<8x32xf32>
    %403 = arith.mulf %398, %402 : vector<8x32xf32>
    %c0_112 = arith.constant 0 : index
    %404 = arith.index_cast %340 : i32 to index
    %c0_113 = arith.constant 0 : index
    %405 = vector.load %arg6[%c0_112, %404, %c0_113] : memref<1x64x32xf32, #tpu.memory_space<vmem>>, vector<1x8x32xf32>
    %406 = vector.shape_cast %405 : vector<1x8x32xf32> to vector<8x32xf32>
    %407 = arith.addf %406, %378 : vector<8x32xf32>
    %c0_114 = arith.constant 0 : index
    %408 = arith.index_cast %340 : i32 to index
    %c0_115 = arith.constant 0 : index
    %409 = vector.load %arg6[%c0_114, %408, %c0_115] : memref<1x64x32xf32, #tpu.memory_space<vmem>>, vector<1x8x32xf32>
    %410 = vector.shape_cast %409 : vector<1x8x32xf32> to vector<8x32xf32>
    %411 = vector.shape_cast %407 : vector<8x32xf32> to vector<1x8x32xf32>
    tpu.vector_store %arg6[%c0_114, %408, %c0_115], %411 {strides = array<i32>} : memref<1x64x32xf32, #tpu.memory_space<vmem>>, vector<1x8x32xf32>,
    %c0_116 = arith.constant 0 : index
    %412 = arith.index_cast %343 : i32 to index
    %c0_117 = arith.constant 0 : index
    %413 = vector.load %arg6[%c0_116, %412, %c0_117] : memref<1x64x32xf32, #tpu.memory_space<vmem>>, vector<1x8x32xf32>
    %414 = vector.shape_cast %413 : vector<1x8x32xf32> to vector<8x32xf32>
    %415 = arith.addf %414, %403 : vector<8x32xf32>
    %c0_118 = arith.constant 0 : index
    %416 = arith.index_cast %343 : i32 to index
    %c0_119 = arith.constant 0 : index
    %417 = vector.load %arg6[%c0_118, %416, %c0_119] : memref<1x64x32xf32, #tpu.memory_space<vmem>>, vector<1x8x32xf32>
    %418 = vector.shape_cast %417 : vector<1x8x32xf32> to vector<8x32xf32>
    %419 = vector.shape_cast %415 : vector<8x32xf32> to vector<1x8x32xf32>
    tpu.vector_store %arg6[%c0_118, %416, %c0_119], %419 {strides = array<i32>} : memref<1x64x32xf32, #tpu.memory_space<vmem>>, vector<1x8x32xf32>,
    %c5_i32 = arith.constant 5 : i32
    %c8_i32_120 = arith.constant 8 : i32
    %420 = arith.muli %c5_i32, %c8_i32_120 : i32
    %421 = tpu.assume_multiple %420, 8 : i32
    %c7_i32_121 = arith.constant 7 : i32
    %422 = arith.subi %c7_i32_121, %c5_i32 : i32
    %c8_i32_122 = arith.constant 8 : i32
    %423 = arith.muli %422, %c8_i32_122 : i32
    %424 = tpu.assume_multiple %423, 8 : i32
    %425 = arith.index_cast %421 : i32 to index
    %c0_123 = arith.constant 0 : index
    %426 = vector.load %arg7[%425, %c0_123] : memref<64x256xf32, #tpu.memory_space<vmem>>, vector<8x256xf32>
    %427 = arith.index_cast %424 : i32 to index
    %c0_124 = arith.constant 0 : index
    %428 = vector.load %arg7[%427, %c0_124] : memref<64x256xf32, #tpu.memory_space<vmem>>, vector<8x256xf32>
    %429 = vector.extract_strided_slice %426 {offsets = [0, 0], sizes = [8, 128], strides = [1, 1]} : vector<8x256xf32> to vector<8x128xf32>
    %cst_125 = arith.constant dense<0.000000e+00> : vector<8x128xf32>
    %430 = tpu.matmul %378, %12, %cst_125 {dimension_numbers = #tpu.dot_dimension_numbers<[1], [0], [0], [1], [0, 0, 1, 1], [], []>} : vector<8x32xf32>, vector<32x128xf32>, vector<8x128xf32> -> vector<8x128xf32>
    %431 = arith.addf %429, %430 : vector<8x128xf32>
    %432 = vector.extract_strided_slice %428 {offsets = [0, 128], sizes = [8, 128], strides = [1, 1]} : vector<8x256xf32> to vector<8x128xf32>
    %cst_126 = arith.constant dense<0.000000e+00> : vector<8x128xf32>
    %433 = tpu.matmul %403, %13, %cst_126 {dimension_numbers = #tpu.dot_dimension_numbers<[1], [0], [0], [1], [0, 0, 1, 1], [], []>} : vector<8x32xf32>, vector<32x128xf32>, vector<8x128xf32> -> vector<8x128xf32>
    %434 = arith.addf %432, %433 : vector<8x128xf32>
    %435 = vector.extract_strided_slice %431 {offsets = [0, 0], sizes = [8, 32], strides = [1, 1]} : vector<8x128xf32> to vector<8x32xf32>
    %436 = arith.negf %435 : vector<8x32xf32>
    %437 = math.exp %436 : vector<8x32xf32>
    %cst_127 = arith.constant 1.000000e+00 : f32
    %438 = vector.broadcast %cst_127 : f32 to vector<8x32xf32>
    %439 = arith.addf %438, %437 : vector<8x32xf32>
    %440 = arith.divf %438, %439 : vector<8x32xf32>
    %441 = vector.extract_strided_slice %431 {offsets = [0, 32], sizes = [8, 32], strides = [1, 1]} : vector<8x128xf32> to vector<8x32xf32>
    %442 = arith.negf %441 : vector<8x32xf32>
    %443 = math.exp %442 : vector<8x32xf32>
    %cst_128 = arith.constant 1.000000e+00 : f32
    %444 = vector.broadcast %cst_128 : f32 to vector<8x32xf32>
    %445 = arith.addf %444, %443 : vector<8x32xf32>
    %446 = arith.divf %444, %445 : vector<8x32xf32>
    %447 = vector.extract_strided_slice %431 {offsets = [0, 64], sizes = [8, 32], strides = [1, 1]} : vector<8x128xf32> to vector<8x32xf32>
    %448 = math.tanh %447 : vector<8x32xf32>
    %449 = vector.extract_strided_slice %431 {offsets = [0, 96], sizes = [8, 32], strides = [1, 1]} : vector<8x128xf32> to vector<8x32xf32>
    %450 = arith.negf %449 : vector<8x32xf32>
    %451 = math.exp %450 : vector<8x32xf32>
    %cst_129 = arith.constant 1.000000e+00 : f32
    %452 = vector.broadcast %cst_129 : f32 to vector<8x32xf32>
    %453 = arith.addf %452, %451 : vector<8x32xf32>
    %454 = arith.divf %452, %453 : vector<8x32xf32>
    %455 = arith.mulf %446, %376 : vector<8x32xf32>
    %456 = arith.mulf %440, %448 : vector<8x32xf32>
    %457 = arith.addf %455, %456 : vector<8x32xf32>
    %458 = math.tanh %457 : vector<8x32xf32>
    %459 = arith.mulf %454, %458 : vector<8x32xf32>
    %460 = vector.extract_strided_slice %434 {offsets = [0, 0], sizes = [8, 32], strides = [1, 1]} : vector<8x128xf32> to vector<8x32xf32>
    %461 = arith.negf %460 : vector<8x32xf32>
    %462 = math.exp %461 : vector<8x32xf32>
    %cst_130 = arith.constant 1.000000e+00 : f32
    %463 = vector.broadcast %cst_130 : f32 to vector<8x32xf32>
    %464 = arith.addf %463, %462 : vector<8x32xf32>
    %465 = arith.divf %463, %464 : vector<8x32xf32>
    %466 = vector.extract_strided_slice %434 {offsets = [0, 32], sizes = [8, 32], strides = [1, 1]} : vector<8x128xf32> to vector<8x32xf32>
    %467 = arith.negf %466 : vector<8x32xf32>
    %468 = math.exp %467 : vector<8x32xf32>
    %cst_131 = arith.constant 1.000000e+00 : f32
    %469 = vector.broadcast %cst_131 : f32 to vector<8x32xf32>
    %470 = arith.addf %469, %468 : vector<8x32xf32>
    %471 = arith.divf %469, %470 : vector<8x32xf32>
    %472 = vector.extract_strided_slice %434 {offsets = [0, 64], sizes = [8, 32], strides = [1, 1]} : vector<8x128xf32> to vector<8x32xf32>
    %473 = math.tanh %472 : vector<8x32xf32>
    %474 = vector.extract_strided_slice %434 {offsets = [0, 96], sizes = [8, 32], strides = [1, 1]} : vector<8x128xf32> to vector<8x32xf32>
    %475 = arith.negf %474 : vector<8x32xf32>
    %476 = math.exp %475 : vector<8x32xf32>
    %cst_132 = arith.constant 1.000000e+00 : f32
    %477 = vector.broadcast %cst_132 : f32 to vector<8x32xf32>
    %478 = arith.addf %477, %476 : vector<8x32xf32>
    %479 = arith.divf %477, %478 : vector<8x32xf32>
    %480 = arith.mulf %471, %401 : vector<8x32xf32>
    %481 = arith.mulf %465, %473 : vector<8x32xf32>
    %482 = arith.addf %480, %481 : vector<8x32xf32>
    %483 = math.tanh %482 : vector<8x32xf32>
    %484 = arith.mulf %479, %483 : vector<8x32xf32>
    %c0_133 = arith.constant 0 : index
    %485 = arith.index_cast %421 : i32 to index
    %c0_134 = arith.constant 0 : index
    %486 = vector.load %arg6[%c0_133, %485, %c0_134] : memref<1x64x32xf32, #tpu.memory_space<vmem>>, vector<1x8x32xf32>
    %487 = vector.shape_cast %486 : vector<1x8x32xf32> to vector<8x32xf32>
    %488 = arith.addf %487, %459 : vector<8x32xf32>
    %c0_135 = arith.constant 0 : index
    %489 = arith.index_cast %421 : i32 to index
    %c0_136 = arith.constant 0 : index
    %490 = vector.load %arg6[%c0_135, %489, %c0_136] : memref<1x64x32xf32, #tpu.memory_space<vmem>>, vector<1x8x32xf32>
    %491 = vector.shape_cast %490 : vector<1x8x32xf32> to vector<8x32xf32>
    %492 = vector.shape_cast %488 : vector<8x32xf32> to vector<1x8x32xf32>
    tpu.vector_store %arg6[%c0_135, %489, %c0_136], %492 {strides = array<i32>} : memref<1x64x32xf32, #tpu.memory_space<vmem>>, vector<1x8x32xf32>,
    %c0_137 = arith.constant 0 : index
    %493 = arith.index_cast %424 : i32 to index
    %c0_138 = arith.constant 0 : index
    %494 = vector.load %arg6[%c0_137, %493, %c0_138] : memref<1x64x32xf32, #tpu.memory_space<vmem>>, vector<1x8x32xf32>
    %495 = vector.shape_cast %494 : vector<1x8x32xf32> to vector<8x32xf32>
    %496 = arith.addf %495, %484 : vector<8x32xf32>
    %c0_139 = arith.constant 0 : index
    %497 = arith.index_cast %424 : i32 to index
    %c0_140 = arith.constant 0 : index
    %498 = vector.load %arg6[%c0_139, %497, %c0_140] : memref<1x64x32xf32, #tpu.memory_space<vmem>>, vector<1x8x32xf32>
    %499 = vector.shape_cast %498 : vector<1x8x32xf32> to vector<8x32xf32>
    %500 = vector.shape_cast %496 : vector<8x32xf32> to vector<1x8x32xf32>
    tpu.vector_store %arg6[%c0_139, %497, %c0_140], %500 {strides = array<i32>} : memref<1x64x32xf32, #tpu.memory_space<vmem>>, vector<1x8x32xf32>,
    %c6_i32 = arith.constant 6 : i32
    %c8_i32_141 = arith.constant 8 : i32
    %501 = arith.muli %c6_i32, %c8_i32_141 : i32
    %502 = tpu.assume_multiple %501, 8 : i32
    %c7_i32_142 = arith.constant 7 : i32
    %503 = arith.subi %c7_i32_142, %c6_i32 : i32
    %c8_i32_143 = arith.constant 8 : i32
    %504 = arith.muli %503, %c8_i32_143 : i32
    %505 = tpu.assume_multiple %504, 8 : i32
    %506 = arith.index_cast %502 : i32 to index
    %c0_144 = arith.constant 0 : index
    %507 = vector.load %arg7[%506, %c0_144] : memref<64x256xf32, #tpu.memory_space<vmem>>, vector<8x256xf32>
    %508 = arith.index_cast %505 : i32 to index
    %c0_145 = arith.constant 0 : index
    %509 = vector.load %arg7[%508, %c0_145] : memref<64x256xf32, #tpu.memory_space<vmem>>, vector<8x256xf32>
    %510 = vector.extract_strided_slice %507 {offsets = [0, 0], sizes = [8, 128], strides = [1, 1]} : vector<8x256xf32> to vector<8x128xf32>
    %cst_146 = arith.constant dense<0.000000e+00> : vector<8x128xf32>
    %511 = tpu.matmul %459, %12, %cst_146 {dimension_numbers = #tpu.dot_dimension_numbers<[1], [0], [0], [1], [0, 0, 1, 1], [], []>} : vector<8x32xf32>, vector<32x128xf32>, vector<8x128xf32> -> vector<8x128xf32>
    %512 = arith.addf %510, %511 : vector<8x128xf32>
    %513 = vector.extract_strided_slice %509 {offsets = [0, 128], sizes = [8, 128], strides = [1, 1]} : vector<8x256xf32> to vector<8x128xf32>
    %cst_147 = arith.constant dense<0.000000e+00> : vector<8x128xf32>
    %514 = tpu.matmul %484, %13, %cst_147 {dimension_numbers = #tpu.dot_dimension_numbers<[1], [0], [0], [1], [0, 0, 1, 1], [], []>} : vector<8x32xf32>, vector<32x128xf32>, vector<8x128xf32> -> vector<8x128xf32>
    %515 = arith.addf %513, %514 : vector<8x128xf32>
    %516 = vector.extract_strided_slice %512 {offsets = [0, 0], sizes = [8, 32], strides = [1, 1]} : vector<8x128xf32> to vector<8x32xf32>
    %517 = arith.negf %516 : vector<8x32xf32>
    %518 = math.exp %517 : vector<8x32xf32>
    %cst_148 = arith.constant 1.000000e+00 : f32
    %519 = vector.broadcast %cst_148 : f32 to vector<8x32xf32>
    %520 = arith.addf %519, %518 : vector<8x32xf32>
    %521 = arith.divf %519, %520 : vector<8x32xf32>
    %522 = vector.extract_strided_slice %512 {offsets = [0, 32], sizes = [8, 32], strides = [1, 1]} : vector<8x128xf32> to vector<8x32xf32>
    %523 = arith.negf %522 : vector<8x32xf32>
    %524 = math.exp %523 : vector<8x32xf32>
    %cst_149 = arith.constant 1.000000e+00 : f32
    %525 = vector.broadcast %cst_149 : f32 to vector<8x32xf32>
    %526 = arith.addf %525, %524 : vector<8x32xf32>
    %527 = arith.divf %525, %526 : vector<8x32xf32>
    %528 = vector.extract_strided_slice %512 {offsets = [0, 64], sizes = [8, 32], strides = [1, 1]} : vector<8x128xf32> to vector<8x32xf32>
    %529 = math.tanh %528 : vector<8x32xf32>
    %530 = vector.extract_strided_slice %512 {offsets = [0, 96], sizes = [8, 32], strides = [1, 1]} : vector<8x128xf32> to vector<8x32xf32>
    %531 = arith.negf %530 : vector<8x32xf32>
    %532 = math.exp %531 : vector<8x32xf32>
    %cst_150 = arith.constant 1.000000e+00 : f32
    %533 = vector.broadcast %cst_150 : f32 to vector<8x32xf32>
    %534 = arith.addf %533, %532 : vector<8x32xf32>
    %535 = arith.divf %533, %534 : vector<8x32xf32>
    %536 = arith.mulf %527, %457 : vector<8x32xf32>
    %537 = arith.mulf %521, %529 : vector<8x32xf32>
    %538 = arith.addf %536, %537 : vector<8x32xf32>
    %539 = math.tanh %538 : vector<8x32xf32>
    %540 = arith.mulf %535, %539 : vector<8x32xf32>
    %541 = vector.extract_strided_slice %515 {offsets = [0, 0], sizes = [8, 32], strides = [1, 1]} : vector<8x128xf32> to vector<8x32xf32>
    %542 = arith.negf %541 : vector<8x32xf32>
    %543 = math.exp %542 : vector<8x32xf32>
    %cst_151 = arith.constant 1.000000e+00 : f32
    %544 = vector.broadcast %cst_151 : f32 to vector<8x32xf32>
    %545 = arith.addf %544, %543 : vector<8x32xf32>
    %546 = arith.divf %544, %545 : vector<8x32xf32>
    %547 = vector.extract_strided_slice %515 {offsets = [0, 32], sizes = [8, 32], strides = [1, 1]} : vector<8x128xf32> to vector<8x32xf32>
    %548 = arith.negf %547 : vector<8x32xf32>
    %549 = math.exp %548 : vector<8x32xf32>
    %cst_152 = arith.constant 1.000000e+00 : f32
    %550 = vector.broadcast %cst_152 : f32 to vector<8x32xf32>
    %551 = arith.addf %550, %549 : vector<8x32xf32>
    %552 = arith.divf %550, %551 : vector<8x32xf32>
    %553 = vector.extract_strided_slice %515 {offsets = [0, 64], sizes = [8, 32], strides = [1, 1]} : vector<8x128xf32> to vector<8x32xf32>
    %554 = math.tanh %553 : vector<8x32xf32>
    %555 = vector.extract_strided_slice %515 {offsets = [0, 96], sizes = [8, 32], strides = [1, 1]} : vector<8x128xf32> to vector<8x32xf32>
    %556 = arith.negf %555 : vector<8x32xf32>
    %557 = math.exp %556 : vector<8x32xf32>
    %cst_153 = arith.constant 1.000000e+00 : f32
    %558 = vector.broadcast %cst_153 : f32 to vector<8x32xf32>
    %559 = arith.addf %558, %557 : vector<8x32xf32>
    %560 = arith.divf %558, %559 : vector<8x32xf32>
    %561 = arith.mulf %552, %482 : vector<8x32xf32>
    %562 = arith.mulf %546, %554 : vector<8x32xf32>
    %563 = arith.addf %561, %562 : vector<8x32xf32>
    %564 = math.tanh %563 : vector<8x32xf32>
    %565 = arith.mulf %560, %564 : vector<8x32xf32>
    %c0_154 = arith.constant 0 : index
    %566 = arith.index_cast %502 : i32 to index
    %c0_155 = arith.constant 0 : index
    %567 = vector.load %arg6[%c0_154, %566, %c0_155] : memref<1x64x32xf32, #tpu.memory_space<vmem>>, vector<1x8x32xf32>
    %568 = vector.shape_cast %567 : vector<1x8x32xf32> to vector<8x32xf32>
    %569 = arith.addf %568, %540 : vector<8x32xf32>
    %c0_156 = arith.constant 0 : index
    %570 = arith.index_cast %502 : i32 to index
    %c0_157 = arith.constant 0 : index
    %571 = vector.load %arg6[%c0_156, %570, %c0_157] : memref<1x64x32xf32, #tpu.memory_space<vmem>>, vector<1x8x32xf32>
    %572 = vector.shape_cast %571 : vector<1x8x32xf32> to vector<8x32xf32>
    %573 = vector.shape_cast %569 : vector<8x32xf32> to vector<1x8x32xf32>
    tpu.vector_store %arg6[%c0_156, %570, %c0_157], %573 {strides = array<i32>} : memref<1x64x32xf32, #tpu.memory_space<vmem>>, vector<1x8x32xf32>,
    %c0_158 = arith.constant 0 : index
    %574 = arith.index_cast %505 : i32 to index
    %c0_159 = arith.constant 0 : index
    %575 = vector.load %arg6[%c0_158, %574, %c0_159] : memref<1x64x32xf32, #tpu.memory_space<vmem>>, vector<1x8x32xf32>
    %576 = vector.shape_cast %575 : vector<1x8x32xf32> to vector<8x32xf32>
    %577 = arith.addf %576, %565 : vector<8x32xf32>
    %c0_160 = arith.constant 0 : index
    %578 = arith.index_cast %505 : i32 to index
    %c0_161 = arith.constant 0 : index
    %579 = vector.load %arg6[%c0_160, %578, %c0_161] : memref<1x64x32xf32, #tpu.memory_space<vmem>>, vector<1x8x32xf32>
    %580 = vector.shape_cast %579 : vector<1x8x32xf32> to vector<8x32xf32>
    %581 = vector.shape_cast %577 : vector<8x32xf32> to vector<1x8x32xf32>
    tpu.vector_store %arg6[%c0_160, %578, %c0_161], %581 {strides = array<i32>} : memref<1x64x32xf32, #tpu.memory_space<vmem>>, vector<1x8x32xf32>,
    %c7_i32_162 = arith.constant 7 : i32
    %c8_i32_163 = arith.constant 8 : i32
    %582 = arith.muli %c7_i32_162, %c8_i32_163 : i32
    %583 = tpu.assume_multiple %582, 8 : i32
    %c7_i32_164 = arith.constant 7 : i32
    %584 = arith.subi %c7_i32_164, %c7_i32_162 : i32
    %c8_i32_165 = arith.constant 8 : i32
    %585 = arith.muli %584, %c8_i32_165 : i32
    %586 = tpu.assume_multiple %585, 8 : i32
    %587 = arith.index_cast %583 : i32 to index
    %c0_166 = arith.constant 0 : index
    %588 = vector.load %arg7[%587, %c0_166] : memref<64x256xf32, #tpu.memory_space<vmem>>, vector<8x256xf32>
    %589 = arith.index_cast %586 : i32 to index
    %c0_167 = arith.constant 0 : index
    %590 = vector.load %arg7[%589, %c0_167] : memref<64x256xf32, #tpu.memory_space<vmem>>, vector<8x256xf32>
    %591 = vector.extract_strided_slice %588 {offsets = [0, 0], sizes = [8, 128], strides = [1, 1]} : vector<8x256xf32> to vector<8x128xf32>
    %cst_168 = arith.constant dense<0.000000e+00> : vector<8x128xf32>
    %592 = tpu.matmul %540, %12, %cst_168 {dimension_numbers = #tpu.dot_dimension_numbers<[1], [0], [0], [1], [0, 0, 1, 1], [], []>} : vector<8x32xf32>, vector<32x128xf32>, vector<8x128xf32> -> vector<8x128xf32>
    %593 = arith.addf %591, %592 : vector<8x128xf32>
    %594 = vector.extract_strided_slice %590 {offsets = [0, 128], sizes = [8, 128], strides = [1, 1]} : vector<8x256xf32> to vector<8x128xf32>
    %cst_169 = arith.constant dense<0.000000e+00> : vector<8x128xf32>
    %595 = tpu.matmul %565, %13, %cst_169 {dimension_numbers = #tpu.dot_dimension_numbers<[1], [0], [0], [1], [0, 0, 1, 1], [], []>} : vector<8x32xf32>, vector<32x128xf32>, vector<8x128xf32> -> vector<8x128xf32>
    %596 = arith.addf %594, %595 : vector<8x128xf32>
    %597 = vector.extract_strided_slice %593 {offsets = [0, 0], sizes = [8, 32], strides = [1, 1]} : vector<8x128xf32> to vector<8x32xf32>
    %598 = arith.negf %597 : vector<8x32xf32>
    %599 = math.exp %598 : vector<8x32xf32>
    %cst_170 = arith.constant 1.000000e+00 : f32
    %600 = vector.broadcast %cst_170 : f32 to vector<8x32xf32>
    %601 = arith.addf %600, %599 : vector<8x32xf32>
    %602 = arith.divf %600, %601 : vector<8x32xf32>
    %603 = vector.extract_strided_slice %593 {offsets = [0, 32], sizes = [8, 32], strides = [1, 1]} : vector<8x128xf32> to vector<8x32xf32>
    %604 = arith.negf %603 : vector<8x32xf32>
    %605 = math.exp %604 : vector<8x32xf32>
    %cst_171 = arith.constant 1.000000e+00 : f32
    %606 = vector.broadcast %cst_171 : f32 to vector<8x32xf32>
    %607 = arith.addf %606, %605 : vector<8x32xf32>
    %608 = arith.divf %606, %607 : vector<8x32xf32>
    %609 = vector.extract_strided_slice %593 {offsets = [0, 64], sizes = [8, 32], strides = [1, 1]} : vector<8x128xf32> to vector<8x32xf32>
    %610 = math.tanh %609 : vector<8x32xf32>
    %611 = vector.extract_strided_slice %593 {offsets = [0, 96], sizes = [8, 32], strides = [1, 1]} : vector<8x128xf32> to vector<8x32xf32>
    %612 = arith.negf %611 : vector<8x32xf32>
    %613 = math.exp %612 : vector<8x32xf32>
    %cst_172 = arith.constant 1.000000e+00 : f32
    %614 = vector.broadcast %cst_172 : f32 to vector<8x32xf32>
    %615 = arith.addf %614, %613 : vector<8x32xf32>
    %616 = arith.divf %614, %615 : vector<8x32xf32>
    %617 = arith.mulf %608, %538 : vector<8x32xf32>
    %618 = arith.mulf %602, %610 : vector<8x32xf32>
    %619 = arith.addf %617, %618 : vector<8x32xf32>
    %620 = math.tanh %619 : vector<8x32xf32>
    %621 = arith.mulf %616, %620 : vector<8x32xf32>
    %622 = vector.extract_strided_slice %596 {offsets = [0, 0], sizes = [8, 32], strides = [1, 1]} : vector<8x128xf32> to vector<8x32xf32>
    %623 = arith.negf %622 : vector<8x32xf32>
    %624 = math.exp %623 : vector<8x32xf32>
    %cst_173 = arith.constant 1.000000e+00 : f32
    %625 = vector.broadcast %cst_173 : f32 to vector<8x32xf32>
    %626 = arith.addf %625, %624 : vector<8x32xf32>
    %627 = arith.divf %625, %626 : vector<8x32xf32>
    %628 = vector.extract_strided_slice %596 {offsets = [0, 32], sizes = [8, 32], strides = [1, 1]} : vector<8x128xf32> to vector<8x32xf32>
    %629 = arith.negf %628 : vector<8x32xf32>
    %630 = math.exp %629 : vector<8x32xf32>
    %cst_174 = arith.constant 1.000000e+00 : f32
    %631 = vector.broadcast %cst_174 : f32 to vector<8x32xf32>
    %632 = arith.addf %631, %630 : vector<8x32xf32>
    %633 = arith.divf %631, %632 : vector<8x32xf32>
    %634 = vector.extract_strided_slice %596 {offsets = [0, 64], sizes = [8, 32], strides = [1, 1]} : vector<8x128xf32> to vector<8x32xf32>
    %635 = math.tanh %634 : vector<8x32xf32>
    %636 = vector.extract_strided_slice %596 {offsets = [0, 96], sizes = [8, 32], strides = [1, 1]} : vector<8x128xf32> to vector<8x32xf32>
    %637 = arith.negf %636 : vector<8x32xf32>
    %638 = math.exp %637 : vector<8x32xf32>
    %cst_175 = arith.constant 1.000000e+00 : f32
    %639 = vector.broadcast %cst_175 : f32 to vector<8x32xf32>
    %640 = arith.addf %639, %638 : vector<8x32xf32>
    %641 = arith.divf %639, %640 : vector<8x32xf32>
    %642 = arith.mulf %633, %563 : vector<8x32xf32>
    %643 = arith.mulf %627, %635 : vector<8x32xf32>
    %644 = arith.addf %642, %643 : vector<8x32xf32>
    %645 = math.tanh %644 : vector<8x32xf32>
    %646 = arith.mulf %641, %645 : vector<8x32xf32>
    %c0_176 = arith.constant 0 : index
    %647 = arith.index_cast %583 : i32 to index
    %c0_177 = arith.constant 0 : index
    %648 = vector.load %arg6[%c0_176, %647, %c0_177] : memref<1x64x32xf32, #tpu.memory_space<vmem>>, vector<1x8x32xf32>
    %649 = vector.shape_cast %648 : vector<1x8x32xf32> to vector<8x32xf32>
    %650 = arith.addf %649, %621 : vector<8x32xf32>
    %c0_178 = arith.constant 0 : index
    %651 = arith.index_cast %583 : i32 to index
    %c0_179 = arith.constant 0 : index
    %652 = vector.load %arg6[%c0_178, %651, %c0_179] : memref<1x64x32xf32, #tpu.memory_space<vmem>>, vector<1x8x32xf32>
    %653 = vector.shape_cast %652 : vector<1x8x32xf32> to vector<8x32xf32>
    %654 = vector.shape_cast %650 : vector<8x32xf32> to vector<1x8x32xf32>
    tpu.vector_store %arg6[%c0_178, %651, %c0_179], %654 {strides = array<i32>} : memref<1x64x32xf32, #tpu.memory_space<vmem>>, vector<1x8x32xf32>,
    %c0_180 = arith.constant 0 : index
    %655 = arith.index_cast %586 : i32 to index
    %c0_181 = arith.constant 0 : index
    %656 = vector.load %arg6[%c0_180, %655, %c0_181] : memref<1x64x32xf32, #tpu.memory_space<vmem>>, vector<1x8x32xf32>
    %657 = vector.shape_cast %656 : vector<1x8x32xf32> to vector<8x32xf32>
    %658 = arith.addf %657, %646 : vector<8x32xf32>
    %c0_182 = arith.constant 0 : index
    %659 = arith.index_cast %586 : i32 to index
    %c0_183 = arith.constant 0 : index
    %660 = vector.load %arg6[%c0_182, %659, %c0_183] : memref<1x64x32xf32, #tpu.memory_space<vmem>>, vector<1x8x32xf32>
    %661 = vector.shape_cast %660 : vector<1x8x32xf32> to vector<8x32xf32>
    %662 = vector.shape_cast %658 : vector<8x32xf32> to vector<1x8x32xf32>
    tpu.vector_store %arg6[%c0_182, %659, %c0_183], %662 {strides = array<i32>} : memref<1x64x32xf32, #tpu.memory_space<vmem>>, vector<1x8x32xf32>,
    %c8_i32_184 = arith.constant 8 : i32
    %c0_185 = arith.constant 0 : index
    %c0_186 = arith.constant 0 : index
    %c0_187 = arith.constant 0 : index
    %663 = vector.load %arg6[%c0_185, %c0_186, %c0_187] : memref<1x64x32xf32, #tpu.memory_space<vmem>>, vector<1x64x32xf32>
    %664 = vector.shape_cast %663 : vector<1x64x32xf32> to vector<64x32xf32>
    %cst_188 = arith.constant 0.000000e+00 : f32
    %665 = vector.broadcast %cst_188 : f32 to vector<64x32xf32>
    %666 = arith.cmpf ogt, %664, %665 : vector<64x32xf32>
    %cst_189 = arith.constant 0.00999999977 : f32
    %667 = vector.broadcast %cst_189 : f32 to vector<64x32xf32>
    %668 = arith.mulf %667, %664 : vector<64x32xf32>
    %669 = arith.select %666, %664, %668 : vector<64x32xi1>, vector<64x32xf32>
    %c0_190 = arith.constant 0 : index
    %c0_191 = arith.constant 0 : index
    %c0_192 = arith.constant 0 : index
    %670 = vector.load %arg6[%c0_190, %c0_191, %c0_192] : memref<1x64x32xf32, #tpu.memory_space<vmem>>, vector<1x64x32xf32>
    %671 = vector.shape_cast %670 : vector<1x64x32xf32> to vector<64x32xf32>
    %672 = vector.shape_cast %669 : vector<64x32xf32> to vector<1x64x32xf32>
    tpu.vector_store %arg6[%c0_190, %c0_191, %c0_192], %672 {strides = array<i32>} : memref<1x64x32xf32, #tpu.memory_space<vmem>>, vector<1x64x32xf32>,
    return
  }
  func.func @transform_0(%arg0: i32) -> (i32, i32, i32) {
    %c0_i32 = arith.constant 0 : i32
    %c0_i32_0 = arith.constant 0 : i32
    %c0_i32_1 = arith.constant 0 : i32
    return %arg0, %c0_i32, %c0_i32_0 : i32, i32, i32
  }
  func.func @transform_1(%arg0: i32) -> (i32, i32) {
    %c0_i32 = arith.constant 0 : i32
    %c0_i32_0 = arith.constant 0 : i32
    %c0_i32_1 = arith.constant 0 : i32
    return %c0_i32, %c0_i32_0 : i32, i32
  }
  func.func @transform_2(%arg0: i32) -> (i32, i32) {
    %c0_i32 = arith.constant 0 : i32
    %c0_i32_0 = arith.constant 0 : i32
    %c0_i32_1 = arith.constant 0 : i32
    return %c0_i32, %c0_i32_0 : i32, i32
  }
  func.func @transform_3(%arg0: i32) -> (i32, i32) {
    %c0_i32 = arith.constant 0 : i32
    %c0_i32_0 = arith.constant 0 : i32
    %c0_i32_1 = arith.constant 0 : i32
    return %c0_i32, %c0_i32_0 : i32, i32
  }
  func.func @transform_4(%arg0: i32) -> (i32, i32) {
    %c0_i32 = arith.constant 0 : i32
    %c0_i32_0 = arith.constant 0 : i32
    %c0_i32_1 = arith.constant 0 : i32
    return %c0_i32, %c0_i32_0 : i32, i32
  }
  func.func @transform_5(%arg0: i32) -> (i32, i32, i32) {
    %c0_i32 = arith.constant 0 : i32
    %c0_i32_0 = arith.constant 0 : i32
    %c0_i32_1 = arith.constant 0 : i32
    return %arg0, %c0_i32, %c0_i32_0 : i32, i32, i32
  }
}

</mosaic_0001>

<bundles_post_ra>
// kernel: bi_lstm_standard.3
= control target key start
LH: loop header
LB: loop body
LE: loop exit
PB: predicated region body
PF: predicated region fallthrough
CT: control target
= control target key end

     0   :  { %v2494_v0 = vmov 0.0|0.0   ;;  %vm68_vm0 = vcmask 1043456   ;;  %v2495_v4 = vmov 0.0   ;;  %vm2496_vm1 = vmmov 0   ;;  %s3027_s1 = inlined_call_operand.vmem [shape: f32[4,256], index: 1, kind: input, shape index: {}]   ;;  %s3028_s2 = inlined_call_operand.vmem [shape: f32[32,128], index: 2, kind: input, shape index: {}]   ;;  %s3029_s0 = inlined_call_operand.vmem [shape: f32[1,64,4], index: 0, kind: input, shape index: {}]   ;;  %s3030_s3 = inlined_call_operand.vmem [shape: f32[32,128], index: 3, kind: input, shape index: {}]   ;;  %s3031_s4 = inlined_call_operand.vmem [shape: f32[1,256], index: 4, kind: input, shape index: {}]   ;;  %s3032_s5 = inlined_call_operand.vmem [shape: f32[1,64,32], index: 5, kind: output, shape index: {}]  }
   0x1   :  { %2264 = vmatprep.subr.bf16.mxu1 %v2494_v0  ;;  %v28_v1 = vld [vmem:[%s3027_s1] sm:$0xff]  ;;  %v212_v3 = vld [vmem:[%s3028_s2 + $0x8] sm:$0xff]  ;;  %137 = vmatprep.mubr.f32.mxu0 %v2495_v4  ;;  %v213_v7 = vld [vmem:[%s3028_s2 + $0x10] sm:$0xff]  ;;  %vm43_vm2 = vcmask 31744   ;;  %v31_v24 = vlaneseq  ;;  %vm202_vm3 = vcmask 261120  }
   0x2   :  { %v211_v2 = vld [vmem:[%s3028_s2] sm:$0xff]  ;;  %v42_v5 = vcombine.high %v28_v1, %v28_v1  ;;  %v214_v8 = vld [vmem:[%s3028_s2 + $0x18] sm:$0xff]  ;;  %2096 = vmatprep.mubr.msk.f32.mxu1 %vm2496_vm1, %v2495_v4  ;;  %v216_v12 = vld [vmem:[%s3030_s3 + $0x8] sm:$0xff]  ;;  %203 = vst.msk [vmem:[%s3032_s5] sm:$0xff] %vm202_vm3, %v2495_v4 }
   0x3   :  { %v2540_v6 = vpack.c.bf16 %v212_v3, %v211_v2  ;;  %v20_v9 = vld [vmem:[%s3029_s0] sm:$0xff]  ;;  %v2555_v10 = vpack.c.bf16 %v214_v8, %v213_v7  ;;  %v21_v13 = vld [vmem:[%s3029_s0 + $0x8] sm:$0xff]  ;;  %v217_v15 = vld [vmem:[%s3030_s3 + $0x10] sm:$0xff]  ;;  %v32_v25 = vshrl.u32 %v31_v24, 7  ;;  %204 = vst.msk [vmem:[%s3032_s5 + $0x8] sm:$0xff] %vm202_vm3, %v2495_v4 }
   0x4   :  { %1940 = vmatprep.subr.msk.mxu0 %vm68_vm0, %v42_v5  ;;  %v215_v11 = vld [vmem:[%s3030_s3] sm:$0xff]  ;;  %v218_v16 = vld [vmem:[%s3030_s3 + $0x18] sm:$0xff]  ;;  %v22_v17 = vld [vmem:[%s3029_s0 + $0x10] sm:$0xff]  ;;  %205 = vst.msk [vmem:[%s3032_s5 + $0x10] sm:$0xff] %vm202_vm3, %v2495_v4 }
   0x5   :  { %2266 = vmatpush3.bf16.msra.mxu1 %v2540_v6  ;;  %1941 = vmatpush1.msk.msra.mxu0 %vm68_vm0, %v28_v1  ;;  %v2573_v14 = vpack.c.bf16 %v216_v12, %v215_v11  ;;  %v2590_v18 = vpack.c.bf16 %v218_v16, %v217_v15  ;;  %v23_v19 = vld [vmem:[%s3029_s0 + $0x18] sm:$0xff]  ;;  %v24_v20 = vld [vmem:[%s3029_s0 + $0x20] sm:$0xff]  ;;  %v25_v21 = vld [vmem:[%s3029_s0 + $0x28] sm:$0xff]  ;;  %v37_v26 = vsub.s32 1, %v32_v25  ;;  %v33_v28 = vsub.s32 0, %v32_v25  ;;  %206 = vst.msk [vmem:[%s3032_s5 + $0x18] sm:$0xff] %vm202_vm3, %v2495_v4 }
   0x6   :  { %2267 = vmatprep.subr.bf16.mxu1 %v2494_v0  ;;  %1942 = vmatmul.mubr.msk.f32.vlgmr.msra.gmra.mrb[0].mxu0 %vm43_vm2, %v20_v9  ;;  %v26_v22 = vld [vmem:[%s3029_s0 + $0x30] sm:$0xff]  ;;  %v27_v23 = vld [vmem:[%s3029_s0 + $0x38] sm:$0xff]  ;;  %v29_v27 = vld [vmem:[%s3031_s4] sm:$0x3]  ;;  %s2497_s0 = smov 64   ;;  %s2498_s4 = smov 32  }
   0x7   :  { %2288 = vmatprep.subr.bf16.mxu0 %v2494_v0  ;;  %143 = vmatprep.mubr.f32.mxu0 %v2495_v4  ;;  %v38_v29 = vrot.slane %v29_v27, %v37_v26  ;;  %v34_v30 = vrot.slane %v29_v27, %v33_v28  ;;  %207 = vst.msk [vmem:[%s3032_s5 + $0x20] sm:$0xff] %vm202_vm3, %v2495_v4  ;;  %208 = vst.msk [vmem:[%s3032_s5 + $0x28] sm:$0xff] %vm202_vm3, %v2495_v4 }
   0x8   :  { %2290 = vmatpush3.bf16.msra.mxu0 %v2540_v6  ;;  %209 = vst.msk [vmem:[%s3032_s5 + $0x30] sm:$0xff] %vm202_vm3, %v2495_v4  ;;  %210 = vst.msk [vmem:[%s3032_s5 + $0x38] sm:$0xff] %vm202_vm3, %v2495_v4 }
   0x9   :  { %2269 = vmatpush3.bf16.msra.mxu1 %v2555_v10  ;;  %2291 = vmatprep.subr.bf16.mxu0 %v2494_v0 }
   0xa   :  { %2270 = vmatprep.subr.bf16.mxu1 %v2494_v0  ;;  %1943 = vmatmul.mubr.msk.f32.gmra.mrb[2].mxu0 %vm43_vm2, %v21_v13 }
   0xb   :  { %149 = vmatprep.mubr.f32.mxu0 %v2495_v4 }
   0xc   :  { %2097 = vmatmul.mubr.f32.vlgmr.msra.gmra.mrb[0].mxu1 %v2495_v4  ;;  %2293 = vmatpush3.bf16.msra.mxu0 %v2555_v10 }
   0xd   :  { %2272 = vmatpush3.bf16.msra.mxu1 %v2573_v14  ;;  %2107 = vmatprep.mubr.msk.f32.mxu1 %vm2496_vm1, %v2495_v4 }
   0xe   :  { %2273 = vmatprep.subr.bf16.mxu1 %v2494_v0  ;;  %1944 = vmatmul.mubr.msk.f32.gmra.mrb[4].mxu0 %vm43_vm2, %v22_v17 }
   0xf   :  { %2300 = vmatprep.subr.bf16.mxu0 %v2494_v0  ;;  %155 = vmatprep.mubr.f32.mxu0 %v2495_v4 }
  0x11   :  { %2275 = vmatpush3.bf16.msra.mxu1 %v2590_v18 }
  0x12   :  { %2276 = vmatprep.subr.bf16.mxu1 %v2494_v0  ;;  %1945 = vmatmul.mubr.msk.f32.gmra.mrb[6].mxu0 %vm43_vm2, %v23_v19 }
  0x13   :  { %161 = vmatprep.mubr.f32.mxu0 %v2495_v4 }
  0x14   :  { %2108 = vmatmul.mubr.f32.vlgmr.msra.gmra.mrb[2].mxu1 %v2495_v4 }
  0x15   :  { %2278 = vmatpush3.bf16.msra.mxu1 %v2540_v6  ;;  %2118 = vmatprep.mubr.msk.f32.mxu1 %vm2496_vm1, %v2495_v4 }
  0x16   :  { %2279 = vmatprep.subr.bf16.mxu1 %v2494_v0  ;;  %1946 = vmatmul.mubr.msk.f32.gmra.mrb[8].mxu0 %vm43_vm2, %v24_v20 }
  0x17   :  { %167 = vmatprep.mubr.f32.mxu0 %v2495_v4 }
  0x19   :  { %2281 = vmatpush3.bf16.msra.mxu1 %v2555_v10 }
  0x1a   :  { %2282 = vmatprep.subr.bf16.mxu1 %v2494_v0  ;;  %1947 = vmatmul.mubr.msk.f32.gmra.mrb[10].mxu0 %vm43_vm2, %v25_v21 }
  0x1b   :  { %173 = vmatprep.mubr.f32.mxu0 %v2495_v4 }
  0x1e   :  { %1948 = vmatmul.mubr.msk.f32.gmra.mrb[12].mxu0 %vm43_vm2, %v26_v22 }
  0x1f   :  { %179 = vmatprep.mubr.f32.mxu0 %v2495_v4 }
  0x22   :  { %1949 = vmatmul.mubr.msk.f32.gmra.mrb[14].mxu0 %vm43_vm2, %v27_v23 }
  0x23   :  { %2140 = vmatprep.mubr.msk.f32.mxu0 %vm2496_vm1, %v2495_v4 }
  0xd9   :  { %v139_v31 = vpop.f32.mrb[0].mxu0 }
  0xda   :  { %v141_v32 = vpop.f32.mrb[1].mxu0  ;;  %v140_v34 = vadd.f32 %v139_v31, %v34_v30 }
  0xdb   :  { %v2637_v33 = vadd.f32 %v141_v32, %v38_v29 }
  0xdd   :  { %v145_v35 = vpop.f32.mrb[2].mxu0 }
  0xde   :  { %v2639_v36 = vadd.f32 %v145_v35, %v34_v30  ;;  %v147_v37 = vpop.f32.mrb[3].mxu0 }
  0xdf   :  { %v296_v38 = vpop.f32.mrb[0].mxu1  ;;  %v2641_v39 = vadd.f32 %v147_v37, %v38_v29 }
  0xe0   :  { %v300_v40 = vadd.f32 %v296_v38, %v140_v34  ;;  %v2098_v41 = vpop.f32.mrb[1].mxu1 }
  0xe1   :  { %v151_v42 = vpop.f32.mrb[4].mxu0 }
  0xe2   :  { %2366 = vtanh.f32 %v300_v40  ;;  %v2643_v43 = vadd.f32 %v151_v42, %v34_v30  ;;  %v153_v44 = vpop.f32.mrb[5].mxu0  ;;  %v1950_v11 = vmul.f32 -1.442695, %v300_v40  ;;  %v420_v40 = vld [vmem:[%s3032_s5] sm:$0xff] }
  0xe3   :  { %v2645_v45 = vadd.f32 %v153_v44, %v38_v29  ;;  %v1952_v44 = vld [vmem:[%s3032_s5 + $0x38] sm:$0xff] }
  0xe5   :  { %v157_v46 = vpop.f32.mrb[6].mxu0 }
  0xe6   :  { %v2647_v47 = vadd.f32 %v157_v46, %v34_v30  ;;  %v159_v48 = vpop.f32.mrb[7].mxu0 }
  0xe7   :  { %v367_v49 = vpop.f32.mrb[2].mxu1  ;;  %v2649_v50 = vadd.f32 %v159_v48, %v38_v29 }
  0xe8   :  { %v2109_v51 = vpop.f32.mrb[3].mxu1 }
  0xe9   :  { %v163_v52 = vpop.f32.mrb[8].mxu0 }
  0xea   :  { %v2651_v53 = vadd.f32 %v163_v52, %v34_v30  ;;  %v165_v54 = vpop.f32.mrb[9].mxu0 }
  0xeb   :  { %v2653_v56 = vadd.f32 %v165_v54, %v38_v29 }
  0xec   :  { %v2367_v55 = vpop.eup %2366 }
  0xed   :  { %381 = vrot.lane.b32.xlu0 %v2367_v55, %s2497_s0  ;;  %v169_v57 = vpop.f32.mrb[10].mxu0 }
  0xee   :  { %v2656_v58 = vadd.f32 %v169_v57, %v34_v30  ;;  %v171_v59 = vpop.f32.mrb[11].mxu0 }
  0xef   :  { %v2658_v60 = vadd.f32 %v171_v59, %v38_v29 }
  0xf1   :  { %v175_v61 = vpop.f32.mrb[12].mxu0 }
  0xf2   :  { %v2660_v62 = vadd.f32 %v175_v61, %v34_v30  ;;  %v177_v63 = vpop.f32.mrb[13].mxu0 }
  0xf3   :  { %v2662_v1 = vadd.f32 %v177_v63, %v38_v29 }
  0xf5   :  { %v181_v2 = vpop.f32.mrb[14].mxu0 }
  0xf6   :  { %v2664_v3 = vadd.f32 %v181_v2, %v34_v30  ;;  %v183_v5 = vpop.f32.mrb[15].mxu0 }
  0xf7   :  { %v184_v7 = vadd.f32 %v183_v5, %v38_v29 }
  0xf9   :  { %v371_v8 = vadd.f32 %v367_v49, %v184_v7 }
  0xfb   :  { %2368 = vtanh.f32 %v371_v8  ;;  %v1951_v15 = vmul.f32 -1.442695, %v371_v8 }
  0xfc   :  { %2370 = vpow2.f32 %v1950_v11 }
 0x105   :  { %v2369_v9 = vpop.eup %2368 }
 0x106   :  { %405 = vrot.lane.b32.xlu0 %v2369_v9, %s2497_s0  ;;  %v2371_v12 = vpop.eup %2370 }
 0x107   :  { %v375_v13 = vadd.f32 1.0, %v2371_v12 }
 0x109   :  { %2372 = vrcp.f32 %v375_v13 }
 0x10a   :  { %2374 = vpow2.f32 %v1951_v15 }
 0x113   :  { %v2373_v16 = vpop.eup %2372 }
 0x114   :  { %v2375_v20 = vpop.eup %2374  ;;  %v379_v25 = vmul.f32 0.0, %v2373_v16 }
 0x115   :  { %v399_v21 = vadd.f32 1.0, %v2375_v20 }
 0x117   :  { %2376 = vrcp.f32 %v399_v21 }
 0x121   :  { %v2377_v22 = vpop.eup %2376 }
 0x122   :  { %v403_v29 = vmul.f32 0.0, %v2377_v22 }
 0x15f   :  { %v382_v17 = vpop.permute.xlu0 %381 }
 0x160   :  { %v384_v19 = vmul.f32 %v2373_v16, %v382_v17 }
 0x162   :  { %386 = vrot.lane.b32.xlu1 %v384_v19, %s2498_s4 }
 0x178   :  { %v406_v23 = vpop.permute.xlu0 %405 }
 0x179   :  { %v408_v24 = vmul.f32 %v2377_v22, %v406_v23 }
 0x17b   :  { %410 = vrot.lane.b32.xlu1 %v408_v24, %s2498_s4 }
 0x1d4   :  { %v387_v26 = vpop.permute.xlu1 %386 }
 0x1d5   :  { %v2669_v27 = vadd.f32 %v387_v26, %v379_v25 }
 0x1d7   :  { %2378 = vtanh.f32 %v2669_v27 }
 0x1e1   :  { %v2379_v28 = vpop.eup %2378 }
 0x1e2   :  { %392 = vrot.lane.b32.xlu0 %v2379_v28, %s2497_s0 }
 0x1ed   :  { %v411_v30 = vpop.permute.xlu1 %410 }
 0x1ee   :  { %v2673_v31 = vadd.f32 %v411_v30, %v403_v29  ;;  %v1958_v29 = vld [vmem:[%s3032_s5 + $0x8] sm:$0xff] }
 0x1f0   :  { %2380 = vtanh.f32 %v2673_v31 }
 0x1fa   :  { %v2381_v32 = vpop.eup %2380 }
 0x1fb   :  { %416 = vrot.lane.b32.xlu1 %v2381_v32, %s2497_s0  ;;  %v1960_v32 = vld [vmem:[%s3032_s5 + $0x30] sm:$0xff] }
 0x254   :  { %v393_v34 = vpop.permute.xlu0 %392 }
 0x255   :  { %v395_v35 = vmul.f32 %v2373_v16, %v393_v34 }
 0x257   :  { %422 = vrot.lane.b32.xlu0 %v395_v35, %s2498_s4 }
 0x26d   :  { %v417_v37 = vpop.permute.xlu1 %416 }
 0x26e   :  { %v419_v38 = vmul.f32 %v2377_v22, %v417_v37 }
 0x270   :  { %430 = vrot.lane.b32.xlu1 %v419_v38, %s2498_s4 }
 0x2c9   :  { %v423_v41 = vpop.permute.xlu0 %422 }
 0x2ca   :  { %v425_v42 = vadd.f32 %v423_v41, %v420_v40  ;;  %2119 = vmatmul.mubr.msk.f32.vlgmr.msra.gmra.mrb[4].mxu1 %vm202_vm3, %v423_v41 }
 0x2cb   :  { %2284 = vmatpush3.bf16.msra.mxu1 %v2573_v14  ;;  %2129 = vmatprep.mubr.msk.f32.mxu1 %vm2496_vm1, %v2495_v4 }
 0x2cc   :  { %426 = vst.msk [vmem:[%s3032_s5] sm:$0xff] %vm202_vm3, %v425_v42  ;;  %2285 = vmatprep.subr.bf16.mxu1 %v2494_v0 }
 0x2cf   :  { %2287 = vmatpush3.bf16.msra.mxu1 %v2590_v18 }
 0x2d0   :  { %2294 = vmatprep.subr.bf16.mxu1 %v2494_v0 }
 0x2e2   :  { %v431_v46 = vpop.permute.xlu1 %430 }
 0x2e3   :  { %v433_v48 = vadd.f32 %v1952_v44, %v431_v46  ;;  %2130 = vmatmul.mubr.msk.f32.vlgmr.msra.gmra.mrb[6].mxu1 %vm202_vm3, %v431_v46 }
 0x2e4   :  { %2296 = vmatpush3.bf16.msra.mxu1 %v2573_v14  ;;  %2151 = vmatprep.mubr.msk.f32.mxu1 %vm2496_vm1, %v2495_v4 }
 0x2e5   :  { %1953 = vst.msk [vmem:[%s3032_s5 + $0x38] sm:$0xff] %vm202_vm3, %v433_v48  ;;  %2297 = vmatprep.subr.bf16.mxu1 %v2494_v0 }
 0x2e8   :  { %2299 = vmatpush3.bf16.msra.mxu1 %v2590_v18 }
 0x2e9   :  { %2306 = vmatprep.subr.bf16.mxu1 %v2494_v0 }
 0x39d   :  { %v511_v49 = vpop.f32.mrb[4].mxu1 }
 0x39e   :  { %v515_v51 = vadd.f32 %v511_v49, %v2639_v36  ;;  %v2120_v52 = vpop.f32.mrb[5].mxu1 }
 0x3a0   :  { %2382 = vtanh.f32 %v515_v51  ;;  %v1956_v63 = vmul.f32 -1.442695, %v515_v51 }
 0x3aa   :  { %v2383_v54 = vpop.eup %2382 }
 0x3ab   :  { %598 = vrot.lane.b32.xlu0 %v2383_v54, %s2497_s0 }
 0x3b6   :  { %v584_v55 = vpop.f32.mrb[6].mxu1 }
 0x3b7   :  { %v588_v57 = vadd.f32 %v584_v55, %v2662_v1  ;;  %v2131_v59 = vpop.f32.mrb[7].mxu1 }
 0x3b9   :  { %2384 = vtanh.f32 %v588_v57  ;;  %v1957_v7 = vmul.f32 -1.442695, %v588_v57 }
 0x3ba   :  { %2386 = vpow2.f32 %v1956_v63 }
 0x3c3   :  { %v2385_v61 = vpop.eup %2384 }
 0x3c4   :  { %622 = vrot.lane.b32.xlu1 %v2385_v61, %s2497_s0  ;;  %v2387_v2 = vpop.eup %2386 }
 0x3c5   :  { %v592_v5 = vadd.f32 1.0, %v2387_v2 }
 0x3c7   :  { %2388 = vrcp.f32 %v592_v5 }
 0x3c8   :  { %2390 = vpow2.f32 %v1957_v7 }
 0x3d1   :  { %v2389_v36 = vpop.eup %2388 }
 0x3d2   :  { %v2391_v11 = vpop.eup %2390  ;;  %v596_v16 = vmul.f32 %v2389_v36, %v2669_v27 }
 0x3d3   :  { %v616_v12 = vadd.f32 1.0, %v2391_v11 }
 0x3d5   :  { %2392 = vrcp.f32 %v616_v12 }
 0x3df   :  { %v2393_v1 = vpop.eup %2392 }
 0x3e0   :  { %v620_v21 = vmul.f32 %v2393_v1, %v2673_v31 }
 0x41d   :  { %v599_v8 = vpop.permute.xlu0 %598 }
 0x41e   :  { %v601_v9 = vmul.f32 %v2389_v36, %v599_v8 }
 0x420   :  { %603 = vrot.lane.b32.xlu0 %v601_v9, %s2498_s4 }
 0x436   :  { %v623_v13 = vpop.permute.xlu1 %622 }
 0x437   :  { %v625_v15 = vmul.f32 %v2393_v1, %v623_v13 }
 0x439   :  { %627 = vrot.lane.b32.xlu1 %v625_v15, %s2498_s4 }
 0x492   :  { %v604_v17 = vpop.permute.xlu0 %603 }
 0x493   :  { %v2754_v19 = vadd.f32 %v604_v17, %v596_v16 }
 0x495   :  { %2394 = vtanh.f32 %v2754_v19 }
 0x49f   :  { %v2395_v20 = vpop.eup %2394 }
 0x4a0   :  { %609 = vrot.lane.b32.xlu0 %v2395_v20, %s2497_s0 }
 0x4ab   :  { %v628_v22 = vpop.permute.xlu1 %627 }
 0x4ac   :  { %v2759_v23 = vadd.f32 %v628_v22, %v620_v21  ;;  %v1968_v22 = vld [vmem:[%s3032_s5 + $0x28] sm:$0xff] }
 0x4ae   :  { %2396 = vtanh.f32 %v2759_v23 }
 0x4b8   :  { %v2397_v24 = vpop.eup %2396 }
 0x4b9   :  { %633 = vrot.lane.b32.xlu1 %v2397_v24, %s2497_s0 }
 0x512   :  { %v610_v25 = vpop.permute.xlu0 %609 }
 0x513   :  { %v612_v26 = vmul.f32 %v2389_v36, %v610_v25 }
 0x515   :  { %640 = vrot.lane.b32.xlu0 %v612_v26, %s2498_s4 }
 0x52b   :  { %v634_v27 = vpop.permute.xlu1 %633 }
 0x52c   :  { %v636_v28 = vmul.f32 %v2393_v1, %v634_v27 }
 0x52e   :  { %648 = vrot.lane.b32.xlu1 %v636_v28, %s2498_s4 }
 0x587   :  { %v641_v30 = vpop.permute.xlu0 %640 }
 0x588   :  { %v643_v31 = vadd.f32 %v1958_v29, %v641_v30  ;;  %2141 = vmatmul.mubr.msk.f32.vlgmr.msra.gmra.mrb[16].mxu0 %vm202_vm3, %v641_v30 }
 0x589   :  { %2302 = vmatpush3.bf16.msra.mxu0 %v2540_v6  ;;  %2162 = vmatprep.mubr.msk.f32.mxu0 %vm2496_vm1, %v2495_v4 }
 0x58a   :  { %1959 = vst.msk [vmem:[%s3032_s5 + $0x8] sm:$0xff] %vm202_vm3, %v643_v31  ;;  %2303 = vmatprep.subr.bf16.mxu0 %v2494_v0 }
 0x58d   :  { %2305 = vmatpush3.bf16.msra.mxu0 %v2555_v10 }
 0x58e   :  { %2312 = vmatprep.subr.bf16.mxu0 %v2494_v0 }
 0x5a0   :  { %v649_v34 = vpop.permute.xlu1 %648 }
 0x5a1   :  { %v651_v35 = vadd.f32 %v1960_v32, %v649_v34  ;;  %2152 = vmatmul.mubr.msk.f32.vlgmr.msra.gmra.mrb[8].mxu1 %vm202_vm3, %v649_v34 }
 0x5a2   :  { %2308 = vmatpush3.bf16.msra.mxu1 %v2573_v14  ;;  %2173 = vmatprep.mubr.msk.f32.mxu1 %vm2496_vm1, %v2495_v4 }
 0x5a3   :  { %1961 = vst.msk [vmem:[%s3032_s5 + $0x30] sm:$0xff] %vm202_vm3, %v651_v35  ;;  %2309 = vmatprep.subr.bf16.mxu1 %v2494_v0 }
 0x5a6   :  { %2311 = vmatpush3.bf16.msra.mxu1 %v2590_v18 }
 0x5a7   :  { %2318 = vmatprep.subr.bf16.mxu1 %v2494_v0 }
 0x65b   :  { %v729_v37 = vpop.f32.mrb[16].mxu0 }
 0x65c   :  { %v733_v38 = vadd.f32 %v729_v37, %v2643_v43  ;;  %v2142_v40 = vpop.f32.mrb[17].mxu0 }
 0x65e   :  { %2398 = vtanh.f32 %v733_v38  ;;  %v1964_v49 = vmul.f32 -1.442695, %v733_v38 }
 0x668   :  { %v2399_v41 = vpop.eup %2398 }
 0x669   :  { %816 = vrot.lane.b32.xlu0 %v2399_v41, %s2497_s0 }
 0x674   :  { %v802_v42 = vpop.f32.mrb[8].mxu1 }
 0x675   :  { %v806_v44 = vadd.f32 %v802_v42, %v2658_v60  ;;  %v2153_v46 = vpop.f32.mrb[9].mxu1 }
 0x677   :  { %2400 = vtanh.f32 %v806_v44  ;;  %v1965_v54 = vmul.f32 -1.442695, %v806_v44 }
 0x678   :  { %2402 = vpow2.f32 %v1964_v49 }
 0x681   :  { %v2401_v48 = vpop.eup %2400 }
 0x682   :  { %840 = vrot.lane.b32.xlu1 %v2401_v48, %s2497_s0  ;;  %v2403_v51 = vpop.eup %2402 }
 0x683   :  { %v810_v52 = vadd.f32 1.0, %v2403_v51 }
 0x685   :  { %2404 = vrcp.f32 %v810_v52 }
 0x686   :  { %2406 = vpow2.f32 %v1965_v54 }
 0x68f   :  { %v2405_v43 = vpop.eup %2404 }
 0x690   :  { %v2407_v59 = vpop.eup %2406  ;;  %v814_v5 = vmul.f32 %v2405_v43, %v2754_v19  ;;  %v1966_v19 = vld [vmem:[%s3032_s5 + $0x10] sm:$0xff] }
 0x691   :  { %v834_v61 = vadd.f32 1.0, %v2407_v59 }
 0x693   :  { %2408 = vrcp.f32 %v834_v61 }
 0x69d   :  { %v2409_v60 = vpop.eup %2408 }
 0x69e   :  { %v838_v9 = vmul.f32 %v2409_v60, %v2759_v23 }
 0x6db   :  { %v817_v55 = vpop.permute.xlu0 %816 }
 0x6dc   :  { %v819_v57 = vmul.f32 %v2405_v43, %v817_v55 }
 0x6de   :  { %821 = vrot.lane.b32.xlu0 %v819_v57, %s2498_s4 }
 0x6f4   :  { %v841_v63 = vpop.permute.xlu1 %840 }
 0x6f5   :  { %v843_v2 = vmul.f32 %v2409_v60, %v841_v63 }
 0x6f7   :  { %845 = vrot.lane.b32.xlu1 %v843_v2, %s2498_s4 }
 0x750   :  { %v822_v7 = vpop.permute.xlu0 %821 }
 0x751   :  { %v2800_v36 = vadd.f32 %v822_v7, %v814_v5  ;;  %v1974_v5 = vld [vmem:[%s3032_s5 + $0x18] sm:$0xff] }
 0x753   :  { %2410 = vtanh.f32 %v2800_v36 }
 0x75d   :  { %v2411_v8 = vpop.eup %2410 }
 0x75e   :  { %827 = vrot.lane.b32.xlu0 %v2411_v8, %s2497_s0  ;;  %v1976_v8 = vld [vmem:[%s3032_s5 + $0x20] sm:$0xff] }
 0x769   :  { %v846_v11 = vpop.permute.xlu1 %845 }
 0x76a   :  { %v2805_v12 = vadd.f32 %v846_v11, %v838_v9 }
 0x76c   :  { %2412 = vtanh.f32 %v2805_v12 }
 0x776   :  { %v2413_v1 = vpop.eup %2412 }
 0x777   :  { %851 = vrot.lane.b32.xlu1 %v2413_v1, %s2497_s0 }
 0x7d0   :  { %v828_v13 = vpop.permute.xlu0 %827 }
 0x7d1   :  { %v830_v15 = vmul.f32 %v2405_v43, %v828_v13 }
 0x7d3   :  { %858 = vrot.lane.b32.xlu0 %v830_v15, %s2498_s4 }
 0x7e9   :  { %v852_v16 = vpop.permute.xlu1 %851 }
 0x7ea   :  { %v854_v17 = vmul.f32 %v2409_v60, %v852_v16 }
 0x7ec   :  { %866 = vrot.lane.b32.xlu1 %v854_v17, %s2498_s4 }
 0x845   :  { %v859_v20 = vpop.permute.xlu0 %858 }
 0x846   :  { %v861_v21 = vadd.f32 %v1966_v19, %v859_v20  ;;  %2163 = vmatmul.mubr.msk.f32.vlgmr.msra.gmra.mrb[18].mxu0 %vm202_vm3, %v859_v20 }
 0x847   :  { %2314 = vmatpush3.bf16.msra.mxu0 %v2540_v6  ;;  %2184 = vmatprep.mubr.msk.f32.mxu0 %vm2496_vm1, %v2495_v4 }
 0x848   :  { %1967 = vst.msk [vmem:[%s3032_s5 + $0x10] sm:$0xff] %vm202_vm3, %v861_v21  ;;  %2315 = vmatprep.subr.bf16.mxu0 %v2494_v0 }
 0x84b   :  { %2317 = vmatpush3.bf16.msra.mxu0 %v2555_v10 }
 0x84c   :  { %2324 = vmatprep.subr.bf16.mxu0 %v2494_v0 }
 0x85e   :  { %v867_v23 = vpop.permute.xlu1 %866 }
 0x85f   :  { %v869_v24 = vadd.f32 %v1968_v22, %v867_v23  ;;  %2174 = vmatmul.mubr.msk.f32.vlgmr.msra.gmra.mrb[10].mxu1 %vm202_vm3, %v867_v23 }
 0x860   :  { %2320 = vmatpush3.bf16.msra.mxu1 %v2573_v14  ;;  %2195 = vmatprep.mubr.msk.f32.mxu1 %vm2496_vm1, %v2495_v4 }
 0x861   :  { %1969 = vst.msk [vmem:[%s3032_s5 + $0x28] sm:$0xff] %vm202_vm3, %v869_v24  ;;  %2321 = vmatprep.subr.bf16.mxu1 %v2494_v0 }
 0x864   :  { %2323 = vmatpush3.bf16.msra.mxu1 %v2590_v18 }
 0x865   :  { %2330 = vmatprep.subr.bf16.mxu1 %v2494_v0 }
 0x919   :  { %v947_v25 = vpop.f32.mrb[18].mxu0 }
 0x91a   :  { %v951_v26 = vadd.f32 %v947_v25, %v2647_v47  ;;  %v2164_v27 = vpop.f32.mrb[19].mxu0 }
 0x91c   :  { %2414 = vtanh.f32 %v951_v26  ;;  %v1972_v34 = vmul.f32 -1.442695, %v951_v26 }
 0x926   :  { %v2415_v28 = vpop.eup %2414 }
 0x927   :  { %1034 = vrot.lane.b32.xlu0 %v2415_v28, %s2497_s0 }
 0x932   :  { %v1020_v29 = vpop.f32.mrb[10].mxu1 }
 0x933   :  { %v1024_v30 = vadd.f32 %v1020_v29, %v2653_v56  ;;  %v2175_v31 = vpop.f32.mrb[11].mxu1 }
 0x935   :  { %2416 = vtanh.f32 %v1024_v30  ;;  %v1973_v38 = vmul.f32 -1.442695, %v1024_v30 }
 0x936   :  { %2418 = vpow2.f32 %v1972_v34 }
 0x93f   :  { %v2417_v32 = vpop.eup %2416 }
 0x940   :  { %1058 = vrot.lane.b32.xlu1 %v2417_v32, %s2497_s0  ;;  %v2419_v35 = vpop.eup %2418 }
 0x941   :  { %v1028_v37 = vadd.f32 1.0, %v2419_v35 }
 0x943   :  { %2420 = vrcp.f32 %v1028_v37 }
 0x944   :  { %2422 = vpow2.f32 %v1973_v38 }
 0x94d   :  { %v2421_v47 = vpop.eup %2420 }
 0x94e   :  { %v2423_v42 = vpop.eup %2422  ;;  %v1032_v49 = vmul.f32 %v2421_v47, %v2800_v36 }
 0x94f   :  { %v1052_v44 = vadd.f32 1.0, %v2423_v42 }
 0x951   :  { %2424 = vrcp.f32 %v1052_v44 }
 0x95b   :  { %v2425_v56 = vpop.eup %2424 }
 0x95c   :  { %v1056_v43 = vmul.f32 %v2425_v56, %v2805_v12 }
 0x999   :  { %v1035_v40 = vpop.permute.xlu0 %1034 }
 0x99a   :  { %v1037_v41 = vmul.f32 %v2421_v47, %v1035_v40 }
 0x99c   :  { %1039 = vrot.lane.b32.xlu0 %v1037_v41, %s2498_s4 }
 0x9b2   :  { %v1059_v46 = vpop.permute.xlu1 %1058 }
 0x9b3   :  { %v1061_v48 = vmul.f32 %v2425_v56, %v1059_v46 }
 0x9b5   :  { %1063 = vrot.lane.b32.xlu1 %v1061_v48, %s2498_s4 }
 0xa0e   :  { %v1040_v51 = vpop.permute.xlu0 %1039 }
 0xa0f   :  { %v2846_v52 = vadd.f32 %v1040_v51, %v1032_v49 }
 0xa11   :  { %2426 = vtanh.f32 %v2846_v52 }
 0xa1b   :  { %v2427_v54 = vpop.eup %2426 }
 0xa1c   :  { %1045 = vrot.lane.b32.xlu0 %v2427_v54, %s2497_s0 }
 0xa27   :  { %v1064_v55 = vpop.permute.xlu1 %1063 }
 0xa28   :  { %v2851_v57 = vadd.f32 %v1064_v55, %v1056_v43 }
 0xa2a   :  { %2428 = vtanh.f32 %v2851_v57 }
 0xa34   :  { %v2429_v59 = vpop.eup %2428 }
 0xa35   :  { %1069 = vrot.lane.b32.xlu1 %v2429_v59, %s2497_s0 }
 0xa8e   :  { %v1046_v61 = vpop.permute.xlu0 %1045 }
 0xa8f   :  { %v1048_v60 = vmul.f32 %v2421_v47, %v1046_v61 }
 0xa91   :  { %1076 = vrot.lane.b32.xlu0 %v1048_v60, %s2498_s4 }
 0xaa7   :  { %v1070_v63 = vpop.permute.xlu1 %1069 }
 0xaa8   :  { %v1072_v2 = vmul.f32 %v2425_v56, %v1070_v63 }
 0xaaa   :  { %1084 = vrot.lane.b32.xlu1 %v1072_v2, %s2498_s4 }
 0xb03   :  { %v1077_v7 = vpop.permute.xlu0 %1076 }
 0xb04   :  { %v1079_v36 = vadd.f32 %v1974_v5, %v1077_v7  ;;  %2185 = vmatmul.mubr.msk.f32.vlgmr.msra.gmra.mrb[20].mxu0 %vm202_vm3, %v1077_v7 }
 0xb05   :  { %2326 = vmatpush3.bf16.msra.mxu0 %v2540_v6  ;;  %2206 = vmatprep.mubr.msk.f32.mxu0 %vm2496_vm1, %v2495_v4 }
 0xb06   :  { %1975 = vst.msk [vmem:[%s3032_s5 + $0x18] sm:$0xff] %vm202_vm3, %v1079_v36  ;;  %2327 = vmatprep.subr.bf16.mxu0 %v2494_v0 }
 0xb09   :  { %2329 = vmatpush3.bf16.msra.mxu0 %v2555_v10 }
 0xb0a   :  { %2336 = vmatprep.subr.bf16.mxu0 %v2494_v0 }
 0xb0d   :  { %v1984_v51 = vld [vmem:[%s3032_s5 + $0x18] sm:$0xff] }
 0xb1c   :  { %v1085_v9 = vpop.permute.xlu1 %1084 }
 0xb1d   :  { %v1087_v11 = vadd.f32 %v1976_v8, %v1085_v9  ;;  %2196 = vmatmul.mubr.msk.f32.vlgmr.msra.gmra.mrb[12].mxu1 %vm202_vm3, %v1085_v9 }
 0xb1e   :  { %2332 = vmatpush3.bf16.msra.mxu1 %v2573_v14  ;;  %2217 = vmatprep.mubr.msk.f32.mxu1 %vm2496_vm1, %v2495_v4 }
 0xb1f   :  { %1977 = vst.msk [vmem:[%s3032_s5 + $0x20] sm:$0xff] %vm202_vm3, %v1087_v11  ;;  %2333 = vmatprep.subr.bf16.mxu1 %v2494_v0 }
 0xb22   :  { %2335 = vmatpush3.bf16.msra.mxu1 %v2590_v18 }
 0xb23   :  { %2342 = vmatprep.subr.bf16.mxu1 %v2494_v0 }
 0xb26   :  { %v1982_v48 = vld [vmem:[%s3032_s5 + $0x20] sm:$0xff] }
 0xbd7   :  { %v1159_v12 = vpop.f32.mrb[20].mxu0 }
 0xbd8   :  { %v1163_v1 = vadd.f32 %v1159_v12, %v2651_v53  ;;  %v2186_v13 = vpop.f32.mrb[21].mxu0 }
 0xbda   :  { %2430 = vtanh.f32 %v1163_v1  ;;  %v1980_v21 = vmul.f32 -1.442695, %v1163_v1 }
 0xbe4   :  { %v2431_v15 = vpop.eup %2430 }
 0xbe5   :  { %1246 = vrot.lane.b32.xlu0 %v2431_v15, %s2497_s0 }
 0xbf0   :  { %v1232_v16 = vpop.f32.mrb[12].mxu1 }
 0xbf1   :  { %v1236_v17 = vadd.f32 %v1232_v16, %v2649_v50  ;;  %v2197_v19 = vpop.f32.mrb[13].mxu1 }
 0xbf3   :  { %2432 = vtanh.f32 %v1236_v17  ;;  %v1981_v24 = vmul.f32 -1.442695, %v1236_v17 }
 0xbf4   :  { %2434 = vpow2.f32 %v1980_v21 }
 0xbfd   :  { %v2433_v20 = vpop.eup %2432 }
 0xbfe   :  { %1270 = vrot.lane.b32.xlu1 %v2433_v20, %s2497_s0  ;;  %v2435_v22 = vpop.eup %2434 }
 0xbff   :  { %v1240_v23 = vadd.f32 1.0, %v2435_v22 }
 0xc01   :  { %2436 = vrcp.f32 %v1240_v23 }
 0xc02   :  { %2438 = vpow2.f32 %v1981_v24 }
 0xc0b   :  { %v2437_v53 = vpop.eup %2436 }
 0xc0c   :  { %v2439_v27 = vpop.eup %2438  ;;  %v1244_v31 = vmul.f32 %v2437_v53, %v2846_v52 }
 0xc0d   :  { %v1264_v28 = vadd.f32 1.0, %v2439_v27 }
 0xc0f   :  { %2440 = vrcp.f32 %v1264_v28 }
 0xc19   :  { %v2441_v50 = vpop.eup %2440 }
 0xc1a   :  { %v1268_v37 = vmul.f32 %v2441_v50, %v2851_v57 }
 0xc57   :  { %v1247_v25 = vpop.permute.xlu0 %1246 }
 0xc58   :  { %v1249_v26 = vmul.f32 %v2437_v53, %v1247_v25 }
 0xc5a   :  { %1251 = vrot.lane.b32.xlu0 %v1249_v26, %s2498_s4 }
 0xc70   :  { %v1271_v29 = vpop.permute.xlu1 %1270 }
 0xc71   :  { %v1273_v30 = vmul.f32 %v2441_v50, %v1271_v29 }
 0xc73   :  { %1275 = vrot.lane.b32.xlu1 %v1273_v30, %s2498_s4  ;;  %v1992_v30 = vld [vmem:[%s3032_s5 + $0x10] sm:$0xff] }
 0xccc   :  { %v1252_v32 = vpop.permute.xlu0 %1251 }
 0xccd   :  { %v2892_v34 = vadd.f32 %v1252_v32, %v1244_v31 }
 0xccf   :  { %2442 = vtanh.f32 %v2892_v34 }
 0xcd9   :  { %v2443_v35 = vpop.eup %2442 }
 0xcda   :  { %1257 = vrot.lane.b32.xlu0 %v2443_v35, %s2497_s0 }
 0xce5   :  { %v1276_v38 = vpop.permute.xlu1 %1275 }
 0xce6   :  { %v2897_v47 = vadd.f32 %v1276_v38, %v1268_v37 }
 0xce8   :  { %2444 = vtanh.f32 %v2897_v47 }
 0xcf2   :  { %v2445_v40 = vpop.eup %2444 }
 0xcf3   :  { %1281 = vrot.lane.b32.xlu1 %v2445_v40, %s2497_s0 }
 0xd4c   :  { %v1258_v41 = vpop.permute.xlu0 %1257 }
 0xd4d   :  { %v1260_v42 = vmul.f32 %v2437_v53, %v1258_v41 }
 0xd4f   :  { %1287 = vrot.lane.b32.xlu0 %v1260_v42, %s2498_s4 }
 0xd65   :  { %v1282_v44 = vpop.permute.xlu1 %1281 }
 0xd66   :  { %v1284_v56 = vmul.f32 %v2441_v50, %v1282_v44  ;;  %v1990_v50 = vld [vmem:[%s3032_s5 + $0x28] sm:$0xff] }
 0xd68   :  { %1294 = vrot.lane.b32.xlu1 %v1284_v56, %s2498_s4 }
 0xdc1   :  { %v1288_v46 = vpop.permute.xlu0 %1287 }
 0xdc2   :  { %v1290_v49 = vadd.f32 %v1982_v48, %v1288_v46  ;;  %2207 = vmatmul.mubr.msk.f32.vlgmr.msra.gmra.mrb[22].mxu0 %vm202_vm3, %v1288_v46 }
 0xdc3   :  { %2338 = vmatpush3.bf16.msra.mxu0 %v2540_v6  ;;  %2228 = vmatprep.mubr.msk.f32.mxu0 %vm2496_vm1, %v2495_v4 }
 0xdc4   :  { %1983 = vst.msk [vmem:[%s3032_s5 + $0x20] sm:$0xff] %vm202_vm3, %v1290_v49  ;;  %2339 = vmatprep.subr.bf16.mxu0 %v2494_v0 }
 0xdc7   :  { %2341 = vmatpush3.bf16.msra.mxu0 %v2555_v10 }
 0xdc8   :  { %2348 = vmatprep.subr.bf16.mxu0 %v2494_v0 }
 0xdda   :  { %v1295_v52 = vpop.permute.xlu1 %1294 }
 0xddb   :  { %v1297_v54 = vadd.f32 %v1984_v51, %v1295_v52  ;;  %2218 = vmatmul.mubr.msk.f32.vlgmr.msra.gmra.mrb[14].mxu1 %vm202_vm3, %v1295_v52 }
 0xddc   :  { %2344 = vmatpush3.bf16.msra.mxu1 %v2573_v14  ;;  %2239 = vmatprep.mubr.msk.f32.mxu1 %vm2496_vm1, %v2495_v4 }
 0xddd   :  { %1985 = vst.msk [vmem:[%s3032_s5 + $0x18] sm:$0xff] %vm202_vm3, %v1297_v54  ;;  %2345 = vmatprep.subr.bf16.mxu1 %v2494_v0 }
 0xde0   :  { %2347 = vmatpush3.bf16.msra.mxu1 %v2590_v18 }
 0xde1   :  { %2354 = vmatprep.subr.bf16.mxu1 %v2494_v0 }
 0xe95   :  { %v1369_v43 = vpop.f32.mrb[22].mxu0 }
 0xe96   :  { %v1373_v55 = vadd.f32 %v1369_v43, %v2656_v58  ;;  %v2208_v57 = vpop.f32.mrb[23].mxu0 }
 0xe98   :  { %2446 = vtanh.f32 %v1373_v55  ;;  %v1988_v5 = vmul.f32 -1.442695, %v1373_v55 }
 0xea2   :  { %v2447_v59 = vpop.eup %2446 }
 0xea3   :  { %1456 = vrot.lane.b32.xlu0 %v2447_v59, %s2497_s0 }
 0xeae   :  { %v1442_v61 = vpop.f32.mrb[14].mxu1 }
 0xeaf   :  { %v1446_v60 = vadd.f32 %v1442_v61, %v2645_v45  ;;  %v2219_v63 = vpop.f32.mrb[15].mxu1 }
 0xeb1   :  { %2448 = vtanh.f32 %v1446_v60  ;;  %v1989_v8 = vmul.f32 -1.442695, %v1446_v60 }
 0xeb2   :  { %2450 = vpow2.f32 %v1988_v5 }
 0xebb   :  { %v2449_v2 = vpop.eup %2448 }
 0xebc   :  { %1480 = vrot.lane.b32.xlu1 %v2449_v2, %s2497_s0  ;;  %v2451_v7 = vpop.eup %2450 }
 0xebd   :  { %v1450_v36 = vadd.f32 1.0, %v2451_v7  ;;  %v1998_v7 = vld [vmem:[%s3032_s5 + $0x30] sm:$0xff] }
 0xebf   :  { %2452 = vrcp.f32 %v1450_v36 }
 0xec0   :  { %2454 = vpow2.f32 %v1989_v8  ;;  %v2000_v8 = vld [vmem:[%s3032_s5 + $0x8] sm:$0xff] }
 0xec9   :  { %v2453_v58 = vpop.eup %2452 }
 0xeca   :  { %v2455_v12 = vpop.eup %2454  ;;  %v1454_v16 = vmul.f32 %v2453_v58, %v2892_v34 }
 0xecb   :  { %v1474_v1 = vadd.f32 1.0, %v2455_v12 }
 0xecd   :  { %2456 = vrcp.f32 %v1474_v1 }
 0xed7   :  { %v2457_v45 = vpop.eup %2456 }
 0xed8   :  { %v1478_v21 = vmul.f32 %v2457_v45, %v2897_v47 }
 0xf15   :  { %v1457_v9 = vpop.permute.xlu0 %1456 }
 0xf16   :  { %v1459_v11 = vmul.f32 %v2453_v58, %v1457_v9 }
 0xf18   :  { %1461 = vrot.lane.b32.xlu0 %v1459_v11, %s2498_s4 }
 0xf2e   :  { %v1481_v13 = vpop.permute.xlu1 %1480 }
 0xf2f   :  { %v1483_v15 = vmul.f32 %v2457_v45, %v1481_v13 }
 0xf31   :  { %1485 = vrot.lane.b32.xlu1 %v1483_v15, %s2498_s4 }
 0xf8a   :  { %v1462_v17 = vpop.permute.xlu0 %1461 }
 0xf8b   :  { %v2938_v19 = vadd.f32 %v1462_v17, %v1454_v16 }
 0xf8d   :  { %2458 = vtanh.f32 %v2938_v19 }
 0xf97   :  { %v2459_v20 = vpop.eup %2458 }
 0xf98   :  { %1467 = vrot.lane.b32.xlu0 %v2459_v20, %s2497_s0 }
 0xfa3   :  { %v1486_v22 = vpop.permute.xlu1 %1485 }
 0xfa4   :  { %v2943_v23 = vadd.f32 %v1486_v22, %v1478_v21 }
 0xfa6   :  { %2460 = vtanh.f32 %v2943_v23 }
 0xfb0   :  { %v2461_v24 = vpop.eup %2460 }
 0xfb1   :  { %1491 = vrot.lane.b32.xlu1 %v2461_v24, %s2497_s0 }
0x100a   :  { %v1468_v53 = vpop.permute.xlu0 %1467 }
0x100b   :  { %v1470_v25 = vmul.f32 %v2453_v58, %v1468_v53 }
0x100d   :  { %1497 = vrot.lane.b32.xlu0 %v1470_v25, %s2498_s4 }
0x1023   :  { %v1492_v26 = vpop.permute.xlu1 %1491 }
0x1024   :  { %v1494_v27 = vmul.f32 %v2457_v45, %v1492_v26 }
0x1026   :  { %1504 = vrot.lane.b32.xlu1 %v1494_v27, %s2498_s4 }
0x107f   :  { %v1498_v28 = vpop.permute.xlu0 %1497 }
0x1080   :  { %v1500_v29 = vadd.f32 %v1990_v50, %v1498_v28  ;;  %2229 = vmatmul.mubr.msk.f32.vlgmr.msra.gmra.mrb[24].mxu0 %vm202_vm3, %v1498_v28 }
0x1081   :  { %2350 = vmatpush3.bf16.msra.mxu0 %v2540_v6  ;;  %2250 = vmatprep.mubr.msk.f32.mxu0 %vm2496_vm1, %v2495_v4 }
0x1082   :  { %1991 = vst.msk [vmem:[%s3032_s5 + $0x28] sm:$0xff] %vm202_vm3, %v1500_v29  ;;  %2351 = vmatprep.subr.bf16.mxu0 %v2494_v0 }
0x1085   :  { %2353 = vmatpush3.bf16.msra.mxu0 %v2555_v10 }
0x1098   :  { %v1505_v31 = vpop.permute.xlu1 %1504 }
0x1099   :  { %v1507_v32 = vadd.f32 %v1992_v30, %v1505_v31  ;;  %2240 = vmatmul.mubr.msk.f32.vlgmr.msra.gmra.mrb[16].mxu1 %vm202_vm3, %v1505_v31 }
0x109a   :  { %2356 = vmatpush3.bf16.msra.mxu1 %v2573_v14  ;;  %2261 = vmatprep.mubr.msk.f32.mxu1 %vm2496_vm1, %v2495_v4 }
0x109b   :  { %1993 = vst.msk [vmem:[%s3032_s5 + $0x10] sm:$0xff] %vm202_vm3, %v1507_v32  ;;  %2357 = vmatprep.subr.bf16.mxu1 %v2494_v0 }
0x109e   :  { %2359 = vmatpush3.bf16.msra.mxu1 %v2590_v18 }
0x1153   :  { %v1579_v6 = vpop.f32.mrb[24].mxu0 }
0x1154   :  { %v1583_v10 = vadd.f32 %v1579_v6, %v2660_v62  ;;  %v2230_v34 = vpop.f32.mrb[25].mxu0 }
0x1156   :  { %2462 = vtanh.f32 %v1583_v10  ;;  %v1996_v47 = vmul.f32 -1.442695, %v1583_v10 }
0x1160   :  { %v2463_v35 = vpop.eup %2462 }
0x1161   :  { %1666 = vrot.lane.b32.xlu0 %v2463_v35, %s2497_s0 }
0x116c   :  { %v1652_v14 = vpop.f32.mrb[16].mxu1 }
0x116d   :  { %v1656_v4 = vadd.f32 %v1652_v14, %v2641_v39  ;;  %v2241_v37 = vpop.f32.mrb[17].mxu1 }
0x116e   :  { %v2006_v37 = vld [vmem:[%s3032_s5 + $0x38] sm:$0xff] }
0x116f   :  { %2464 = vtanh.f32 %v1656_v4  ;;  %v1997_v40 = vmul.f32 -1.442695, %v1656_v4 }
0x1170   :  { %2466 = vpow2.f32 %v1996_v47 }
0x1179   :  { %v2465_v38 = vpop.eup %2464 }
0x117a   :  { %1690 = vrot.lane.b32.xlu1 %v2465_v38, %s2497_s0  ;;  %v2467_v0 = vpop.eup %2466 }
0x117b   :  { %v1660_v18 = vadd.f32 1.0, %v2467_v0 }
0x117d   :  { %2468 = vrcp.f32 %v1660_v18  ;;  %v1922_v18 = vld [vmem:[%s3032_s5] sm:$0xff] }
0x117e   :  { %2470 = vpow2.f32 %v1997_v40 }
0x1187   :  { %v2469_v62 = vpop.eup %2468 }
0x1188   :  { %v2471_v44 = vpop.eup %2470  ;;  %v1664_v49 = vmul.f32 %v2469_v62, %v2938_v19 }
0x1189   :  { %v1684_v56 = vadd.f32 1.0, %v2471_v44 }
0x118b   :  { %2472 = vrcp.f32 %v1684_v56 }
0x1195   :  { %v2473_v39 = vpop.eup %2472 }
0x1196   :  { %v1688_v43 = vmul.f32 %v2473_v39, %v2943_v23 }
0x11d3   :  { %v1667_v41 = vpop.permute.xlu0 %1666 }
0x11d4   :  { %v1669_v42 = vmul.f32 %v2469_v62, %v1667_v41 }
0x11d6   :  { %1671 = vrot.lane.b32.xlu0 %v1669_v42, %s2498_s4 }
0x11ec   :  { %v1691_v46 = vpop.permute.xlu1 %1690 }
0x11ed   :  { %v1693_v48 = vmul.f32 %v2473_v39, %v1691_v46 }
0x11ef   :  { %1695 = vrot.lane.b32.xlu1 %v1693_v48, %s2498_s4 }
0x1248   :  { %v1672_v51 = vpop.permute.xlu0 %1671 }
0x1249   :  { %v1674_v52 = vadd.f32 %v1672_v51, %v1664_v49 }
0x124b   :  { %2474 = vtanh.f32 %v1674_v52 }
0x1255   :  { %v2475_v54 = vpop.eup %2474 }
0x1256   :  { %1677 = vrot.lane.b32.xlu0 %v2475_v54, %s2497_s0 }
0x1261   :  { %v1696_v55 = vpop.permute.xlu1 %1695 }
0x1262   :  { %v1698_v57 = vadd.f32 %v1696_v55, %v1688_v43 }
0x1264   :  { %2476 = vtanh.f32 %v1698_v57 }
0x126e   :  { %v2477_v59 = vpop.eup %2476 }
0x126f   :  { %1701 = vrot.lane.b32.xlu1 %v2477_v59, %s2497_s0 }
0x12c8   :  { %v1678_v61 = vpop.permute.xlu0 %1677 }
0x12c9   :  { %v1680_v60 = vmul.f32 %v2469_v62, %v1678_v61 }
0x12cb   :  { %1707 = vrot.lane.b32.xlu0 %v1680_v60, %s2498_s4 }
0x12e1   :  { %v1702_v63 = vpop.permute.xlu1 %1701 }
0x12e2   :  { %v1704_v2 = vmul.f32 %v2473_v39, %v1702_v63 }
0x12e4   :  { %1714 = vrot.lane.b32.xlu1 %v1704_v2, %s2498_s4 }
0x133d   :  { %v1708_v5 = vpop.permute.xlu0 %1707 }
0x133e   :  { %v1710_v36 = vadd.f32 %v1998_v7, %v1708_v5  ;;  %2251 = vmatmul.mubr.msk.f32.vlgmr.msra.gmra.mrb[26].mxu0 %vm202_vm3, %v1708_v5 }
0x1340   :  { %1999 = vst.msk [vmem:[%s3032_s5 + $0x30] sm:$0xff] %vm202_vm3, %v1710_v36 }
0x1356   :  { %v1715_v58 = vpop.permute.xlu1 %1714 }
0x1357   :  { %v1717_v9 = vadd.f32 %v2000_v8, %v1715_v58  ;;  %2262 = vmatmul.mubr.msk.f32.vlgmr.msra.gmra.mrb[18].mxu1 %vm202_vm3, %v1715_v58 }
0x1359   :  { %2001 = vst.msk [vmem:[%s3032_s5 + $0x8] sm:$0xff] %vm202_vm3, %v1717_v9 }
0x1411   :  { %v1789_v11 = vpop.f32.mrb[26].mxu0 }
0x1412   :  { %v1793_v12 = vadd.f32 %v1789_v11, %v2664_v3  ;;  %v2252_v1 = vpop.f32.mrb[27].mxu0 }
0x1414   :  { %2478 = vtanh.f32 %v1793_v12  ;;  %v2004_v19 = vmul.f32 -1.442695, %v1793_v12 }
0x141e   :  { %v2479_v45 = vpop.eup %2478 }
0x141f   :  { %1876 = vrot.lane.b32.xlu0 %v2479_v45, %s2497_s0 }
0x142a   :  { %v1862_v13 = vpop.f32.mrb[18].mxu1 }
0x142b   :  { %v1866_v15 = vadd.f32 %v1862_v13, %v2637_v33  ;;  %v2263_v16 = vpop.f32.mrb[19].mxu1 }
0x142d   :  { %2480 = vtanh.f32 %v1866_v15  ;;  %v2005_v22 = vmul.f32 -1.442695, %v1866_v15 }
0x142e   :  { %2482 = vpow2.f32 %v2004_v19 }
0x1437   :  { %v2481_v17 = vpop.eup %2480 }
0x1438   :  { %1900 = vrot.lane.b32.xlu1 %v2481_v17, %s2497_s0  ;;  %v2483_v20 = vpop.eup %2482 }
0x1439   :  { %v1870_v21 = vadd.f32 1.0, %v2483_v20 }
0x143b   :  { %2484 = vrcp.f32 %v1870_v21 }
0x143c   :  { %2486 = vpow2.f32 %v2005_v22 }
0x1445   :  { %v2485_v3 = vpop.eup %2484 }
0x1446   :  { %v2487_v53 = vpop.eup %2486  ;;  %v1874_v28 = vmul.f32 %v2485_v3, %v1674_v52 }
0x1447   :  { %v1894_v25 = vadd.f32 1.0, %v2487_v53 }
0x1449   :  { %2488 = vrcp.f32 %v1894_v25 }
0x1453   :  { %v2489_v33 = vpop.eup %2488 }
0x1454   :  { %v1898_v31 = vmul.f32 %v2489_v33, %v1698_v57 }
0x1491   :  { %v1877_v23 = vpop.permute.xlu0 %1876 }
0x1492   :  { %v1879_v24 = vmul.f32 %v2485_v3, %v1877_v23 }
0x1494   :  { %1881 = vrot.lane.b32.xlu0 %v1879_v24, %s2498_s4 }
0x14aa   :  { %v1901_v26 = vpop.permute.xlu1 %1900 }
0x14ab   :  { %v1903_v27 = vmul.f32 %v2489_v33, %v1901_v26 }
0x14ad   :  { %1905 = vrot.lane.b32.xlu1 %v1903_v27, %s2498_s4 }
0x1506   :  { %v1882_v50 = vpop.permute.xlu0 %1881 }
0x1507   :  { %v1884_v29 = vadd.f32 %v1882_v50, %v1874_v28 }
0x1509   :  { %2490 = vtanh.f32 %v1884_v29 }
0x1513   :  { %v2491_v30 = vpop.eup %2490 }
0x1514   :  { %1887 = vrot.lane.b32.xlu0 %v2491_v30, %s2497_s0 }
0x151f   :  { %v1906_v32 = vpop.permute.xlu1 %1905 }
0x1520   :  { %v1908_v6 = vadd.f32 %v1906_v32, %v1898_v31 }
0x1522   :  { %2492 = vtanh.f32 %v1908_v6 }
0x152c   :  { %v2493_v10 = vpop.eup %2492 }
0x152d   :  { %1911 = vrot.lane.b32.xlu1 %v2493_v10, %s2497_s0 }
0x1586   :  { %v1888_v34 = vpop.permute.xlu0 %1887 }
0x1587   :  { %v1890_v35 = vmul.f32 %v2485_v3, %v1888_v34 }
0x1589   :  { %1917 = vrot.lane.b32.xlu0 %v1890_v35, %s2498_s4 }
0x159f   :  { %v1912_v14 = vpop.permute.xlu1 %1911 }
0x15a0   :  { %v1914_v4 = vmul.f32 %v2489_v33, %v1912_v14 }
0x15a2   :  { %1924 = vrot.lane.b32.xlu1 %v1914_v4, %s2498_s4 }
0x15fb   :  { %v1918_v38 = vpop.permute.xlu0 %1917 }
0x15fc   :  { %v1920_v47 = vadd.f32 %v2006_v37, %v1918_v38 }
0x15fe   :  { %2007 = vst.msk [vmem:[%s3032_s5 + $0x38] sm:$0xff] %vm202_vm3, %v1920_v47 }
0x1614   :  { %v1925_v0 = vpop.permute.xlu1 %1924 }
0x1615   :  { %v1927_v40 = vadd.f32 %v1925_v0, %v1922_v18 }
0x1617   :  { %1928 = vst.msk [vmem:[%s3032_s5] sm:$0xff] %vm202_vm3, %v1927_v40 }

// kernel: bi_lstm_standard.5
= control target key start
LH: loop header
LB: loop body
LE: loop exit
PB: predicated region body
PF: predicated region fallthrough
CT: control target
= control target key end

     0   :  { %v2555_v3 = vmov 0.0|0.0   ;;  %v2556_v4 = vmov 0.0   ;;  %vm2557_vm0 = vmmov 0   ;;  %vm56_vm1 = vcmask 523264   ;;  %s3195_s1 = inlined_call_operand.vmem [shape: f32[64,256], index: 1, kind: input, shape index: {}]   ;;  %s3196_s2 = inlined_call_operand.vmem [shape: f32[32,128], index: 2, kind: input, shape index: {}]   ;;  %s3197_s3 = inlined_call_operand.vmem [shape: f32[32,128], index: 3, kind: input, shape index: {}]   ;;  %s3198_s0 = inlined_call_operand.vmem [shape: f32[1,64,64], index: 0, kind: input, shape index: {}]   ;;  %s3199_s4 = inlined_call_operand.vmem [shape: f32[1,256], index: 4, kind: input, shape index: {}]   ;;  %s3200_s5 = inlined_call_operand.vmem [shape: f32[1,64,32], index: 5, kind: output, shape index: {}]  }
   0x1   :  { %v29_v0 = vld [vmem:[%s3195_s1 + $0x8] sm:$0xff]  ;;  %v31_v1 = vld [vmem:[%s3195_s1 + $0x18] sm:$0xff]  ;;  %v28_v2 = vld [vmem:[%s3195_s1] sm:$0xff]  ;;  %2326 = vmatprep.subr.bf16.mxu1 %v2555_v3  ;;  %145 = vmatprep.mubr.f32.mxu0 %v2556_v4  ;;  %v46_v46 = vlaneseq  ;;  %vm210_vm2 = vcmask 261120  }
   0x2   :  { %v2310_v5 = vpack.c.bf16 %v31_v1, %v29_v0  ;;  %v30_v6 = vld [vmem:[%s3195_s1 + $0x10] sm:$0xff]  ;;  %v33_v7 = vld [vmem:[%s3195_s1 + $0x28] sm:$0xff]  ;;  %v35_v8 = vld [vmem:[%s3195_s1 + $0x38] sm:$0xff]  ;;  %2142 = vmatprep.mubr.msk.f32.mxu1 %vm2557_vm0, %v2556_v4  ;;  %211 = vst.msk [vmem:[%s3200_s5] sm:$0xff] %vm210_vm2, %v2556_v4 }
   0x3   :  { %v2312_v9 = vpack.c.bf16 %v30_v6, %v28_v2  ;;  %v2314_v10 = vpack.c.bf16 %v35_v8, %v33_v7  ;;  %v32_v11 = vld [vmem:[%s3195_s1 + $0x20] sm:$0xff]  ;;  %v34_v12 = vld [vmem:[%s3195_s1 + $0x30] sm:$0xff]  ;;  %v37_v13 = vld [vmem:[%s3195_s1 + $0x48] sm:$0xff]  ;;  %v47_v47 = vshrl.u32 %v46_v46, 7  ;;  %212 = vst.msk [vmem:[%s3200_s5 + $0x8] sm:$0xff] %vm210_vm2, %v2556_v4 }
   0x4   :  { %2311 = vmatprep.subr.bf16.mxu0 %v2310_v5  ;;  %v39_v14 = vld [vmem:[%s3195_s1 + $0x58] sm:$0xff]  ;;  %v2316_v15 = vpack.c.bf16 %v34_v12, %v32_v11  ;;  %v219_v16 = vld [vmem:[%s3196_s2] sm:$0xff]  ;;  %v220_v17 = vld [vmem:[%s3196_s2 + $0x8] sm:$0xff]  ;;  %213 = vst.msk [vmem:[%s3200_s5 + $0x10] sm:$0xff] %vm210_vm2, %v2556_v4 }
   0x5   :  { %2313 = vmatpush1.bf16.msra.mxu0 %v2312_v9  ;;  %v2318_v18 = vpack.c.bf16 %v39_v14, %v37_v13  ;;  %v36_v19 = vld [vmem:[%s3195_s1 + $0x40] sm:$0xff]  ;;  %v38_v20 = vld [vmem:[%s3195_s1 + $0x50] sm:$0xff]  ;;  %v2636_v21 = vpack.c.bf16 %v220_v17, %v219_v16  ;;  %v41_v22 = vld [vmem:[%s3195_s1 + $0x68] sm:$0xff]  ;;  %v48_v48 = vsub.s32 0, %v47_v47  ;;  %v52_v50 = vsub.s32 1, %v47_v47  ;;  %214 = vst.msk [vmem:[%s3200_s5 + $0x18] sm:$0xff] %vm210_vm2, %v2556_v4 }
   0x6   :  { %2315 = vmatprep.subr.bf16.mxu0 %v2314_v10  ;;  %v43_v23 = vld [vmem:[%s3195_s1 + $0x78] sm:$0xff]  ;;  %v221_v24 = vld [vmem:[%s3196_s2 + $0x10] sm:$0xff]  ;;  %v2320_v27 = vpack.c.bf16 %v38_v20, %v36_v19  ;;  %v223_v28 = vld [vmem:[%s3197_s3] sm:$0xff]  ;;  %215 = vst.msk [vmem:[%s3200_s5 + $0x20] sm:$0xff] %vm210_vm2, %v2556_v4 }
   0x7   :  { %v222_v25 = vld [vmem:[%s3196_s2 + $0x18] sm:$0xff]  ;;  %2328 = vmatpush3.bf16.msra.mxu1 %v2636_v21  ;;  %v2322_v29 = vpack.c.bf16 %v43_v23, %v41_v22  ;;  %v40_v30 = vld [vmem:[%s3195_s1 + $0x60] sm:$0xff]  ;;  %v42_v31 = vld [vmem:[%s3195_s1 + $0x70] sm:$0xff]  ;;  %216 = vst.msk [vmem:[%s3200_s5 + $0x28] sm:$0xff] %vm210_vm2, %v2556_v4 }
   0x8   :  { %v2651_v26 = vpack.c.bf16 %v222_v25, %v221_v24  ;;  %2329 = vmatprep.subr.bf16.mxu1 %v2555_v3  ;;  %v224_v32 = vld [vmem:[%s3197_s3 + $0x8] sm:$0xff]  ;;  %v2324_v34 = vpack.c.bf16 %v42_v31, %v40_v30  ;;  %v225_v35 = vld [vmem:[%s3197_s3 + $0x10] sm:$0xff]  ;;  %v226_v36 = vld [vmem:[%s3197_s3 + $0x18] sm:$0xff]  ;;  %217 = vst.msk [vmem:[%s3200_s5 + $0x30] sm:$0xff] %vm210_vm2, %v2556_v4 }
   0x9   :  { %2317 = vmatpush1.bf16.msra.mxu0 %v2316_v15  ;;  %v2667_v33 = vpack.c.bf16 %v224_v32, %v223_v28  ;;  %v2678_v37 = vpack.c.bf16 %v226_v36, %v225_v35  ;;  %v20_v38 = vld [vmem:[%s3198_s0] sm:$0xff]  ;;  %v21_v39 = vld [vmem:[%s3198_s0 + $0x8] sm:$0xff]  ;;  %v22_v40 = vld [vmem:[%s3198_s0 + $0x10] sm:$0xff]  ;;  %218 = vst.msk [vmem:[%s3200_s5 + $0x38] sm:$0xff] %vm210_vm2, %v2556_v4 }
   0xa   :  { %2319 = vmatprep.subr.bf16.mxu0 %v2318_v18  ;;  %v23_v41 = vld [vmem:[%s3198_s0 + $0x18] sm:$0xff]  ;;  %v24_v42 = vld [vmem:[%s3198_s0 + $0x20] sm:$0xff]  ;;  %v25_v43 = vld [vmem:[%s3198_s0 + $0x28] sm:$0xff] }
   0xb   :  { %2331 = vmatpush3.bf16.msra.mxu1 %v2651_v26  ;;  %v26_v44 = vld [vmem:[%s3198_s0 + $0x30] sm:$0xff]  ;;  %v27_v45 = vld [vmem:[%s3198_s0 + $0x38] sm:$0xff]  ;;  %v44_v49 = vld [vmem:[%s3199_s4] sm:$0x3]  ;;  %s2558_s0 = smov 64   ;;  %s2559_s4 = smov 32  }
   0xc   :  { %2332 = vmatprep.subr.bf16.mxu1 %v2555_v3  ;;  %v49_v53 = vrot.slane %v44_v49, %v48_v48  ;;  %v53_v54 = vrot.slane %v44_v49, %v52_v50 }
   0xd   :  { %2321 = vmatpush1.bf16.msra.mxu0 %v2320_v27 }
   0xe   :  { %2323 = vmatprep.subr.bf16.mxu0 %v2322_v29  ;;  %2143 = vmatmul.mubr.f32.vlgmr.msra.gmra.mrb[0].mxu1 %v2556_v4 }
   0xf   :  { %2334 = vmatpush3.bf16.msra.mxu1 %v2667_v33  ;;  %2153 = vmatprep.mubr.msk.f32.mxu1 %vm2557_vm0, %v2556_v4 }
  0x10   :  { %2335 = vmatprep.subr.bf16.mxu1 %v2555_v3 }
  0x11   :  { %2325 = vmatpush1.bf16.msra.mxu0 %v2324_v34 }
  0x12   :  { %2356 = vmatprep.subr.bf16.mxu0 %v2555_v3 }
  0x13   :  { %2337 = vmatpush3.bf16.msra.mxu1 %v2678_v37 }
  0x14   :  { %1988 = vmatmul.mubr.msk.f32.vlgmr.msra.gmra.mrb[0].mxu0 %vm56_vm1, %v20_v38  ;;  %2338 = vmatprep.subr.bf16.mxu1 %v2555_v3 }
  0x15   :  { %151 = vmatprep.mubr.f32.mxu0 %v2556_v4  ;;  %2358 = vmatpush3.bf16.msra.mxu0 %v2667_v33 }
  0x16   :  { %2154 = vmatmul.mubr.f32.vlgmr.msra.gmra.mrb[2].mxu1 %v2556_v4  ;;  %2359 = vmatprep.subr.bf16.mxu0 %v2555_v3 }
  0x17   :  { %2340 = vmatpush3.bf16.msra.mxu1 %v2636_v21  ;;  %2164 = vmatprep.mubr.msk.f32.mxu1 %vm2557_vm0, %v2556_v4 }
  0x18   :  { %1989 = vmatmul.mubr.msk.f32.gmra.mrb[2].mxu0 %vm56_vm1, %v21_v39  ;;  %2341 = vmatprep.subr.bf16.mxu1 %v2555_v3 }
  0x19   :  { %157 = vmatprep.mubr.f32.mxu0 %v2556_v4  ;;  %2361 = vmatpush3.bf16.msra.mxu0 %v2678_v37 }
  0x1a   :  { %2368 = vmatprep.subr.bf16.mxu0 %v2555_v3 }
  0x1b   :  { %2343 = vmatpush3.bf16.msra.mxu1 %v2651_v26 }
  0x1c   :  { %1990 = vmatmul.mubr.msk.f32.gmra.mrb[4].mxu0 %vm56_vm1, %v22_v40  ;;  %2344 = vmatprep.subr.bf16.mxu1 %v2555_v3 }
  0x1d   :  { %163 = vmatprep.mubr.f32.mxu0 %v2556_v4 }
  0x20   :  { %1991 = vmatmul.mubr.msk.f32.gmra.mrb[6].mxu0 %vm56_vm1, %v23_v41 }
  0x21   :  { %169 = vmatprep.mubr.f32.mxu0 %v2556_v4 }
  0x24   :  { %1992 = vmatmul.mubr.msk.f32.gmra.mrb[8].mxu0 %vm56_vm1, %v24_v42 }
  0x25   :  { %175 = vmatprep.mubr.f32.mxu0 %v2556_v4 }
  0x28   :  { %1993 = vmatmul.mubr.msk.f32.gmra.mrb[10].mxu0 %vm56_vm1, %v25_v43 }
  0x29   :  { %181 = vmatprep.mubr.f32.mxu0 %v2556_v4 }
  0x2c   :  { %1994 = vmatmul.mubr.msk.f32.gmra.mrb[12].mxu0 %vm56_vm1, %v26_v44 }
  0x2d   :  { %187 = vmatprep.mubr.f32.mxu0 %v2556_v4 }
  0x30   :  { %1995 = vmatmul.mubr.msk.f32.gmra.mrb[14].mxu0 %vm56_vm1, %v27_v45 }
  0x31   :  { %2197 = vmatprep.mubr.msk.f32.mxu0 %vm2557_vm0, %v2556_v4 }
  0xe1   :  { %v304_v51 = vpop.f32.mrb[0].mxu1 }
  0xe2   :  { %v2144_v52 = vpop.f32.mrb[1].mxu1 }
  0xe7   :  { %v147_v55 = vpop.f32.mrb[0].mxu0 }
  0xe8   :  { %v148_v56 = vadd.f32 %v147_v55, %v49_v53  ;;  %v149_v57 = vpop.f32.mrb[1].mxu0 }
  0xe9   :  { %v2741_v58 = vadd.f32 %v149_v57, %v53_v54  ;;  %v375_v60 = vpop.f32.mrb[2].mxu1 }
  0xea   :  { %v308_v59 = vadd.f32 %v304_v51, %v148_v56  ;;  %v2155_v62 = vpop.f32.mrb[3].mxu1 }
  0xeb   :  { %v153_v61 = vpop.f32.mrb[2].mxu0 }
  0xec   :  { %2427 = vtanh.f32 %v308_v59  ;;  %v2743_v63 = vadd.f32 %v153_v61, %v49_v53  ;;  %v155_v0 = vpop.f32.mrb[3].mxu0  ;;  %v1996_v34 = vmul.f32 -1.442695, %v308_v59 }
  0xed   :  { %v2745_v1 = vadd.f32 %v155_v0, %v53_v54  ;;  %v1998_v0 = vld [vmem:[%s3200_s5 + $0x38] sm:$0xff] }
  0xef   :  { %v159_v2 = vpop.f32.mrb[4].mxu0 }
  0xf0   :  { %v2747_v5 = vadd.f32 %v159_v2, %v49_v53  ;;  %v161_v6 = vpop.f32.mrb[5].mxu0 }
  0xf1   :  { %v2749_v7 = vadd.f32 %v161_v6, %v53_v54 }
  0xf3   :  { %v165_v8 = vpop.f32.mrb[6].mxu0 }
  0xf4   :  { %v2751_v9 = vadd.f32 %v165_v8, %v49_v53  ;;  %v167_v10 = vpop.f32.mrb[7].mxu0 }
  0xf5   :  { %v2753_v11 = vadd.f32 %v167_v10, %v53_v54 }
  0xf6   :  { %v2428_v12 = vpop.eup %2427 }
  0xf7   :  { %v171_v13 = vpop.f32.mrb[8].mxu0  ;;  %389 = vrot.lane.b32.xlu0 %v2428_v12, %s2558_s0 }
  0xf8   :  { %v2756_v14 = vadd.f32 %v171_v13, %v49_v53  ;;  %v173_v15 = vpop.f32.mrb[9].mxu0 }
  0xf9   :  { %v2758_v16 = vadd.f32 %v173_v15, %v53_v54 }
  0xfb   :  { %v177_v17 = vpop.f32.mrb[10].mxu0 }
  0xfc   :  { %v2760_v18 = vadd.f32 %v177_v17, %v49_v53  ;;  %v179_v19 = vpop.f32.mrb[11].mxu0 }
  0xfd   :  { %v2762_v20 = vadd.f32 %v179_v19, %v53_v54 }
  0xff   :  { %v183_v22 = vpop.f32.mrb[12].mxu0 }
 0x100   :  { %v2764_v23 = vadd.f32 %v183_v22, %v49_v53  ;;  %v185_v24 = vpop.f32.mrb[13].mxu0 }
 0x101   :  { %v2766_v25 = vadd.f32 %v185_v24, %v53_v54 }
 0x103   :  { %v189_v27 = vpop.f32.mrb[14].mxu0 }
 0x104   :  { %v2768_v28 = vadd.f32 %v189_v27, %v49_v53  ;;  %v191_v29 = vpop.f32.mrb[15].mxu0 }
 0x105   :  { %v192_v30 = vadd.f32 %v191_v29, %v53_v54 }
 0x107   :  { %v379_v31 = vadd.f32 %v375_v60, %v192_v30  ;;  %v428_v60 = vld [vmem:[%s3200_s5] sm:$0xff] }
 0x109   :  { %2429 = vtanh.f32 %v379_v31  ;;  %v1997_v38 = vmul.f32 -1.442695, %v379_v31 }
 0x10a   :  { %2431 = vpow2.f32 %v1996_v34 }
 0x113   :  { %v2430_v32 = vpop.eup %2429 }
 0x114   :  { %413 = vrot.lane.b32.xlu0 %v2430_v32, %s2558_s0  ;;  %v2432_v35 = vpop.eup %2431 }
 0x115   :  { %v383_v36 = vadd.f32 1.0, %v2432_v35 }
 0x117   :  { %2433 = vrcp.f32 %v383_v36 }
 0x118   :  { %2435 = vpow2.f32 %v1997_v38 }
 0x121   :  { %v2434_v39 = vpop.eup %2433 }
 0x122   :  { %v2436_v42 = vpop.eup %2435  ;;  %v387_v47 = vmul.f32 0.0, %v2434_v39 }
 0x123   :  { %v407_v43 = vadd.f32 1.0, %v2436_v42 }
 0x125   :  { %2437 = vrcp.f32 %v407_v43 }
 0x12f   :  { %v2438_v44 = vpop.eup %2437 }
 0x130   :  { %v411_v51 = vmul.f32 0.0, %v2438_v44 }
 0x169   :  { %v390_v40 = vpop.permute.xlu0 %389 }
 0x16a   :  { %v392_v41 = vmul.f32 %v2434_v39, %v390_v40 }
 0x16c   :  { %394 = vrot.lane.b32.xlu1 %v392_v41, %s2559_s4 }
 0x186   :  { %v414_v45 = vpop.permute.xlu0 %413 }
 0x187   :  { %v416_v46 = vmul.f32 %v2438_v44, %v414_v45 }
 0x189   :  { %418 = vrot.lane.b32.xlu1 %v416_v46, %s2559_s4 }
 0x1de   :  { %v395_v48 = vpop.permute.xlu1 %394 }
 0x1df   :  { %v2773_v49 = vadd.f32 %v395_v48, %v387_v47 }
 0x1e1   :  { %2439 = vtanh.f32 %v2773_v49 }
 0x1eb   :  { %v2440_v50 = vpop.eup %2439 }
 0x1ec   :  { %400 = vrot.lane.b32.xlu0 %v2440_v50, %s2558_s0 }
 0x1fb   :  { %v419_v52 = vpop.permute.xlu1 %418 }
 0x1fc   :  { %v2777_v53 = vadd.f32 %v419_v52, %v411_v51  ;;  %v2004_v51 = vld [vmem:[%s3200_s5 + $0x8] sm:$0xff] }
 0x1fe   :  { %2441 = vtanh.f32 %v2777_v53 }
 0x208   :  { %v2442_v54 = vpop.eup %2441 }
 0x209   :  { %424 = vrot.lane.b32.xlu1 %v2442_v54, %s2558_s0  ;;  %v2006_v54 = vld [vmem:[%s3200_s5 + $0x30] sm:$0xff] }
 0x25e   :  { %v401_v55 = vpop.permute.xlu0 %400 }
 0x25f   :  { %v403_v56 = vmul.f32 %v2434_v39, %v401_v55 }
 0x261   :  { %430 = vrot.lane.b32.xlu0 %v403_v56, %s2559_s4 }
 0x27b   :  { %v425_v57 = vpop.permute.xlu1 %424 }
 0x27c   :  { %v427_v59 = vmul.f32 %v2438_v44, %v425_v57 }
 0x27e   :  { %438 = vrot.lane.b32.xlu1 %v427_v59, %s2559_s4 }
 0x2d3   :  { %v431_v61 = vpop.permute.xlu0 %430 }
 0x2d4   :  { %v433_v62 = vadd.f32 %v431_v61, %v428_v60  ;;  %2165 = vmatmul.mubr.msk.f32.vlgmr.msra.gmra.mrb[4].mxu1 %vm210_vm2, %v431_v61 }
 0x2d5   :  { %2346 = vmatpush3.bf16.msra.mxu1 %v2667_v33  ;;  %2175 = vmatprep.mubr.msk.f32.mxu1 %vm2557_vm0, %v2556_v4 }
 0x2d6   :  { %434 = vst.msk [vmem:[%s3200_s5] sm:$0xff] %vm210_vm2, %v433_v62  ;;  %2347 = vmatprep.subr.bf16.mxu1 %v2555_v3 }
 0x2d9   :  { %2349 = vmatpush3.bf16.msra.mxu1 %v2678_v37 }
 0x2da   :  { %2350 = vmatprep.subr.bf16.mxu1 %v2555_v3 }
 0x2f0   :  { %v439_v2 = vpop.permute.xlu1 %438 }
 0x2f1   :  { %v441_v6 = vadd.f32 %v1998_v0, %v439_v2  ;;  %2176 = vmatmul.mubr.msk.f32.vlgmr.msra.gmra.mrb[6].mxu1 %vm210_vm2, %v439_v2 }
 0x2f2   :  { %2352 = vmatpush3.bf16.msra.mxu1 %v2636_v21  ;;  %2186 = vmatprep.mubr.msk.f32.mxu1 %vm2557_vm0, %v2556_v4 }
 0x2f3   :  { %1999 = vst.msk [vmem:[%s3200_s5 + $0x38] sm:$0xff] %vm210_vm2, %v441_v6  ;;  %2353 = vmatprep.subr.bf16.mxu1 %v2555_v3 }
 0x2f6   :  { %2355 = vmatpush3.bf16.msra.mxu1 %v2651_v26 }
 0x2f7   :  { %2362 = vmatprep.subr.bf16.mxu1 %v2555_v3 }
 0x3a7   :  { %v519_v8 = vpop.f32.mrb[4].mxu1 }
 0x3a8   :  { %v523_v10 = vadd.f32 %v519_v8, %v2743_v63  ;;  %v2166_v12 = vpop.f32.mrb[5].mxu1 }
 0x3aa   :  { %2443 = vtanh.f32 %v523_v10  ;;  %v2002_v24 = vmul.f32 -1.442695, %v523_v10 }
 0x3b4   :  { %v2444_v13 = vpop.eup %2443 }
 0x3b5   :  { %606 = vrot.lane.b32.xlu0 %v2444_v13, %s2558_s0 }
 0x3c4   :  { %v592_v15 = vpop.f32.mrb[6].mxu1 }
 0x3c5   :  { %v596_v17 = vadd.f32 %v592_v15, %v2766_v25  ;;  %v2177_v19 = vpop.f32.mrb[7].mxu1 }
 0x3c7   :  { %2445 = vtanh.f32 %v596_v17  ;;  %v2003_v30 = vmul.f32 -1.442695, %v596_v17 }
 0x3c8   :  { %2447 = vpow2.f32 %v2002_v24 }
 0x3d1   :  { %v2446_v22 = vpop.eup %2445 }
 0x3d2   :  { %630 = vrot.lane.b32.xlu1 %v2446_v22, %s2558_s0  ;;  %v2448_v27 = vpop.eup %2447 }
 0x3d3   :  { %v600_v29 = vadd.f32 1.0, %v2448_v27 }
 0x3d5   :  { %2449 = vrcp.f32 %v600_v29 }
 0x3d6   :  { %2451 = vpow2.f32 %v2003_v30 }
 0x3df   :  { %v2450_v63 = vpop.eup %2449 }
 0x3e0   :  { %v2452_v34 = vpop.eup %2451  ;;  %v604_v39 = vmul.f32 %v2450_v63, %v2773_v49 }
 0x3e1   :  { %v624_v35 = vadd.f32 1.0, %v2452_v34 }
 0x3e3   :  { %2453 = vrcp.f32 %v624_v35 }
 0x3ed   :  { %v2454_v25 = vpop.eup %2453 }
 0x3ee   :  { %v628_v43 = vmul.f32 %v2454_v25, %v2777_v53 }
 0x427   :  { %v607_v31 = vpop.permute.xlu0 %606 }
 0x428   :  { %v609_v32 = vmul.f32 %v2450_v63, %v607_v31 }
 0x42a   :  { %611 = vrot.lane.b32.xlu0 %v609_v32, %s2559_s4 }
 0x444   :  { %v631_v36 = vpop.permute.xlu1 %630 }
 0x445   :  { %v633_v38 = vmul.f32 %v2454_v25, %v631_v36 }
 0x447   :  { %635 = vrot.lane.b32.xlu1 %v633_v38, %s2559_s4 }
 0x49c   :  { %v612_v40 = vpop.permute.xlu0 %611 }
 0x49d   :  { %v2858_v41 = vadd.f32 %v612_v40, %v604_v39 }
 0x49f   :  { %2455 = vtanh.f32 %v2858_v41 }
 0x4a9   :  { %v2456_v42 = vpop.eup %2455 }
 0x4aa   :  { %617 = vrot.lane.b32.xlu0 %v2456_v42, %s2558_s0 }
 0x4b9   :  { %v636_v44 = vpop.permute.xlu1 %635 }
 0x4ba   :  { %v2863_v45 = vadd.f32 %v636_v44, %v628_v43  ;;  %v2014_v44 = vld [vmem:[%s3200_s5 + $0x28] sm:$0xff] }
 0x4bc   :  { %2457 = vtanh.f32 %v2863_v45 }
 0x4c6   :  { %v2458_v46 = vpop.eup %2457 }
 0x4c7   :  { %641 = vrot.lane.b32.xlu1 %v2458_v46, %s2558_s0 }
 0x51c   :  { %v618_v47 = vpop.permute.xlu0 %617 }
 0x51d   :  { %v620_v48 = vmul.f32 %v2450_v63, %v618_v47 }
 0x51f   :  { %648 = vrot.lane.b32.xlu0 %v620_v48, %s2559_s4 }
 0x539   :  { %v642_v49 = vpop.permute.xlu1 %641 }
 0x53a   :  { %v644_v50 = vmul.f32 %v2454_v25, %v642_v49 }
 0x53c   :  { %656 = vrot.lane.b32.xlu1 %v644_v50, %s2559_s4 }
 0x591   :  { %v649_v52 = vpop.permute.xlu0 %648 }
 0x592   :  { %v651_v53 = vadd.f32 %v2004_v51, %v649_v52  ;;  %2187 = vmatmul.mubr.msk.f32.vlgmr.msra.gmra.mrb[8].mxu1 %vm210_vm2, %v649_v52 }
 0x593   :  { %2364 = vmatpush3.bf16.msra.mxu1 %v2636_v21  ;;  %2208 = vmatprep.mubr.msk.f32.mxu1 %vm2557_vm0, %v2556_v4 }
 0x594   :  { %2005 = vst.msk [vmem:[%s3200_s5 + $0x8] sm:$0xff] %vm210_vm2, %v651_v53  ;;  %2365 = vmatprep.subr.bf16.mxu1 %v2555_v3 }
 0x597   :  { %2367 = vmatpush3.bf16.msra.mxu1 %v2651_v26 }
 0x598   :  { %2374 = vmatprep.subr.bf16.mxu1 %v2555_v3 }
 0x5ae   :  { %v657_v55 = vpop.permute.xlu1 %656 }
 0x5af   :  { %v659_v56 = vadd.f32 %v2006_v54, %v657_v55  ;;  %2198 = vmatmul.mubr.msk.f32.vlgmr.msra.gmra.mrb[16].mxu0 %vm210_vm2, %v657_v55 }
 0x5b0   :  { %2370 = vmatpush3.bf16.msra.mxu0 %v2667_v33  ;;  %2219 = vmatprep.mubr.msk.f32.mxu0 %vm2557_vm0, %v2556_v4 }
 0x5b1   :  { %2007 = vst.msk [vmem:[%s3200_s5 + $0x30] sm:$0xff] %vm210_vm2, %v659_v56  ;;  %2371 = vmatprep.subr.bf16.mxu0 %v2555_v3 }
 0x5b4   :  { %2373 = vmatpush3.bf16.msra.mxu0 %v2678_v37 }
 0x5b5   :  { %2380 = vmatprep.subr.bf16.mxu0 %v2555_v3 }
 0x665   :  { %v737_v57 = vpop.f32.mrb[8].mxu1 }
 0x666   :  { %v741_v59 = vadd.f32 %v737_v57, %v2747_v5  ;;  %v2188_v60 = vpop.f32.mrb[9].mxu1 }
 0x668   :  { %2459 = vtanh.f32 %v741_v59  ;;  %v2010_v8 = vmul.f32 -1.442695, %v741_v59 }
 0x672   :  { %v2460_v61 = vpop.eup %2459 }
 0x673   :  { %824 = vrot.lane.b32.xlu0 %v2460_v61, %s2558_s0 }
 0x682   :  { %v810_v62 = vpop.f32.mrb[16].mxu0 }
 0x683   :  { %v814_v0 = vadd.f32 %v810_v62, %v2762_v20  ;;  %v2199_v2 = vpop.f32.mrb[17].mxu0 }
 0x685   :  { %2461 = vtanh.f32 %v814_v0  ;;  %v2011_v13 = vmul.f32 -1.442695, %v814_v0 }
 0x686   :  { %2463 = vpow2.f32 %v2010_v8 }
 0x68f   :  { %v2462_v6 = vpop.eup %2461 }
 0x690   :  { %848 = vrot.lane.b32.xlu1 %v2462_v6, %s2558_s0  ;;  %v2464_v10 = vpop.eup %2463 }
 0x691   :  { %v818_v12 = vadd.f32 1.0, %v2464_v10 }
 0x693   :  { %2465 = vrcp.f32 %v818_v12 }
 0x694   :  { %2467 = vpow2.f32 %v2011_v13 }
 0x69d   :  { %v2466_v5 = vpop.eup %2465 }
 0x69e   :  { %v2468_v19 = vpop.eup %2467  ;;  %v822_v29 = vmul.f32 %v2466_v5, %v2858_v41  ;;  %v2012_v41 = vld [vmem:[%s3200_s5 + $0x10] sm:$0xff] }
 0x69f   :  { %v842_v22 = vadd.f32 1.0, %v2468_v19 }
 0x6a1   :  { %2469 = vrcp.f32 %v842_v22 }
 0x6ab   :  { %v2470_v20 = vpop.eup %2469 }
 0x6ac   :  { %v846_v32 = vmul.f32 %v2470_v20, %v2863_v45 }
 0x6e5   :  { %v825_v15 = vpop.permute.xlu0 %824 }
 0x6e6   :  { %v827_v17 = vmul.f32 %v2466_v5, %v825_v15 }
 0x6e8   :  { %829 = vrot.lane.b32.xlu0 %v827_v17, %s2559_s4 }
 0x702   :  { %v849_v24 = vpop.permute.xlu1 %848 }
 0x703   :  { %v851_v27 = vmul.f32 %v2470_v20, %v849_v24 }
 0x705   :  { %853 = vrot.lane.b32.xlu1 %v851_v27, %s2559_s4 }
 0x75a   :  { %v830_v30 = vpop.permute.xlu0 %829 }
 0x75b   :  { %v2904_v63 = vadd.f32 %v830_v30, %v822_v29  ;;  %v2020_v29 = vld [vmem:[%s3200_s5 + $0x18] sm:$0xff] }
 0x75d   :  { %2471 = vtanh.f32 %v2904_v63 }
 0x767   :  { %v2472_v31 = vpop.eup %2471 }
 0x768   :  { %835 = vrot.lane.b32.xlu0 %v2472_v31, %s2558_s0  ;;  %v2022_v31 = vld [vmem:[%s3200_s5 + $0x20] sm:$0xff] }
 0x777   :  { %v854_v34 = vpop.permute.xlu1 %853 }
 0x778   :  { %v2909_v35 = vadd.f32 %v854_v34, %v846_v32 }
 0x77a   :  { %2473 = vtanh.f32 %v2909_v35 }
 0x784   :  { %v2474_v25 = vpop.eup %2473 }
 0x785   :  { %859 = vrot.lane.b32.xlu1 %v2474_v25, %s2558_s0 }
 0x7da   :  { %v836_v36 = vpop.permute.xlu0 %835 }
 0x7db   :  { %v838_v38 = vmul.f32 %v2466_v5, %v836_v36 }
 0x7dd   :  { %866 = vrot.lane.b32.xlu0 %v838_v38, %s2559_s4 }
 0x7f7   :  { %v860_v39 = vpop.permute.xlu1 %859 }
 0x7f8   :  { %v862_v40 = vmul.f32 %v2470_v20, %v860_v39 }
 0x7fa   :  { %874 = vrot.lane.b32.xlu1 %v862_v40, %s2559_s4 }
 0x84f   :  { %v867_v42 = vpop.permute.xlu0 %866 }
 0x850   :  { %v869_v43 = vadd.f32 %v2012_v41, %v867_v42  ;;  %2209 = vmatmul.mubr.msk.f32.vlgmr.msra.gmra.mrb[10].mxu1 %vm210_vm2, %v867_v42 }
 0x851   :  { %2376 = vmatpush3.bf16.msra.mxu1 %v2636_v21  ;;  %2230 = vmatprep.mubr.msk.f32.mxu1 %vm2557_vm0, %v2556_v4 }
 0x852   :  { %2013 = vst.msk [vmem:[%s3200_s5 + $0x10] sm:$0xff] %vm210_vm2, %v869_v43  ;;  %2377 = vmatprep.subr.bf16.mxu1 %v2555_v3 }
 0x855   :  { %2379 = vmatpush3.bf16.msra.mxu1 %v2651_v26 }
 0x856   :  { %2386 = vmatprep.subr.bf16.mxu1 %v2555_v3 }
 0x86c   :  { %v875_v45 = vpop.permute.xlu1 %874 }
 0x86d   :  { %v877_v46 = vadd.f32 %v2014_v44, %v875_v45  ;;  %2220 = vmatmul.mubr.msk.f32.vlgmr.msra.gmra.mrb[18].mxu0 %vm210_vm2, %v875_v45 }
 0x86e   :  { %2382 = vmatpush3.bf16.msra.mxu0 %v2667_v33  ;;  %2241 = vmatprep.mubr.msk.f32.mxu0 %vm2557_vm0, %v2556_v4 }
 0x86f   :  { %2015 = vst.msk [vmem:[%s3200_s5 + $0x28] sm:$0xff] %vm210_vm2, %v877_v46  ;;  %2383 = vmatprep.subr.bf16.mxu0 %v2555_v3 }
 0x872   :  { %2385 = vmatpush3.bf16.msra.mxu0 %v2678_v37 }
 0x873   :  { %2392 = vmatprep.subr.bf16.mxu0 %v2555_v3 }
 0x923   :  { %v955_v47 = vpop.f32.mrb[10].mxu1 }
 0x924   :  { %v959_v48 = vadd.f32 %v955_v47, %v2751_v9  ;;  %v2210_v49 = vpop.f32.mrb[11].mxu1 }
 0x926   :  { %2475 = vtanh.f32 %v959_v48  ;;  %v2018_v55 = vmul.f32 -1.442695, %v959_v48 }
 0x930   :  { %v2476_v50 = vpop.eup %2475 }
 0x931   :  { %1042 = vrot.lane.b32.xlu0 %v2476_v50, %s2558_s0 }
 0x940   :  { %v1028_v51 = vpop.f32.mrb[18].mxu0 }
 0x941   :  { %v1032_v52 = vadd.f32 %v1028_v51, %v2758_v16  ;;  %v2221_v53 = vpop.f32.mrb[19].mxu0 }
 0x943   :  { %2477 = vtanh.f32 %v1032_v52  ;;  %v2019_v59 = vmul.f32 -1.442695, %v1032_v52 }
 0x944   :  { %2479 = vpow2.f32 %v2018_v55 }
 0x94d   :  { %v2478_v54 = vpop.eup %2477 }
 0x94e   :  { %1066 = vrot.lane.b32.xlu1 %v2478_v54, %s2558_s0  ;;  %v2480_v56 = vpop.eup %2479 }
 0x94f   :  { %v1036_v57 = vadd.f32 1.0, %v2480_v56 }
 0x951   :  { %2481 = vrcp.f32 %v1036_v57 }
 0x952   :  { %2483 = vpow2.f32 %v2019_v59 }
 0x95b   :  { %v2482_v9 = vpop.eup %2481 }
 0x95c   :  { %v2484_v62 = vpop.eup %2483  ;;  %v1040_v8 = vmul.f32 %v2482_v9, %v2904_v63 }
 0x95d   :  { %v1060_v0 = vadd.f32 1.0, %v2484_v62 }
 0x95f   :  { %2485 = vrcp.f32 %v1060_v0 }
 0x969   :  { %v2486_v16 = vpop.eup %2485 }
 0x96a   :  { %v1064_v5 = vmul.f32 %v2486_v16, %v2909_v35 }
 0x9a3   :  { %v1043_v60 = vpop.permute.xlu0 %1042 }
 0x9a4   :  { %v1045_v61 = vmul.f32 %v2482_v9, %v1043_v60 }
 0x9a6   :  { %1047 = vrot.lane.b32.xlu0 %v1045_v61, %s2559_s4 }
 0x9c0   :  { %v1067_v2 = vpop.permute.xlu1 %1066 }
 0x9c1   :  { %v1069_v6 = vmul.f32 %v2486_v16, %v1067_v2 }
 0x9c3   :  { %1071 = vrot.lane.b32.xlu1 %v1069_v6, %s2559_s4 }
 0xa18   :  { %v1048_v10 = vpop.permute.xlu0 %1047 }
 0xa19   :  { %v2950_v12 = vadd.f32 %v1048_v10, %v1040_v8 }
 0xa1b   :  { %2487 = vtanh.f32 %v2950_v12 }
 0xa25   :  { %v2488_v13 = vpop.eup %2487 }
 0xa26   :  { %1053 = vrot.lane.b32.xlu0 %v2488_v13, %s2558_s0 }
 0xa35   :  { %v1072_v15 = vpop.permute.xlu1 %1071 }
 0xa36   :  { %v2955_v17 = vadd.f32 %v1072_v15, %v1064_v5 }
 0xa38   :  { %2489 = vtanh.f32 %v2955_v17 }
 0xa42   :  { %v2490_v19 = vpop.eup %2489 }
 0xa43   :  { %1077 = vrot.lane.b32.xlu1 %v2490_v19, %s2558_s0 }
 0xa98   :  { %v1054_v22 = vpop.permute.xlu0 %1053 }
 0xa99   :  { %v1056_v20 = vmul.f32 %v2482_v9, %v1054_v22 }
 0xa9b   :  { %1084 = vrot.lane.b32.xlu0 %v1056_v20, %s2559_s4 }
 0xab5   :  { %v1078_v24 = vpop.permute.xlu1 %1077 }
 0xab6   :  { %v1080_v27 = vmul.f32 %v2486_v16, %v1078_v24 }
 0xab8   :  { %1092 = vrot.lane.b32.xlu1 %v1080_v27, %s2559_s4 }
 0xb0d   :  { %v1085_v30 = vpop.permute.xlu0 %1084 }
 0xb0e   :  { %v1087_v63 = vadd.f32 %v2020_v29, %v1085_v30  ;;  %2231 = vmatmul.mubr.msk.f32.vlgmr.msra.gmra.mrb[12].mxu1 %vm210_vm2, %v1085_v30 }
 0xb0f   :  { %2388 = vmatpush3.bf16.msra.mxu1 %v2636_v21  ;;  %2252 = vmatprep.mubr.msk.f32.mxu1 %vm2557_vm0, %v2556_v4 }
 0xb10   :  { %2021 = vst.msk [vmem:[%s3200_s5 + $0x18] sm:$0xff] %vm210_vm2, %v1087_v63  ;;  %2389 = vmatprep.subr.bf16.mxu1 %v2555_v3 }
 0xb13   :  { %2391 = vmatpush3.bf16.msra.mxu1 %v2651_v26 }
 0xb14   :  { %2398 = vmatprep.subr.bf16.mxu1 %v2555_v3 }
 0xb17   :  { %v2030_v15 = vld [vmem:[%s3200_s5 + $0x18] sm:$0xff] }
 0xb2a   :  { %v1093_v32 = vpop.permute.xlu1 %1092 }
 0xb2b   :  { %v1095_v34 = vadd.f32 %v2022_v31, %v1093_v32  ;;  %2242 = vmatmul.mubr.msk.f32.vlgmr.msra.gmra.mrb[20].mxu0 %vm210_vm2, %v1093_v32 }
 0xb2c   :  { %2394 = vmatpush3.bf16.msra.mxu0 %v2667_v33  ;;  %2263 = vmatprep.mubr.msk.f32.mxu0 %vm2557_vm0, %v2556_v4 }
 0xb2d   :  { %2023 = vst.msk [vmem:[%s3200_s5 + $0x20] sm:$0xff] %vm210_vm2, %v1095_v34  ;;  %2395 = vmatprep.subr.bf16.mxu0 %v2555_v3 }
 0xb30   :  { %2397 = vmatpush3.bf16.msra.mxu0 %v2678_v37 }
 0xb31   :  { %2404 = vmatprep.subr.bf16.mxu0 %v2555_v3 }
 0xb34   :  { %v2028_v2 = vld [vmem:[%s3200_s5 + $0x20] sm:$0xff] }
 0xbe1   :  { %v1167_v35 = vpop.f32.mrb[12].mxu1 }
 0xbe2   :  { %v1171_v25 = vadd.f32 %v1167_v35, %v2756_v14  ;;  %v2232_v36 = vpop.f32.mrb[13].mxu1 }
 0xbe4   :  { %2491 = vtanh.f32 %v1171_v25  ;;  %v2026_v43 = vmul.f32 -1.442695, %v1171_v25 }
 0xbee   :  { %v2492_v38 = vpop.eup %2491 }
 0xbef   :  { %1254 = vrot.lane.b32.xlu0 %v2492_v38, %s2558_s0 }
 0xbfe   :  { %v1240_v39 = vpop.f32.mrb[20].mxu0 }
 0xbff   :  { %v1244_v40 = vadd.f32 %v1240_v39, %v2753_v11  ;;  %v2243_v41 = vpop.f32.mrb[21].mxu0 }
 0xc01   :  { %2493 = vtanh.f32 %v1244_v40  ;;  %v2027_v46 = vmul.f32 -1.442695, %v1244_v40 }
 0xc02   :  { %2495 = vpow2.f32 %v2026_v43 }
 0xc0b   :  { %v2494_v42 = vpop.eup %2493 }
 0xc0c   :  { %1278 = vrot.lane.b32.xlu1 %v2494_v42, %s2558_s0  ;;  %v2496_v44 = vpop.eup %2495 }
 0xc0d   :  { %v1248_v45 = vadd.f32 1.0, %v2496_v44 }
 0xc0f   :  { %2497 = vrcp.f32 %v1248_v45 }
 0xc10   :  { %2499 = vpow2.f32 %v2027_v46 }
 0xc19   :  { %v2498_v14 = vpop.eup %2497 }
 0xc1a   :  { %v2500_v49 = vpop.eup %2499  ;;  %v1252_v53 = vmul.f32 %v2498_v14, %v2950_v12 }
 0xc1b   :  { %v1272_v50 = vadd.f32 1.0, %v2500_v49 }
 0xc1d   :  { %2501 = vrcp.f32 %v1272_v50 }
 0xc27   :  { %v2502_v11 = vpop.eup %2501 }
 0xc28   :  { %v1276_v57 = vmul.f32 %v2502_v11, %v2955_v17 }
 0xc61   :  { %v1255_v47 = vpop.permute.xlu0 %1254 }
 0xc62   :  { %v1257_v48 = vmul.f32 %v2498_v14, %v1255_v47 }
 0xc64   :  { %1259 = vrot.lane.b32.xlu0 %v1257_v48, %s2559_s4 }
 0xc7e   :  { %v1279_v51 = vpop.permute.xlu1 %1278 }
 0xc7f   :  { %v1281_v52 = vmul.f32 %v2502_v11, %v1279_v51 }
 0xc81   :  { %1283 = vrot.lane.b32.xlu1 %v1281_v52, %s2559_s4 }
 0xcd6   :  { %v1260_v54 = vpop.permute.xlu0 %1259 }
 0xcd7   :  { %v2996_v55 = vadd.f32 %v1260_v54, %v1252_v53 }
 0xcd9   :  { %2503 = vtanh.f32 %v2996_v55 }
 0xce3   :  { %v2504_v56 = vpop.eup %2503 }
 0xce4   :  { %1265 = vrot.lane.b32.xlu0 %v2504_v56, %s2558_s0 }
 0xcf3   :  { %v1284_v59 = vpop.permute.xlu1 %1283 }
 0xcf4   :  { %v3001_v9 = vadd.f32 %v1284_v59, %v1276_v57 }
 0xcf6   :  { %2505 = vtanh.f32 %v3001_v9 }
 0xd00   :  { %v2506_v60 = vpop.eup %2505 }
 0xd01   :  { %1289 = vrot.lane.b32.xlu1 %v2506_v60, %s2558_s0 }
 0xd56   :  { %v1266_v61 = vpop.permute.xlu0 %1265 }
 0xd57   :  { %v1268_v62 = vmul.f32 %v2498_v14, %v1266_v61  ;;  %v2038_v61 = vld [vmem:[%s3200_s5 + $0x10] sm:$0xff] }
 0xd59   :  { %1295 = vrot.lane.b32.xlu0 %v1268_v62, %s2559_s4 }
 0xd73   :  { %v1290_v0 = vpop.permute.xlu1 %1289 }
 0xd74   :  { %v1292_v16 = vmul.f32 %v2502_v11, %v1290_v0 }
 0xd76   :  { %1302 = vrot.lane.b32.xlu1 %v1292_v16, %s2559_s4 }
 0xdcb   :  { %v1296_v6 = vpop.permute.xlu0 %1295 }
 0xdcc   :  { %v1298_v8 = vadd.f32 %v2028_v2, %v1296_v6  ;;  %2253 = vmatmul.mubr.msk.f32.vlgmr.msra.gmra.mrb[14].mxu1 %vm210_vm2, %v1296_v6 }
 0xdcd   :  { %2400 = vmatpush3.bf16.msra.mxu1 %v2636_v21  ;;  %2274 = vmatprep.mubr.msk.f32.mxu1 %vm2557_vm0, %v2556_v4 }
 0xdce   :  { %2029 = vst.msk [vmem:[%s3200_s5 + $0x20] sm:$0xff] %vm210_vm2, %v1298_v8  ;;  %2401 = vmatprep.subr.bf16.mxu1 %v2555_v3 }
 0xdd1   :  { %2403 = vmatpush3.bf16.msra.mxu1 %v2651_v26 }
 0xdd2   :  { %2410 = vmatprep.subr.bf16.mxu1 %v2555_v3 }
 0xdd5   :  { %v1941_v10 = vld [vmem:[%s3200_s5 + $0x20] sm:$0xff] }
 0xdd6   :  { %vm1949_vm3 = vcmp.gt.f32.partialorder %v1941_v10, 0.0  ;;  %v1957_v12 = vmul.f32 0.01, %v1941_v10 }
 0xdd8   :  { %v1965_v13 = vsel %vm1949_vm3, %v1941_v10, %v1957_v12 }
 0xdd9   :  { %1973 = vst.msk [vmem:[%s3200_s5 + $0x20] sm:$0xff] %vm210_vm2, %v1965_v13 }
 0xde8   :  { %v1303_v5 = vpop.permute.xlu1 %1302 }
 0xde9   :  { %v1305_v17 = vadd.f32 %v2030_v15, %v1303_v5  ;;  %2264 = vmatmul.mubr.msk.f32.vlgmr.msra.gmra.mrb[22].mxu0 %vm210_vm2, %v1303_v5 }
 0xdea   :  { %2406 = vmatpush3.bf16.msra.mxu0 %v2667_v33  ;;  %2285 = vmatprep.mubr.msk.f32.mxu0 %vm2557_vm0, %v2556_v4 }
 0xdeb   :  { %2031 = vst.msk [vmem:[%s3200_s5 + $0x18] sm:$0xff] %vm210_vm2, %v1305_v17  ;;  %2407 = vmatprep.subr.bf16.mxu0 %v2555_v3 }
 0xdee   :  { %2409 = vmatpush3.bf16.msra.mxu0 %v2678_v37 }
 0xdef   :  { %2416 = vmatprep.subr.bf16.mxu0 %v2555_v3 }
 0xdf2   :  { %v1940_v19 = vld [vmem:[%s3200_s5 + $0x18] sm:$0xff] }
 0xdf3   :  { %vm1948_vm4 = vcmp.gt.f32.partialorder %v1940_v19, 0.0  ;;  %v1956_v22 = vmul.f32 0.01, %v1940_v19 }
 0xdf5   :  { %v1964_v20 = vsel %vm1948_vm4, %v1940_v19, %v1956_v22 }
 0xdf6   :  { %1972 = vst.msk [vmem:[%s3200_s5 + $0x18] sm:$0xff] %vm210_vm2, %v1964_v20 }
 0xe9f   :  { %v1377_v24 = vpop.f32.mrb[14].mxu1 }
 0xea0   :  { %v1381_v27 = vadd.f32 %v1377_v24, %v2760_v18  ;;  %v2254_v29 = vpop.f32.mrb[15].mxu1 }
 0xea2   :  { %2507 = vtanh.f32 %v1381_v27  ;;  %v2034_v35 = vmul.f32 -1.442695, %v1381_v27 }
 0xeac   :  { %v2508_v30 = vpop.eup %2507 }
 0xead   :  { %1464 = vrot.lane.b32.xlu0 %v2508_v30, %s2558_s0 }
 0xebc   :  { %v1450_v63 = vpop.f32.mrb[22].mxu0 }
 0xebd   :  { %v1454_v31 = vadd.f32 %v1450_v63, %v2749_v7  ;;  %v2265_v32 = vpop.f32.mrb[23].mxu0 }
 0xebf   :  { %2509 = vtanh.f32 %v1454_v31  ;;  %v2035_v38 = vmul.f32 -1.442695, %v1454_v31 }
 0xec0   :  { %2511 = vpow2.f32 %v2034_v35 }
 0xec9   :  { %v2510_v34 = vpop.eup %2509 }
 0xeca   :  { %1488 = vrot.lane.b32.xlu1 %v2510_v34, %s2558_s0  ;;  %v2512_v25 = vpop.eup %2511 }
 0xecb   :  { %v1458_v36 = vadd.f32 1.0, %v2512_v25 }
 0xecd   :  { %2513 = vrcp.f32 %v1458_v36 }
 0xece   :  { %2515 = vpow2.f32 %v2035_v38 }
 0xed7   :  { %v2514_v18 = vpop.eup %2513 }
 0xed8   :  { %v2516_v41 = vpop.eup %2515  ;;  %v1462_v45 = vmul.f32 %v2514_v18, %v2996_v55  ;;  %v2036_v55 = vld [vmem:[%s3200_s5 + $0x28] sm:$0xff] }
 0xed9   :  { %v1482_v42 = vadd.f32 1.0, %v2516_v41 }
 0xedb   :  { %2517 = vrcp.f32 %v1482_v42 }
 0xee5   :  { %v2518_v7 = vpop.eup %2517 }
 0xee6   :  { %v1486_v48 = vmul.f32 %v2518_v7, %v3001_v9 }
 0xf1f   :  { %v1465_v39 = vpop.permute.xlu0 %1464 }
 0xf20   :  { %v1467_v40 = vmul.f32 %v2514_v18, %v1465_v39 }
 0xf22   :  { %1469 = vrot.lane.b32.xlu0 %v1467_v40, %s2559_s4  ;;  %v2044_v40 = vld [vmem:[%s3200_s5 + $0x30] sm:$0xff] }
 0xf3c   :  { %v1489_v43 = vpop.permute.xlu1 %1488 }
 0xf3d   :  { %v1491_v44 = vmul.f32 %v2518_v7, %v1489_v43 }
 0xf3f   :  { %1493 = vrot.lane.b32.xlu1 %v1491_v44, %s2559_s4 }
 0xf94   :  { %v1470_v46 = vpop.permute.xlu0 %1469 }
 0xf95   :  { %v3056_v14 = vadd.f32 %v1470_v46, %v1462_v45  ;;  %v2046_v45 = vld [vmem:[%s3200_s5 + $0x8] sm:$0xff] }
 0xf97   :  { %2519 = vtanh.f32 %v3056_v14 }
 0xfa1   :  { %v2520_v47 = vpop.eup %2519 }
 0xfa2   :  { %1475 = vrot.lane.b32.xlu0 %v2520_v47, %s2558_s0 }
 0xfb1   :  { %v1494_v49 = vpop.permute.xlu1 %1493 }
 0xfb2   :  { %v3061_v50 = vadd.f32 %v1494_v49, %v1486_v48 }
 0xfb4   :  { %2521 = vtanh.f32 %v3061_v50 }
 0xfbe   :  { %v2522_v11 = vpop.eup %2521 }
 0xfbf   :  { %1499 = vrot.lane.b32.xlu1 %v2522_v11, %s2558_s0 }
0x1014   :  { %v1476_v51 = vpop.permute.xlu0 %1475 }
0x1015   :  { %v1478_v52 = vmul.f32 %v2514_v18, %v1476_v51 }
0x1017   :  { %1505 = vrot.lane.b32.xlu0 %v1478_v52, %s2559_s4 }
0x1031   :  { %v1500_v53 = vpop.permute.xlu1 %1499 }
0x1032   :  { %v1502_v54 = vmul.f32 %v2518_v7, %v1500_v53 }
0x1034   :  { %1512 = vrot.lane.b32.xlu1 %v1502_v54, %s2559_s4 }
0x1089   :  { %v1506_v56 = vpop.permute.xlu0 %1505 }
0x108a   :  { %v1508_v57 = vadd.f32 %v2036_v55, %v1506_v56  ;;  %2275 = vmatmul.mubr.msk.f32.vlgmr.msra.gmra.mrb[16].mxu1 %vm210_vm2, %v1506_v56 }
0x108b   :  { %2412 = vmatpush3.bf16.msra.mxu1 %v2636_v21  ;;  %2296 = vmatprep.mubr.msk.f32.mxu1 %vm2557_vm0, %v2556_v4 }
0x108c   :  { %2037 = vst.msk [vmem:[%s3200_s5 + $0x28] sm:$0xff] %vm210_vm2, %v1508_v57  ;;  %2413 = vmatprep.subr.bf16.mxu1 %v2555_v3 }
0x108f   :  { %2415 = vmatpush3.bf16.msra.mxu1 %v2651_v26 }
0x1093   :  { %v1942_v59 = vld [vmem:[%s3200_s5 + $0x28] sm:$0xff] }
0x1094   :  { %vm1950_vm5 = vcmp.gt.f32.partialorder %v1942_v59, 0.0  ;;  %v1958_v9 = vmul.f32 0.01, %v1942_v59 }
0x1096   :  { %v1966_v60 = vsel %vm1950_vm5, %v1942_v59, %v1958_v9 }
0x1097   :  { %1974 = vst.msk [vmem:[%s3200_s5 + $0x28] sm:$0xff] %vm210_vm2, %v1966_v60 }
0x10a6   :  { %v1513_v21 = vpop.permute.xlu1 %1512 }
0x10a7   :  { %v1515_v62 = vadd.f32 %v2038_v61, %v1513_v21  ;;  %2286 = vmatmul.mubr.msk.f32.vlgmr.msra.gmra.mrb[24].mxu0 %vm210_vm2, %v1513_v21 }
0x10a8   :  { %2418 = vmatpush3.bf16.msra.mxu0 %v2667_v33  ;;  %2307 = vmatprep.mubr.msk.f32.mxu0 %vm2557_vm0, %v2556_v4 }
0x10a9   :  { %2039 = vst.msk [vmem:[%s3200_s5 + $0x10] sm:$0xff] %vm210_vm2, %v1515_v62  ;;  %2419 = vmatprep.subr.bf16.mxu0 %v2555_v3 }
0x10ac   :  { %2421 = vmatpush3.bf16.msra.mxu0 %v2678_v37 }
0x10b0   :  { %v1939_v26 = vld [vmem:[%s3200_s5 + $0x10] sm:$0xff] }
0x10b1   :  { %vm1947_vm6 = vcmp.gt.f32.partialorder %v1939_v26, 0.0  ;;  %v1955_v0 = vmul.f32 0.01, %v1939_v26 }
0x10b3   :  { %v1963_v16 = vsel %vm1947_vm6, %v1939_v26, %v1955_v0 }
0x10b4   :  { %1971 = vst.msk [vmem:[%s3200_s5 + $0x10] sm:$0xff] %vm210_vm2, %v1963_v16 }
0x115d   :  { %v1587_v4 = vpop.f32.mrb[16].mxu1 }
0x115e   :  { %v1591_v33 = vadd.f32 %v1587_v4, %v2764_v23  ;;  %v2276_v2 = vpop.f32.mrb[17].mxu1 }
0x1160   :  { %2523 = vtanh.f32 %v1591_v33  ;;  %v2042_v12 = vmul.f32 -1.442695, %v1591_v33 }
0x116a   :  { %v2524_v3 = vpop.eup %2523 }
0x116b   :  { %1674 = vrot.lane.b32.xlu0 %v2524_v3, %s2558_s0 }
0x117a   :  { %v1660_v37 = vpop.f32.mrb[24].mxu0 }
0x117b   :  { %v1664_v6 = vadd.f32 %v1660_v37, %v2745_v1  ;;  %v2287_v8 = vpop.f32.mrb[25].mxu0 }
0x117d   :  { %2525 = vtanh.f32 %v1664_v6  ;;  %v2043_v15 = vmul.f32 -1.442695, %v1664_v6 }
0x117e   :  { %2527 = vpow2.f32 %v2042_v12 }
0x1187   :  { %v2526_v10 = vpop.eup %2525 }
0x1188   :  { %1698 = vrot.lane.b32.xlu1 %v2526_v10, %s2558_s0  ;;  %v2528_v13 = vpop.eup %2527 }
0x1189   :  { %v1668_v5 = vadd.f32 1.0, %v2528_v13 }
0x118b   :  { %2529 = vrcp.f32 %v1668_v5 }
0x118c   :  { %2531 = vpow2.f32 %v2043_v15 }
0x1195   :  { %v2530_v23 = vpop.eup %2529 }
0x1196   :  { %v2532_v22 = vpop.eup %2531  ;;  %v1672_v29 = vmul.f32 %v2530_v23, %v3056_v14 }
0x1197   :  { %v1692_v20 = vadd.f32 1.0, %v2532_v22 }
0x1199   :  { %2533 = vrcp.f32 %v1692_v20 }
0x11a3   :  { %v2534_v1 = vpop.eup %2533 }
0x11a4   :  { %v1696_v32 = vmul.f32 %v2534_v1, %v3061_v50 }
0x11dd   :  { %v1675_v17 = vpop.permute.xlu0 %1674 }
0x11de   :  { %v1677_v19 = vmul.f32 %v2530_v23, %v1675_v17 }
0x11e0   :  { %1679 = vrot.lane.b32.xlu0 %v1677_v19, %s2559_s4 }
0x11fa   :  { %v1699_v24 = vpop.permute.xlu1 %1698 }
0x11fb   :  { %v1701_v27 = vmul.f32 %v2534_v1, %v1699_v24 }
0x11fd   :  { %1703 = vrot.lane.b32.xlu1 %v1701_v27, %s2559_s4  ;;  %v1930_v27 = vld [vmem:[%s3200_s5] sm:$0xff] }
0x1252   :  { %v1680_v30 = vpop.permute.xlu0 %1679 }
0x1253   :  { %v3114_v63 = vadd.f32 %v1680_v30, %v1672_v29 }
0x1255   :  { %2535 = vtanh.f32 %v3114_v63 }
0x125f   :  { %v2536_v31 = vpop.eup %2535 }
0x1260   :  { %1685 = vrot.lane.b32.xlu0 %v2536_v31, %s2558_s0 }
0x126f   :  { %v1704_v34 = vpop.permute.xlu1 %1703 }
0x1270   :  { %v3119_v35 = vadd.f32 %v1704_v34, %v1696_v32 }
0x1272   :  { %2537 = vtanh.f32 %v3119_v35 }
0x127c   :  { %v2538_v25 = vpop.eup %2537 }
0x127d   :  { %1709 = vrot.lane.b32.xlu1 %v2538_v25, %s2558_s0 }
0x12d2   :  { %v1686_v36 = vpop.permute.xlu0 %1685 }
0x12d3   :  { %v1688_v38 = vmul.f32 %v2530_v23, %v1686_v36  ;;  %v2052_v23 = vld [vmem:[%s3200_s5 + $0x38] sm:$0xff] }
0x12d5   :  { %1715 = vrot.lane.b32.xlu0 %v1688_v38, %s2559_s4 }
0x12ef   :  { %v1710_v18 = vpop.permute.xlu1 %1709 }
0x12f0   :  { %v1712_v39 = vmul.f32 %v2534_v1, %v1710_v18 }
0x12f2   :  { %1722 = vrot.lane.b32.xlu1 %v1712_v39, %s2559_s4 }
0x1347   :  { %v1716_v41 = vpop.permute.xlu0 %1715 }
0x1348   :  { %v1718_v42 = vadd.f32 %v2044_v40, %v1716_v41  ;;  %2297 = vmatmul.mubr.msk.f32.vlgmr.msra.gmra.mrb[18].mxu1 %vm210_vm2, %v1716_v41 }
0x134a   :  { %2045 = vst.msk [vmem:[%s3200_s5 + $0x30] sm:$0xff] %vm210_vm2, %v1718_v42 }
0x1351   :  { %v1943_v7 = vld [vmem:[%s3200_s5 + $0x30] sm:$0xff] }
0x1352   :  { %vm1951_vm7 = vcmp.gt.f32.partialorder %v1943_v7, 0.0  ;;  %v1959_v43 = vmul.f32 0.01, %v1943_v7 }
0x1354   :  { %v1967_v44 = vsel %vm1951_vm7, %v1943_v7, %v1959_v43 }
0x1355   :  { %1975 = vst.msk [vmem:[%s3200_s5 + $0x30] sm:$0xff] %vm210_vm2, %v1967_v44 }
0x1364   :  { %v1723_v46 = vpop.permute.xlu1 %1722 }
0x1365   :  { %v1725_v14 = vadd.f32 %v2046_v45, %v1723_v46  ;;  %2308 = vmatmul.mubr.msk.f32.vlgmr.msra.gmra.mrb[26].mxu0 %vm210_vm2, %v1723_v46 }
0x1367   :  { %2047 = vst.msk [vmem:[%s3200_s5 + $0x8] sm:$0xff] %vm210_vm2, %v1725_v14 }
0x136e   :  { %v1938_v47 = vld [vmem:[%s3200_s5 + $0x8] sm:$0xff] }
0x136f   :  { %vm1946_vm8 = vcmp.gt.f32.partialorder %v1938_v47, 0.0  ;;  %v1954_v48 = vmul.f32 0.01, %v1938_v47 }
0x1371   :  { %v1962_v49 = vsel %vm1946_vm8, %v1938_v47, %v1954_v48 }
0x1372   :  { %1970 = vst.msk [vmem:[%s3200_s5 + $0x8] sm:$0xff] %vm210_vm2, %v1962_v49 }
0x141b   :  { %v1797_v50 = vpop.f32.mrb[18].mxu1 }
0x141c   :  { %v1801_v11 = vadd.f32 %v1797_v50, %v2768_v28  ;;  %v2298_v51 = vpop.f32.mrb[19].mxu1 }
0x141e   :  { %2539 = vtanh.f32 %v1801_v11  ;;  %v2050_v57 = vmul.f32 -1.442695, %v1801_v11 }
0x1428   :  { %v2540_v52 = vpop.eup %2539 }
0x1429   :  { %1884 = vrot.lane.b32.xlu0 %v2540_v52, %s2558_s0 }
0x1438   :  { %v1870_v53 = vpop.f32.mrb[26].mxu0 }
0x1439   :  { %v1874_v54 = vadd.f32 %v1870_v53, %v2741_v58  ;;  %v2309_v55 = vpop.f32.mrb[27].mxu0 }
0x143b   :  { %2541 = vtanh.f32 %v1874_v54  ;;  %v2051_v60 = vmul.f32 -1.442695, %v1874_v54 }
0x143c   :  { %2543 = vpow2.f32 %v2050_v57 }
0x1445   :  { %v2542_v56 = vpop.eup %2541 }
0x1446   :  { %1908 = vrot.lane.b32.xlu1 %v2542_v56, %s2558_s0  ;;  %v2544_v59 = vpop.eup %2543 }
0x1447   :  { %v1878_v9 = vadd.f32 1.0, %v2544_v59 }
0x1449   :  { %2545 = vrcp.f32 %v1878_v9 }
0x144a   :  { %2547 = vpow2.f32 %v2051_v60 }
0x1453   :  { %v2546_v28 = vpop.eup %2545 }
0x1454   :  { %v2548_v62 = vpop.eup %2547  ;;  %v1882_v4 = vmul.f32 %v2546_v28, %v3114_v63 }
0x1455   :  { %v1902_v26 = vadd.f32 1.0, %v2548_v62 }
0x1457   :  { %2549 = vrcp.f32 %v1902_v26 }
0x1461   :  { %v2550_v58 = vpop.eup %2549 }
0x1462   :  { %v1906_v37 = vmul.f32 %v2550_v58, %v3119_v35 }
0x149b   :  { %v1885_v21 = vpop.permute.xlu0 %1884 }
0x149c   :  { %v1887_v61 = vmul.f32 %v2546_v28, %v1885_v21 }
0x149e   :  { %1889 = vrot.lane.b32.xlu0 %v1887_v61, %s2559_s4 }
0x14b8   :  { %v1909_v0 = vpop.permute.xlu1 %1908 }
0x14b9   :  { %v1911_v16 = vmul.f32 %v2550_v58, %v1909_v0 }
0x14bb   :  { %1913 = vrot.lane.b32.xlu1 %v1911_v16, %s2559_s4 }
0x1510   :  { %v1890_v33 = vpop.permute.xlu0 %1889 }
0x1511   :  { %v1892_v2 = vadd.f32 %v1890_v33, %v1882_v4 }
0x1513   :  { %2551 = vtanh.f32 %v1892_v2 }
0x151d   :  { %v2552_v3 = vpop.eup %2551 }
0x151e   :  { %1895 = vrot.lane.b32.xlu0 %v2552_v3, %s2558_s0 }
0x152d   :  { %v1914_v6 = vpop.permute.xlu1 %1913 }
0x152e   :  { %v1916_v8 = vadd.f32 %v1914_v6, %v1906_v37 }
0x1530   :  { %2553 = vtanh.f32 %v1916_v8 }
0x153a   :  { %v2554_v10 = vpop.eup %2553 }
0x153b   :  { %1919 = vrot.lane.b32.xlu1 %v2554_v10, %s2558_s0 }
0x1590   :  { %v1896_v12 = vpop.permute.xlu0 %1895 }
0x1591   :  { %v1898_v13 = vmul.f32 %v2546_v28, %v1896_v12 }
0x1593   :  { %1925 = vrot.lane.b32.xlu0 %v1898_v13, %s2559_s4 }
0x15ad   :  { %v1920_v5 = vpop.permute.xlu1 %1919 }
0x15ae   :  { %v1922_v15 = vmul.f32 %v2550_v58, %v1920_v5 }
0x15b0   :  { %1932 = vrot.lane.b32.xlu1 %v1922_v15, %s2559_s4 }
0x1605   :  { %v1926_v17 = vpop.permute.xlu0 %1925 }
0x1606   :  { %v1928_v19 = vadd.f32 %v2052_v23, %v1926_v17 }
0x1608   :  { %2053 = vst.msk [vmem:[%s3200_s5 + $0x38] sm:$0xff] %vm210_vm2, %v1928_v19 }
0x160f   :  { %v1944_v22 = vld [vmem:[%s3200_s5 + $0x38] sm:$0xff] }
0x1610   :  { %vm1952_vm9 = vcmp.gt.f32.partialorder %v1944_v22, 0.0  ;;  %v1960_v20 = vmul.f32 0.01, %v1944_v22 }
0x1612   :  { %v1968_v1 = vsel %vm1952_vm9, %v1944_v22, %v1960_v20 }
0x1613   :  { %1976 = vst.msk [vmem:[%s3200_s5 + $0x38] sm:$0xff] %vm210_vm2, %v1968_v1 }
0x1622   :  { %v1933_v24 = vpop.permute.xlu1 %1932 }
0x1623   :  { %v1935_v29 = vadd.f32 %v1933_v24, %v1930_v27 }
0x1625   :  { %1936 = vst.msk [vmem:[%s3200_s5] sm:$0xff] %vm210_vm2, %v1935_v29 }
0x162c   :  { %v1937_v30 = vld [vmem:[%s3200_s5] sm:$0xff] }
0x162d   :  { %vm1945_vm10 = vcmp.gt.f32.partialorder %v1937_v30, 0.0  ;;  %v1953_v63 = vmul.f32 0.01, %v1937_v30 }
0x162f   :  { %v1961_v31 = vsel %vm1945_vm10, %v1937_v30, %v1953_v63 }
0x1630   :  { %1969 = vst.msk [vmem:[%s3200_s5] sm:$0xff] %vm210_vm2, %v1961_v31 }

// kernel: bi_lstm_standard.4
= control target key start
LH: loop header
LB: loop body
LE: loop exit
PB: predicated region body
PF: predicated region fallthrough
CT: control target
= control target key end

     0   :  { %v2747_v3 = vmov 0.0   ;;  %vm66_vm0 = vcmask 261120   ;;  %vm349_vm1 = vcmask 523264   ;;  %s3446_s1 = inlined_call_operand.vmem [shape: f32[32,512], index: 1, kind: input, shape index: {}]   ;;  %s3447_s2 = inlined_call_operand.vmem [shape: f32[64,256], index: 2, kind: input, shape index: {}]   ;;  %s3448_s3 = inlined_call_operand.vmem [shape: f32[64,256], index: 3, kind: input, shape index: {}]   ;;  %s3449_s0 = inlined_call_operand.vmem [shape: f32[1,64,32], index: 0, kind: input, shape index: {}]   ;;  %s3450_s4 = inlined_call_operand.vmem [shape: f32[1,512], index: 4, kind: input, shape index: {}]   ;;  %s3451_s5 = inlined_call_operand.vmem [shape: f32[1,64,64], index: 5, kind: output, shape index: {}]  }
   0x1   :  { %v29_v0 = vld [vmem:[%s3446_s1 + $0x8] sm:$0xff]  ;;  %v31_v2 = vld [vmem:[%s3446_s1 + $0x18] sm:$0xff]  ;;  %155 = vmatprep.mubr.f32.mxu0 %v2747_v3  ;;  %268 = vmatprep.mubr.f32.mxu1 %v2747_v3  ;;  %v28_v6 = vld [vmem:[%s3446_s1] sm:$0xff]  ;;  %350 = vst.msk [vmem:[%s3451_s5] sm:$0xff] %vm349_vm1, %v2747_v3 }
   0x2   :  { %v33_v1 = vld [vmem:[%s3446_s1 + $0x28] sm:$0xff]  ;;  %v35_v5 = vld [vmem:[%s3446_s1 + $0x38] sm:$0xff]  ;;  %v32_v7 = vld [vmem:[%s3446_s1 + $0x20] sm:$0xff]  ;;  %351 = vst.msk [vmem:[%s3451_s5 + $0x8] sm:$0xff] %vm349_vm1, %v2747_v3 }
   0x3   :  { %v2217_v4 = vpack.c.bf16 %v33_v1, %v29_v0  ;;  %v2225_v8 = vpack.c.bf16 %v35_v5, %v31_v2  ;;  %v2219_v9 = vpack.c.bf16 %v32_v7, %v28_v6  ;;  %v30_v10 = vld [vmem:[%s3446_s1 + $0x10] sm:$0xff]  ;;  %v37_v12 = vld [vmem:[%s3446_s1 + $0x48] sm:$0xff]  ;;  %v39_v15 = vld [vmem:[%s3446_s1 + $0x58] sm:$0xff]  ;;  %352 = vst.msk [vmem:[%s3451_s5 + $0x10] sm:$0xff] %vm349_vm1, %v2747_v3 }
   0x4   :  { %v34_v11 = vld [vmem:[%s3446_s1 + $0x30] sm:$0xff]  ;;  %v41_v14 = vld [vmem:[%s3446_s1 + $0x68] sm:$0xff]  ;;  %v43_v16 = vld [vmem:[%s3446_s1 + $0x78] sm:$0xff]  ;;  %353 = vst.msk [vmem:[%s3451_s5 + $0x18] sm:$0xff] %vm349_vm1, %v2747_v3 }
   0x5   :  { %2218 = vmatprep.subr.bf16.mxu0 %v2217_v4  ;;  %v2227_v13 = vpack.c.bf16 %v34_v11, %v30_v10  ;;  %2226 = vmatprep.subr.bf16.mxu1 %v2225_v8  ;;  %v2221_v17 = vpack.c.bf16 %v41_v14, %v37_v12  ;;  %v2229_v18 = vpack.c.bf16 %v43_v16, %v39_v15  ;;  %v36_v19 = vld [vmem:[%s3446_s1 + $0x40] sm:$0xff]  ;;  %v38_v21 = vld [vmem:[%s3446_s1 + $0x50] sm:$0xff]  ;;  %v359_v24 = vld [vmem:[%s3447_s2 + $0x8] sm:$0xff] }
   0x6   :  { %2220 = vmatpush1.bf16.msra.mxu0 %v2219_v9  ;;  %v40_v20 = vld [vmem:[%s3446_s1 + $0x60] sm:$0xff]  ;;  %v42_v23 = vld [vmem:[%s3446_s1 + $0x70] sm:$0xff]  ;;  %v361_v26 = vld [vmem:[%s3447_s2 + $0x18] sm:$0xff]  ;;  %354 = vst.msk [vmem:[%s3451_s5 + $0x20] sm:$0xff] %vm349_vm1, %v2747_v3 }
   0x7   :  { %2228 = vmatpush1.bf16.msra.mxu1 %v2227_v13  ;;  %v2223_v22 = vpack.c.bf16 %v40_v20, %v36_v19  ;;  %2222 = vmatprep.subr.bf16.mxu0 %v2221_v17  ;;  %v2231_v25 = vpack.c.bf16 %v42_v23, %v38_v21  ;;  %v375_v27 = vld [vmem:[%s3448_s3 + $0x8] sm:$0xff]  ;;  %v377_v28 = vld [vmem:[%s3448_s3 + $0x18] sm:$0xff]  ;;  %v2841_v29 = vpack.c.bf16 %v361_v26, %v359_v24  ;;  %v358_v31 = vld [vmem:[%s3447_s2] sm:$0xff] }
   0x8   :  { %2230 = vmatprep.subr.bf16.mxu1 %v2229_v18  ;;  %v2843_v30 = vpack.c.bf16 %v377_v28, %v375_v27  ;;  %v360_v32 = vld [vmem:[%s3447_s2 + $0x10] sm:$0xff]  ;;  %v374_v33 = vld [vmem:[%s3448_s3] sm:$0xff]  ;;  %v363_v38 = vld [vmem:[%s3447_s2 + $0x28] sm:$0xff]  ;;  %v46_v18 = vlaneseq  ;;  %355 = vst.msk [vmem:[%s3451_s5 + $0x28] sm:$0xff] %vm349_vm1, %v2747_v3 }
   0x9   :  { %v20_v34 = vld [vmem:[%s3449_s0] sm:$0xff]  ;;  %v2857_v35 = vpack.c.bf16 %v360_v32, %v358_v31  ;;  %v376_v36 = vld [vmem:[%s3448_s3 + $0x10] sm:$0xff]  ;;  %v365_v39 = vld [vmem:[%s3447_s2 + $0x38] sm:$0xff]  ;;  %356 = vst.msk [vmem:[%s3451_s5 + $0x30] sm:$0xff] %vm349_vm1, %v2747_v3 }
   0xa   :  { %2224 = vmatpush1.bf16.msra.mxu0 %v2223_v22  ;;  %v2863_v37 = vpack.c.bf16 %v376_v36, %v374_v33  ;;  %v362_v40 = vld [vmem:[%s3447_s2 + $0x20] sm:$0xff]  ;;  %v2875_v41 = vpack.c.bf16 %v365_v39, %v363_v38  ;;  %v364_v42 = vld [vmem:[%s3447_s2 + $0x30] sm:$0xff]  ;;  %v379_v43 = vld [vmem:[%s3448_s3 + $0x28] sm:$0xff]  ;;  %v47_v19 = vshrl.u32 %v46_v18, 7  ;;  %357 = vst.msk [vmem:[%s3451_s5 + $0x38] sm:$0xff] %vm349_vm1, %v2747_v3 }
   0xb   :  { %2232 = vmatpush1.bf16.msra.mxu1 %v2231_v25  ;;  %2234 = vmatprep.subr.bf16.mxu0 %v2841_v29  ;;  %v381_v44 = vld [vmem:[%s3448_s3 + $0x38] sm:$0xff]  ;;  %v378_v46 = vld [vmem:[%s3448_s3 + $0x20] sm:$0xff]  ;;  %v380_v47 = vld [vmem:[%s3448_s3 + $0x30] sm:$0xff]  ;;  %v2908_v51 = vpack.c.bf16 %v364_v42, %v362_v40 }
   0xc   :  { %2250 = vmatprep.subr.bf16.mxu1 %v2843_v30  ;;  %v2887_v45 = vpack.c.bf16 %v381_v44, %v379_v43  ;;  %v21_v48 = vld [vmem:[%s3449_s0 + $0x8] sm:$0xff]  ;;  %v369_v50 = vld [vmem:[%s3447_s2 + $0x58] sm:$0xff]  ;;  %v2915_v53 = vpack.c.bf16 %v380_v47, %v378_v46  ;;  %v366_v55 = vld [vmem:[%s3447_s2 + $0x40] sm:$0xff]  ;;  %v48_v20 = vsub.s32 0, %v47_v19  ;;  %v56_v23 = vsub.s32 2, %v47_v19 }
   0xd   :  { %2127 = vmatmul.mubr.msk.f32.vlgmr.msra.gmra.mrb[0].mxu0 %vm66_vm0, %v20_v34  ;;  %v367_v49 = vld [vmem:[%s3447_s2 + $0x48] sm:$0xff]  ;;  %v368_v56 = vld [vmem:[%s3447_s2 + $0x50] sm:$0xff]  ;;  %v385_v57 = vld [vmem:[%s3448_s3 + $0x58] sm:$0xff]  ;;  %v52_v31 = vsub.s32 1, %v47_v19  ;;  %v60_v39 = vsub.s32 3, %v47_v19 }
   0xe   :  { %2135 = vmatmul.mubr.msk.f32.vlgmr.msra.gmra.mrb[0].mxu1 %vm66_vm0, %v20_v34  ;;  %2236 = vmatpush1.bf16.msra.mxu0 %v2857_v35  ;;  %v383_v52 = vld [vmem:[%s3448_s3 + $0x48] sm:$0xff]  ;;  %v2917_v54 = vpack.c.bf16 %v369_v50, %v367_v49  ;;  %v382_v59 = vld [vmem:[%s3448_s3 + $0x40] sm:$0xff]  ;;  %v384_v60 = vld [vmem:[%s3448_s3 + $0x50] sm:$0xff]  ;;  %v2951_v0 = vpack.c.bf16 %v368_v56, %v366_v55 }
   0xf   :  { %2252 = vmatpush1.bf16.msra.mxu1 %v2863_v37  ;;  %161 = vmatprep.mubr.f32.mxu0 %v2747_v3  ;;  %v2930_v58 = vpack.c.bf16 %v385_v57, %v383_v52  ;;  %v371_v61 = vld [vmem:[%s3447_s2 + $0x68] sm:$0xff]  ;;  %v22_v62 = vld [vmem:[%s3449_s0 + $0x10] sm:$0xff]  ;;  %v373_v63 = vld [vmem:[%s3447_s2 + $0x78] sm:$0xff]  ;;  %v2961_v4 = vpack.c.bf16 %v384_v60, %v382_v59 }
  0x10   :  { %274 = vmatprep.mubr.f32.mxu1 %v2747_v3  ;;  %2238 = vmatprep.subr.bf16.mxu0 %v2875_v41  ;;  %v387_v1 = vld [vmem:[%s3448_s3 + $0x68] sm:$0xff]  ;;  %v389_v2 = vld [vmem:[%s3448_s3 + $0x78] sm:$0xff]  ;;  %v2963_v5 = vpack.c.bf16 %v373_v63, %v371_v61  ;;  %v370_v6 = vld [vmem:[%s3447_s2 + $0x60] sm:$0xff] }
  0x11   :  { %2128 = vmatmul.mubr.msk.f32.gmra.mrb[2].mxu0 %vm66_vm0, %v21_v48  ;;  %2254 = vmatprep.subr.bf16.mxu1 %v2887_v45  ;;  %v372_v7 = vld [vmem:[%s3447_s2 + $0x70] sm:$0xff]  ;;  %v2973_v8 = vpack.c.bf16 %v389_v2, %v387_v1  ;;  %v386_v9 = vld [vmem:[%s3448_s3 + $0x60] sm:$0xff]  ;;  %v23_v11 = vld [vmem:[%s3449_s0 + $0x18] sm:$0xff] }
  0x12   :  { %2136 = vmatmul.mubr.msk.f32.gmra.mrb[2].mxu1 %vm66_vm0, %v21_v48  ;;  %167 = vmatprep.mubr.f32.mxu0 %v2747_v3  ;;  %v388_v10 = vld [vmem:[%s3448_s3 + $0x70] sm:$0xff]  ;;  %v2988_v12 = vpack.c.bf16 %v372_v7, %v370_v6  ;;  %v24_v14 = vld [vmem:[%s3449_s0 + $0x20] sm:$0xff]  ;;  %v25_v15 = vld [vmem:[%s3449_s0 + $0x28] sm:$0xff] }
  0x13   :  { %280 = vmatprep.mubr.f32.mxu1 %v2747_v3  ;;  %2240 = vmatpush1.bf16.msra.mxu0 %v2908_v51  ;;  %v2992_v13 = vpack.c.bf16 %v388_v10, %v386_v9  ;;  %v26_v16 = vld [vmem:[%s3449_s0 + $0x30] sm:$0xff]  ;;  %v27_v17 = vld [vmem:[%s3449_s0 + $0x38] sm:$0xff]  ;;  %v44_v21 = vld [vmem:[%s3450_s4] sm:$0xf]  ;;  %s2748_s4 = smov 64  }
  0x14   :  { %2256 = vmatpush1.bf16.msra.mxu1 %v2915_v53  ;;  %2242 = vmatprep.subr.bf16.mxu0 %v2917_v54  ;;  %v3054_v22 = vrot.slane %v44_v21, %v48_v20  ;;  %v3057_v27 = vrot.slane %v44_v21, %v56_v23  ;;  %v3060_v38 = vrot.slane %v44_v21, %v52_v31  ;;  %v593_v20 = vld [vmem:[%s3451_s5] sm:$0xff] }
  0x15   :  { %2129 = vmatmul.mubr.msk.f32.gmra.mrb[4].mxu0 %vm66_vm0, %v22_v62  ;;  %2258 = vmatprep.subr.bf16.mxu1 %v2930_v58  ;;  %v3063_v42 = vrot.slane %v44_v21, %v60_v39 }
  0x16   :  { %2137 = vmatmul.mubr.msk.f32.gmra.mrb[4].mxu1 %vm66_vm0, %v22_v62  ;;  %173 = vmatprep.mubr.f32.mxu0 %v2747_v3 }
  0x17   :  { %286 = vmatprep.mubr.f32.mxu1 %v2747_v3  ;;  %2244 = vmatpush1.bf16.msra.mxu0 %v2951_v0 }
  0x18   :  { %2260 = vmatpush1.bf16.msra.mxu1 %v2961_v4  ;;  %2246 = vmatprep.subr.bf16.mxu0 %v2963_v5 }
  0x19   :  { %2130 = vmatmul.mubr.msk.f32.gmra.mrb[6].mxu0 %vm66_vm0, %v23_v11  ;;  %2262 = vmatprep.subr.bf16.mxu1 %v2973_v8 }
  0x1a   :  { %2138 = vmatmul.mubr.msk.f32.gmra.mrb[6].mxu1 %vm66_vm0, %v23_v11  ;;  %179 = vmatprep.mubr.f32.mxu0 %v2747_v3 }
  0x1b   :  { %292 = vmatprep.mubr.f32.mxu1 %v2747_v3  ;;  %2248 = vmatpush1.bf16.msra.mxu0 %v2988_v12 }
  0x1c   :  { %2264 = vmatpush1.bf16.msra.mxu1 %v2992_v13  ;;  %2266 = vmatprep.subr.bf16.mxu0 %v2841_v29 }
  0x1d   :  { %2131 = vmatmul.mubr.msk.f32.gmra.mrb[8].mxu0 %vm66_vm0, %v24_v14  ;;  %2282 = vmatprep.subr.bf16.mxu1 %v2843_v30 }
  0x1e   :  { %2139 = vmatmul.mubr.msk.f32.gmra.mrb[8].mxu1 %vm66_vm0, %v24_v14  ;;  %185 = vmatprep.mubr.f32.mxu0 %v2747_v3 }
  0x1f   :  { %298 = vmatprep.mubr.f32.mxu1 %v2747_v3 }
  0x21   :  { %2132 = vmatmul.mubr.msk.f32.gmra.mrb[10].mxu0 %vm66_vm0, %v25_v15 }
  0x22   :  { %2140 = vmatmul.mubr.msk.f32.gmra.mrb[10].mxu1 %vm66_vm0, %v25_v15  ;;  %191 = vmatprep.mubr.f32.mxu0 %v2747_v3 }
  0x23   :  { %304 = vmatprep.mubr.f32.mxu1 %v2747_v3 }
  0x25   :  { %2133 = vmatmul.mubr.msk.f32.gmra.mrb[12].mxu0 %vm66_vm0, %v26_v16 }
  0x26   :  { %2141 = vmatmul.mubr.msk.f32.gmra.mrb[12].mxu1 %vm66_vm0, %v26_v16  ;;  %197 = vmatprep.mubr.f32.mxu0 %v2747_v3 }
  0x27   :  { %310 = vmatprep.mubr.f32.mxu1 %v2747_v3 }
  0x29   :  { %2134 = vmatmul.mubr.msk.f32.gmra.mrb[14].mxu0 %vm66_vm0, %v27_v17 }
  0x2a   :  { %2142 = vmatmul.mubr.msk.f32.gmra.mrb[14].mxu1 %vm66_vm0, %v27_v17  ;;  %467 = vmatprep.mubr.f32.mxu0 %v2747_v3 }
  0x2b   :  { %540 = vmatprep.mubr.f32.mxu1 %v2747_v3 }
  0x2d   :  { %468 = vmatmul.mubr.f32.vlgmr.msra.gmra.mrb[0].mxu0 %v2747_v3 }
  0x2e   :  { %2268 = vmatpush1.bf16.msra.mxu0 %v2857_v35  ;;  %684 = vmatprep.mubr.f32.mxu0 %v2747_v3 }
  0x2f   :  { %2270 = vmatprep.subr.bf16.mxu0 %v2875_v41 }
  0x32   :  { %541 = vmatmul.mubr.f32.vlgmr.msra.gmra.mrb[14].mxu1 %v2747_v3  ;;  %2272 = vmatpush1.bf16.msra.mxu0 %v2908_v51 }
  0x33   :  { %2284 = vmatpush1.bf16.msra.mxu1 %v2863_v37  ;;  %2274 = vmatprep.subr.bf16.mxu0 %v2917_v54 }
  0x34   :  { %2286 = vmatprep.subr.bf16.mxu1 %v2887_v45  ;;  %759 = vmatprep.mubr.f32.mxu1 %v2747_v3 }
  0x36   :  { %2276 = vmatpush1.bf16.msra.mxu0 %v2951_v0 }
  0x37   :  { %2288 = vmatpush1.bf16.msra.mxu1 %v2915_v53  ;;  %2278 = vmatprep.subr.bf16.mxu0 %v2963_v5 }
  0x38   :  { %2290 = vmatprep.subr.bf16.mxu1 %v2930_v58 }
  0x3a   :  { %2280 = vmatpush1.bf16.msra.mxu0 %v2988_v12 }
  0x3b   :  { %2292 = vmatpush1.bf16.msra.mxu1 %v2961_v4  ;;  %2298 = vmatprep.subr.bf16.mxu0 %v2841_v29 }
  0x3c   :  { %2294 = vmatprep.subr.bf16.mxu1 %v2973_v8 }
  0x3f   :  { %2296 = vmatpush1.bf16.msra.mxu1 %v2992_v13 }
  0x40   :  { %2314 = vmatprep.subr.bf16.mxu1 %v2843_v30 }
 0x100   :  { %v469_v24 = vpop.f32.mrb[0].mxu0 }
 0x101   :  { %v2489_v25 = vadd.f32 %v469_v24, %v3054_v22  ;;  %v471_v26 = vpop.f32.mrb[1].mxu0  ;;  %v2147_v24 = vld [vmem:[%s3451_s5 + $0x38] sm:$0xff] }
 0x102   :  { %v2490_v40 = vadd.f32 %v471_v26, %v3060_v38 }
 0x103   :  { %v2143_v28 = vmul.f32 -1.442695, %v2489_v25 }
 0x104   :  { %v2144_v59 = vmul.f32 -1.442695, %v2490_v40 }
 0x105   :  { %2555 = vpow2.f32 %v2143_v28  ;;  %v542_v32 = vpop.f32.mrb[14].mxu1 }
 0x106   :  { %v2519_v33 = vadd.f32 %v542_v32, %v3057_v27  ;;  %v544_v34 = vpop.f32.mrb[15].mxu1 }
 0x107   :  { %v2520_v46 = vadd.f32 %v544_v34, %v3063_v42 }
 0x108   :  { %v2145_v36 = vmul.f32 -1.442695, %v2519_v33 }
 0x109   :  { %v2146_v60 = vmul.f32 -1.442695, %v2520_v46 }
 0x10a   :  { %2557 = vpow2.f32 %v2145_v36 }
 0x10b   :  { %2559 = vtanh.f32 %v2490_v40 }
 0x10f   :  { %v2556_v43 = vpop.eup %2555 }
 0x110   :  { %v552_v44 = vadd.f32 1.0, %v2556_v43 }
 0x112   :  { %2561 = vrcp.f32 %v552_v44 }
 0x113   :  { %2563 = vtanh.f32 %v2520_v46 }
 0x114   :  { %v2558_v47 = vpop.eup %2557 }
 0x115   :  { %v574_v48 = vadd.f32 1.0, %v2558_v47  ;;  %v2560_v49 = vpop.eup %2559 }
 0x117   :  { %2565 = vrcp.f32 %v574_v48 }
 0x118   :  { %2567 = vpow2.f32 %v2144_v59 }
 0x119   :  { %2569 = vpow2.f32 %v2146_v60 }
 0x11c   :  { %v2562_v50 = vpop.eup %2561 }
 0x11d   :  { %v563_v52 = vmul.f32 %v2562_v50, %v2560_v49  ;;  %v2564_v55 = vpop.eup %2563  ;;  %v562_v63 = vmul.f32 0.0, %v2562_v50 }
 0x11f   :  { %565 = vrot.lane.b32.xlu0 %v563_v52, %s2748_s4 }
 0x121   :  { %v2566_v56 = vpop.eup %2565 }
 0x122   :  { %v585_v57 = vmul.f32 %v2566_v56, %v2564_v55  ;;  %v2568_v61 = vpop.eup %2567  ;;  %v584_v9 = vmul.f32 0.0, %v2566_v56 }
 0x123   :  { %v559_v62 = vadd.f32 1.0, %v2568_v61  ;;  %v2570_v1 = vpop.eup %2569 }
 0x124   :  { %587 = vrot.lane.b32.xlu0 %v585_v57, %s2748_s4  ;;  %v581_v7 = vadd.f32 1.0, %v2570_v1 }
 0x125   :  { %2571 = vrcp.f32 %v559_v62 }
 0x12f   :  { %v2572_v14 = vpop.eup %2571 }
 0x191   :  { %v566_v2 = vpop.permute.xlu0 %565 }
 0x192   :  { %v3108_v6 = vadd.f32 %v566_v2, %v562_v63 }
 0x194   :  { %2573 = vtanh.f32 %v3108_v6 }
 0x195   :  { %2575 = vrcp.f32 %v581_v7 }
 0x196   :  { %v588_v10 = vpop.permute.xlu0 %587 }
 0x197   :  { %v3111_v11 = vadd.f32 %v588_v10, %v584_v9 }
 0x199   :  { %2577 = vtanh.f32 %v3111_v11 }
 0x19e   :  { %v2574_v15 = vpop.eup %2573 }
 0x19f   :  { %v570_v16 = vmul.f32 %v2574_v15, %v2572_v14  ;;  %v2576_v17 = vpop.eup %2575 }
 0x1a1   :  { %595 = vrot.lane.b32.xlu1 %v570_v16, %s2748_s4 }
 0x1a3   :  { %v2578_v18 = vpop.eup %2577 }
 0x1a4   :  { %v592_v19 = vmul.f32 %v2578_v18, %v2576_v17 }
 0x1a6   :  { %603 = vrot.lane.b32.xlu1 %v592_v19, %s2748_s4 }
 0x213   :  { %v596_v21 = vpop.permute.xlu1 %595 }
 0x214   :  { %v598_v23 = vadd.f32 %v596_v21, %v593_v20  ;;  %2149 = vmatmul.mubr.msk.f32.vlgmr.msra.gmra.mrb[2].mxu0 %vm349_vm1, %v596_v21 }
 0x215   :  { %2300 = vmatpush1.bf16.msra.mxu0 %v2857_v35  ;;  %904 = vmatprep.mubr.f32.mxu0 %v2747_v3 }
 0x216   :  { %599 = vst.msk [vmem:[%s3451_s5] sm:$0xff] %vm349_vm1, %v598_v23  ;;  %2302 = vmatprep.subr.bf16.mxu0 %v2875_v41 }
 0x218   :  { %v604_v25 = vpop.permute.xlu1 %603 }
 0x219   :  { %v606_v26 = vadd.f32 %v2147_v24, %v604_v25  ;;  %2150 = vmatmul.mubr.msk.f32.vlgmr.msra.gmra.mrb[12].mxu1 %vm349_vm1, %v604_v25  ;;  %2304 = vmatpush1.bf16.msra.mxu0 %v2908_v51  ;;  %v2157_v25 = vld [vmem:[%s3451_s5 + $0x30] sm:$0xff] }
 0x21a   :  { %2316 = vmatpush1.bf16.msra.mxu1 %v2863_v37  ;;  %2306 = vmatprep.subr.bf16.mxu0 %v2917_v54 }
 0x21b   :  { %2148 = vst.msk [vmem:[%s3451_s5 + $0x38] sm:$0xff] %vm349_vm1, %v606_v26  ;;  %2318 = vmatprep.subr.bf16.mxu1 %v2887_v45  ;;  %979 = vmatprep.mubr.f32.mxu1 %v2747_v3 }
 0x21d   :  { %2308 = vmatpush1.bf16.msra.mxu0 %v2951_v0 }
 0x21e   :  { %2320 = vmatpush1.bf16.msra.mxu1 %v2915_v53  ;;  %2310 = vmatprep.subr.bf16.mxu0 %v2963_v5 }
 0x21f   :  { %2322 = vmatprep.subr.bf16.mxu1 %v2930_v58 }
 0x221   :  { %2312 = vmatpush1.bf16.msra.mxu0 %v2988_v12 }
 0x222   :  { %2324 = vmatpush1.bf16.msra.mxu1 %v2961_v4  ;;  %2330 = vmatprep.subr.bf16.mxu0 %v2841_v29 }
 0x223   :  { %2326 = vmatprep.subr.bf16.mxu1 %v2973_v8 }
 0x226   :  { %2328 = vmatpush1.bf16.msra.mxu1 %v2992_v13 }
 0x227   :  { %2346 = vmatprep.subr.bf16.mxu1 %v2843_v30 }
 0x2e7   :  { %v686_v28 = vpop.f32.mrb[2].mxu0 }
 0x2e8   :  { %v2491_v31 = vadd.f32 %v686_v28, %v3054_v22  ;;  %v688_v32 = vpop.f32.mrb[3].mxu0 }
 0x2e9   :  { %v2492_v43 = vadd.f32 %v688_v32, %v3060_v38 }
 0x2ea   :  { %v2151_v33 = vmul.f32 -1.442695, %v2491_v31 }
 0x2eb   :  { %v2152_v60 = vmul.f32 -1.442695, %v2492_v43 }
 0x2ec   :  { %2579 = vpow2.f32 %v2151_v33  ;;  %v761_v34 = vpop.f32.mrb[12].mxu1 }
 0x2ed   :  { %v2517_v36 = vadd.f32 %v761_v34, %v3057_v27  ;;  %v763_v39 = vpop.f32.mrb[13].mxu1 }
 0x2ee   :  { %v2518_v47 = vadd.f32 %v763_v39, %v3063_v42 }
 0x2ef   :  { %v2153_v40 = vmul.f32 -1.442695, %v2517_v36 }
 0x2f0   :  { %v2154_v61 = vmul.f32 -1.442695, %v2518_v47 }
 0x2f1   :  { %2581 = vpow2.f32 %v2153_v40 }
 0x2f2   :  { %2583 = vtanh.f32 %v2492_v43 }
 0x2f6   :  { %v2580_v44 = vpop.eup %2579 }
 0x2f7   :  { %v771_v46 = vadd.f32 1.0, %v2580_v44 }
 0x2f9   :  { %2585 = vrcp.f32 %v771_v46 }
 0x2fa   :  { %2587 = vtanh.f32 %v2518_v47 }
 0x2fb   :  { %v2582_v48 = vpop.eup %2581 }
 0x2fc   :  { %v793_v49 = vadd.f32 1.0, %v2582_v48  ;;  %v2584_v50 = vpop.eup %2583 }
 0x2fe   :  { %2589 = vrcp.f32 %v793_v49 }
 0x2ff   :  { %2591 = vpow2.f32 %v2152_v60 }
 0x300   :  { %2593 = vpow2.f32 %v2154_v61 }
 0x303   :  { %v2586_v52 = vpop.eup %2585 }
 0x304   :  { %v782_v55 = vmul.f32 %v2586_v52, %v2584_v50  ;;  %v2588_v56 = vpop.eup %2587  ;;  %v781_v1 = vmul.f32 %v2586_v52, %v3108_v6 }
 0x306   :  { %784 = vrot.lane.b32.xlu0 %v782_v55, %s2748_s4 }
 0x308   :  { %v2590_v57 = vpop.eup %2589 }
 0x309   :  { %v804_v59 = vmul.f32 %v2590_v57, %v2588_v56  ;;  %v2592_v62 = vpop.eup %2591  ;;  %v803_v14 = vmul.f32 %v2590_v57, %v3111_v11  ;;  %v2155_v11 = vld [vmem:[%s3451_s5 + $0x8] sm:$0xff] }
 0x30a   :  { %v778_v63 = vadd.f32 1.0, %v2592_v62  ;;  %v2594_v2 = vpop.eup %2593 }
 0x30b   :  { %806 = vrot.lane.b32.xlu1 %v804_v59, %s2748_s4  ;;  %v800_v10 = vadd.f32 1.0, %v2594_v2 }
 0x30c   :  { %2595 = vrcp.f32 %v778_v63 }
 0x316   :  { %v2596_v17 = vpop.eup %2595 }
 0x378   :  { %v785_v7 = vpop.permute.xlu0 %784 }
 0x379   :  { %v3157_v9 = vadd.f32 %v785_v7, %v781_v1 }
 0x37b   :  { %2597 = vtanh.f32 %v3157_v9 }
 0x37c   :  { %2599 = vrcp.f32 %v800_v10 }
 0x37d   :  { %v807_v15 = vpop.permute.xlu1 %806 }
 0x37e   :  { %v3161_v16 = vadd.f32 %v807_v15, %v803_v14 }
 0x380   :  { %2601 = vtanh.f32 %v3161_v16 }
 0x385   :  { %v2598_v18 = vpop.eup %2597 }
 0x386   :  { %v789_v19 = vmul.f32 %v2598_v18, %v2596_v17  ;;  %v2600_v6 = vpop.eup %2599 }
 0x388   :  { %815 = vrot.lane.b32.xlu0 %v789_v19, %s2748_s4 }
 0x38a   :  { %v2602_v20 = vpop.eup %2601 }
 0x38b   :  { %v811_v21 = vmul.f32 %v2602_v20, %v2600_v6 }
 0x38d   :  { %823 = vrot.lane.b32.xlu1 %v811_v21, %s2748_s4 }
 0x3fa   :  { %v816_v23 = vpop.permute.xlu0 %815 }
 0x3fb   :  { %v818_v24 = vadd.f32 %v2155_v11, %v816_v23  ;;  %2159 = vmatmul.mubr.msk.f32.vlgmr.msra.gmra.mrb[4].mxu0 %vm349_vm1, %v816_v23 }
 0x3fc   :  { %2332 = vmatpush1.bf16.msra.mxu0 %v2857_v35  ;;  %1124 = vmatprep.mubr.f32.mxu0 %v2747_v3 }
 0x3fd   :  { %2156 = vst.msk [vmem:[%s3451_s5 + $0x8] sm:$0xff] %vm349_vm1, %v818_v24  ;;  %2334 = vmatprep.subr.bf16.mxu0 %v2875_v41 }
 0x3ff   :  { %v824_v26 = vpop.permute.xlu1 %823 }
 0x400   :  { %v826_v28 = vadd.f32 %v2157_v25, %v824_v26  ;;  %2160 = vmatmul.mubr.msk.f32.vlgmr.msra.gmra.mrb[10].mxu1 %vm349_vm1, %v824_v26  ;;  %2336 = vmatpush1.bf16.msra.mxu0 %v2908_v51  ;;  %v2167_v26 = vld [vmem:[%s3451_s5 + $0x28] sm:$0xff] }
 0x401   :  { %2348 = vmatpush1.bf16.msra.mxu1 %v2863_v37  ;;  %2338 = vmatprep.subr.bf16.mxu0 %v2917_v54 }
 0x402   :  { %2158 = vst.msk [vmem:[%s3451_s5 + $0x30] sm:$0xff] %vm349_vm1, %v826_v28  ;;  %2350 = vmatprep.subr.bf16.mxu1 %v2887_v45  ;;  %1199 = vmatprep.mubr.f32.mxu1 %v2747_v3 }
 0x404   :  { %2340 = vmatpush1.bf16.msra.mxu0 %v2951_v0 }
 0x405   :  { %2352 = vmatpush1.bf16.msra.mxu1 %v2915_v53  ;;  %2342 = vmatprep.subr.bf16.mxu0 %v2963_v5 }
 0x406   :  { %2354 = vmatprep.subr.bf16.mxu1 %v2930_v58 }
 0x408   :  { %2344 = vmatpush1.bf16.msra.mxu0 %v2988_v12 }
 0x409   :  { %2356 = vmatpush1.bf16.msra.mxu1 %v2961_v4  ;;  %2362 = vmatprep.subr.bf16.mxu0 %v2841_v29 }
 0x40a   :  { %2358 = vmatprep.subr.bf16.mxu1 %v2973_v8 }
 0x40d   :  { %2360 = vmatpush1.bf16.msra.mxu1 %v2992_v13 }
 0x40e   :  { %2378 = vmatprep.subr.bf16.mxu1 %v2843_v30 }
 0x4ce   :  { %v906_v31 = vpop.f32.mrb[4].mxu0 }
 0x4cf   :  { %v2493_v32 = vadd.f32 %v906_v31, %v3054_v22  ;;  %v908_v33 = vpop.f32.mrb[5].mxu0 }
 0x4d0   :  { %v2494_v44 = vadd.f32 %v908_v33, %v3060_v38 }
 0x4d1   :  { %v2161_v34 = vmul.f32 -1.442695, %v2493_v32 }
 0x4d2   :  { %v2162_v61 = vmul.f32 -1.442695, %v2494_v44 }
 0x4d3   :  { %2603 = vpow2.f32 %v2161_v34  ;;  %v981_v36 = vpop.f32.mrb[10].mxu1 }
 0x4d4   :  { %v2515_v39 = vadd.f32 %v981_v36, %v3057_v27  ;;  %v983_v40 = vpop.f32.mrb[11].mxu1 }
 0x4d5   :  { %v2516_v48 = vadd.f32 %v983_v40, %v3063_v42 }
 0x4d6   :  { %v2163_v43 = vmul.f32 -1.442695, %v2515_v39 }
 0x4d7   :  { %v2164_v62 = vmul.f32 -1.442695, %v2516_v48 }
 0x4d8   :  { %2605 = vpow2.f32 %v2163_v43 }
 0x4d9   :  { %2607 = vtanh.f32 %v2494_v44 }
 0x4dd   :  { %v2604_v46 = vpop.eup %2603 }
 0x4de   :  { %v991_v47 = vadd.f32 1.0, %v2604_v46 }
 0x4e0   :  { %2609 = vrcp.f32 %v991_v47 }
 0x4e1   :  { %2611 = vtanh.f32 %v2516_v48 }
 0x4e2   :  { %v2606_v49 = vpop.eup %2605 }
 0x4e3   :  { %v1013_v50 = vadd.f32 1.0, %v2606_v49  ;;  %v2608_v52 = vpop.eup %2607 }
 0x4e5   :  { %2613 = vrcp.f32 %v1013_v50 }
 0x4e6   :  { %2615 = vpow2.f32 %v2162_v61 }
 0x4e7   :  { %2617 = vpow2.f32 %v2164_v62 }
 0x4ea   :  { %v2610_v55 = vpop.eup %2609 }
 0x4eb   :  { %v1002_v56 = vmul.f32 %v2610_v55, %v2608_v52  ;;  %v2612_v57 = vpop.eup %2611  ;;  %v1001_v2 = vmul.f32 %v2610_v55, %v3157_v9 }
 0x4ed   :  { %1004 = vrot.lane.b32.xlu0 %v1002_v56, %s2748_s4 }
 0x4ef   :  { %v2614_v59 = vpop.eup %2613 }
 0x4f0   :  { %v1024_v60 = vmul.f32 %v2614_v59, %v2612_v57  ;;  %v2616_v63 = vpop.eup %2615  ;;  %v1023_v17 = vmul.f32 %v2614_v59, %v3161_v16  ;;  %v2165_v16 = vld [vmem:[%s3451_s5 + $0x10] sm:$0xff] }
 0x4f1   :  { %v998_v1 = vadd.f32 1.0, %v2616_v63  ;;  %v2618_v7 = vpop.eup %2617 }
 0x4f2   :  { %1026 = vrot.lane.b32.xlu1 %v1024_v60, %s2748_s4  ;;  %v1020_v15 = vadd.f32 1.0, %v2618_v7 }
 0x4f3   :  { %2619 = vrcp.f32 %v998_v1 }
 0x4fd   :  { %v2620_v6 = vpop.eup %2619 }
 0x55f   :  { %v1005_v10 = vpop.permute.xlu0 %1004 }
 0x560   :  { %v3207_v14 = vadd.f32 %v1005_v10, %v1001_v2 }
 0x562   :  { %2621 = vtanh.f32 %v3207_v14 }
 0x563   :  { %2623 = vrcp.f32 %v1020_v15 }
 0x564   :  { %v1027_v18 = vpop.permute.xlu1 %1026 }
 0x565   :  { %v3211_v19 = vadd.f32 %v1027_v18, %v1023_v17 }
 0x567   :  { %2625 = vtanh.f32 %v3211_v19 }
 0x56c   :  { %v2622_v20 = vpop.eup %2621 }
 0x56d   :  { %v1009_v21 = vmul.f32 %v2622_v20, %v2620_v6  ;;  %v2624_v9 = vpop.eup %2623 }
 0x56f   :  { %1035 = vrot.lane.b32.xlu0 %v1009_v21, %s2748_s4 }
 0x571   :  { %v2626_v11 = vpop.eup %2625 }
 0x572   :  { %v1031_v23 = vmul.f32 %v2626_v11, %v2624_v9 }
 0x574   :  { %1043 = vrot.lane.b32.xlu1 %v1031_v23, %s2748_s4 }
 0x5e1   :  { %v1036_v24 = vpop.permute.xlu0 %1035 }
 0x5e2   :  { %v1038_v25 = vadd.f32 %v2165_v16, %v1036_v24  ;;  %2169 = vmatmul.mubr.msk.f32.vlgmr.msra.gmra.mrb[6].mxu0 %vm349_vm1, %v1036_v24 }
 0x5e3   :  { %2364 = vmatpush1.bf16.msra.mxu0 %v2857_v35  ;;  %1338 = vmatprep.mubr.f32.mxu0 %v2747_v3 }
 0x5e4   :  { %2166 = vst.msk [vmem:[%s3451_s5 + $0x10] sm:$0xff] %vm349_vm1, %v1038_v25  ;;  %2366 = vmatprep.subr.bf16.mxu0 %v2875_v41 }
 0x5e6   :  { %v1044_v28 = vpop.permute.xlu1 %1043 }
 0x5e7   :  { %v1046_v31 = vadd.f32 %v2167_v26, %v1044_v28  ;;  %2170 = vmatmul.mubr.msk.f32.vlgmr.msra.gmra.mrb[8].mxu1 %vm349_vm1, %v1044_v28  ;;  %2368 = vmatpush1.bf16.msra.mxu0 %v2908_v51  ;;  %v2177_v28 = vld [vmem:[%s3451_s5 + $0x20] sm:$0xff] }
 0x5e8   :  { %2380 = vmatpush1.bf16.msra.mxu1 %v2863_v37  ;;  %2370 = vmatprep.subr.bf16.mxu0 %v2917_v54 }
 0x5e9   :  { %2168 = vst.msk [vmem:[%s3451_s5 + $0x28] sm:$0xff] %vm349_vm1, %v1046_v31  ;;  %2382 = vmatprep.subr.bf16.mxu1 %v2887_v45  ;;  %1413 = vmatprep.mubr.f32.mxu1 %v2747_v3 }
 0x5eb   :  { %2372 = vmatpush1.bf16.msra.mxu0 %v2951_v0 }
 0x5ec   :  { %2384 = vmatpush1.bf16.msra.mxu1 %v2915_v53  ;;  %2374 = vmatprep.subr.bf16.mxu0 %v2963_v5 }
 0x5ed   :  { %2386 = vmatprep.subr.bf16.mxu1 %v2930_v58 }
 0x5ef   :  { %2376 = vmatpush1.bf16.msra.mxu0 %v2988_v12 }
 0x5f0   :  { %2388 = vmatpush1.bf16.msra.mxu1 %v2961_v4  ;;  %2394 = vmatprep.subr.bf16.mxu0 %v2841_v29 }
 0x5f1   :  { %2390 = vmatprep.subr.bf16.mxu1 %v2973_v8 }
 0x5f4   :  { %2392 = vmatpush1.bf16.msra.mxu1 %v2992_v13 }
 0x5f5   :  { %2410 = vmatprep.subr.bf16.mxu1 %v2843_v30 }
 0x6b5   :  { %v1126_v32 = vpop.f32.mrb[6].mxu0 }
 0x6b6   :  { %v2495_v33 = vadd.f32 %v1126_v32, %v3054_v22  ;;  %v1128_v34 = vpop.f32.mrb[7].mxu0 }
 0x6b7   :  { %v2496_v46 = vadd.f32 %v1128_v34, %v3060_v38 }
 0x6b8   :  { %v2171_v36 = vmul.f32 -1.442695, %v2495_v33 }
 0x6b9   :  { %v2172_v62 = vmul.f32 -1.442695, %v2496_v46 }
 0x6ba   :  { %2627 = vpow2.f32 %v2171_v36  ;;  %v1201_v39 = vpop.f32.mrb[8].mxu1 }
 0x6bb   :  { %v2513_v40 = vadd.f32 %v1201_v39, %v3057_v27  ;;  %v1203_v43 = vpop.f32.mrb[9].mxu1 }
 0x6bc   :  { %v2514_v49 = vadd.f32 %v1203_v43, %v3063_v42 }
 0x6bd   :  { %v2173_v44 = vmul.f32 -1.442695, %v2513_v40 }
 0x6be   :  { %v2174_v63 = vmul.f32 -1.442695, %v2514_v49 }
 0x6bf   :  { %2629 = vpow2.f32 %v2173_v44 }
 0x6c0   :  { %2631 = vtanh.f32 %v2496_v46 }
 0x6c4   :  { %v2628_v47 = vpop.eup %2627 }
 0x6c5   :  { %v1211_v48 = vadd.f32 1.0, %v2628_v47 }
 0x6c7   :  { %2633 = vrcp.f32 %v1211_v48 }
 0x6c8   :  { %2635 = vtanh.f32 %v2514_v49 }
 0x6c9   :  { %v2630_v50 = vpop.eup %2629 }
 0x6ca   :  { %v1233_v52 = vadd.f32 1.0, %v2630_v50  ;;  %v2632_v55 = vpop.eup %2631 }
 0x6cc   :  { %2637 = vrcp.f32 %v1233_v52 }
 0x6cd   :  { %2639 = vpow2.f32 %v2172_v62 }
 0x6ce   :  { %2641 = vpow2.f32 %v2174_v63 }
 0x6d1   :  { %v2634_v56 = vpop.eup %2633 }
 0x6d2   :  { %v1222_v57 = vmul.f32 %v2634_v56, %v2632_v55  ;;  %v2636_v59 = vpop.eup %2635  ;;  %v1221_v7 = vmul.f32 %v2634_v56, %v3207_v14 }
 0x6d4   :  { %1224 = vrot.lane.b32.xlu0 %v1222_v57, %s2748_s4 }
 0x6d6   :  { %v2638_v60 = vpop.eup %2637 }
 0x6d7   :  { %v1244_v61 = vmul.f32 %v2638_v60, %v2636_v59  ;;  %v2640_v1 = vpop.eup %2639  ;;  %v1243_v6 = vmul.f32 %v2638_v60, %v3211_v19  ;;  %v2175_v19 = vld [vmem:[%s3451_s5 + $0x18] sm:$0xff] }
 0x6d8   :  { %v1218_v2 = vadd.f32 1.0, %v2640_v1  ;;  %v2642_v10 = vpop.eup %2641 }
 0x6d9   :  { %1246 = vrot.lane.b32.xlu1 %v1244_v61, %s2748_s4  ;;  %v1240_v18 = vadd.f32 1.0, %v2642_v10 }
 0x6da   :  { %2643 = vrcp.f32 %v1218_v2 }
 0x6e4   :  { %v2644_v9 = vpop.eup %2643 }
 0x746   :  { %v1225_v15 = vpop.permute.xlu0 %1224 }
 0x747   :  { %v3257_v17 = vadd.f32 %v1225_v15, %v1221_v7 }
 0x749   :  { %2645 = vtanh.f32 %v3257_v17 }
 0x74a   :  { %2647 = vrcp.f32 %v1240_v18 }
 0x74b   :  { %v1247_v20 = vpop.permute.xlu1 %1246 }
 0x74c   :  { %v3261_v21 = vadd.f32 %v1247_v20, %v1243_v6 }
 0x74e   :  { %2649 = vtanh.f32 %v3261_v21 }
 0x753   :  { %v2646_v11 = vpop.eup %2645 }
 0x754   :  { %v1229_v23 = vmul.f32 %v2646_v11, %v2644_v9  ;;  %v2648_v14 = vpop.eup %2647 }
 0x756   :  { %1255 = vrot.lane.b32.xlu0 %v1229_v23, %s2748_s4 }
 0x758   :  { %v2650_v16 = vpop.eup %2649 }
 0x759   :  { %v1251_v24 = vmul.f32 %v2650_v16, %v2648_v14 }
 0x75b   :  { %1263 = vrot.lane.b32.xlu1 %v1251_v24, %s2748_s4 }
 0x7c8   :  { %v1256_v25 = vpop.permute.xlu0 %1255 }
 0x7c9   :  { %v1258_v26 = vadd.f32 %v2175_v19, %v1256_v25  ;;  %2179 = vmatmul.mubr.msk.f32.vlgmr.msra.gmra.mrb[8].mxu0 %vm349_vm1, %v1256_v25 }
 0x7ca   :  { %2396 = vmatpush1.bf16.msra.mxu0 %v2857_v35  ;;  %1550 = vmatprep.mubr.f32.mxu0 %v2747_v3 }
 0x7cb   :  { %2176 = vst.msk [vmem:[%s3451_s5 + $0x18] sm:$0xff] %vm349_vm1, %v1258_v26  ;;  %2398 = vmatprep.subr.bf16.mxu0 %v2875_v41 }
 0x7cd   :  { %v1264_v31 = vpop.permute.xlu1 %1263 }
 0x7ce   :  { %v1266_v32 = vadd.f32 %v2177_v28, %v1264_v31  ;;  %2180 = vmatmul.mubr.msk.f32.vlgmr.msra.gmra.mrb[6].mxu1 %vm349_vm1, %v1264_v31  ;;  %2400 = vmatpush1.bf16.msra.mxu0 %v2908_v51 }
 0x7cf   :  { %2412 = vmatpush1.bf16.msra.mxu1 %v2863_v37  ;;  %2402 = vmatprep.subr.bf16.mxu0 %v2917_v54 }
 0x7d0   :  { %2178 = vst.msk [vmem:[%s3451_s5 + $0x20] sm:$0xff] %vm349_vm1, %v1266_v32  ;;  %2414 = vmatprep.subr.bf16.mxu1 %v2887_v45  ;;  %1625 = vmatprep.mubr.f32.mxu1 %v2747_v3 }
 0x7d2   :  { %2404 = vmatpush1.bf16.msra.mxu0 %v2951_v0  ;;  %v2187_v32 = vld [vmem:[%s3451_s5 + $0x18] sm:$0xff] }
 0x7d3   :  { %2416 = vmatpush1.bf16.msra.mxu1 %v2915_v53  ;;  %2406 = vmatprep.subr.bf16.mxu0 %v2963_v5 }
 0x7d4   :  { %2418 = vmatprep.subr.bf16.mxu1 %v2930_v58 }
 0x7d6   :  { %2408 = vmatpush1.bf16.msra.mxu0 %v2988_v12 }
 0x7d7   :  { %2420 = vmatpush1.bf16.msra.mxu1 %v2961_v4  ;;  %2426 = vmatprep.subr.bf16.mxu0 %v2841_v29 }
 0x7d8   :  { %2422 = vmatprep.subr.bf16.mxu1 %v2973_v8 }
 0x7db   :  { %2424 = vmatpush1.bf16.msra.mxu1 %v2992_v13 }
 0x7dc   :  { %2442 = vmatprep.subr.bf16.mxu1 %v2843_v30 }
 0x89c   :  { %v1340_v33 = vpop.f32.mrb[8].mxu0 }
 0x89d   :  { %v2497_v34 = vadd.f32 %v1340_v33, %v3054_v22  ;;  %v1342_v36 = vpop.f32.mrb[9].mxu0 }
 0x89e   :  { %v2498_v47 = vadd.f32 %v1342_v36, %v3060_v38 }
 0x89f   :  { %v2181_v39 = vmul.f32 -1.442695, %v2497_v34 }
 0x8a0   :  { %v2182_v63 = vmul.f32 -1.442695, %v2498_v47 }
 0x8a1   :  { %2651 = vpow2.f32 %v2181_v39  ;;  %v1415_v40 = vpop.f32.mrb[6].mxu1 }
 0x8a2   :  { %v2511_v43 = vadd.f32 %v1415_v40, %v3057_v27  ;;  %v1417_v44 = vpop.f32.mrb[7].mxu1 }
 0x8a3   :  { %v2512_v50 = vadd.f32 %v1417_v44, %v3063_v42 }
 0x8a4   :  { %v2183_v46 = vmul.f32 -1.442695, %v2511_v43 }
 0x8a5   :  { %v2184_v1 = vmul.f32 -1.442695, %v2512_v50 }
 0x8a6   :  { %2653 = vpow2.f32 %v2183_v46 }
 0x8a7   :  { %2655 = vtanh.f32 %v2498_v47 }
 0x8ab   :  { %v2652_v48 = vpop.eup %2651 }
 0x8ac   :  { %v1425_v49 = vadd.f32 1.0, %v2652_v48 }
 0x8ae   :  { %2657 = vrcp.f32 %v1425_v49 }
 0x8af   :  { %2659 = vtanh.f32 %v2512_v50 }
 0x8b0   :  { %v2654_v52 = vpop.eup %2653 }
 0x8b1   :  { %v1447_v55 = vadd.f32 1.0, %v2654_v52  ;;  %v2656_v56 = vpop.eup %2655 }
 0x8b3   :  { %2661 = vrcp.f32 %v1447_v55 }
 0x8b4   :  { %2663 = vpow2.f32 %v2182_v63 }
 0x8b5   :  { %2665 = vpow2.f32 %v2184_v1 }
 0x8b8   :  { %v2658_v57 = vpop.eup %2657 }
 0x8b9   :  { %v1436_v59 = vmul.f32 %v2658_v57, %v2656_v56  ;;  %v2660_v60 = vpop.eup %2659  ;;  %v1435_v10 = vmul.f32 %v2658_v57, %v3257_v17 }
 0x8bb   :  { %1438 = vrot.lane.b32.xlu0 %v1436_v59, %s2748_s4 }
 0x8bd   :  { %v2662_v61 = vpop.eup %2661 }
 0x8be   :  { %v1458_v62 = vmul.f32 %v2662_v61, %v2660_v60  ;;  %v2664_v2 = vpop.eup %2663  ;;  %v1457_v9 = vmul.f32 %v2662_v61, %v3261_v21  ;;  %v2185_v21 = vld [vmem:[%s3451_s5 + $0x20] sm:$0xff] }
 0x8bf   :  { %v1432_v7 = vadd.f32 1.0, %v2664_v2  ;;  %v2666_v15 = vpop.eup %2665 }
 0x8c0   :  { %1460 = vrot.lane.b32.xlu1 %v1458_v62, %s2748_s4  ;;  %v1454_v20 = vadd.f32 1.0, %v2666_v15 }
 0x8c1   :  { %2667 = vrcp.f32 %v1432_v7 }
 0x8cb   :  { %v2668_v14 = vpop.eup %2667 }
 0x92d   :  { %v1439_v18 = vpop.permute.xlu0 %1438 }
 0x92e   :  { %v3307_v6 = vadd.f32 %v1439_v18, %v1435_v10 }
 0x930   :  { %2669 = vtanh.f32 %v3307_v6 }
 0x931   :  { %2671 = vrcp.f32 %v1454_v20 }
 0x932   :  { %v1461_v11 = vpop.permute.xlu1 %1460 }
 0x933   :  { %v3311_v23 = vadd.f32 %v1461_v11, %v1457_v9 }
 0x935   :  { %2673 = vtanh.f32 %v3311_v23 }
 0x93a   :  { %v2670_v16 = vpop.eup %2669 }
 0x93b   :  { %v1443_v24 = vmul.f32 %v2670_v16, %v2668_v14  ;;  %v2672_v17 = vpop.eup %2671 }
 0x93d   :  { %1468 = vrot.lane.b32.xlu0 %v1443_v24, %s2748_s4 }
 0x93f   :  { %v2674_v19 = vpop.eup %2673 }
 0x940   :  { %v1465_v25 = vmul.f32 %v2674_v19, %v2672_v17 }
 0x942   :  { %1475 = vrot.lane.b32.xlu1 %v1465_v25, %s2748_s4 }
 0x9af   :  { %v1469_v26 = vpop.permute.xlu0 %1468 }
 0x9b0   :  { %v1471_v28 = vadd.f32 %v2185_v21, %v1469_v26  ;;  %2189 = vmatmul.mubr.msk.f32.vlgmr.msra.gmra.mrb[10].mxu0 %vm349_vm1, %v1469_v26 }
 0x9b1   :  { %2428 = vmatpush1.bf16.msra.mxu0 %v2857_v35  ;;  %1762 = vmatprep.mubr.f32.mxu0 %v2747_v3 }
 0x9b2   :  { %2186 = vst.msk [vmem:[%s3451_s5 + $0x20] sm:$0xff] %vm349_vm1, %v1471_v28  ;;  %2430 = vmatprep.subr.bf16.mxu0 %v2875_v41 }
 0x9b4   :  { %v1476_v31 = vpop.permute.xlu1 %1475 }
 0x9b5   :  { %v1478_v33 = vadd.f32 %v2187_v32, %v1476_v31  ;;  %2190 = vmatmul.mubr.msk.f32.vlgmr.msra.gmra.mrb[4].mxu1 %vm349_vm1, %v1476_v31  ;;  %2432 = vmatpush1.bf16.msra.mxu0 %v2908_v51  ;;  %v2197_v31 = vld [vmem:[%s3451_s5 + $0x10] sm:$0xff] }
 0x9b6   :  { %2444 = vmatpush1.bf16.msra.mxu1 %v2863_v37  ;;  %2434 = vmatprep.subr.bf16.mxu0 %v2917_v54 }
 0x9b7   :  { %2188 = vst.msk [vmem:[%s3451_s5 + $0x18] sm:$0xff] %vm349_vm1, %v1478_v33  ;;  %2446 = vmatprep.subr.bf16.mxu1 %v2887_v45  ;;  %1837 = vmatprep.mubr.f32.mxu1 %v2747_v3 }
 0x9b9   :  { %2436 = vmatpush1.bf16.msra.mxu0 %v2951_v0 }
 0x9ba   :  { %2448 = vmatpush1.bf16.msra.mxu1 %v2915_v53  ;;  %2438 = vmatprep.subr.bf16.mxu0 %v2963_v5 }
 0x9bb   :  { %2450 = vmatprep.subr.bf16.mxu1 %v2930_v58 }
 0x9bd   :  { %2440 = vmatpush1.bf16.msra.mxu0 %v2988_v12 }
 0x9be   :  { %2452 = vmatpush1.bf16.msra.mxu1 %v2961_v4  ;;  %2458 = vmatprep.subr.bf16.mxu0 %v2841_v29 }
 0x9bf   :  { %2454 = vmatprep.subr.bf16.mxu1 %v2973_v8 }
 0x9c2   :  { %2456 = vmatpush1.bf16.msra.mxu1 %v2992_v13 }
 0x9c3   :  { %2474 = vmatprep.subr.bf16.mxu1 %v2843_v30 }
 0xa83   :  { %v1552_v34 = vpop.f32.mrb[10].mxu0 }
 0xa84   :  { %v2499_v36 = vadd.f32 %v1552_v34, %v3054_v22  ;;  %v1554_v39 = vpop.f32.mrb[11].mxu0 }
 0xa85   :  { %v2500_v29 = vadd.f32 %v1554_v39, %v3060_v38 }
 0xa86   :  { %v2191_v40 = vmul.f32 -1.442695, %v2499_v36 }
 0xa87   :  { %v2192_v62 = vmul.f32 -1.442695, %v2500_v29 }
 0xa88   :  { %2675 = vpow2.f32 %v2191_v40  ;;  %v1627_v43 = vpop.f32.mrb[4].mxu1 }
 0xa89   :  { %v2509_v44 = vadd.f32 %v1627_v43, %v3057_v27  ;;  %v1629_v46 = vpop.f32.mrb[5].mxu1 }
 0xa8a   :  { %v2510_v30 = vadd.f32 %v1629_v46, %v3063_v42 }
 0xa8b   :  { %v2193_v47 = vmul.f32 -1.442695, %v2509_v44 }
 0xa8c   :  { %v2194_v63 = vmul.f32 -1.442695, %v2510_v30 }
 0xa8d   :  { %2677 = vpow2.f32 %v2193_v47 }
 0xa8e   :  { %2679 = vtanh.f32 %v2500_v29 }
 0xa92   :  { %v2676_v48 = vpop.eup %2675 }
 0xa93   :  { %v1637_v49 = vadd.f32 1.0, %v2676_v48 }
 0xa95   :  { %2681 = vrcp.f32 %v1637_v49 }
 0xa96   :  { %2683 = vtanh.f32 %v2510_v30 }
 0xa97   :  { %v2678_v50 = vpop.eup %2677 }
 0xa98   :  { %v1659_v52 = vadd.f32 1.0, %v2678_v50  ;;  %v2680_v55 = vpop.eup %2679 }
 0xa9a   :  { %2685 = vrcp.f32 %v1659_v52 }
 0xa9b   :  { %2687 = vpow2.f32 %v2192_v62 }
 0xa9c   :  { %2689 = vpow2.f32 %v2194_v63 }
 0xa9f   :  { %v2682_v56 = vpop.eup %2681 }
 0xaa0   :  { %v1648_v57 = vmul.f32 %v2682_v56, %v2680_v55  ;;  %v2684_v59 = vpop.eup %2683  ;;  %v1647_v7 = vmul.f32 %v2682_v56, %v3307_v6 }
 0xaa2   :  { %1650 = vrot.lane.b32.xlu0 %v1648_v57, %s2748_s4 }
 0xaa4   :  { %v2686_v60 = vpop.eup %2685 }
 0xaa5   :  { %v1670_v61 = vmul.f32 %v2686_v60, %v2684_v59  ;;  %v2688_v1 = vpop.eup %2687  ;;  %v1669_v9 = vmul.f32 %v2686_v60, %v3311_v23  ;;  %v2195_v23 = vld [vmem:[%s3451_s5 + $0x28] sm:$0xff] }
 0xaa6   :  { %v1644_v2 = vadd.f32 1.0, %v2688_v1  ;;  %v2690_v10 = vpop.eup %2689  ;;  %v2205_v1 = vld [vmem:[%s3451_s5 + $0x30] sm:$0xff] }
 0xaa7   :  { %1672 = vrot.lane.b32.xlu1 %v1670_v61, %s2748_s4  ;;  %v1666_v20 = vadd.f32 1.0, %v2690_v10 }
 0xaa8   :  { %2691 = vrcp.f32 %v1644_v2 }
 0xab2   :  { %v2692_v16 = vpop.eup %2691 }
 0xb14   :  { %v1651_v15 = vpop.permute.xlu0 %1650 }
 0xb15   :  { %v3357_v18 = vadd.f32 %v1651_v15, %v1647_v7  ;;  %v2207_v15 = vld [vmem:[%s3451_s5 + $0x8] sm:$0xff] }
 0xb17   :  { %2693 = vtanh.f32 %v3357_v18 }
 0xb18   :  { %2695 = vrcp.f32 %v1666_v20 }
 0xb19   :  { %v1673_v11 = vpop.permute.xlu1 %1672 }
 0xb1a   :  { %v3361_v14 = vadd.f32 %v1673_v11, %v1669_v9 }
 0xb1c   :  { %2697 = vtanh.f32 %v3361_v14 }
 0xb21   :  { %v2694_v24 = vpop.eup %2693 }
 0xb22   :  { %v1655_v17 = vmul.f32 %v2694_v24, %v2692_v16  ;;  %v2696_v6 = vpop.eup %2695 }
 0xb24   :  { %1680 = vrot.lane.b32.xlu0 %v1655_v17, %s2748_s4 }
 0xb26   :  { %v2698_v19 = vpop.eup %2697 }
 0xb27   :  { %v1677_v25 = vmul.f32 %v2698_v19, %v2696_v6 }
 0xb29   :  { %1687 = vrot.lane.b32.xlu1 %v1677_v25, %s2748_s4 }
 0xb96   :  { %v1681_v21 = vpop.permute.xlu0 %1680 }
 0xb97   :  { %v1683_v26 = vadd.f32 %v2195_v23, %v1681_v21  ;;  %2199 = vmatmul.mubr.msk.f32.vlgmr.msra.gmra.mrb[12].mxu0 %vm349_vm1, %v1681_v21 }
 0xb98   :  { %2460 = vmatpush1.bf16.msra.mxu0 %v2857_v35  ;;  %1974 = vmatprep.mubr.f32.mxu0 %v2747_v3 }
 0xb99   :  { %2196 = vst.msk [vmem:[%s3451_s5 + $0x28] sm:$0xff] %vm349_vm1, %v1683_v26  ;;  %2462 = vmatprep.subr.bf16.mxu0 %v2875_v41 }
 0xb9b   :  { %v1688_v28 = vpop.permute.xlu1 %1687 }
 0xb9c   :  { %v1690_v32 = vadd.f32 %v2197_v31, %v1688_v28  ;;  %2200 = vmatmul.mubr.msk.f32.vlgmr.msra.gmra.mrb[2].mxu1 %vm349_vm1, %v1688_v28  ;;  %2464 = vmatpush1.bf16.msra.mxu0 %v2908_v51 }
 0xb9d   :  { %2476 = vmatpush1.bf16.msra.mxu1 %v2863_v37  ;;  %2466 = vmatprep.subr.bf16.mxu0 %v2917_v54 }
 0xb9e   :  { %2198 = vst.msk [vmem:[%s3451_s5 + $0x10] sm:$0xff] %vm349_vm1, %v1690_v32  ;;  %2478 = vmatprep.subr.bf16.mxu1 %v2887_v45  ;;  %2049 = vmatprep.mubr.f32.mxu1 %v2747_v3 }
 0xba0   :  { %2468 = vmatpush1.bf16.msra.mxu0 %v2951_v0 }
 0xba1   :  { %2480 = vmatpush1.bf16.msra.mxu1 %v2915_v53  ;;  %2470 = vmatprep.subr.bf16.mxu0 %v2963_v5 }
 0xba2   :  { %2482 = vmatprep.subr.bf16.mxu1 %v2930_v58 }
 0xba4   :  { %2472 = vmatpush1.bf16.msra.mxu0 %v2988_v12 }
 0xba5   :  { %2484 = vmatpush1.bf16.msra.mxu1 %v2961_v4 }
 0xba6   :  { %2486 = vmatprep.subr.bf16.mxu1 %v2973_v8 }
 0xba9   :  { %2488 = vmatpush1.bf16.msra.mxu1 %v2992_v13 }
 0xc6a   :  { %v1764_v35 = vpop.f32.mrb[12].mxu0 }
 0xc6b   :  { %v2501_v37 = vadd.f32 %v1764_v35, %v3054_v22  ;;  %v1766_v3 = vpop.f32.mrb[13].mxu0 }
 0xc6c   :  { %v2502_v58 = vadd.f32 %v1766_v3, %v3060_v38 }
 0xc6d   :  { %v2201_v41 = vmul.f32 -1.442695, %v2501_v37 }
 0xc6e   :  { %v2202_v43 = vmul.f32 -1.442695, %v2502_v58 }
 0xc6f   :  { %2699 = vpow2.f32 %v2201_v41  ;;  %v1839_v45 = vpop.f32.mrb[2].mxu1 }
 0xc70   :  { %v2507_v51 = vadd.f32 %v1839_v45, %v3057_v27  ;;  %v1841_v53 = vpop.f32.mrb[3].mxu1 }
 0xc71   :  { %v2508_v5 = vadd.f32 %v1841_v53, %v3063_v42 }
 0xc72   :  { %v2203_v54 = vmul.f32 -1.442695, %v2507_v51 }
 0xc73   :  { %v2204_v44 = vmul.f32 -1.442695, %v2508_v5 }
 0xc74   :  { %2701 = vpow2.f32 %v2203_v54 }
 0xc75   :  { %2703 = vtanh.f32 %v2502_v58 }
 0xc79   :  { %v2700_v0 = vpop.eup %2699 }
 0xc7a   :  { %v1849_v4 = vadd.f32 1.0, %v2700_v0 }
 0xc7c   :  { %2705 = vrcp.f32 %v1849_v4 }
 0xc7d   :  { %2707 = vtanh.f32 %v2508_v5 }
 0xc7e   :  { %v2702_v8 = vpop.eup %2701 }
 0xc7f   :  { %v1871_v12 = vadd.f32 1.0, %v2702_v8  ;;  %v2704_v13 = vpop.eup %2703 }
 0xc81   :  { %2709 = vrcp.f32 %v1871_v12 }
 0xc82   :  { %2711 = vpow2.f32 %v2202_v43 }
 0xc83   :  { %2713 = vpow2.f32 %v2204_v44  ;;  %v2109_v44 = vld [vmem:[%s3451_s5] sm:$0xff] }
 0xc86   :  { %v2706_v33 = vpop.eup %2705 }
 0xc87   :  { %v1860_v34 = vmul.f32 %v2706_v33, %v2704_v13  ;;  %v2708_v36 = vpop.eup %2707  ;;  %v1859_v29 = vmul.f32 %v2706_v33, %v3357_v18 }
 0xc89   :  { %1862 = vrot.lane.b32.xlu0 %v1860_v34, %s2748_s4 }
 0xc8b   :  { %v2710_v39 = vpop.eup %2709 }
 0xc8c   :  { %v1882_v40 = vmul.f32 %v2710_v39, %v2708_v36  ;;  %v2712_v46 = vpop.eup %2711  ;;  %v1881_v52 = vmul.f32 %v2710_v39, %v3361_v14  ;;  %v2215_v39 = vld [vmem:[%s3451_s5 + $0x38] sm:$0xff] }
 0xc8d   :  { %v1856_v47 = vadd.f32 1.0, %v2712_v46  ;;  %v2714_v48 = vpop.eup %2713 }
 0xc8e   :  { %1884 = vrot.lane.b32.xlu1 %v1882_v40, %s2748_s4  ;;  %v1878_v50 = vadd.f32 1.0, %v2714_v48 }
 0xc8f   :  { %2715 = vrcp.f32 %v1856_v47 }
 0xc99   :  { %v2716_v57 = vpop.eup %2715 }
 0xcfb   :  { %v1863_v49 = vpop.permute.xlu0 %1862 }
 0xcfc   :  { %v1865_v30 = vadd.f32 %v1863_v49, %v1859_v29 }
 0xcfe   :  { %2717 = vtanh.f32 %v1865_v30 }
 0xcff   :  { %2719 = vrcp.f32 %v1878_v50 }
 0xd00   :  { %v1885_v55 = vpop.permute.xlu1 %1884 }
 0xd01   :  { %v1887_v56 = vadd.f32 %v1885_v55, %v1881_v52 }
 0xd03   :  { %2721 = vtanh.f32 %v1887_v56 }
 0xd08   :  { %v2718_v59 = vpop.eup %2717 }
 0xd09   :  { %v1867_v60 = vmul.f32 %v2718_v59, %v2716_v57  ;;  %v2720_v61 = vpop.eup %2719 }
 0xd0b   :  { %1892 = vrot.lane.b32.xlu0 %v1867_v60, %s2748_s4 }
 0xd0d   :  { %v2722_v62 = vpop.eup %2721 }
 0xd0e   :  { %v1889_v63 = vmul.f32 %v2722_v62, %v2720_v61 }
 0xd10   :  { %1899 = vrot.lane.b32.xlu1 %v1889_v63, %s2748_s4 }
 0xd7d   :  { %v1893_v2 = vpop.permute.xlu0 %1892 }
 0xd7e   :  { %v1895_v7 = vadd.f32 %v2205_v1, %v1893_v2  ;;  %2209 = vmatmul.mubr.msk.f32.vlgmr.msra.gmra.mrb[14].mxu0 %vm349_vm1, %v1893_v2 }
 0xd80   :  { %2206 = vst.msk [vmem:[%s3451_s5 + $0x30] sm:$0xff] %vm349_vm1, %v1895_v7 }
 0xd82   :  { %v1900_v10 = vpop.permute.xlu1 %1899 }
 0xd83   :  { %v1902_v18 = vadd.f32 %v2207_v15, %v1900_v10  ;;  %2210 = vmatmul.mubr.msk.f32.vlgmr.msra.gmra.mrb[0].mxu1 %vm349_vm1, %v1900_v10 }
 0xd85   :  { %2208 = vst.msk [vmem:[%s3451_s5 + $0x8] sm:$0xff] %vm349_vm1, %v1902_v18 }
 0xe51   :  { %v1976_v20 = vpop.f32.mrb[14].mxu0 }
 0xe52   :  { %v2503_v9 = vadd.f32 %v1976_v20, %v3054_v22  ;;  %v1978_v11 = vpop.f32.mrb[15].mxu0 }
 0xe53   :  { %v2504_v19 = vadd.f32 %v1978_v11, %v3060_v38 }
 0xe54   :  { %v2211_v14 = vmul.f32 -1.442695, %v2503_v9 }
 0xe55   :  { %v2212_v38 = vmul.f32 -1.442695, %v2504_v19 }
 0xe56   :  { %2723 = vpow2.f32 %v2211_v14  ;;  %v2051_v16 = vpop.f32.mrb[0].mxu1 }
 0xe57   :  { %v2505_v24 = vadd.f32 %v2051_v16, %v3057_v27  ;;  %v2053_v17 = vpop.f32.mrb[1].mxu1 }
 0xe58   :  { %v2506_v21 = vadd.f32 %v2053_v17, %v3063_v42 }
 0xe59   :  { %v2213_v6 = vmul.f32 -1.442695, %v2505_v24 }
 0xe5a   :  { %v2214_v3 = vmul.f32 -1.442695, %v2506_v21 }
 0xe5b   :  { %2725 = vpow2.f32 %v2213_v6 }
 0xe5c   :  { %2727 = vtanh.f32 %v2504_v19 }
 0xe60   :  { %v2724_v25 = vpop.eup %2723 }
 0xe61   :  { %v2061_v23 = vadd.f32 1.0, %v2724_v25 }
 0xe63   :  { %2729 = vrcp.f32 %v2061_v23 }
 0xe64   :  { %2731 = vtanh.f32 %v2506_v21 }
 0xe65   :  { %v2726_v26 = vpop.eup %2725 }
 0xe66   :  { %v2083_v28 = vadd.f32 1.0, %v2726_v26  ;;  %v2728_v22 = vpop.eup %2727 }
 0xe68   :  { %2733 = vrcp.f32 %v2083_v28 }
 0xe69   :  { %2735 = vpow2.f32 %v2212_v38 }
 0xe6a   :  { %2737 = vpow2.f32 %v2214_v3 }
 0xe6d   :  { %v2730_v31 = vpop.eup %2729 }
 0xe6e   :  { %v2072_v32 = vmul.f32 %v2730_v31, %v2728_v22  ;;  %v2732_v27 = vpop.eup %2731  ;;  %v2071_v45 = vmul.f32 %v2730_v31, %v1865_v30 }
 0xe70   :  { %2074 = vrot.lane.b32.xlu0 %v2072_v32, %s2748_s4 }
 0xe72   :  { %v2734_v35 = vpop.eup %2733 }
 0xe73   :  { %v2094_v37 = vmul.f32 %v2734_v35, %v2732_v27  ;;  %v2736_v41 = vpop.eup %2735  ;;  %v2093_v0 = vmul.f32 %v2734_v35, %v1887_v56 }
 0xe74   :  { %v2068_v42 = vadd.f32 1.0, %v2736_v41  ;;  %v2738_v51 = vpop.eup %2737 }
 0xe75   :  { %2096 = vrot.lane.b32.xlu1 %v2094_v37, %s2748_s4  ;;  %v2090_v58 = vadd.f32 1.0, %v2738_v51 }
 0xe76   :  { %2739 = vrcp.f32 %v2068_v42 }
 0xe80   :  { %v2740_v8 = vpop.eup %2739 }
 0xee2   :  { %v2075_v53 = vpop.permute.xlu0 %2074 }
 0xee3   :  { %v2077_v54 = vadd.f32 %v2075_v53, %v2071_v45 }
 0xee5   :  { %2741 = vtanh.f32 %v2077_v54 }
 0xee6   :  { %2743 = vrcp.f32 %v2090_v58 }
 0xee7   :  { %v2097_v4 = vpop.permute.xlu1 %2096 }
 0xee8   :  { %v2099_v5 = vadd.f32 %v2097_v4, %v2093_v0 }
 0xeea   :  { %2745 = vtanh.f32 %v2099_v5 }
 0xeef   :  { %v2742_v12 = vpop.eup %2741 }
 0xef0   :  { %v2079_v13 = vmul.f32 %v2742_v12, %v2740_v8  ;;  %v2744_v33 = vpop.eup %2743 }
 0xef2   :  { %2104 = vrot.lane.b32.xlu0 %v2079_v13, %s2748_s4 }
 0xef4   :  { %v2746_v34 = vpop.eup %2745 }
 0xef5   :  { %v2101_v36 = vmul.f32 %v2746_v34, %v2744_v33 }
 0xef7   :  { %2111 = vrot.lane.b32.xlu1 %v2101_v36, %s2748_s4 }
 0xf64   :  { %v2105_v40 = vpop.permute.xlu0 %2104 }
 0xf65   :  { %v2107_v43 = vadd.f32 %v2215_v39, %v2105_v40 }
 0xf67   :  { %2216 = vst.msk [vmem:[%s3451_s5 + $0x38] sm:$0xff] %vm349_vm1, %v2107_v43 }
 0xf69   :  { %v2112_v46 = vpop.permute.xlu1 %2111 }
 0xf6a   :  { %v2114_v47 = vadd.f32 %v2112_v46, %v2109_v44 }
 0xf6c   :  { %2115 = vst.msk [vmem:[%s3451_s5] sm:$0xff] %vm349_vm1, %v2114_v47 }

</bundles_post_ra>
